<compile_context>
chip_gen: v6e
topology: v6e:2x2x1
jax: 0.10.0
libtpu: 0.0.40
codegen_flags: <defaults>
</compile_context>

<pallas_src>
import jax
import jax.numpy as jnp
from jax.experimental import pallas as pl
from jax.experimental.pallas import tpu as pltpu


# ----------------------------------------------------------------------------
# Fused kernel: stem conv + basic block (2 convs, residual) + global avg pool
# ----------------------------------------------------------------------------
def _make_fused_kernel(H, W, F):
    Hp = H + 2            # padded rows   (1-px halo top/bottom)
    Wpad = W + 16         # padded cols: interior lives at column offset 8 so the
    WOFF = 8              # interior store is sublane-aligned; halo cols 7 / 8+W
    HW = H * W

    def kernel(x_ref, w0_ref, w1_ref, w2_ref, s_ref, b_ref, o_ref, xp_ref):
        # Folded BN params, rows: [stem, conv1, conv2]  (f32, stays on VPU).
        s = s_ref[...]                      # (3, F)
        b = b_ref[...]                      # (3, F)

        # Zero the padded scratch once; only the interior is rewritten per conv,
        # so the 1-px halo stays zero (== conv padding=1 semantics).
        xp_ref[...] = jnp.zeros((Hp, Wpad, F), jnp.float32)

        def conv3x3(x_hwc, w_ref):
            # x_hwc: (H, W, F) f32 activation; w_ref: (9*F, F) bf16 weights.
            # Aligned interior store (row offset 1 is an untiled dim, col offset
            # 8 is sublane-aligned for f32).
            xp_ref[1:H + 1, WOFF:WOFF + W, :] = x_hwc
            # im2col slab: 9 shifted HxW views concatenated on the lane axis,
            # then a single deep MXU matmul with K = 9*F.
            cols = [
                xp_ref[kh:kh + H, WOFF - 1 + kw:WOFF - 1 + kw + W, :].reshape(HW, F)
                for kh in range(3)
                for kw in range(3)
            ]
            patch = jnp.concatenate(cols, axis=-1).astype(jnp.bfloat16)   # (HW, 9F)
            return jnp.dot(patch, w_ref[...],
                           preferred_element_type=jnp.float32)            # (HW, F)

        x = x_ref[0]                        # (H, W, F) f32 (stem chans zero-padded)

        # stem: conv -> BN -> ReLU
        h = conv3x3(x, w0_ref)
        h = jnp.maximum(h * s[0:1] + b[0:1], 0.0)                         # (HW, F)

        # basic block: conv -> BN -> ReLU -> conv -> BN -> (+identity) -> ReLU
        y = conv3x3(h.reshape(H, W, F), w1_ref)
        y = jnp.maximum(y * s[1:2] + b[1:2], 0.0)
        y = conv3x3(y.reshape(H, W, F), w2_ref)
        y = jnp.maximum(y * s[2:3] + b[2:3] + h, 0.0)

        # global average pool over H*W -> (1, 1, F) features
        o_ref[...] = jnp.mean(y, axis=0, keepdims=True).reshape(1, 1, F)

    return kernel


# ----------------------------------------------------------------------------
# Wrapper (pallas_call plumbing)
# ----------------------------------------------------------------------------
def first_model_forward(x_nchw, params):
    """ResNet-style featMod forward. Input NCHW (PyTorch convention) -> (B, F)."""
    x = jnp.transpose(x_nchw, (0, 2, 3, 1)).astype(jnp.float32)   # NCHW -> NHWC
    B, H, W, Cin = x.shape
    F = params["w1"].shape[-1]
    assert Cin <= F

    # Zero-pad stem input channels to F so all three convs share one shape.
    if Cin < F:
        x = jnp.pad(x, ((0, 0), (0, 0), (0, 0), (0, F - Cin)))

    def flat_w(w):
        ci = w.shape[2]
        if ci < F:                                  # zero rows for padded channels
            w = jnp.pad(w, ((0, 0), (0, 0), (0, F - ci), (0, 0)))
        # (3, 3, F, F) -> (9*F, F); row order = (kh, kw, cin), which matches the
        # kernel's im2col slab column order.  bf16 halves DMA/VMEM bytes.
        return w.reshape(9 * F, F).astype(jnp.bfloat16)

    w0 = flat_w(params["w_stem"])
    w1 = flat_w(params["w1"])
    w2 = flat_w(params["w2"])
    scales = jnp.stack([params["s_stem"], params["s1"], params["s2"]]).astype(jnp.float32)
    biases = jnp.stack([params["b_stem"], params["b1"], params["b2"]]).astype(jnp.float32)

    out = pl.pallas_call(
        _make_fused_kernel(H, W, F),
        out_shape=jax.ShapeDtypeStruct((B, 1, F), jnp.float32),
        grid=(B,),
        in_specs=[
            pl.BlockSpec((1, H, W, F), lambda bb: (bb, 0, 0, 0)),   # activations
            pl.BlockSpec((9 * F, F), lambda bb: (0, 0)),            # w_stem
            pl.BlockSpec((9 * F, F), lambda bb: (0, 0)),            # w1
            pl.BlockSpec((9 * F, F), lambda bb: (0, 0)),            # w2
            pl.BlockSpec((3, F), lambda bb: (0, 0)),                # BN scales
            pl.BlockSpec((3, F), lambda bb: (0, 0)),                # BN biases
        ],
        out_specs=pl.BlockSpec((1, 1, F), lambda bb: (bb, 0, 0)),
        scratch_shapes=[pltpu.VMEM((H + 2, W + 16, F), jnp.float32)],  # padded slab
        compiler_params=pltpu.CompilerParams(dimension_semantics=("parallel",)),
    )(x, w0, w1, w2, scales, biases)
    return out[:, 0, :]


# ----------------------------------------------------------------------------
# Parameter init (deterministic, synthetic)
# ----------------------------------------------------------------------------
def _fold_bn(gamma, beta, mean, var, eps=1e-5):
    scale = gamma / jnp.sqrt(var + eps)
    bias = beta - mean * scale
    return scale, bias


def init_params(key, cin, feat):
    def conv_w(k, ci, co):
        fan_in = 3 * 3 * ci
        return jax.random.normal(k, (3, 3, ci, co), jnp.float32) * jnp.sqrt(2.0 / fan_in)

    def bn(k, c):
        k1, k2, k3, k4 = jax.random.split(k, 4)
        gamma = 1.0 + 0.1 * jax.random.normal(k1, (c,), jnp.float32)
        beta = 0.1 * jax.random.normal(k2, (c,), jnp.float32)
        mean = 0.1 * jax.random.normal(k3, (c,), jnp.float32)
        var = 1.0 + 0.5 * jnp.abs(jax.random.normal(k4, (c,), jnp.float32))
        return _fold_bn(gamma, beta, mean, var)

    ks = jax.random.split(key, 6)
    p = {}
    p["w_stem"] = conv_w(ks[0], cin, feat)
    p["s_stem"], p["b_stem"] = bn(ks[1], feat)
    p["w1"] = conv_w(ks[2], feat, feat)
    p["s1"], p["b1"] = bn(ks[3], feat)
    p["w2"] = conv_w(ks[4], feat, feat)
    p["s2"], p["b2"] = bn(ks[5], feat)
    return p


# ----------------------------------------------------------------------------
if __name__ == "__main__":
    key = jax.random.PRNGKey(0)
    k_x, k_p = jax.random.split(key)

    B, Cin, H, W = 2, 4, 16, 16
    FEAT = 32

    x = jax.random.normal(k_x, (B, Cin, H, W), jnp.float32)   # NCHW, like PyTorch
    params = init_params(k_p, Cin, FEAT)

    feats = first_model_forward(x, params)
    feats = jax.block_until_ready(feats)

    assert feats.shape == (B, FEAT), feats.shape
    assert jnp.all(jnp.isfinite(feats))
    print("KERNEL_OK")
</pallas_src>

<mosaic_0001>
module attributes {stable_mosaic.version = 11 : i64} {
  func.func @kernel(%arg0: i32, %arg1: memref<1x16x16x32xf32, #tpu.memory_space<vmem>>, %arg2: memref<288x32xbf16, #tpu.memory_space<vmem>>, %arg3: memref<288x32xbf16, #tpu.memory_space<vmem>>, %arg4: memref<288x32xbf16, #tpu.memory_space<vmem>>, %arg5: memref<3x32xf32, #tpu.memory_space<vmem>>, %arg6: memref<3x32xf32, #tpu.memory_space<vmem>>, %arg7: memref<1x1x32xf32, #tpu.memory_space<vmem>>, %arg8: memref<18x32x32xf32, #tpu.memory_space<vmem>>) attributes {dimension_semantics = [#tpu.dimension_semantics<parallel>], iteration_bounds = array<i64: 2>, scalar_prefetch = 0 : i64, scratch_operands = 1 : i64, tpu.core_type = #tpu.core_type<tc>, window_params = [{transform_indices = @transform_0, window_bounds = array<i64: 1, 16, 16, 32>}, {pipeline_mode = #tpu.pipeline_mode<synchronous>, transform_indices = @transform_1, window_bounds = array<i64: 288, 32>}, {pipeline_mode = #tpu.pipeline_mode<synchronous>, transform_indices = @transform_2, window_bounds = array<i64: 288, 32>}, {pipeline_mode = #tpu.pipeline_mode<synchronous>, transform_indices = @transform_3, window_bounds = array<i64: 288, 32>}, {pipeline_mode = #tpu.pipeline_mode<synchronous>, transform_indices = @transform_4, window_bounds = array<i64: 3, 32>}, {pipeline_mode = #tpu.pipeline_mode<synchronous>, transform_indices = @transform_5, window_bounds = array<i64: 3, 32>}, {transform_indices = @transform_6, window_bounds = array<i64: 1, 1, 32>}]} {
    %c0 = arith.constant 0 : index
    %c0_0 = arith.constant 0 : index
    %0 = vector.load %arg5[%c0, %c0_0] : memref<3x32xf32, #tpu.memory_space<vmem>>, vector<3x32xf32>
    %c0_1 = arith.constant 0 : index
    %c0_2 = arith.constant 0 : index
    %1 = vector.load %arg6[%c0_1, %c0_2] : memref<3x32xf32, #tpu.memory_space<vmem>>, vector<3x32xf32>
    %cst = arith.constant 0.000000e+00 : f32
    %2 = vector.broadcast %cst : f32 to vector<18x32x32xf32>
    %c0_3 = arith.constant 0 : index
    %c0_4 = arith.constant 0 : index
    %c0_5 = arith.constant 0 : index
    %3 = vector.load %arg8[%c0_3, %c0_4, %c0_5] : memref<18x32x32xf32, #tpu.memory_space<vmem>>, vector<18x32x32xf32>
    tpu.vector_store %arg8[%c0_3, %c0_4, %c0_5], %2 {strides = array<i32>} : memref<18x32x32xf32, #tpu.memory_space<vmem>>, vector<18x32x32xf32>,
    %c0_6 = arith.constant 0 : index
    %c0_7 = arith.constant 0 : index
    %c0_8 = arith.constant 0 : index
    %c0_9 = arith.constant 0 : index
    %4 = vector.load %arg1[%c0_6, %c0_7, %c0_8, %c0_9] : memref<1x16x16x32xf32, #tpu.memory_space<vmem>>, vector<1x16x16x32xf32>
    %5 = vector.shape_cast %4 : vector<1x16x16x32xf32> to vector<16x16x32xf32>
    %c1 = arith.constant 1 : index
    %c8 = arith.constant 8 : index
    %c0_10 = arith.constant 0 : index
    %6 = vector.load %arg8[%c1, %c8, %c0_10] : memref<18x32x32xf32, #tpu.memory_space<vmem>>, vector<16x16x32xf32>
    tpu.vector_store %arg8[%c1, %c8, %c0_10], %5 {strides = array<i32>} : memref<18x32x32xf32, #tpu.memory_space<vmem>>, vector<16x16x32xf32>,
    %c0_11 = arith.constant 0 : index
    %c7 = arith.constant 7 : index
    %c0_12 = arith.constant 0 : index
    %7 = vector.load %arg8[%c0_11, %c7, %c0_12] : memref<18x32x32xf32, #tpu.memory_space<vmem>>, vector<16x16x32xf32>
    %8 = vector.shape_cast %7 : vector<16x16x32xf32> to vector<256x32xf32>
    %c0_13 = arith.constant 0 : index
    %c8_14 = arith.constant 8 : index
    %c0_15 = arith.constant 0 : index
    %9 = vector.load %arg8[%c0_13, %c8_14, %c0_15] : memref<18x32x32xf32, #tpu.memory_space<vmem>>, vector<16x16x32xf32>
    %10 = vector.shape_cast %9 : vector<16x16x32xf32> to vector<256x32xf32>
    %c0_16 = arith.constant 0 : index
    %c9 = arith.constant 9 : index
    %c0_17 = arith.constant 0 : index
    %11 = vector.load %arg8[%c0_16, %c9, %c0_17] : memref<18x32x32xf32, #tpu.memory_space<vmem>>, vector<16x16x32xf32>
    %12 = vector.shape_cast %11 : vector<16x16x32xf32> to vector<256x32xf32>
    %c1_18 = arith.constant 1 : index
    %c7_19 = arith.constant 7 : index
    %c0_20 = arith.constant 0 : index
    %13 = vector.load %arg8[%c1_18, %c7_19, %c0_20] : memref<18x32x32xf32, #tpu.memory_space<vmem>>, vector<16x16x32xf32>
    %14 = vector.shape_cast %13 : vector<16x16x32xf32> to vector<256x32xf32>
    %c1_21 = arith.constant 1 : index
    %c8_22 = arith.constant 8 : index
    %c0_23 = arith.constant 0 : index
    %15 = vector.load %arg8[%c1_21, %c8_22, %c0_23] : memref<18x32x32xf32, #tpu.memory_space<vmem>>, vector<16x16x32xf32>
    %16 = vector.shape_cast %15 : vector<16x16x32xf32> to vector<256x32xf32>
    %c1_24 = arith.constant 1 : index
    %c9_25 = arith.constant 9 : index
    %c0_26 = arith.constant 0 : index
    %17 = vector.load %arg8[%c1_24, %c9_25, %c0_26] : memref<18x32x32xf32, #tpu.memory_space<vmem>>, vector<16x16x32xf32>
    %18 = vector.shape_cast %17 : vector<16x16x32xf32> to vector<256x32xf32>
    %c2 = arith.constant 2 : index
    %c7_27 = arith.constant 7 : index
    %c0_28 = arith.constant 0 : index
    %19 = vector.load %arg8[%c2, %c7_27, %c0_28] : memref<18x32x32xf32, #tpu.memory_space<vmem>>, vector<16x16x32xf32>
    %20 = vector.shape_cast %19 : vector<16x16x32xf32> to vector<256x32xf32>
    %c2_29 = arith.constant 2 : index
    %c8_30 = arith.constant 8 : index
    %c0_31 = arith.constant 0 : index
    %21 = vector.load %arg8[%c2_29, %c8_30, %c0_31] : memref<18x32x32xf32, #tpu.memory_space<vmem>>, vector<16x16x32xf32>
    %22 = vector.shape_cast %21 : vector<16x16x32xf32> to vector<256x32xf32>
    %c2_32 = arith.constant 2 : index
    %c9_33 = arith.constant 9 : index
    %c0_34 = arith.constant 0 : index
    %23 = vector.load %arg8[%c2_32, %c9_33, %c0_34] : memref<18x32x32xf32, #tpu.memory_space<vmem>>, vector<16x16x32xf32>
    %24 = vector.shape_cast %23 : vector<16x16x32xf32> to vector<256x32xf32>
    %25 = tpu.concatenate %8, %10, %12, %14, %16, %18, %20, %22, %24 in 1 : vector<256x32xf32>, vector<256x32xf32>, vector<256x32xf32>, vector<256x32xf32>, vector<256x32xf32>, vector<256x32xf32>, vector<256x32xf32>, vector<256x32xf32>, vector<256x32xf32> -> vector<256x288xf32>
    %26 = arith.truncf %25 : vector<256x288xf32> to vector<256x288xbf16>
    %c0_35 = arith.constant 0 : index
    %c0_36 = arith.constant 0 : index
    %27 = vector.load %arg2[%c0_35, %c0_36] : memref<288x32xbf16, #tpu.memory_space<vmem>>, vector<288x32xbf16>
    %cst_37 = arith.constant dense<0.000000e+00> : vector<256x32xf32>
    %28 = tpu.matmul %26, %27, %cst_37 {dimension_numbers = #tpu.dot_dimension_numbers<[1], [0], [0], [1], [0, 0, 1, 1], [], []>} : vector<256x288xbf16>, vector<288x32xbf16>, vector<256x32xf32> -> vector<256x32xf32>
    %29 = vector.extract_strided_slice %0 {offsets = [0, 0], sizes = [1, 32], strides = [1, 1]} : vector<3x32xf32> to vector<1x32xf32>
    %30 = vector.broadcast %29 : vector<1x32xf32> to vector<256x32xf32>
    %31 = arith.mulf %28, %30 : vector<256x32xf32>
    %32 = vector.extract_strided_slice %1 {offsets = [0, 0], sizes = [1, 32], strides = [1, 1]} : vector<3x32xf32> to vector<1x32xf32>
    %33 = vector.broadcast %32 : vector<1x32xf32> to vector<256x32xf32>
    %34 = arith.addf %31, %33 : vector<256x32xf32>
    %cst_38 = arith.constant 0.000000e+00 : f32
    %35 = vector.broadcast %cst_38 : f32 to vector<256x32xf32>
    %36 = arith.maximumf %34, %35 : vector<256x32xf32>
    %37 = vector.shape_cast %36 : vector<256x32xf32> to vector<16x16x32xf32>
    %c1_39 = arith.constant 1 : index
    %c8_40 = arith.constant 8 : index
    %c0_41 = arith.constant 0 : index
    %38 = vector.load %arg8[%c1_39, %c8_40, %c0_41] : memref<18x32x32xf32, #tpu.memory_space<vmem>>, vector<16x16x32xf32>
    tpu.vector_store %arg8[%c1_39, %c8_40, %c0_41], %37 {strides = array<i32>} : memref<18x32x32xf32, #tpu.memory_space<vmem>>, vector<16x16x32xf32>,
    %c0_42 = arith.constant 0 : index
    %c7_43 = arith.constant 7 : index
    %c0_44 = arith.constant 0 : index
    %39 = vector.load %arg8[%c0_42, %c7_43, %c0_44] : memref<18x32x32xf32, #tpu.memory_space<vmem>>, vector<16x16x32xf32>
    %40 = vector.shape_cast %39 : vector<16x16x32xf32> to vector<256x32xf32>
    %c0_45 = arith.constant 0 : index
    %c8_46 = arith.constant 8 : index
    %c0_47 = arith.constant 0 : index
    %41 = vector.load %arg8[%c0_45, %c8_46, %c0_47] : memref<18x32x32xf32, #tpu.memory_space<vmem>>, vector<16x16x32xf32>
    %42 = vector.shape_cast %41 : vector<16x16x32xf32> to vector<256x32xf32>
    %c0_48 = arith.constant 0 : index
    %c9_49 = arith.constant 9 : index
    %c0_50 = arith.constant 0 : index
    %43 = vector.load %arg8[%c0_48, %c9_49, %c0_50] : memref<18x32x32xf32, #tpu.memory_space<vmem>>, vector<16x16x32xf32>
    %44 = vector.shape_cast %43 : vector<16x16x32xf32> to vector<256x32xf32>
    %c1_51 = arith.constant 1 : index
    %c7_52 = arith.constant 7 : index
    %c0_53 = arith.constant 0 : index
    %45 = vector.load %arg8[%c1_51, %c7_52, %c0_53] : memref<18x32x32xf32, #tpu.memory_space<vmem>>, vector<16x16x32xf32>
    %46 = vector.shape_cast %45 : vector<16x16x32xf32> to vector<256x32xf32>
    %c1_54 = arith.constant 1 : index
    %c8_55 = arith.constant 8 : index
    %c0_56 = arith.constant 0 : index
    %47 = vector.load %arg8[%c1_54, %c8_55, %c0_56] : memref<18x32x32xf32, #tpu.memory_space<vmem>>, vector<16x16x32xf32>
    %48 = vector.shape_cast %47 : vector<16x16x32xf32> to vector<256x32xf32>
    %c1_57 = arith.constant 1 : index
    %c9_58 = arith.constant 9 : index
    %c0_59 = arith.constant 0 : index
    %49 = vector.load %arg8[%c1_57, %c9_58, %c0_59] : memref<18x32x32xf32, #tpu.memory_space<vmem>>, vector<16x16x32xf32>
    %50 = vector.shape_cast %49 : vector<16x16x32xf32> to vector<256x32xf32>
    %c2_60 = arith.constant 2 : index
    %c7_61 = arith.constant 7 : index
    %c0_62 = arith.constant 0 : index
    %51 = vector.load %arg8[%c2_60, %c7_61, %c0_62] : memref<18x32x32xf32, #tpu.memory_space<vmem>>, vector<16x16x32xf32>
    %52 = vector.shape_cast %51 : vector<16x16x32xf32> to vector<256x32xf32>
    %c2_63 = arith.constant 2 : index
    %c8_64 = arith.constant 8 : index
    %c0_65 = arith.constant 0 : index
    %53 = vector.load %arg8[%c2_63, %c8_64, %c0_65] : memref<18x32x32xf32, #tpu.memory_space<vmem>>, vector<16x16x32xf32>
    %54 = vector.shape_cast %53 : vector<16x16x32xf32> to vector<256x32xf32>
    %c2_66 = arith.constant 2 : index
    %c9_67 = arith.constant 9 : index
    %c0_68 = arith.constant 0 : index
    %55 = vector.load %arg8[%c2_66, %c9_67, %c0_68] : memref<18x32x32xf32, #tpu.memory_space<vmem>>, vector<16x16x32xf32>
    %56 = vector.shape_cast %55 : vector<16x16x32xf32> to vector<256x32xf32>
    %57 = tpu.concatenate %40, %42, %44, %46, %48, %50, %52, %54, %56 in 1 : vector<256x32xf32>, vector<256x32xf32>, vector<256x32xf32>, vector<256x32xf32>, vector<256x32xf32>, vector<256x32xf32>, vector<256x32xf32>, vector<256x32xf32>, vector<256x32xf32> -> vector<256x288xf32>
    %58 = arith.truncf %57 : vector<256x288xf32> to vector<256x288xbf16>
    %c0_69 = arith.constant 0 : index
    %c0_70 = arith.constant 0 : index
    %59 = vector.load %arg3[%c0_69, %c0_70] : memref<288x32xbf16, #tpu.memory_space<vmem>>, vector<288x32xbf16>
    %cst_71 = arith.constant dense<0.000000e+00> : vector<256x32xf32>
    %60 = tpu.matmul %58, %59, %cst_71 {dimension_numbers = #tpu.dot_dimension_numbers<[1], [0], [0], [1], [0, 0, 1, 1], [], []>} : vector<256x288xbf16>, vector<288x32xbf16>, vector<256x32xf32> -> vector<256x32xf32>
    %61 = vector.extract_strided_slice %0 {offsets = [1, 0], sizes = [1, 32], strides = [1, 1]} : vector<3x32xf32> to vector<1x32xf32>
    %62 = vector.broadcast %61 : vector<1x32xf32> to vector<256x32xf32>
    %63 = arith.mulf %60, %62 : vector<256x32xf32>
    %64 = vector.extract_strided_slice %1 {offsets = [1, 0], sizes = [1, 32], strides = [1, 1]} : vector<3x32xf32> to vector<1x32xf32>
    %65 = vector.broadcast %64 : vector<1x32xf32> to vector<256x32xf32>
    %66 = arith.addf %63, %65 : vector<256x32xf32>
    %cst_72 = arith.constant 0.000000e+00 : f32
    %67 = vector.broadcast %cst_72 : f32 to vector<256x32xf32>
    %68 = arith.maximumf %66, %67 : vector<256x32xf32>
    %69 = vector.shape_cast %68 : vector<256x32xf32> to vector<16x16x32xf32>
    %c1_73 = arith.constant 1 : index
    %c8_74 = arith.constant 8 : index
    %c0_75 = arith.constant 0 : index
    %70 = vector.load %arg8[%c1_73, %c8_74, %c0_75] : memref<18x32x32xf32, #tpu.memory_space<vmem>>, vector<16x16x32xf32>
    tpu.vector_store %arg8[%c1_73, %c8_74, %c0_75], %69 {strides = array<i32>} : memref<18x32x32xf32, #tpu.memory_space<vmem>>, vector<16x16x32xf32>,
    %c0_76 = arith.constant 0 : index
    %c7_77 = arith.constant 7 : index
    %c0_78 = arith.constant 0 : index
    %71 = vector.load %arg8[%c0_76, %c7_77, %c0_78] : memref<18x32x32xf32, #tpu.memory_space<vmem>>, vector<16x16x32xf32>
    %72 = vector.shape_cast %71 : vector<16x16x32xf32> to vector<256x32xf32>
    %c0_79 = arith.constant 0 : index
    %c8_80 = arith.constant 8 : index
    %c0_81 = arith.constant 0 : index
    %73 = vector.load %arg8[%c0_79, %c8_80, %c0_81] : memref<18x32x32xf32, #tpu.memory_space<vmem>>, vector<16x16x32xf32>
    %74 = vector.shape_cast %73 : vector<16x16x32xf32> to vector<256x32xf32>
    %c0_82 = arith.constant 0 : index
    %c9_83 = arith.constant 9 : index
    %c0_84 = arith.constant 0 : index
    %75 = vector.load %arg8[%c0_82, %c9_83, %c0_84] : memref<18x32x32xf32, #tpu.memory_space<vmem>>, vector<16x16x32xf32>
    %76 = vector.shape_cast %75 : vector<16x16x32xf32> to vector<256x32xf32>
    %c1_85 = arith.constant 1 : index
    %c7_86 = arith.constant 7 : index
    %c0_87 = arith.constant 0 : index
    %77 = vector.load %arg8[%c1_85, %c7_86, %c0_87] : memref<18x32x32xf32, #tpu.memory_space<vmem>>, vector<16x16x32xf32>
    %78 = vector.shape_cast %77 : vector<16x16x32xf32> to vector<256x32xf32>
    %c1_88 = arith.constant 1 : index
    %c8_89 = arith.constant 8 : index
    %c0_90 = arith.constant 0 : index
    %79 = vector.load %arg8[%c1_88, %c8_89, %c0_90] : memref<18x32x32xf32, #tpu.memory_space<vmem>>, vector<16x16x32xf32>
    %80 = vector.shape_cast %79 : vector<16x16x32xf32> to vector<256x32xf32>
    %c1_91 = arith.constant 1 : index
    %c9_92 = arith.constant 9 : index
    %c0_93 = arith.constant 0 : index
    %81 = vector.load %arg8[%c1_91, %c9_92, %c0_93] : memref<18x32x32xf32, #tpu.memory_space<vmem>>, vector<16x16x32xf32>
    %82 = vector.shape_cast %81 : vector<16x16x32xf32> to vector<256x32xf32>
    %c2_94 = arith.constant 2 : index
    %c7_95 = arith.constant 7 : index
    %c0_96 = arith.constant 0 : index
    %83 = vector.load %arg8[%c2_94, %c7_95, %c0_96] : memref<18x32x32xf32, #tpu.memory_space<vmem>>, vector<16x16x32xf32>
    %84 = vector.shape_cast %83 : vector<16x16x32xf32> to vector<256x32xf32>
    %c2_97 = arith.constant 2 : index
    %c8_98 = arith.constant 8 : index
    %c0_99 = arith.constant 0 : index
    %85 = vector.load %arg8[%c2_97, %c8_98, %c0_99] : memref<18x32x32xf32, #tpu.memory_space<vmem>>, vector<16x16x32xf32>
    %86 = vector.shape_cast %85 : vector<16x16x32xf32> to vector<256x32xf32>
    %c2_100 = arith.constant 2 : index
    %c9_101 = arith.constant 9 : index
    %c0_102 = arith.constant 0 : index
    %87 = vector.load %arg8[%c2_100, %c9_101, %c0_102] : memref<18x32x32xf32, #tpu.memory_space<vmem>>, vector<16x16x32xf32>
    %88 = vector.shape_cast %87 : vector<16x16x32xf32> to vector<256x32xf32>
    %89 = tpu.concatenate %72, %74, %76, %78, %80, %82, %84, %86, %88 in 1 : vector<256x32xf32>, vector<256x32xf32>, vector<256x32xf32>, vector<256x32xf32>, vector<256x32xf32>, vector<256x32xf32>, vector<256x32xf32>, vector<256x32xf32>, vector<256x32xf32> -> vector<256x288xf32>
    %90 = arith.truncf %89 : vector<256x288xf32> to vector<256x288xbf16>
    %c0_103 = arith.constant 0 : index
    %c0_104 = arith.constant 0 : index
    %91 = vector.load %arg4[%c0_103, %c0_104] : memref<288x32xbf16, #tpu.memory_space<vmem>>, vector<288x32xbf16>
    %cst_105 = arith.constant dense<0.000000e+00> : vector<256x32xf32>
    %92 = tpu.matmul %90, %91, %cst_105 {dimension_numbers = #tpu.dot_dimension_numbers<[1], [0], [0], [1], [0, 0, 1, 1], [], []>} : vector<256x288xbf16>, vector<288x32xbf16>, vector<256x32xf32> -> vector<256x32xf32>
    %93 = vector.extract_strided_slice %0 {offsets = [2, 0], sizes = [1, 32], strides = [1, 1]} : vector<3x32xf32> to vector<1x32xf32>
    %94 = vector.broadcast %93 : vector<1x32xf32> to vector<256x32xf32>
    %95 = arith.mulf %92, %94 : vector<256x32xf32>
    %96 = vector.extract_strided_slice %1 {offsets = [2, 0], sizes = [1, 32], strides = [1, 1]} : vector<3x32xf32> to vector<1x32xf32>
    %97 = vector.broadcast %96 : vector<1x32xf32> to vector<256x32xf32>
    %98 = arith.addf %95, %97 : vector<256x32xf32>
    %99 = arith.addf %98, %36 : vector<256x32xf32>
    %cst_106 = arith.constant 0.000000e+00 : f32
    %100 = vector.broadcast %cst_106 : f32 to vector<256x32xf32>
    %101 = arith.maximumf %99, %100 : vector<256x32xf32>
    %cst_107 = arith.constant dense<0.000000e+00> : vector<32xf32>
    %102 = vector.multi_reduction <add>, %101, %cst_107 [0] : vector<256x32xf32> to vector<32xf32>
    %103 = vector.shape_cast %102 : vector<32xf32> to vector<1x32xf32>
    %cst_108 = arith.constant 2.560000e+02 : f32
    %104 = vector.broadcast %cst_108 : f32 to vector<1x32xf32>
    %105 = arith.divf %103, %104 : vector<1x32xf32>
    %106 = vector.shape_cast %105 : vector<1x32xf32> to vector<1x1x32xf32>
    %c0_109 = arith.constant 0 : index
    %c0_110 = arith.constant 0 : index
    %c0_111 = arith.constant 0 : index
    %107 = vector.load %arg7[%c0_109, %c0_110, %c0_111] : memref<1x1x32xf32, #tpu.memory_space<vmem>>, vector<1x1x32xf32>
    tpu.vector_store %arg7[%c0_109, %c0_110, %c0_111], %106 {strides = array<i32>} : memref<1x1x32xf32, #tpu.memory_space<vmem>>, vector<1x1x32xf32>,
    return
  }
  func.func @transform_0(%arg0: i32) -> (i32, i32, i32, i32) {
    %c0_i32 = arith.constant 0 : i32
    %c0_i32_0 = arith.constant 0 : i32
    %c0_i32_1 = arith.constant 0 : i32
    %c0_i32_2 = arith.constant 0 : i32
    return %arg0, %c0_i32, %c0_i32_0, %c0_i32_1 : i32, i32, i32, i32
  }
  func.func @transform_1(%arg0: i32) -> (i32, i32) {
    %c0_i32 = arith.constant 0 : i32
    %c0_i32_0 = arith.constant 0 : i32
    %c0_i32_1 = arith.constant 0 : i32
    return %c0_i32, %c0_i32_0 : i32, i32
  }
  func.func @transform_2(%arg0: i32) -> (i32, i32) {
    %c0_i32 = arith.constant 0 : i32
    %c0_i32_0 = arith.constant 0 : i32
    %c0_i32_1 = arith.constant 0 : i32
    return %c0_i32, %c0_i32_0 : i32, i32
  }
  func.func @transform_3(%arg0: i32) -> (i32, i32) {
    %c0_i32 = arith.constant 0 : i32
    %c0_i32_0 = arith.constant 0 : i32
    %c0_i32_1 = arith.constant 0 : i32
    return %c0_i32, %c0_i32_0 : i32, i32
  }
  func.func @transform_4(%arg0: i32) -> (i32, i32) {
    %c0_i32 = arith.constant 0 : i32
    %c0_i32_0 = arith.constant 0 : i32
    %c0_i32_1 = arith.constant 0 : i32
    return %c0_i32, %c0_i32_0 : i32, i32
  }
  func.func @transform_5(%arg0: i32) -> (i32, i32) {
    %c0_i32 = arith.constant 0 : i32
    %c0_i32_0 = arith.constant 0 : i32
    %c0_i32_1 = arith.constant 0 : i32
    return %c0_i32, %c0_i32_0 : i32, i32
  }
  func.func @transform_6(%arg0: i32) -> (i32, i32, i32) {
    %c0_i32 = arith.constant 0 : i32
    %c0_i32_0 = arith.constant 0 : i32
    %c0_i32_1 = arith.constant 0 : i32
    return %arg0, %c0_i32, %c0_i32_0 : i32, i32, i32
  }
}

</mosaic_0001>

<bundles_post_ra>
// kernel: tpu_custom_call.1
= control target key start
LH: loop header
LB: loop body
LE: loop exit
PB: predicated region body
PF: predicated region fallthrough
CT: control target
= control target key end

     0   :  { %11 = vsyncpa [#allocation4], 0  ;;  %s11722_s0 = inlined_call_operand.vmem [shape: f32[2,16,16,32], index: 0, kind: input, shape index: {}]   ;;  %s11723_s1 = inlined_call_operand.vmem [shape: bf16[288,32], index: 1, kind: input, shape index: {}]   ;;  %s11724_s2 = inlined_call_operand.vmem [shape: bf16[288,32], index: 2, kind: input, shape index: {}]   ;;  %s11725_s3 = inlined_call_operand.vmem [shape: bf16[288,32], index: 3, kind: input, shape index: {}]   ;;  %s11726_s4 = inlined_call_operand.vmem [shape: f32[3,32], index: 4, kind: input, shape index: {}]   ;;  %s11727_s5 = inlined_call_operand.vmem [shape: f32[3,32], index: 5, kind: input, shape index: {}]   ;;  %s11728_s6 = inlined_call_operand.hbm [shape: f32[2,1,32], index: 6, kind: output, shape index: {}]  }
   0x1   :  { %13 = vsyncpa [#allocation4 + $0x1], 0  ;;  %s8658_s21 = smov 0   ;;  %s8660_s22 = smov 0  }
   0x2   :  { %s8662_s23 = smov 0   ;;  %s8664_s24 = smov 0  }
   0x3 LB: > { %s8679_s25 = sadd.s32 4294967295, %s8616_s24   ;;  %s6372_s26 = sadd.s32 4294967294, %s8616_s24   ;;  %s8616_s24 = sphi %s8664_s24, %s11958_s24   ;;  %s8612_s23 = sphi %s8662_s23, %s11957_s23   ;;  %s8608_s22 = sphi %s8660_s22, %s11956_s22   ;;  %s8604_s21 = sphi %s8658_s21, %s11955_s21  }
   0x4   : > { %s8683_s27 = sadd.s32 1, %s8616_s24   ;;  %s157_s28 = sadd.s32 1, %s8612_s23 }
   0x5   : > { %s154_s29 = ssub.s32 %s8616_s24, %s8683_s27  ;;  %p167_p0 = scmp.ne.s32.totalorder %s8612_s23, %s8608_s22 }
   0x6   : > { %p155_p1 = scmp.eq.s32.totalorder %s154_s29, 0  ;;  %p168_p2 = scmp.eq.s32.totalorder %s8679_s25, 1 }
   0x7   : > { %p173_p3 = scmp.ne.s32.totalorder %s8608_s22, %s8604_s21  ;;  %p174_p4 = scmp.eq.s32.totalorder %s6372_s26, 1 }
   0x8   : > { %s8694_s30 = scalar_select %p155_p1, %s8612_s23, %s157_s28  }
   0x9   : > { %p8696_p5 = por %p168_p2, %p167_p0  ;;  %p8700_p6 = por %p174_p4, %p173_p3 }
   0xa   : > { %p6375_p7 = scmp.ge.s32.totalorder %s8616_s24, 1  ;;  %p215_p8 = scmp.lt.s32.totalorder %s8616_s24, 3 }
   0xc   : > { %p216_p9 = pnand %p6375_p7, %p215_p8 }
   0xe   : > { %219 = sbr.rel (%p216_p9) target bundleno = 1509 (0x5e5), region = 44 }
  0x13   : > { %vm252_vm0 = vcmask 261120   ;;  %p244_p10 = scmp.lt.s32.totalorder %s8679_s25, 1  ;;  %v8618_v0 = vmov 0.0   ;;  %v8469_v1 = vld [vmem:[%s11723_s1 + $0x78] sm:$0xff]   ;;  %s8619_s18 = smov 32   ;;  %vm1479_vm1 = vcmask 523264  }
  0x14   : > { %254 = vst.msk [vmem:[#allocation2 + $0x8] sm:$0xff] %vm252_vm0, %v8618_v0  ;;  %255 = vst.msk [vmem:[#allocation2 + $0x10] sm:$0xff] %vm252_vm0, %v8618_v0  ;;  %v8470_v2 = vld [vmem:[%s11723_s1 + $0x38] sm:$0xff]   ;;  %6484 = vmatprep.subr.bf16.mxu0 %v8469_v1  ;;  %s8621_s16 = smov 96   ;;  %vm1512_vm2 = vcmask 785408   ;;  %s242_s11 = sand.u32 1, %s8608_s22  }
  0x15   : > { %253 = vst.msk [vmem:[#allocation2] sm:$0xff] %vm252_vm0, %v8618_v0  ;;  %256 = vst.msk [vmem:[#allocation2 + $0x18] sm:$0xff] %vm252_vm0, %v8618_v0  ;;  %s245_s9 = scalar_select %p244_p10, %s8679_s25, 1  ;;  %6485 = vmatpush3.bf16.msra.mxu0 %v8470_v2  ;;  %v8471_v2 = vld [vmem:[%s11723_s1 + $0x70] sm:$0xff]   ;;  %vm6302_vm3 = vcmask 253952  }
  0x16   : > { %257 = vst.msk [vmem:[#allocation2 + $0x20] sm:$0xff] %vm252_vm0, %v8618_v0  ;;  %258 = vst.msk [vmem:[#allocation2 + $0x28] sm:$0xff] %vm252_vm0, %v8618_v0  ;;  %6486 = vmatprep.subr.bf16.mxu0 %v8471_v2  ;;  %s6480_s12 = sshll.u32 %s8679_s25, 4  ;;  %s243_s13 = scalar_lea.vmem [#allocation3], %s242_s11 }
  0x17   : > { %259 = vst.msk [vmem:[#allocation2 + $0x30] sm:$0xff] %vm252_vm0, %v8618_v0  ;;  %260 = vst.msk [vmem:[#allocation2 + $0x38] sm:$0xff] %vm252_vm0, %v8618_v0  ;;  %s6483_s10 = sshll.u32 %s245_s9, 8  ;;  %s6317_s14 = sshll.u32 %s243_s13, 4  ;;  %s6318_s14 = int_to_ptr.vmem [resolvable:$true] %s6317_s14 }
  0x18   : > { %261 = vst.msk [vmem:[#allocation2 + $0x40] sm:$0xff] %vm252_vm0, %v8618_v0  ;;  %262 = vst.msk [vmem:[#allocation2 + $0x48] sm:$0xff] %vm252_vm0, %v8618_v0  ;;  %s8860_s15 = scalar_lea.vmem %s11722_s0, %s6483_s10  ;;  %s8620_s10 = smov 64  }
  0x19   : > { %263 = vst.msk [vmem:[#allocation2 + $0x50] sm:$0xff] %vm252_vm0, %v8618_v0  ;;  %264 = vst.msk [vmem:[#allocation2 + $0x58] sm:$0xff] %vm252_vm0, %v8618_v0  ;;  %v327_v3 = vld [vmem:[%s8860_s15 + $0x10] sm:$0xff]  ;;  %v328_v4 = vld [vmem:[%s8860_s15 + $0x18] sm:$0xff]  ;;  %s6315_s20 = scalar_lea.hbm %s11728_s6, %s6480_s12  ;;  %s6305_s26 = scalar_lea.sflag [#allocation4], %s242_s11 }
  0x1a   : > { %265 = vst.msk [vmem:[#allocation2 + $0x60] sm:$0xff] %vm252_vm0, %v8618_v0  ;;  %266 = vst.msk [vmem:[#allocation2 + $0x68] sm:$0xff] %vm252_vm0, %v8618_v0  ;;  %v325_v5 = vld [vmem:[%s8860_s15] sm:$0xff]  ;;  %v326_v6 = vld [vmem:[%s8860_s15 + $0x8] sm:$0xff]  ;;  %s8556_s28 = scalar_lea.vmem %s6318_s14, 16  ;;  %s8622_s29 = smov [#allocation3]  }
  0x1b   : > { %267 = vst.msk [vmem:[#allocation2 + $0x70] sm:$0xff] %vm252_vm0, %v8618_v0  ;;  %268 = vst.msk [vmem:[#allocation2 + $0x78] sm:$0xff] %vm252_vm0, %v8618_v0  ;;  %v329_v7 = vld [vmem:[%s8860_s15 + $0x20] sm:$0xff]  ;;  %v330_v8 = vld [vmem:[%s8860_s15 + $0x28] sm:$0xff]  ;;  %p8557_p11 = scmp.ne.s32.totalorder %s6318_s14, %s8556_s28  ;;  %s8560_s9 = sshll.u32 %s8622_s29, 4  ;;  %s8561_s9 = int_to_ptr.vmem [resolvable:$false] %s8560_s9 }
  0x1c   : > { %269 = vst.msk [vmem:[#allocation2 + $0x80] sm:$0xff] %vm252_vm0, %v8618_v0  ;;  %270 = vst.msk [vmem:[#allocation2 + $0x88] sm:$0xff] %vm252_vm0, %v8618_v0  ;;  %v422_v9 = vld [vmem:[#allocation2 + $0x8] sm:$0xff]  ;;  %v423_v10 = vld [vmem:[#allocation2 + $0x10] sm:$0xff]  ;;  %s8562_s25 = scalar_lea.vmem %s8561_s9, 32  ;;  %p8563_p0 = scmp.lt.s32.totalorder %s6318_s14, %s8561_s9 }
  0x1d   : > { %271 = vst.msk [vmem:[#allocation2 + $0x90] sm:$0xff] %vm252_vm0, %v8618_v0  ;;  %272 = vst.msk [vmem:[#allocation2 + $0x98] sm:$0xff] %vm252_vm0, %v8618_v0  ;;  %v331_v11 = vld [vmem:[%s8860_s15 + $0x30] sm:$0xff]  ;;  %v7029_v12 = vpack.i.bf16 %v423_v10, %v422_v9  ;;  %v332_v13 = vld [vmem:[%s8860_s15 + $0x38] sm:$0xff]  ;;  %p8558_p12 = pnand %p8557_p11, %p8696_p5  ;;  %p8564_p1 = scmp.lt.s32.totalorder %s8562_s25, %s8556_s28 }
  0x1e   : > { %273 = vst.msk [vmem:[#allocation2 + $0xa0] sm:$0xff] %vm252_vm0, %v8618_v0  ;;  %274 = vst.msk [vmem:[#allocation2 + $0xa8] sm:$0xff] %vm252_vm0, %v8618_v0  ;;  %v333_v14 = vld [vmem:[%s8860_s15 + $0x40] sm:$0xff]  ;;  %v334_v15 = vld [vmem:[%s8860_s15 + $0x48] sm:$0xff] }
  0x1f   : > { %275 = vst.msk [vmem:[#allocation2 + $0xb0] sm:$0xff] %vm252_vm0, %v8618_v0  ;;  %276 = vst.msk [vmem:[#allocation2 + $0xb8] sm:$0xff] %vm252_vm0, %v8618_v0  ;;  %v335_v16 = vld [vmem:[%s8860_s15 + $0x50] sm:$0xff]  ;;  %v336_v17 = vld [vmem:[%s8860_s15 + $0x58] sm:$0xff]  ;;  %7030 = vrot.lane.b32.xlu0 %v7029_v12, %s8619_s18  ;;  %p8559_p13 = pneg %p8558_p12  ;;  %p8565_p2 = por %p8564_p1, %p8563_p0 }
  0x20   : > { %277 = vst.msk [vmem:[#allocation2 + $0xc0] sm:$0xff] %vm252_vm0, %v8618_v0  ;;  %278 = vst.msk [vmem:[#allocation2 + $0xc8] sm:$0xff] %vm252_vm0, %v8618_v0  ;;  %v337_v18 = vld [vmem:[%s8860_s15 + $0x60] sm:$0xff]  ;;  %v338_v19 = vld [vmem:[%s8860_s15 + $0x68] sm:$0xff] }
  0x21   : > { %279 = vst.msk [vmem:[#allocation2 + $0xd0] sm:$0xff] %vm252_vm0, %v8618_v0  ;;  %280 = vst.msk [vmem:[#allocation2 + $0xd8] sm:$0xff] %vm252_vm0, %v8618_v0  ;;  %v339_v20 = vld [vmem:[%s8860_s15 + $0x70] sm:$0xff]  ;;  %v340_v21 = vld [vmem:[%s8860_s15 + $0x78] sm:$0xff]  ;;  %p8566_p3 = pnand %p8565_p2, %p8559_p13 }
  0x22   : > { %281 = vst.msk [vmem:[#allocation2 + $0xe0] sm:$0xff] %vm252_vm0, %v8618_v0  ;;  %282 = vst.msk [vmem:[#allocation2 + $0xe8] sm:$0xff] %vm252_vm0, %v8618_v0  ;;  %v341_v22 = vld [vmem:[%s8860_s15 + $0x80] sm:$0xff]  ;;  %v342_v23 = vld [vmem:[%s8860_s15 + $0x88] sm:$0xff] }
  0x23   : > { %283 = vst.msk [vmem:[#allocation2 + $0xf0] sm:$0xff] %vm252_vm0, %v8618_v0  ;;  %284 = vst.msk [vmem:[#allocation2 + $0xf8] sm:$0xff] %vm252_vm0, %v8618_v0  ;;  %v343_v24 = vld [vmem:[%s8860_s15 + $0x90] sm:$0xff]  ;;  %v344_v25 = vld [vmem:[%s8860_s15 + $0x98] sm:$0xff] }
  0x24   : > { %285 = vst.msk [vmem:[#allocation2 + $0x100] sm:$0xff] %vm252_vm0, %v8618_v0  ;;  %286 = vst.msk [vmem:[#allocation2 + $0x108] sm:$0xff] %vm252_vm0, %v8618_v0  ;;  %v454_v62 = vld [vmem:[#allocation2 + $0x9] sm:$0xff]  ;;  %v455_v63 = vld [vmem:[#allocation2 + $0x11] sm:$0xff] }
  0x25   : > { %287 = vst.msk [vmem:[#allocation2 + $0x110] sm:$0xff] %vm252_vm0, %v8618_v0  ;;  %288 = vst.msk [vmem:[#allocation2 + $0x118] sm:$0xff] %vm252_vm0, %v8618_v0  ;;  %v346_v1 = vld [vmem:[%s8860_s15 + $0xa8] sm:$0xff]  ;;  %v7094_v9 = vpack.i.bf16 %v455_v63, %v454_v62 }
  0x26   : > { %289 = vst.msk [vmem:[#allocation2 + $0x120] sm:$0xff] %vm252_vm0, %v8618_v0  ;;  %290 = vst.msk [vmem:[#allocation2 + $0x128] sm:$0xff] %vm252_vm0, %v8618_v0  ;;  %v8474_v12 = vld [vmem:[%s11723_s1 + $0x28] sm:$0xff]  }
  0x27   : > { %291 = vst.msk [vmem:[#allocation2 + $0x130] sm:$0xff] %vm252_vm0, %v8618_v0  ;;  %292 = vst.msk [vmem:[#allocation2 + $0x138] sm:$0xff] %vm252_vm0, %v8618_v0 }
  0x28   : > { %293 = vst.msk [vmem:[#allocation2 + $0x140] sm:$0xff] %vm252_vm0, %v8618_v0  ;;  %294 = vst.msk [vmem:[#allocation2 + $0x148] sm:$0xff] %vm252_vm0, %v8618_v0 }
  0x29   : > { %295 = vst.msk [vmem:[#allocation2 + $0x150] sm:$0xff] %vm252_vm0, %v8618_v0  ;;  %296 = vst.msk [vmem:[#allocation2 + $0x158] sm:$0xff] %vm252_vm0, %v8618_v0 }
  0x2a   : > { %297 = vst.msk [vmem:[#allocation2 + $0x160] sm:$0xff] %vm252_vm0, %v8618_v0  ;;  %298 = vst.msk [vmem:[#allocation2 + $0x168] sm:$0xff] %vm252_vm0, %v8618_v0 }
  0x2b   : > { %299 = vst.msk [vmem:[#allocation2 + $0x170] sm:$0xff] %vm252_vm0, %v8618_v0  ;;  %300 = vst.msk [vmem:[#allocation2 + $0x178] sm:$0xff] %vm252_vm0, %v8618_v0 }
  0x2c   : > { %301 = vst.msk [vmem:[#allocation2 + $0x180] sm:$0xff] %vm252_vm0, %v8618_v0  ;;  %302 = vst.msk [vmem:[#allocation2 + $0x188] sm:$0xff] %vm252_vm0, %v8618_v0 }
  0x2d   : > { %303 = vst.msk [vmem:[#allocation2 + $0x190] sm:$0xff] %vm252_vm0, %v8618_v0  ;;  %304 = vst.msk [vmem:[#allocation2 + $0x198] sm:$0xff] %vm252_vm0, %v8618_v0 }
  0x2e   : > { %305 = vst.msk [vmem:[#allocation2 + $0x1a0] sm:$0xff] %vm252_vm0, %v8618_v0  ;;  %306 = vst.msk [vmem:[#allocation2 + $0x1a8] sm:$0xff] %vm252_vm0, %v8618_v0 }
  0x2f   : > { %307 = vst.msk [vmem:[#allocation2 + $0x1b0] sm:$0xff] %vm252_vm0, %v8618_v0  ;;  %308 = vst.msk [vmem:[#allocation2 + $0x1b8] sm:$0xff] %vm252_vm0, %v8618_v0 }
  0x30   : > { %309 = vst.msk [vmem:[#allocation2 + $0x1c0] sm:$0xff] %vm252_vm0, %v8618_v0  ;;  %310 = vst.msk [vmem:[#allocation2 + $0x1c8] sm:$0xff] %vm252_vm0, %v8618_v0 }
  0x31   : > { %311 = vst.msk [vmem:[#allocation2 + $0x1d0] sm:$0xff] %vm252_vm0, %v8618_v0  ;;  %312 = vst.msk [vmem:[#allocation2 + $0x1d8] sm:$0xff] %vm252_vm0, %v8618_v0 }
  0x32   : > { %313 = vst.msk [vmem:[#allocation2 + $0x1e0] sm:$0xff] %vm252_vm0, %v8618_v0  ;;  %314 = vst.msk [vmem:[#allocation2 + $0x1e8] sm:$0xff] %vm252_vm0, %v8618_v0 }
  0x33   : > { %315 = vst.msk [vmem:[#allocation2 + $0x1f0] sm:$0xff] %vm252_vm0, %v8618_v0  ;;  %316 = vst.msk [vmem:[#allocation2 + $0x1f8] sm:$0xff] %vm252_vm0, %v8618_v0 }
  0x34   : > { %317 = vst.msk [vmem:[#allocation2 + $0x200] sm:$0xff] %vm252_vm0, %v8618_v0  ;;  %318 = vst.msk [vmem:[#allocation2 + $0x208] sm:$0xff] %vm252_vm0, %v8618_v0 }
  0x35   : > { %319 = vst.msk [vmem:[#allocation2 + $0x210] sm:$0xff] %vm252_vm0, %v8618_v0  ;;  %320 = vst.msk [vmem:[#allocation2 + $0x218] sm:$0xff] %vm252_vm0, %v8618_v0 }
  0x36   : > { %321 = vst.msk [vmem:[#allocation2 + $0x220] sm:$0xff] %vm252_vm0, %v8618_v0  ;;  %322 = vst.msk [vmem:[#allocation2 + $0x228] sm:$0xff] %vm252_vm0, %v8618_v0 }
  0x37   : > { %323 = vst.msk [vmem:[#allocation2 + $0x230] sm:$0xff] %vm252_vm0, %v8618_v0  ;;  %324 = vst.msk [vmem:[#allocation2 + $0x238] sm:$0xff] %vm252_vm0, %v8618_v0  ;;  %v345_v0 = vld [vmem:[%s8860_s15 + $0xa0] sm:$0xff] }
  0x38   : > { %360 = vst.msk [vmem:[#allocation2 + $0x48] sm:$0xff] %vm252_vm0, %v327_v3  ;;  %361 = vst.msk [vmem:[#allocation2 + $0x50] sm:$0xff] %vm252_vm0, %v328_v4  ;;  %v347_v3 = vld [vmem:[%s8860_s15 + $0xb0] sm:$0xff] }
  0x39   : > { %358 = vst.msk [vmem:[#allocation2 + $0x28] sm:$0xff] %vm252_vm0, %v325_v5  ;;  %359 = vst.msk [vmem:[#allocation2 + $0x30] sm:$0xff] %vm252_vm0, %v326_v6  ;;  %v348_v6 = vld [vmem:[%s8860_s15 + $0xb8] sm:$0xff] }
  0x3a   : > { %362 = vst.msk [vmem:[#allocation2 + $0x68] sm:$0xff] %vm252_vm0, %v329_v7  ;;  %363 = vst.msk [vmem:[#allocation2 + $0x70] sm:$0xff] %vm252_vm0, %v330_v8  ;;  %v8472_v7 = vld [vmem:[%s11723_s1 + $0x30] sm:$0xff]   ;;  %v8473_v8 = vld [vmem:[%s11723_s1 + $0x68] sm:$0xff]  }
  0x3b   : > { %364 = vst.msk [vmem:[#allocation2 + $0x88] sm:$0xff] %vm252_vm0, %v331_v11  ;;  %365 = vst.msk [vmem:[#allocation2 + $0x90] sm:$0xff] %vm252_vm0, %v332_v13  ;;  %6487 = vmatpush3.bf16.msra.mxu0 %v8472_v7  ;;  %v8475_v13 = vld [vmem:[%s11723_s1 + $0x60] sm:$0xff]  }
  0x3c   : > { %366 = vst.msk [vmem:[#allocation2 + $0xa8] sm:$0xff] %vm252_vm0, %v333_v14  ;;  %367 = vst.msk [vmem:[#allocation2 + $0xb0] sm:$0xff] %vm252_vm0, %v334_v15  ;;  %6488 = vmatprep.subr.bf16.mxu0 %v8473_v8  ;;  %v349_v14 = vld [vmem:[%s8860_s15 + $0xc0] sm:$0xff]  ;;  %v350_v15 = vld [vmem:[%s8860_s15 + $0xc8] sm:$0xff] }
  0x3d   : > { %368 = vst.msk [vmem:[#allocation2 + $0xc8] sm:$0xff] %vm252_vm0, %v335_v16  ;;  %369 = vst.msk [vmem:[#allocation2 + $0xd0] sm:$0xff] %vm252_vm0, %v336_v17 }
  0x3e   : > { %370 = vst.msk [vmem:[#allocation2 + $0xe8] sm:$0xff] %vm252_vm0, %v337_v18  ;;  %371 = vst.msk [vmem:[#allocation2 + $0xf0] sm:$0xff] %vm252_vm0, %v338_v19 }
  0x3f   : > { %372 = vst.msk [vmem:[#allocation2 + $0x108] sm:$0xff] %vm252_vm0, %v339_v20  ;;  %373 = vst.msk [vmem:[#allocation2 + $0x110] sm:$0xff] %vm252_vm0, %v340_v21  ;;  %v8905_v26 = vld [vmem:[#allocation2 + $0x48] sm:$0xff]  ;;  %v8907_v27 = vld [vmem:[#allocation2 + $0x50] sm:$0xff]  ;;  %6489 = vmatpush3.bf16.msra.mxu0 %v8474_v12 }
  0x40   : > { %374 = vst.msk [vmem:[#allocation2 + $0x128] sm:$0xff] %vm252_vm0, %v341_v22  ;;  %375 = vst.msk [vmem:[#allocation2 + $0x130] sm:$0xff] %vm252_vm0, %v342_v23  ;;  %v8909_v28 = vld [vmem:[#allocation2 + $0x28] sm:$0xff]  ;;  %v8914_v29 = vpack.i.bf16 %v8907_v27, %v8905_v26  ;;  %v8916_v30 = vld [vmem:[#allocation2 + $0x30] sm:$0xff]  ;;  %6490 = vmatprep.subr.bf16.mxu0 %v8475_v13 }
  0x41   : > { %376 = vst.msk [vmem:[#allocation2 + $0x148] sm:$0xff] %vm252_vm0, %v343_v24  ;;  %377 = vst.msk [vmem:[#allocation2 + $0x150] sm:$0xff] %vm252_vm0, %v344_v25  ;;  %v428_v31 = vld [vmem:[#allocation2 + $0x68] sm:$0xff]  ;;  %v429_v32 = vld [vmem:[#allocation2 + $0x70] sm:$0xff]  ;;  %v7034_v33 = vpack.i.bf16 %v8916_v30, %v8909_v28 }
  0x42   : > { %v430_v34 = vld [vmem:[#allocation2 + $0x88] sm:$0xff]  ;;  %7040 = vrot.lane.b32.xlu1 %v8914_v29, %s8619_s18  ;;  %v8922_v35 = vpack.i.bf16 %v429_v32, %v428_v31  ;;  %v431_v36 = vld [vmem:[#allocation2 + $0x90] sm:$0xff]  ;;  %378 = vst.msk [vmem:[#allocation2 + $0x168] sm:$0xff] %vm252_vm0, %v345_v0  ;;  %379 = vst.msk [vmem:[#allocation2 + $0x170] sm:$0xff] %vm252_vm0, %v346_v1 }
  0x43   : > { %7035 = vrot.lane.b32.xlu0 %v7034_v33, %s8619_s18  ;;  %v8925_v37 = vpack.i.bf16 %v431_v36, %v430_v34  ;;  %v432_v38 = vld [vmem:[#allocation2 + $0xa8] sm:$0xff]  ;;  %v433_v39 = vld [vmem:[#allocation2 + $0xb0] sm:$0xff]  ;;  %380 = vst.msk [vmem:[#allocation2 + $0x188] sm:$0xff] %vm252_vm0, %v347_v3  ;;  %381 = vst.msk [vmem:[#allocation2 + $0x190] sm:$0xff] %vm252_vm0, %v348_v6 }
  0x44   : > { %v434_v40 = vld [vmem:[#allocation2 + $0xc8] sm:$0xff]  ;;  %v435_v41 = vld [vmem:[#allocation2 + $0xd0] sm:$0xff]  ;;  %v8929_v42 = vpack.i.bf16 %v433_v39, %v432_v38  ;;  %382 = vst.msk [vmem:[#allocation2 + $0x1a8] sm:$0xff] %vm252_vm0, %v349_v14  ;;  %383 = vst.msk [vmem:[#allocation2 + $0x1b0] sm:$0xff] %vm252_vm0, %v350_v15 }
  0x45   : > { %v8933_v43 = vpack.i.bf16 %v435_v41, %v434_v40  ;;  %v436_v44 = vld [vmem:[#allocation2 + $0xe8] sm:$0xff]  ;;  %v437_v45 = vld [vmem:[#allocation2 + $0xf0] sm:$0xff]  ;;  %v8476_v20 = vld [vmem:[%s11723_s1 + $0x20] sm:$0xff]  }
  0x46   : > { %7045 = vrot.lane.b32.xlu1 %v8922_v35, %s8619_s18  ;;  %v438_v46 = vld [vmem:[#allocation2 + $0x108] sm:$0xff]  ;;  %v439_v47 = vld [vmem:[#allocation2 + $0x110] sm:$0xff]  ;;  %v8937_v48 = vpack.i.bf16 %v437_v45, %v436_v44  ;;  %v8477_v21 = vld [vmem:[%s11723_s1 + $0x58] sm:$0xff]   ;;  %6491 = vmatpush3.bf16.msra.mxu0 %v8476_v20 }
  0x47   : > { %7050 = vrot.lane.b32.xlu0 %v8925_v37, %s8619_s18  ;;  %v8941_v49 = vpack.i.bf16 %v439_v47, %v438_v46  ;;  %v440_v50 = vld [vmem:[#allocation2 + $0x128] sm:$0xff]  ;;  %v441_v51 = vld [vmem:[#allocation2 + $0x130] sm:$0xff]  ;;  %v8478_v23 = vld [vmem:[%s11723_s1 + $0x18] sm:$0xff]   ;;  %6492 = vmatprep.subr.bf16.mxu0 %v8477_v21 }
  0x48   : > { %v442_v52 = vld [vmem:[#allocation2 + $0x148] sm:$0xff]  ;;  %v443_v53 = vld [vmem:[#allocation2 + $0x150] sm:$0xff]  ;;  %v8945_v54 = vpack.i.bf16 %v441_v51, %v440_v50  ;;  %v352_v39 = vld [vmem:[%s8860_s15 + $0xd8] sm:$0xff] }
  0x49   : > { %v8949_v55 = vpack.i.bf16 %v443_v53, %v442_v52  ;;  %v550_v56 = vld [vmem:[#allocation2 + $0x29] sm:$0xff]  ;;  %v551_v57 = vld [vmem:[#allocation2 + $0x31] sm:$0xff]  ;;  %385 = vst.msk [vmem:[#allocation2 + $0x1d0] sm:$0xff] %vm252_vm0, %v352_v39  ;;  %v353_v44 = vld [vmem:[%s8860_s15 + $0xe0] sm:$0xff] }
  0x4a   : > { %7055 = vrot.lane.b32.xlu1 %v8929_v42, %s8619_s18  ;;  %v8951_v58 = vld [vmem:[#allocation2 + $0x47] sm:$0xff]  ;;  %v8953_v59 = vld [vmem:[#allocation2 + $0x4f] sm:$0xff]  ;;  %v7084_v60 = vpack.i.bf16 %v551_v57, %v550_v56  ;;  %6493 = vmatpush3.bf16.msra.mxu0 %v8478_v23  ;;  %386 = vst.msk [vmem:[#allocation2 + $0x1e8] sm:$0xff] %vm252_vm0, %v353_v44  ;;  %v356_v52 = vld [vmem:[%s8860_s15 + $0xf8] sm:$0xff] }
  0x4b   : > { %7060 = vrot.lane.b32.xlu0 %v8933_v43, %s8619_s18  ;;  %v7089_v61 = vpack.i.bf16 %v8953_v59, %v8951_v58  ;;  %v8968_v4 = vld [vmem:[#allocation2 + $0x27] sm:$0xff]  ;;  %v8970_v5 = vld [vmem:[#allocation2 + $0x2f] sm:$0xff]  ;;  %389 = vst.msk [vmem:[#allocation2 + $0x210] sm:$0xff] %vm252_vm0, %v356_v52 }
  0x4c   : > { %v552_v10 = vld [vmem:[#allocation2 + $0x49] sm:$0xff]  ;;  %v553_v11 = vld [vmem:[#allocation2 + $0x51] sm:$0xff]  ;;  %v7104_v16 = vpack.i.bf16 %v8970_v5, %v8968_v4  ;;  %v8484_v46 = vld [vmem:[%s11723_s1] sm:$0xff]  }
  0x4d   : > { %v8995_v17 = vld [vmem:[#allocation2 + $0x67] sm:$0xff]  ;;  %v7109_v18 = vpack.i.bf16 %v553_v11, %v552_v10  ;;  %v9001_v19 = vld [vmem:[#allocation2 + $0x6f] sm:$0xff] }
  0x4e   : > { %7065 = vrot.lane.b32.xlu1 %v8937_v48, %s8619_s18  ;;  %v7114_v22 = vpack.i.bf16 %v9001_v19, %v8995_v17  ;;  %v8479_v24 = vld [vmem:[%s11723_s1 + $0x50] sm:$0xff]   ;;  %v9021_v31 = vld [vmem:[#allocation2 + $0x87] sm:$0xff] }
  0x4f   : > { %7070 = vrot.lane.b32.xlu0 %v8941_v49, %s8619_s18  ;;  %v554_v25 = vld [vmem:[#allocation2 + $0x69] sm:$0xff]  ;;  %6494 = vmatprep.subr.bf16.mxu0 %v8479_v24  ;;  %v557_v51 = vld [vmem:[#allocation2 + $0x91] sm:$0xff]  ;;  %v9092_v3 = vld [vmem:[%s11723_s1 + $0x80] sm:$0xff]  }
  0x50   : > { %v9023_v32 = vld [vmem:[#allocation2 + $0x8f] sm:$0xff]  ;;  %v9062_v56 = vld [vmem:[#allocation2 + $0xa7] sm:$0xff] }
  0x51   : > { %v8480_v33 = vld [vmem:[%s11723_s1 + $0x10] sm:$0xff]   ;;  %v8481_v34 = vld [vmem:[%s11723_s1 + $0x48] sm:$0xff]   ;;  %v7139_v40 = vpack.i.bf16 %v9023_v32, %v9021_v31 }
  0x52   : > { %7075 = vrot.lane.b32.xlu1 %v8945_v54, %s8619_s18  ;;  %v351_v38 = vld [vmem:[%s8860_s15 + $0xd0] sm:$0xff]  ;;  %6495 = vmatpush3.bf16.msra.mxu0 %v8480_v33  ;;  %v8482_v41 = vld [vmem:[%s11723_s1 + $0x8] sm:$0xff]  }
  0x53   : > { %7080 = vrot.lane.b32.xlu0 %v8949_v55, %s8619_s18  ;;  %384 = vst.msk [vmem:[#allocation2 + $0x1c8] sm:$0xff] %vm252_vm0, %v351_v38  ;;  %6496 = vmatprep.subr.bf16.mxu0 %v8481_v34  ;;  %v354_v45 = vld [vmem:[%s8860_s15 + $0xe8] sm:$0xff]  ;;  %v355_v47 = vld [vmem:[%s8860_s15 + $0xf0] sm:$0xff] }
  0x54   : > { %387 = vst.msk [vmem:[#allocation2 + $0x1f0] sm:$0xff] %vm252_vm0, %v354_v45  ;;  %v556_v50 = vld [vmem:[#allocation2 + $0x89] sm:$0xff]  ;;  %388 = vst.msk [vmem:[#allocation2 + $0x208] sm:$0xff] %vm252_vm0, %v355_v47  ;;  %v559_v62 = vld [vmem:[#allocation2 + $0xb1] sm:$0xff] }
  0x55   : > { %v7159_v53 = vpack.i.bf16 %v557_v51, %v556_v50  ;;  %v9064_v57 = vld [vmem:[#allocation2 + $0xaf] sm:$0xff]  ;;  %v9077_v63 = vld [vmem:[#allocation2 + $0xc7] sm:$0xff] }
  0x56   : > { %7085 = vrot.lane.b32.xlu1 %v7084_v60, %s8619_s18  ;;  %6497 = vmatpush3.bf16.msra.mxu0 %v8482_v41  ;;  %v9079_v0 = vld [vmem:[#allocation2 + $0xcf] sm:$0xff]  ;;  %v9101_v13 = vld [vmem:[#allocation2 + $0xe7] sm:$0xff] }
  0x57   : > { %7090 = vrot.lane.b32.xlu0 %v7089_v61, %s8620_s10  ;;  %v7189_v2 = vpack.i.bf16 %v9079_v0, %v9077_v63  ;;  %v655_v6 = vld [vmem:[#allocation2 + $0xc9] sm:$0xff]  ;;  %v656_v7 = vld [vmem:[#allocation2 + $0xd1] sm:$0xff] }
  0x58   : > { %v561_v8 = vld [vmem:[#allocation2 + $0xd1] sm:$0xff]  ;;  %v657_v10 = vld [vmem:[#allocation2 + $0xe9] sm:$0xff] }
  0x59   : > { %v658_v11 = vld [vmem:[#allocation2 + $0xf1] sm:$0xff]  ;;  %v9112_v21 = vld [vmem:[#allocation2 + $0x107] sm:$0xff] }
  0x5a   : > { %7095 = vrot.lane.b32.xlu1 %v7094_v9, %s8620_s10  ;;  %v1655_v9 = vpack.c.bf16 %v656_v7, %v655_v6  ;;  %v1658_v12 = vpack.c.bf16 %v658_v11, %v657_v10  ;;  %v9103_v14 = vld [vmem:[#allocation2 + $0xef] sm:$0xff]  ;;  %v601_v6 = vld [vmem:[#allocation2 + $0x167] sm:$0xff] }
  0x5b   : > { %7100 = vrot.lane.b32.xlu0 %v8914_v29, %s8621_s16  ;;  %v555_v29 = vld [vmem:[#allocation2 + $0x71] sm:$0xff]  ;;  %v659_v24 = vld [vmem:[#allocation2 + $0x109] sm:$0xff] }
  0x5c   : > { %v7134_v36 = vpack.i.bf16 %v555_v29, %v554_v25  ;;  %6886 = vmatprep.mubr.msk.bf16.mxu1 %vm252_vm0, %v1655_v9  ;;  %v563_v20 = vld [vmem:[#allocation2 + $0xf1] sm:$0xff]  ;;  %v661_v33 = vld [vmem:[#allocation2 + $0x129] sm:$0xff] }
  0x5d   : > { %v660_v25 = vld [vmem:[#allocation2 + $0x111] sm:$0xff]  ;;  %v564_v38 = vld [vmem:[#allocation2 + $0x109] sm:$0xff] }
  0x5e   : > { %7105 = vrot.lane.b32.xlu1 %v7104_v16, %s8621_s16  ;;  %v7214_v16 = vpack.i.bf16 %v9103_v14, %v9101_v13  ;;  %v1661_v29 = vpack.c.bf16 %v660_v25, %v659_v24  ;;  %v662_v34 = vld [vmem:[#allocation2 + $0x131] sm:$0xff]  ;;  %v566_v44 = vld [vmem:[#allocation2 + $0x129] sm:$0xff] }
  0x5f   : > { %7110 = vrot.lane.b32.xlu0 %v7109_v18, %s8619_s18  ;;  %v565_v39 = vld [vmem:[#allocation2 + $0x111] sm:$0xff]  ;;  %v663_v51 = vld [vmem:[#allocation2 + $0x149] sm:$0xff] }
  0x60   : > { %v9131_v41 = vld [vmem:[#allocation2 + $0x12f] sm:$0xff] }
  0x61   : > { %v567_v45 = vld [vmem:[#allocation2 + $0x131] sm:$0xff]  ;;  %v633_v9 = vld [vmem:[#allocation2 + $0x168] sm:$0xff] }
  0x62   : > { %7115 = vrot.lane.b32.xlu1 %v7114_v22, %s8620_s10  ;;  %v7284_v47 = vpack.i.bf16 %v567_v45, %v566_v44  ;;  %v664_v52 = vld [vmem:[#allocation2 + $0x151] sm:$0xff]  ;;  %v635_v25 = vld [vmem:[#allocation2 + $0x188] sm:$0xff] }
  0x63   : > { %7120 = vrot.lane.b32.xlu0 %v7084_v60, %s8620_s10  ;;  %v7164_v60 = vpack.i.bf16 %v9064_v57, %v9062_v56  ;;  %v602_v7 = vld [vmem:[#allocation2 + $0x16f] sm:$0xff] }
  0x64   : > { %v634_v10 = vld [vmem:[#allocation2 + $0x170] sm:$0xff] }
  0x65   : > { %v7324_v11 = vpack.i.bf16 %v634_v10, %v633_v9 }
  0x66   : > { %7125 = vrot.lane.b32.xlu1 %v8922_v35, %s8621_s16  ;;  %v8483_v35 = vld [vmem:[%s11723_s1 + $0x40] sm:$0xff]  }
  0x67   : > { %7130 = vrot.lane.b32.xlu0 %v7089_v61, %s8621_s16  ;;  %6498 = vmatprep.subr.bf16.mxu0 %v8483_v35  ;;  %v558_v61 = vld [vmem:[#allocation2 + $0xa9] sm:$0xff] }
  0x68   : > { %6499 = vmatpush3.bf16.msra.mxu0 %v8484_v46  ;;  %v7184_v1 = vpack.i.bf16 %v559_v62, %v558_v61  ;;  %v599_v46 = vld [vmem:[#allocation2 + $0x147] sm:$0xff]  ;;  %v666_v61 = vld [vmem:[#allocation2 + $0x171] sm:$0xff] }
  0x6a   : > { %7135 = vrot.lane.b32.xlu1 %v7134_v36, %s8619_s18 }
  0x6b   : > { %7140 = vrot.lane.b32.xlu0 %v7139_v40, %s8620_s10 }
  0x6e   : > { %7145 = vrot.lane.b32.xlu1 %v7109_v18, %s8620_s10  ;;  %v562_v18 = vld [vmem:[#allocation2 + $0xe9] sm:$0xff] }
  0x6f   : > { %7150 = vrot.lane.b32.xlu0 %v8925_v37, %s8621_s16  ;;  %v9075_v37 = vld [vmem:[%s11723_s1 + $0x88] sm:$0xff]  }
  0x70   : > { %6982 = vmatprep.subr.bf16.mxu1 %v9075_v37  ;;  %6874 = vmatprep.subr.bf16.mxu0 %v9075_v37 }
  0x71   : > { %6984 = vmatpush3.bf16.msra.mxu1 %v9075_v37 }
  0x72   : > { %7155 = vrot.lane.b32.xlu1 %v7114_v22, %s8621_s16  ;;  %6983 = vmatprep.subr.bf16.mxu1 %v9092_v3  ;;  %v9114_v22 = vld [vmem:[#allocation2 + $0x10f] sm:$0xff] }
  0x73   : > { %7160 = vrot.lane.b32.xlu0 %v7159_v53, %s8619_s18  ;;  %v7239_v23 = vpack.i.bf16 %v9114_v22, %v9112_v21 }
  0x75   : > { %6985 = vmatpush3.bf16.msra.mxu1 %v9092_v3 }
  0x76   : > { %7165 = vrot.lane.b32.xlu1 %v7164_v60, %s8620_s10 }
  0x77   : > { %7170 = vrot.lane.b32.xlu0 %v7134_v36, %s8620_s10  ;;  %v1664_v36 = vpack.c.bf16 %v662_v34, %v661_v33  ;;  %v667_v34 = vld [vmem:[#allocation2 + $0x189] sm:$0xff] }
  0x78   : > { %6887 = vmatmul.mubr.msk.bf16.vlgmr.msra.gmra.mxu1 %vm252_vm0, %v1658_v12  ;;  %v570_v12 = vld [vmem:[#allocation2 + $0x169] sm:$0xff] }
  0x79   : > { %6890 = vmatprep.mubr.msk.bf16.mxu1 %vm252_vm0, %v1661_v29  ;;  %v636_v29 = vld [vmem:[#allocation2 + $0x190] sm:$0xff] }
  0x7a   : > { %7175 = vrot.lane.b32.xlu1 %v8929_v42, %s8621_s16  ;;  %v560_v42 = vld [vmem:[#allocation2 + $0xc9] sm:$0xff] }
  0x7b   : > { %7180 = vrot.lane.b32.xlu0 %v7139_v40, %s8621_s16  ;;  %v7209_v15 = vpack.i.bf16 %v561_v8, %v560_v42  ;;  %v9129_v40 = vld [vmem:[#allocation2 + $0x127] sm:$0xff]  ;;  %v7314_v42 = vpack.i.bf16 %v602_v7, %v601_v6 }
  0x7c   : > { %11817 = vst [vmem:[#allocation6_spill] sm:$0xff] %v9129_v40  ;;  %v7264_v35 = vpack.i.bf16 %v9131_v41, %v9129_v40  ;;  %v577_v40 = vld [vmem:[#allocation2 + $0x1d1] sm:$0xff] }
  0x7e   : > { %7185 = vrot.lane.b32.xlu1 %v7184_v1, %s8619_s18 }
  0x7f   : > { %7190 = vrot.lane.b32.xlu0 %v7189_v2, %s8620_s10 }
  0x80   : > { %6891 = vmatmul.mubr.msk.bf16.gmra.mxu1 %vm252_vm0, %v1664_v36  ;;  %v668_v36 = vld [vmem:[#allocation2 + $0x191] sm:$0xff] }
  0x82   : > { %7195 = vrot.lane.b32.xlu1 %v7159_v53, %s8620_s10  ;;  %v1667_v53 = vpack.c.bf16 %v664_v52, %v663_v51  ;;  %v605_v52 = vld [vmem:[#allocation2 + $0x1a7] sm:$0xff] }
  0x83   : > { %7200 = vrot.lane.b32.xlu0 %v8933_v43, %s8621_s16  ;;  %v7234_v43 = vpack.i.bf16 %v563_v20, %v562_v18  ;;  %v604_v18 = vld [vmem:[#allocation2 + $0x18f] sm:$0xff] }
  0x84   : > { %6894 = vmatprep.mubr.msk.bf16.mxu1 %vm252_vm0, %v1667_v53  ;;  %v606_v53 = vld [vmem:[#allocation2 + $0x1af] sm:$0xff] }
  0x86   : > { %7205 = vrot.lane.b32.xlu1 %v7164_v60, %s8621_s16  ;;  %v665_v60 = vld [vmem:[#allocation2 + $0x169] sm:$0xff] }
  0x87   : > { %7210 = vrot.lane.b32.xlu0 %v7209_v15, %s8619_s18  ;;  %v1670_v62 = vpack.c.bf16 %v666_v61, %v665_v60  ;;  %v9190_v61 = vpack.i.bf16 %v606_v53, %v605_v52 }
  0x89   : > { %6895 = vmatmul.mubr.msk.bf16.gmra.mxu1 %vm252_vm0, %v1670_v62 }
  0x8a   : > { %7215 = vrot.lane.b32.xlu1 %v7214_v16, %s8620_s10 }
  0x8b   : > { %7220 = vrot.lane.b32.xlu0 %v7184_v1, %s8620_s10  ;;  %v568_v1 = vld [vmem:[#allocation2 + $0x149] sm:$0xff] }
  0x8e   : > { %7225 = vrot.lane.b32.xlu1 %v8937_v48, %s8621_s16  ;;  %v7259_v48 = vpack.i.bf16 %v565_v39, %v564_v38  ;;  %v574_v38 = vld [vmem:[#allocation2 + $0x1a9] sm:$0xff]  ;;  %v575_v39 = vld [vmem:[#allocation2 + $0x1b1] sm:$0xff] }
  0x8f   : > { %7230 = vrot.lane.b32.xlu0 %v7189_v2, %s8621_s16  ;;  %v569_v2 = vld [vmem:[#allocation2 + $0x151] sm:$0xff]  ;;  %v1676_v44 = vpack.c.bf16 %v575_v39, %v574_v38 }
  0x91   : > { %v9151_v8 = vpop.permute.xlu0 %7030 }
  0x92   : > { %7235 = vrot.lane.b32.xlu1 %v7234_v43, %s8619_s18 }
  0x93   : > { %7240 = vrot.lane.b32.xlu0 %v7239_v23, %s8620_s10 }
  0x96   : > { %7245 = vrot.lane.b32.xlu1 %v7209_v15, %s8620_s10  ;;  %v571_v15 = vld [vmem:[#allocation2 + $0x171] sm:$0xff] }
  0x97   : > { %7250 = vrot.lane.b32.xlu0 %v8941_v49, %s8621_s16  ;;  %v600_v49 = vld [vmem:[#allocation2 + $0x14f] sm:$0xff] }
  0x98   : > { %v7289_v50 = vpack.i.bf16 %v600_v49, %v599_v46  ;;  %v572_v46 = vld [vmem:[#allocation2 + $0x189] sm:$0xff]  ;;  %v573_v49 = vld [vmem:[#allocation2 + $0x191] sm:$0xff] }
  0x9a   : > { %7255 = vrot.lane.b32.xlu1 %v7214_v16, %s8621_s16  ;;  %v603_v16 = vld [vmem:[#allocation2 + $0x187] sm:$0xff] }
  0x9b   : > { %7260 = vrot.lane.b32.xlu0 %v7259_v48, %s8619_s18 }
  0x9e   : > { %7265 = vrot.lane.b32.xlu1 %v7264_v35, %s8620_s10 }
  0x9f   : > { %7270 = vrot.lane.b32.xlu0 %v7234_v43, %s8620_s10  ;;  %v7334_v43 = vpack.i.bf16 %v571_v15, %v570_v12 }
  0xa2   : > { %7275 = vrot.lane.b32.xlu1 %v8945_v54, %s8621_s16  ;;  %v7309_v54 = vpack.i.bf16 %v569_v2, %v568_v1  ;;  %v637_v1 = vld [vmem:[#allocation2 + $0x1a8] sm:$0xff]  ;;  %v638_v2 = vld [vmem:[#allocation2 + $0x1b0] sm:$0xff] }
  0xa3   : > { %7280 = vrot.lane.b32.xlu0 %v7239_v23, %s8621_s16  ;;  %v9161_v23 = vpack.i.bf16 %v604_v18, %v603_v16  ;;  %v9199_v6 = vpack.i.bf16 %v638_v2, %v637_v1  ;;  %v9204_v16 = vpack.i.bf16 %v575_v39, %v574_v38  ;;  %v640_v38 = vld [vmem:[#allocation2 + $0x1d0] sm:$0xff] }
  0xa4   : > { %v391_v39 = vld [vmem:[#allocation2 + $0xf] sm:$0xff] }
  0xa6   : > { %7285 = vrot.lane.b32.xlu1 %v7284_v47, %s8619_s18 }
  0xa7   : > { %7290 = vrot.lane.b32.xlu0 %v7289_v50, %s8620_s10 }
  0xaa   : > { %7295 = vrot.lane.b32.xlu1 %v7259_v48, %s8620_s10  ;;  %v1673_v48 = vpack.c.bf16 %v668_v36, %v667_v34 }
  0xab   : > { %7300 = vrot.lane.b32.xlu0 %v8949_v55, %s8621_s16 }
  0xac   : > { %6898 = vmatprep.mubr.msk.bf16.mxu1 %vm252_vm0, %v1673_v48  ;;  %v390_v48 = vld [vmem:[#allocation2 + $0x7] sm:$0xff] }
  0xad   : > { %6899 = vmatmul.mubr.msk.bf16.gmra.mxu1 %vm252_vm0, %v1676_v44 }
  0xae   : > { %7305 = vrot.lane.b32.xlu1 %v7264_v35, %s8621_s16  ;;  %v9170_v35 = vpack.i.bf16 %v636_v29, %v635_v25  ;;  %v607_v25 = vld [vmem:[#allocation2 + $0x1c7] sm:$0xff]  ;;  %v608_v29 = vld [vmem:[#allocation2 + $0x1cf] sm:$0xff] }
  0xaf   : > { %7310 = vrot.lane.b32.xlu0 %v7309_v54, %s8619_s18 }
  0xb2   : > { %7315 = vrot.lane.b32.xlu1 %v7314_v42, %s8620_s10 }
  0xb3   : > { %7320 = vrot.lane.b32.xlu0 %v7284_v47, %s8620_s10 }
  0xb4   : > { %v9155_v55 = vpop.permute.xlu1 %7040 }
  0xb5   : > { %v9157_v20 = vpop.permute.xlu0 %7035 }
  0xb6   : > { %7325 = vrot.lane.b32.xlu1 %v7324_v11, %s8621_s16 }
  0xb7   : > { %7330 = vrot.lane.b32.xlu0 %v7289_v50, %s8621_s16  ;;  %v9181_v50 = vpack.i.bf16 %v573_v49, %v572_v46  ;;  %v639_v46 = vld [vmem:[#allocation2 + $0x1c8] sm:$0xff] }
  0xb8   : > { %v9163_v24 = vpop.permute.xlu1 %7045 }
  0xb9   : > { %v9165_v33 = vpop.permute.xlu0 %7050 }
  0xba   : > { %7335 = vrot.lane.b32.xlu1 %v7334_v43, %s8619_s18 }
  0xbb   : > { %7340 = vrot.lane.b32.xlu0 %v9161_v23, %s8620_s10 }
  0xbc   : > { %v9172_v45 = vpop.permute.xlu1 %7055 }
  0xbd   : > { %v9175_v47 = vpop.permute.xlu0 %7060 }
  0xbe   : > { %7345 = vrot.lane.b32.xlu1 %v7309_v54, %s8620_s10 }
  0xbf   : > { %7350 = vrot.lane.b32.xlu0 %v9170_v35, %s8621_s16 }
  0xc0   : > { %v9183_v51 = vpop.permute.xlu1 %7065 }
  0xc1   : > { %v9185_v60 = vpop.permute.xlu0 %7070 }
  0xc2   : > { %7355 = vrot.lane.b32.xlu1 %v7314_v42, %s8621_s16 }
  0xc3   : > { %7360 = vrot.lane.b32.xlu0 %v9181_v50, %s8619_s18 }
  0xc4   : > { %v9192_v62 = vpop.permute.xlu1 %7075 }
  0xc5   : > { %v9194_v54 = vpop.permute.xlu0 %7080 }
  0xc6   : > { %11818 = vst [vmem:[#allocation7_spill] sm:$0xff] %v9194_v54  ;;  %7365 = vrot.lane.b32.xlu1 %v7324_v11, %s8619_s18  ;;  %v7032_v11 = vunpack.i.l.bf16 %v9151_v8 }
  0xc7   : > { %7370 = vrot.lane.b32.xlu0 %v9190_v61, %s8620_s10 }
  0xc8   : > { %v7086_v7 = vpop.permute.xlu1 %7085  ;;  %v1447_v2 = vsel %vm252_vm0, %v390_v48, %v7032_v11 }
  0xc9   : > { %v7088_v42 = vunpack.i.h.bf16 %v7086_v7  ;;  %v7087_v9 = vunpack.i.l.bf16 %v7086_v7  ;;  %v7091_v10 = vpop.permute.xlu0 %7090 }
  0xca   : > { %7375 = vrot.lane.b32.xlu1 %v7334_v43, %s8620_s10  ;;  %v7093_v12 = vunpack.i.h.bf16 %v7091_v10  ;;  %v7092_v15 = vunpack.i.l.bf16 %v7091_v10  ;;  %v7033_v43 = vunpack.i.h.bf16 %v9151_v8  ;;  %v9223_v10 = vpack.i.bf16 %v640_v38, %v639_v46 }
  0xcb   : > { %7380 = vrot.lane.b32.xlu0 %v9199_v6, %s8621_s16  ;;  %v1545_v34 = vsel %vm252_vm0, %v8909_v28, %v7087_v9  ;;  %v1546_v36 = vsel %vm252_vm0, %v8916_v30, %v7088_v42  ;;  %v9216_v28 = vpack.i.bf16 %v608_v29, %v607_v25  ;;  %v576_v29 = vld [vmem:[#allocation2 + $0x1c9] sm:$0xff] }
  0xcc   : > { %v7096_v18 = vpop.permute.xlu1 %7095  ;;  %v1577_v30 = vsel %vm1479_vm1, %v1545_v34, %v7092_v15  ;;  %v1578_v8 = vsel %vm1479_vm1, %v1546_v36, %v7093_v12  ;;  %v9230_v34 = vld [vmem:[#allocation2 + $0x1e9] sm:$0xff]  ;;  %v9232_v36 = vld [vmem:[#allocation2 + $0x1f1] sm:$0xff]  ;;  %v1679_v48 = vpack.c.bf16 %v577_v40, %v576_v29 }
  0xcd   : > { %v7101_v44 = vpop.permute.xlu0 %7100  ;;  %v7098_v49 = vunpack.i.h.bf16 %v7096_v18  ;;  %v7097_v52 = vunpack.i.l.bf16 %v7096_v18 }
  0xce   : > { %v7103_v53 = vunpack.i.h.bf16 %v7101_v44  ;;  %v7102_v1 = vunpack.i.l.bf16 %v7101_v44  ;;  %7385 = vrot.lane.b32.xlu1 %v9161_v23, %s8621_s16  ;;  %v1448_v23 = vsel %vm252_vm0, %v391_v39, %v7033_v43  ;;  %v7037_v39 = vunpack.i.l.bf16 %v9157_v20  ;;  %6902 = vmatprep.mubr.msk.bf16.mxu1 %vm252_vm0, %v1679_v48 }
  0xcf   : > { %7390 = vrot.lane.b32.xlu0 %v9204_v16, %s8619_s18  ;;  %v1480_v12 = vsel %vm1479_vm1, %v1447_v2, %v7097_v52  ;;  %v1481_v11 = vsel %vm1479_vm1, %v1448_v23, %v7098_v49 }
  0xd0   : > { %v7106_v7 = vpop.permute.xlu1 %7105  ;;  %v1609_v42 = vsel %vm1512_vm2, %v1577_v30, %v7102_v1  ;;  %v1610_v9 = vsel %vm1512_vm2, %v1578_v8, %v7103_v53  ;;  %v7038_v53 = vunpack.i.h.bf16 %v9157_v20  ;;  %v609_v30 = vld [vmem:[#allocation2 + $0x1e7] sm:$0xff]  ;;  %v610_v8 = vld [vmem:[#allocation2 + $0x1ef] sm:$0xff]  ;;  %v9252_v20 = vpack.i.bf16 %v577_v40, %v576_v29 }
  0xd1   : > { %v7108_v18 = vunpack.i.h.bf16 %v7106_v7  ;;  %v7107_v44 = vunpack.i.l.bf16 %v7106_v7  ;;  %v7111_v54 = vpop.permute.xlu0 %7110  ;;  %v1642_v25 = vpack.c.bf16 %v1610_v9, %v1609_v42 }
  0xd2   : > { %v7112_v15 = vunpack.i.l.bf16 %v7111_v54  ;;  %7395 = vrot.lane.b32.xlu1 %v9170_v35, %s8619_s18  ;;  %v7113_v43 = vunpack.i.h.bf16 %v7111_v54  ;;  %v1682_v35 = vpack.c.bf16 %v9232_v36, %v9230_v34 }
  0xd3   : > { %7400 = vrot.lane.b32.xlu0 %v9216_v28, %s8620_s10  ;;  %1913 = vmatprep.mubr.bf16.mxu0 %v1642_v25  ;;  %v1513_v46 = vsel %vm1512_vm2, %v1480_v12, %v7107_v44  ;;  %v1514_v38 = vsel %vm1512_vm2, %v1481_v11, %v7108_v18  ;;  %v9257_v44 = vpack.i.bf16 %v610_v8, %v609_v30 }
  0xd4   : > { %v7116_v49 = vpop.permute.xlu1 %7115  ;;  %v1641_v52 = vpack.c.bf16 %v1514_v38, %v1513_v46  ;;  %6903 = vmatmul.mubr.msk.bf16.gmra.mxu1 %vm252_vm0, %v1682_v35  ;;  %v1547_v2 = vsel %vm252_vm0, %v8905_v26, %v7112_v15  ;;  %v1548_v9 = vsel %vm252_vm0, %v8907_v27, %v7113_v43  ;;  %v1449_v26 = vsel %vm252_vm0, %v8968_v4, %v7037_v39  ;;  %v9275_v35 = vld [vmem:[#allocation2 + $0x1e8] sm:$0xff]  ;;  %v9277_v39 = vld [vmem:[#allocation2 + $0x1f0] sm:$0xff] }
  0xd5   : > { %v7117_v54 = vunpack.i.l.bf16 %v7116_v49  ;;  %v7121_v1 = vpop.permute.xlu0 %7120  ;;  %v7118_v7 = vunpack.i.h.bf16 %v7116_v49  ;;  %v522_v49 = vld [vmem:[#allocation2 + $0x68] sm:$0xff] }
  0xd6   : > { %v7122_v42 = vunpack.i.l.bf16 %v7121_v1  ;;  %7405 = vrot.lane.b32.xlu1 %v9181_v50, %s8620_s10  ;;  %1914 = vmatmul.mubr.bf16.vlgmr.msra.gmra.mxu0 %v1641_v52  ;;  %v7123_v23 = vunpack.i.h.bf16 %v7121_v1  ;;  %v1450_v50 = vsel %vm252_vm0, %v8970_v5, %v7038_v53  ;;  %v523_v52 = vld [vmem:[#allocation2 + $0x70] sm:$0xff] }
  0xd7   : > { %7410 = vrot.lane.b32.xlu0 %v9223_v10, %s8621_s16  ;;  %6875 = vmatpush3.bf16.msra.mxu0 %v9075_v37  ;;  %v1579_v12 = vsel %vm1479_vm1, %v1547_v2, %v7117_v54  ;;  %v1580_v4 = vsel %vm1479_vm1, %v1548_v9, %v7118_v7  ;;  %v9285_v2 = vpack.i.bf16 %v9277_v39, %v9275_v35  ;;  %v7042_v7 = vunpack.i.l.bf16 %v9155_v55 }
  0xd8   : > { %v7126_v18 = vpop.permute.xlu1 %7125  ;;  %6876 = vmatprep.subr.bf16.mxu0 %v9092_v3  ;;  %v1482_v37 = vsel %vm1479_vm1, %v1449_v26, %v7122_v42  ;;  %v1483_v48 = vsel %vm1479_vm1, %v1450_v50, %v7123_v23 }
  0xd9   : > { %v7128_v27 = vunpack.i.h.bf16 %v7126_v18  ;;  %v7127_v25 = vunpack.i.l.bf16 %v7126_v18  ;;  %v7131_v15 = vpop.permute.xlu0 %7130 }
  0xda   : > { %v7133_v40 = vunpack.i.h.bf16 %v7131_v15  ;;  %v7132_v29 = vunpack.i.l.bf16 %v7131_v15  ;;  %7415 = vrot.lane.b32.xlu1 %v9190_v61, %s8621_s16  ;;  %v9297_v15 = vpack.i.bf16 %v9232_v36, %v9230_v34 }
  0xdb   : > { %7420 = vrot.lane.b32.xlu0 %v9252_v20, %s8619_s18  ;;  %v1611_v11 = vsel %vm1512_vm2, %v1579_v12, %v7127_v25  ;;  %v1612_v5 = vsel %vm1512_vm2, %v1580_v4, %v7128_v27  ;;  %6877 = vmatpush3.bf16.msra.mxu0 %v9092_v3 }
  0xdc   : > { %v7136_v43 = vpop.permute.xlu1 %7135  ;;  %v1645_v46 = vpack.c.bf16 %v1612_v5, %v1611_v11  ;;  %v1515_v38 = vsel %vm1512_vm2, %v1482_v37, %v7132_v29  ;;  %v1516_v61 = vsel %vm1512_vm2, %v1483_v48, %v7133_v40  ;;  %v612_v11 = vld [vmem:[#allocation2 + $0x20f] sm:$0xff] }
  0xdd   : > { %v7138_v53 = vunpack.i.h.bf16 %v7136_v43  ;;  %v7137_v54 = vunpack.i.l.bf16 %v7136_v43  ;;  %v7141_v1 = vpop.permute.xlu0 %7140  ;;  %v1644_v30 = vpack.c.bf16 %v1516_v61, %v1515_v38  ;;  %v9311_v61 = vld [vmem:[#allocation2 + $0x208] sm:$0xff] }
  0xde   : > { %7425 = vrot.lane.b32.xlu1 %v9199_v6, %s8619_s18  ;;  %1921 = vmatprep.mubr.bf16.mxu0 %v1645_v46  ;;  %v7143_v3 = vunpack.i.h.bf16 %v7141_v1  ;;  %v7142_v8 = vunpack.i.l.bf16 %v7141_v1  ;;  %v7043_v6 = vunpack.i.h.bf16 %v9155_v55  ;;  %v1451_v55 = vsel %vm252_vm0, %v8951_v58, %v7042_v7  ;;  %v524_v1 = vld [vmem:[#allocation2 + $0x88] sm:$0xff] }
  0xdf   : > { %7430 = vrot.lane.b32.xlu0 %v9257_v44, %s8620_s10  ;;  %1922 = vmatmul.mubr.bf16.gmra.mxu0 %v1644_v30  ;;  %v1550_v42 = vsel %vm252_vm0, %v523_v52, %v7138_v53  ;;  %v1549_v9 = vsel %vm252_vm0, %v522_v49, %v7137_v54  ;;  %v9313_v49 = vld [vmem:[#allocation2 + $0x210] sm:$0xff]  ;;  %v7047_v7 = vunpack.i.l.bf16 %v9163_v24 }
  0xe0   : > { %v7146_v23 = vpop.permute.xlu1 %7145  ;;  %v1581_v12 = vsel %vm1479_vm1, %v1549_v9, %v7142_v8  ;;  %v1582_v40 = vsel %vm1479_vm1, %v1550_v42, %v7143_v3  ;;  %v1452_v5 = vsel %vm252_vm0, %v8953_v59, %v7043_v6  ;;  %v525_v52 = vld [vmem:[#allocation2 + $0x90] sm:$0xff]  ;;  %v7048_v8 = vunpack.i.h.bf16 %v9163_v24 }
  0xe1   : > { %v7151_v26 = vpop.permute.xlu0 %7150  ;;  %v7148_v18 = vunpack.i.h.bf16 %v7146_v23  ;;  %v7147_v50 = vunpack.i.l.bf16 %v7146_v23  ;;  %v7469_v9 = vpack.i.bf16 %v9313_v49, %v9311_v61  ;;  %v580_v23 = vld [vmem:[#allocation2 + $0x209] sm:$0xff]  ;;  %v581_v6 = vld [vmem:[#allocation2 + $0x211] sm:$0xff] }
  0xe2   : > { %v7153_v27 = vunpack.i.h.bf16 %v7151_v26  ;;  %v7152_v25 = vunpack.i.l.bf16 %v7151_v26  ;;  %7435 = vrot.lane.b32.xlu1 %v9204_v16, %s8620_s10  ;;  %v611_v16 = vld [vmem:[#allocation2 + $0x207] sm:$0xff] }
  0xe3   : > { %7440 = vrot.lane.b32.xlu0 %v9285_v2, %s8621_s16  ;;  %v1484_v58 = vsel %vm1479_vm1, %v1451_v55, %v7147_v50  ;;  %v1485_v38 = vsel %vm1479_vm1, %v1452_v5, %v7148_v18  ;;  %v9317_v59 = vpack.i.bf16 %v612_v11, %v611_v16  ;;  %v1454_v16 = vsel %vm252_vm0, %v9001_v19, %v7048_v8 }
  0xe4   : > { %v7156_v29 = vpop.permute.xlu1 %7155  ;;  %v1613_v4 = vsel %vm1512_vm2, %v1581_v12, %v7152_v25  ;;  %v1614_v37 = vsel %vm1512_vm2, %v1582_v40, %v7153_v27  ;;  %v1685_v27 = vpack.c.bf16 %v581_v6, %v580_v23  ;;  %v677_v25 = vld [vmem:[#allocation2 + $0x229] sm:$0xff]  ;;  %v678_v12 = vld [vmem:[#allocation2 + $0x231] sm:$0xff] }
  0xe5   : > { %v7158_v48 = vunpack.i.h.bf16 %v7156_v29  ;;  %v7157_v34 = vunpack.i.l.bf16 %v7156_v29  ;;  %v7161_v36 = vpop.permute.xlu0 %7160  ;;  %v1648_v43 = vpack.c.bf16 %v1614_v37, %v1613_v4  ;;  %v1688_v29 = vpack.c.bf16 %v678_v12, %v677_v25  ;;  %v645_v12 = vld [vmem:[#allocation2 + $0x228] sm:$0xff] }
  0xe6   : > { %v7163_v46 = vunpack.i.h.bf16 %v7161_v36  ;;  %7445 = vrot.lane.b32.xlu1 %v9216_v28, %s8621_s16  ;;  %v7162_v53 = vunpack.i.l.bf16 %v7161_v36  ;;  %v7479_v37 = vpack.i.bf16 %v581_v6, %v580_v23  ;;  %6906 = vmatprep.mubr.msk.bf16.mxu1 %vm252_vm0, %v1685_v27 }
  0xe7   : > { %7450 = vrot.lane.b32.xlu0 %v9297_v15, %s8619_s18  ;;  %1929 = vmatprep.mubr.bf16.mxu0 %v1648_v43  ;;  %v1517_v54 = vsel %vm1512_vm2, %v1484_v58, %v7157_v34  ;;  %v1518_v28 = vsel %vm1512_vm2, %v1485_v38, %v7158_v48 }
  0xe8   : > { %v7166_v30 = vpop.permute.xlu1 %7165  ;;  %v1647_v3 = vpack.c.bf16 %v1518_v28, %v1517_v54  ;;  %v1552_v26 = vsel %vm252_vm0, %v525_v52, %v7163_v46  ;;  %v1551_v40 = vsel %vm252_vm0, %v524_v1, %v7162_v53  ;;  %6907 = vmatmul.mubr.msk.bf16.gmra.mxu1 %vm252_vm0, %v1688_v29  ;;  %v613_v28 = vld [vmem:[#allocation2 + $0x227] sm:$0xff]  ;;  %v614_v1 = vld [vmem:[#allocation2 + $0x22f] sm:$0xff] }
  0xe9   : > { %v7171_v42 = vpop.permute.xlu0 %7170  ;;  %v7168_v18 = vunpack.i.h.bf16 %v7166_v30  ;;  %v7167_v50 = vunpack.i.l.bf16 %v7166_v30  ;;  %v526_v30 = vld [vmem:[#allocation2 + $0xa8] sm:$0xff] }
  0xea   : > { %7455 = vrot.lane.b32.xlu1 %v9223_v10, %s8619_s18  ;;  %1930 = vmatmul.mubr.bf16.gmra.mxu0 %v1647_v3  ;;  %v7173_v24 = vunpack.i.h.bf16 %v7171_v42  ;;  %v7172_v55 = vunpack.i.l.bf16 %v7171_v42  ;;  %v1453_v10 = vsel %vm252_vm0, %v8995_v17, %v7047_v7  ;;  %v527_v3 = vld [vmem:[#allocation2 + $0xb0] sm:$0xff] }
  0xeb   : > { %7460 = vrot.lane.b32.xlu0 %v9317_v59, %s8620_s10  ;;  %v1583_v43 = vsel %vm1479_vm1, %v1551_v40, %v7167_v50  ;;  %v1584_v46 = vsel %vm1479_vm1, %v1552_v26, %v7168_v18  ;;  %v7489_v26 = vpack.i.bf16 %v614_v1, %v613_v28  ;;  %v7053_v18 = vunpack.i.h.bf16 %v9165_v33  ;;  %v646_v40 = vld [vmem:[#allocation2 + $0x230] sm:$0xff] }
  0xec   : > { %v7176_v4 = vpop.permute.xlu1 %7175  ;;  %v1486_v58 = vsel %vm1479_vm1, %v1453_v10, %v7172_v55  ;;  %v1487_v38 = vsel %vm1479_vm1, %v1454_v16, %v7173_v24  ;;  %v7052_v24 = vunpack.i.l.bf16 %v9165_v33  ;;  %v7058_v1 = vunpack.i.h.bf16 %v9172_v45 }
  0xed   : > { %v7178_v11 = vunpack.i.h.bf16 %v7176_v4  ;;  %v7177_v5 = vunpack.i.l.bf16 %v7176_v4  ;;  %v7181_v48 = vpop.permute.xlu0 %7180 }
  0xee   : > { %v7183_v34 = vunpack.i.h.bf16 %v7181_v48  ;;  %v7182_v36 = vunpack.i.l.bf16 %v7181_v48  ;;  %7465 = vrot.lane.b32.xlu1 %v9252_v20, %s8620_s10 }
  0xef   : > { %7470 = vrot.lane.b32.xlu0 %v7469_v9, %s8621_s16  ;;  %v1615_v19 = vsel %vm1512_vm2, %v1583_v43, %v7177_v5  ;;  %v1616_v17 = vsel %vm1512_vm2, %v1584_v46, %v7178_v11  ;;  %v1456_v5 = vsel %vm252_vm0, %v9023_v32, %v7053_v18 }
  0xf0   : > { %v7186_v52 = vpop.permute.xlu1 %7185  ;;  %v1651_v53 = vpack.c.bf16 %v1616_v17, %v1615_v19  ;;  %v1519_v54 = vsel %vm1512_vm2, %v1486_v58, %v7182_v36  ;;  %v1520_v20 = vsel %vm1512_vm2, %v1487_v38, %v7183_v34  ;;  %v1455_v36 = vsel %vm252_vm0, %v9021_v31, %v7052_v24 }
  0xf1   : > { %v7188_v8 = vunpack.i.h.bf16 %v7186_v52  ;;  %v7187_v7 = vunpack.i.l.bf16 %v7186_v52  ;;  %v7191_v42 = vpop.permute.xlu0 %7190  ;;  %v1650_v9 = vpack.c.bf16 %v1520_v20, %v1519_v54  ;;  %v529_v54 = vld [vmem:[#allocation2 + $0xd0] sm:$0xff] }
  0xf2   : > { %7475 = vrot.lane.b32.xlu1 %v9257_v44, %s8621_s16  ;;  %1937 = vmatprep.mubr.bf16.mxu0 %v1651_v53  ;;  %v7193_v23 = vunpack.i.h.bf16 %v7191_v42  ;;  %v7192_v6 = vunpack.i.l.bf16 %v7191_v42  ;;  %v528_v53 = vld [vmem:[#allocation2 + $0xc8] sm:$0xff] }
  0xf3   : > { %7480 = vrot.lane.b32.xlu0 %v7479_v37, %s8619_s18  ;;  %1938 = vmatmul.mubr.bf16.gmra.mxu0 %v1650_v9  ;;  %v1554_v50 = vsel %vm252_vm0, %v527_v3, %v7188_v8  ;;  %v1553_v27 = vsel %vm252_vm0, %v526_v30, %v7187_v7  ;;  %v7499_v37 = vpack.i.bf16 %v646_v40, %v645_v12 }
  0xf4   : > { %v7196_v25 = vpop.permute.xlu1 %7195  ;;  %v1585_v10 = vsel %vm1479_vm1, %v1553_v27, %v7192_v6  ;;  %v1586_v11 = vsel %vm1479_vm1, %v1554_v50, %v7193_v23 }
  0xf5   : > { %v7201_v55 = vpop.permute.xlu0 %7200  ;;  %v7198_v44 = vunpack.i.h.bf16 %v7196_v25  ;;  %v7197_v29 = vunpack.i.l.bf16 %v7196_v25 }
  0xf6   : > { %v7203_v4 = vunpack.i.h.bf16 %v7201_v55  ;;  %v7202_v16 = vunpack.i.l.bf16 %v7201_v55  ;;  %7485 = vrot.lane.b32.xlu1 %v9285_v2, %s8619_s18 }
  0xf7   : > { %7490 = vrot.lane.b32.xlu0 %v7489_v26, %s8620_s10  ;;  %v1488_v17 = vsel %vm1479_vm1, %v1455_v36, %v7197_v29  ;;  %v1489_v58 = vsel %vm1479_vm1, %v1456_v5, %v7198_v44  ;;  %v1458_v26 = vsel %vm252_vm0, %v9064_v57, %v7058_v1 }
  0xf8   : > { %v7206_v48 = vpop.permute.xlu1 %7205  ;;  %v1617_v33 = vsel %vm1512_vm2, %v1585_v10, %v7202_v16  ;;  %v1618_v34 = vsel %vm1512_vm2, %v1586_v11, %v7203_v4  ;;  %v531_v10 = vld [vmem:[#allocation2 + $0xf0] sm:$0xff] }
  0xf9   : > { %v7208_v43 = vunpack.i.h.bf16 %v7206_v48  ;;  %v7207_v2 = vunpack.i.l.bf16 %v7206_v48  ;;  %v7211_v46 = vpop.permute.xlu0 %7210  ;;  %v1654_v19 = vpack.c.bf16 %v1618_v34, %v1617_v33 }
  0xfa   : > { %7495 = vrot.lane.b32.xlu1 %v9297_v15, %s8620_s10  ;;  %v7213_v32 = vunpack.i.h.bf16 %v7211_v46  ;;  %v7212_v38 = vunpack.i.l.bf16 %v7211_v46  ;;  %v7057_v15 = vunpack.i.l.bf16 %v9172_v45 }
  0xfb   : > { %7500 = vrot.lane.b32.xlu0 %v7499_v37, %s8621_s16  ;;  %1945 = vmatprep.mubr.bf16.mxu0 %v1654_v19  ;;  %v1521_v52 = vsel %vm1512_vm2, %v1488_v17, %v7207_v2  ;;  %v1522_v31 = vsel %vm1512_vm2, %v1489_v58, %v7208_v43  ;;  %v530_v37 = vld [vmem:[#allocation2 + $0xe8] sm:$0xff]  ;;  %v7063_v43 = vunpack.i.h.bf16 %v9175_v47  ;;  %v7062_v17 = vunpack.i.l.bf16 %v9175_v47 }
  0xfc   : > { %v7216_v20 = vpop.permute.xlu1 %7215  ;;  %v1653_v28 = vpack.c.bf16 %v1522_v31, %v1521_v52  ;;  %v1556_v7 = vsel %vm252_vm0, %v529_v54, %v7213_v32  ;;  %v1555_v42 = vsel %vm252_vm0, %v528_v53, %v7212_v38  ;;  %v1457_v45 = vsel %vm252_vm0, %v9062_v56, %v7057_v15 }
  0xfd   : > { %v7221_v30 = vpop.permute.xlu0 %7220  ;;  %v7218_v3 = vunpack.i.h.bf16 %v7216_v20  ;;  %v7217_v8 = vunpack.i.l.bf16 %v7216_v20  ;;  %v1460_v20 = vsel %vm252_vm0, %v9079_v0, %v7063_v43  ;;  %v1459_v47 = vsel %vm252_vm0, %v9077_v63, %v7062_v17  ;;  %v535_v17 = vld [vmem:[#allocation2 + $0x130] sm:$0xff] }
  0xfe   : > { %7505 = vrot.lane.b32.xlu1 %v9317_v59, %s8621_s16  ;;  %1946 = vmatmul.mubr.bf16.gmra.mxu0 %v1653_v28  ;;  %v7223_v9 = vunpack.i.h.bf16 %v7221_v30  ;;  %v7222_v23 = vunpack.i.l.bf16 %v7221_v30  ;;  %v7068_v63 = vunpack.i.h.bf16 %v9183_v51 }
  0xff   : > { %v1587_v59 = vsel %vm1479_vm1, %v1555_v42, %v7217_v8  ;;  %v1588_v40 = vsel %vm1479_vm1, %v1556_v7, %v7218_v3 }
 0x100   : > { %v7226_v6 = vpop.permute.xlu1 %7225  ;;  %v1490_v44 = vsel %vm1479_vm1, %v1457_v45, %v7222_v23  ;;  %v1491_v57 = vsel %vm1479_vm1, %v1458_v26, %v7223_v9  ;;  %v532_v45 = vld [vmem:[#allocation2 + $0x108] sm:$0xff] }
 0x101   : > { %v7228_v18 = vunpack.i.h.bf16 %v7226_v6  ;;  %v7227_v50 = vunpack.i.l.bf16 %v7226_v6  ;;  %v7231_v27 = vpop.permute.xlu0 %7230 }
 0x102   : > { %v7233_v25 = vunpack.i.h.bf16 %v7231_v27  ;;  %v7232_v12 = vunpack.i.l.bf16 %v7231_v27 }
 0x103   : > { %v1619_v24 = vsel %vm1512_vm2, %v1587_v59, %v7227_v50  ;;  %v1620_v55 = vsel %vm1512_vm2, %v1588_v40, %v7228_v18  ;;  %v533_v18 = vld [vmem:[#allocation2 + $0x110] sm:$0xff] }
 0x104   : > { %v7236_v29 = vpop.permute.xlu1 %7235  ;;  %v1657_v4 = vpack.c.bf16 %v1620_v55, %v1619_v24  ;;  %v1523_v56 = vsel %vm1512_vm2, %v1490_v44, %v7232_v12  ;;  %v1524_v16 = vsel %vm1512_vm2, %v1491_v57, %v7233_v25  ;;  %v7067_v25 = vunpack.i.l.bf16 %v9183_v51 }
 0x105   : > { %v7238_v11 = vunpack.i.h.bf16 %v7236_v29  ;;  %v7237_v5 = vunpack.i.l.bf16 %v7236_v29  ;;  %v7241_v48 = vpop.permute.xlu0 %7240  ;;  %v1656_v33 = vpack.c.bf16 %v1524_v16, %v1523_v56 }
 0x106   : > { %1953 = vmatprep.mubr.bf16.mxu0 %v1657_v4  ;;  %v7243_v34 = vunpack.i.h.bf16 %v7241_v48  ;;  %v7242_v36 = vunpack.i.l.bf16 %v7241_v48  ;;  %v1462_v4 = vsel %vm252_vm0, %v9103_v14, %v7068_v63  ;;  %v1461_v56 = vsel %vm252_vm0, %v9101_v13, %v7067_v25 }
 0x107   : > { %1954 = vmatmul.mubr.bf16.gmra.mxu0 %v1656_v33  ;;  %v1558_v2 = vsel %vm252_vm0, %v531_v10, %v7238_v11  ;;  %v1557_v46 = vsel %vm252_vm0, %v530_v37, %v7237_v5 }
 0x108   : > { %v7246_v19 = vpop.permute.xlu1 %7245  ;;  %v1589_v53 = vsel %vm1479_vm1, %v1557_v46, %v7242_v36  ;;  %v1590_v54 = vsel %vm1479_vm1, %v1558_v2, %v7243_v34 }
 0x109   : > { %v7251_v58 = vpop.permute.xlu0 %7250  ;;  %v7248_v32 = vunpack.i.h.bf16 %v7246_v19  ;;  %v7247_v38 = vunpack.i.l.bf16 %v7246_v19  ;;  %v534_v19 = vld [vmem:[#allocation2 + $0x128] sm:$0xff] }
 0x10a   : > { %v7253_v52 = vunpack.i.h.bf16 %v7251_v58  ;;  %v7252_v31 = vunpack.i.l.bf16 %v7251_v58 }
 0x10b   : > { %v1492_v42 = vsel %vm1479_vm1, %v1459_v47, %v7247_v38  ;;  %v1493_v9 = vsel %vm1479_vm1, %v1460_v20, %v7248_v32 }
 0x10c   : > { %v7256_v28 = vpop.permute.xlu1 %7255  ;;  %v1621_v1 = vsel %vm1512_vm2, %v1589_v53, %v7252_v31  ;;  %v1622_v15 = vsel %vm1512_vm2, %v1590_v54, %v7253_v52  ;;  %v7073_v54 = vunpack.i.h.bf16 %v9185_v60 }
 0x10d   : > { %v7258_v30 = vunpack.i.h.bf16 %v7256_v28  ;;  %v7257_v3 = vunpack.i.l.bf16 %v7256_v28  ;;  %v7261_v8 = vpop.permute.xlu0 %7260  ;;  %v1660_v7 = vpack.c.bf16 %v1622_v15, %v1621_v1  ;;  %v7072_v15 = vunpack.i.l.bf16 %v9185_v60 }
 0x10e   : > { %v7263_v23 = vunpack.i.h.bf16 %v7261_v8  ;;  %v7262_v6 = vunpack.i.l.bf16 %v7261_v8 }
 0x10f   : > { %1961 = vmatprep.mubr.bf16.mxu0 %v1660_v7  ;;  %v1525_v0 = vsel %vm1512_vm2, %v1492_v42, %v7257_v3  ;;  %v1526_v26 = vsel %vm1512_vm2, %v1493_v9, %v7258_v30  ;;  %v1463_v60 = vsel %vm252_vm0, %v9112_v21, %v7072_v15  ;;  %v7078_v21 = vunpack.i.h.bf16 %v9192_v62 }
 0x110   : > { %v7266_v50 = vpop.permute.xlu1 %7265  ;;  %v1659_v27 = vpack.c.bf16 %v1526_v26, %v1525_v0  ;;  %v1560_v24 = vsel %vm252_vm0, %v533_v18, %v7263_v23  ;;  %v1559_v55 = vsel %vm252_vm0, %v532_v45, %v7262_v6  ;;  %v1464_v23 = vsel %vm252_vm0, %v9114_v22, %v7073_v54  ;;  %v539_v54 = vld [vmem:[#allocation2 + $0x170] sm:$0xff] }
 0x111   : > { %v7271_v12 = vpop.permute.xlu0 %7270  ;;  %v7268_v59 = vunpack.i.h.bf16 %v7266_v50  ;;  %v7267_v40 = vunpack.i.l.bf16 %v7266_v50 }
 0x112   : > { %1962 = vmatmul.mubr.bf16.gmra.mxu0 %v1659_v27  ;;  %v7273_v44 = vunpack.i.h.bf16 %v7271_v12  ;;  %v7272_v57 = vunpack.i.l.bf16 %v7271_v12 }
 0x113   : > { %v1591_v5 = vsel %vm1479_vm1, %v1559_v55, %v7267_v40  ;;  %v1592_v48 = vsel %vm1479_vm1, %v1560_v24, %v7268_v59  ;;  %v536_v24 = vld [vmem:[#allocation2 + $0x148] sm:$0xff]  ;;  %v537_v55 = vld [vmem:[#allocation2 + $0x150] sm:$0xff] }
 0x114   : > { %v7276_v29 = vpop.permute.xlu1 %7275  ;;  %v1494_v36 = vsel %vm1479_vm1, %v1461_v56, %v7272_v57  ;;  %v1495_v14 = vsel %vm1479_vm1, %v1462_v4, %v7273_v44 }
 0x115   : > { %v7278_v16 = vunpack.i.h.bf16 %v7276_v29  ;;  %v7277_v37 = vunpack.i.l.bf16 %v7276_v29  ;;  %v7281_v51 = vpop.permute.xlu0 %7280  ;;  %v7077_v29 = vunpack.i.l.bf16 %v9192_v62 }
 0x116   : > { %v7283_v10 = vunpack.i.h.bf16 %v7281_v51  ;;  %v7282_v11 = vunpack.i.l.bf16 %v7281_v51 }
 0x117   : > { %v1623_v33 = vsel %vm1512_vm2, %v1591_v5, %v7277_v37  ;;  %v1624_v34 = vsel %vm1512_vm2, %v1592_v48, %v7278_v16  ;;  %v1466_v48 = vsel %vm252_vm0, %v9131_v41, %v7078_v21 }
 0x118   : > { %v7286_v43 = vpop.permute.xlu1 %7285  ;;  %v1663_v2 = vpack.c.bf16 %v1624_v34, %v1623_v33  ;;  %v1527_v13 = vsel %vm1512_vm2, %v1494_v36, %v7282_v11  ;;  %v1528_v46 = vsel %vm1512_vm2, %v1495_v14, %v7283_v10  ;;  %v11819_v33 = vld [vmem:[#allocation6_spill] sm:$0xff] }
 0x119   : > { %v7288_v58 = vunpack.i.h.bf16 %v7286_v43  ;;  %v7287_v32 = vunpack.i.l.bf16 %v7286_v43  ;;  %v7291_v38 = vpop.permute.xlu0 %7290  ;;  %v1662_v52 = vpack.c.bf16 %v1528_v46, %v1527_v13  ;;  %v1465_v34 = vsel %vm252_vm0, %v11819_v33, %v7077_v29 }
 0x11a   : > { %1969 = vmatprep.mubr.bf16.mxu0 %v1663_v2  ;;  %v7293_v31 = vunpack.i.h.bf16 %v7291_v38  ;;  %v7292_v53 = vunpack.i.l.bf16 %v7291_v38 }
 0x11b   : > { %1970 = vmatmul.mubr.bf16.gmra.mxu0 %v1662_v52  ;;  %v1562_v20 = vsel %vm252_vm0, %v535_v17, %v7288_v58  ;;  %v1561_v28 = vsel %vm252_vm0, %v534_v19, %v7287_v32 }
 0x11c   : > { %v7296_v1 = vpop.permute.xlu1 %7295  ;;  %v1593_v42 = vsel %vm1479_vm1, %v1561_v28, %v7292_v53  ;;  %v1594_v9 = vsel %vm1479_vm1, %v1562_v20, %v7293_v31  ;;  %v538_v53 = vld [vmem:[#allocation2 + $0x168] sm:$0xff] }
 0x11d   : > { %v7301_v47 = vpop.permute.xlu0 %7300  ;;  %v7298_v30 = vunpack.i.h.bf16 %v7296_v1  ;;  %v7297_v3 = vunpack.i.l.bf16 %v7296_v1 }
 0x11e   : > { %v7303_v8 = vunpack.i.h.bf16 %v7301_v47  ;;  %v7302_v7 = vunpack.i.l.bf16 %v7301_v47 }
 0x11f   : > { %v1496_v63 = vsel %vm1479_vm1, %v1463_v60, %v7297_v3  ;;  %v1497_v25 = vsel %vm1479_vm1, %v1464_v23, %v7298_v30  ;;  %v11820_v3 = vld [vmem:[#allocation7_spill] sm:$0xff] }
 0x120   : > { %v7306_v6 = vpop.permute.xlu1 %7305  ;;  %v1625_v0 = vsel %vm1512_vm2, %v1593_v42, %v7302_v7  ;;  %v1626_v26 = vsel %vm1512_vm2, %v1594_v9, %v7303_v8  ;;  %v7083_v8 = vunpack.i.h.bf16 %v11820_v3  ;;  %v7082_v23 = vunpack.i.l.bf16 %v11820_v3 }
 0x121   : > { %v7308_v45 = vunpack.i.h.bf16 %v7306_v6  ;;  %v7307_v18 = vunpack.i.l.bf16 %v7306_v6  ;;  %v7311_v50 = vpop.permute.xlu0 %7310  ;;  %v1666_v27 = vpack.c.bf16 %v1626_v26, %v1625_v0 }
 0x122   : > { %v7313_v12 = vunpack.i.h.bf16 %v7311_v50  ;;  %v7312_v59 = vunpack.i.l.bf16 %v7311_v50 }
 0x123   : > { %1977 = vmatprep.mubr.bf16.mxu0 %v1666_v27  ;;  %v1529_v22 = vsel %vm1512_vm2, %v1496_v63, %v7307_v18  ;;  %v1530_v40 = vsel %vm1512_vm2, %v1497_v25, %v7308_v45  ;;  %v8523_v27 = vld [vmem:[#allocation2 + $0x14f] sm:$0xff] }
 0x124   : > { %v7316_v44 = vpop.permute.xlu1 %7315  ;;  %v1665_v57 = vpack.c.bf16 %v1530_v40, %v1529_v22  ;;  %v1564_v37 = vsel %vm252_vm0, %v537_v55, %v7313_v12  ;;  %v1563_v51 = vsel %vm252_vm0, %v536_v24, %v7312_v59  ;;  %v1468_v63 = vsel %vm252_vm0, %v8523_v27, %v7083_v8  ;;  %v8524_v22 = vld [vmem:[#allocation2 + $0x147] sm:$0xff] }
 0x125   : > { %v7321_v4 = vpop.permute.xlu0 %7320  ;;  %v7318_v56 = vunpack.i.h.bf16 %v7316_v44  ;;  %v7317_v16 = vunpack.i.l.bf16 %v7316_v44  ;;  %v1467_v40 = vsel %vm252_vm0, %v8524_v22, %v7082_v23 }
 0x126   : > { %1978 = vmatmul.mubr.bf16.gmra.mxu0 %v1665_v57  ;;  %v7323_v10 = vunpack.i.h.bf16 %v7321_v4  ;;  %v7322_v11 = vunpack.i.l.bf16 %v7321_v4 }
 0x127   : > { %v1595_v13 = vsel %vm1479_vm1, %v1563_v51, %v7317_v16  ;;  %v1596_v46 = vsel %vm1479_vm1, %v1564_v37, %v7318_v56 }
 0x128   : > { %v7326_v5 = vpop.permute.xlu1 %7325  ;;  %v1498_v58 = vsel %vm1479_vm1, %v1465_v34, %v7322_v11  ;;  %v1499_v41 = vsel %vm1479_vm1, %v1466_v48, %v7323_v10  ;;  %v540_v11 = vld [vmem:[#allocation2 + $0x188] sm:$0xff] }
 0x129   : > { %v7328_v36 = vunpack.i.h.bf16 %v7326_v5  ;;  %v7327_v14 = vunpack.i.l.bf16 %v7326_v5  ;;  %v7331_v62 = vpop.permute.xlu0 %7330  ;;  %v541_v5 = vld [vmem:[#allocation2 + $0x190] sm:$0xff] }
 0x12a   : > { %v7333_v43 = vunpack.i.h.bf16 %v7331_v62  ;;  %v7332_v2 = vunpack.i.l.bf16 %v7331_v62 }
 0x12b   : > { %v1627_v19 = vsel %vm1512_vm2, %v1595_v13, %v7327_v14  ;;  %v1628_v17 = vsel %vm1512_vm2, %v1596_v46, %v7328_v36 }
 0x12c   : > { %v7336_v32 = vpop.permute.xlu1 %7335  ;;  %v1669_v38 = vpack.c.bf16 %v1628_v17, %v1627_v19  ;;  %v1531_v52 = vsel %vm1512_vm2, %v1498_v58, %v7332_v2  ;;  %v1532_v31 = vsel %vm1512_vm2, %v1499_v41, %v7333_v43  ;;  %v413_v2 = vld [vmem:[#allocation2 + $0x16f] sm:$0xff]  ;;  %v412_v19 = vld [vmem:[#allocation2 + $0x167] sm:$0xff] }
 0x12d   : > { %v7338_v20 = vunpack.i.h.bf16 %v7336_v32  ;;  %v7337_v28 = vunpack.i.l.bf16 %v7336_v32  ;;  %v7341_v1 = vpop.permute.xlu0 %7340  ;;  %v1668_v15 = vpack.c.bf16 %v1532_v31, %v1531_v52 }
 0x12e   : > { %1985 = vmatprep.mubr.bf16.mxu0 %v1669_v38  ;;  %v7343_v47 = vunpack.i.h.bf16 %v7341_v1  ;;  %v7342_v30 = vunpack.i.l.bf16 %v7341_v1 }
 0x12f   : > { %1986 = vmatmul.mubr.bf16.gmra.mxu0 %v1668_v15  ;;  %v1566_v7 = vsel %vm252_vm0, %v539_v54, %v7338_v20  ;;  %v1565_v42 = vsel %vm252_vm0, %v538_v53, %v7337_v28 }
 0x130   : > { %v7346_v9 = vpop.permute.xlu1 %7345  ;;  %v1597_v18 = vsel %vm1479_vm1, %v1565_v42, %v7342_v30  ;;  %v1598_v50 = vsel %vm1479_vm1, %v1566_v7, %v7343_v47 }
 0x131   : > { %v7351_v6 = vpop.permute.xlu0 %7350  ;;  %v7348_v0 = vunpack.i.h.bf16 %v7346_v9  ;;  %v7347_v26 = vunpack.i.l.bf16 %v7346_v9 }
 0x132   : > { %v7353_v60 = vunpack.i.h.bf16 %v7351_v6  ;;  %v7352_v45 = vunpack.i.l.bf16 %v7351_v6 }
 0x133   : > { %v1500_v21 = vsel %vm1479_vm1, %v1467_v40, %v7347_v26  ;;  %v1501_v29 = vsel %vm1479_vm1, %v1468_v63, %v7348_v0  ;;  %v542_v26 = vld [vmem:[#allocation2 + $0x1a8] sm:$0xff] }
 0x134   : > { %v7356_v25 = vpop.permute.xlu1 %7355  ;;  %v1629_v12 = vsel %vm1512_vm2, %v1597_v18, %v7352_v45  ;;  %v1630_v59 = vsel %vm1512_vm2, %v1598_v50, %v7353_v60  ;;  %v543_v60 = vld [vmem:[#allocation2 + $0x1b0] sm:$0xff] }
 0x135   : > { %v7358_v24 = vunpack.i.h.bf16 %v7356_v25  ;;  %v7357_v55 = vunpack.i.l.bf16 %v7356_v25  ;;  %v7361_v44 = vpop.permute.xlu0 %7360  ;;  %v1672_v57 = vpack.c.bf16 %v1630_v59, %v1629_v12  ;;  %v415_v59 = vld [vmem:[#allocation2 + $0x18f] sm:$0xff] }
 0x136   : > { %v7363_v16 = vunpack.i.h.bf16 %v7361_v44  ;;  %v7362_v37 = vunpack.i.l.bf16 %v7361_v44 }
 0x137   : > { %1993 = vmatprep.mubr.bf16.mxu0 %v1672_v57  ;;  %v1533_v4 = vsel %vm1512_vm2, %v1500_v21, %v7357_v55  ;;  %v1534_v56 = vsel %vm1512_vm2, %v1501_v29, %v7358_v24  ;;  %v414_v24 = vld [vmem:[#allocation2 + $0x187] sm:$0xff] }
 0x138   : > { %v7366_v51 = vpop.permute.xlu1 %7365  ;;  %v1671_v10 = vpack.c.bf16 %v1534_v56, %v1533_v4  ;;  %v1568_v36 = vsel %vm252_vm0, %v541_v5, %v7363_v16  ;;  %v1567_v14 = vsel %vm252_vm0, %v540_v11, %v7362_v37 }
 0x139   : > { %v7371_v48 = vpop.permute.xlu0 %7370  ;;  %v7368_v62 = vunpack.i.h.bf16 %v7366_v51  ;;  %v7367_v13 = vunpack.i.l.bf16 %v7366_v51 }
 0x13a   : > { %1994 = vmatmul.mubr.bf16.gmra.mxu0 %v1671_v10  ;;  %v7373_v33 = vunpack.i.h.bf16 %v7371_v48  ;;  %v7372_v34 = vunpack.i.l.bf16 %v7371_v48 }
 0x13b   : > { %v1470_v31 = vsel %vm252_vm0, %v413_v2, %v7368_v62  ;;  %v1469_v28 = vsel %vm252_vm0, %v412_v19, %v7367_v13  ;;  %v2372_v2 = vld [vmem:[#allocation2 + $0x10] sm:$0xff] }
 0x13c   : > { %v7376_v43 = vpop.permute.xlu1 %7375  ;;  %v1599_v38 = vsel %vm1479_vm1, %v1567_v14, %v7372_v34  ;;  %v1600_v52 = vsel %vm1479_vm1, %v1568_v36, %v7373_v33 }
 0x13d   : > { %v7381_v46 = vpop.permute.xlu0 %7380  ;;  %v7378_v17 = vunpack.i.h.bf16 %v7376_v43  ;;  %v7377_v58 = vunpack.i.l.bf16 %v7376_v43  ;;  %v2371_v43 = vld [vmem:[#allocation2 + $0x8] sm:$0xff] }
 0x13e   : > { %v7383_v41 = vunpack.i.h.bf16 %v7381_v46  ;;  %v7382_v32 = vunpack.i.l.bf16 %v7381_v46 }
 0x13f   : > { %v1502_v3 = vsel %vm1479_vm1, %v1469_v28, %v7377_v58  ;;  %v1503_v8 = vsel %vm1479_vm1, %v1470_v31, %v7378_v17  ;;  %v7509_v58 = vpack.i.bf16 %v2372_v2, %v2371_v43  ;;  %v2404_v31 = vld [vmem:[#allocation2 + $0x11] sm:$0xff] }
 0x140   : > { %v7386_v53 = vpop.permute.xlu1 %7385  ;;  %v1631_v54 = vsel %vm1512_vm2, %v1599_v38, %v7382_v32  ;;  %v1632_v20 = vsel %vm1512_vm2, %v1600_v52, %v7383_v41  ;;  %v2403_v52 = vld [vmem:[#allocation2 + $0x9] sm:$0xff] }
 0x141   : > { %v7388_v1 = vunpack.i.h.bf16 %v7386_v53  ;;  %v7387_v15 = vunpack.i.l.bf16 %v7386_v53  ;;  %v7391_v47 = vpop.permute.xlu0 %7390  ;;  %v1675_v30 = vpack.c.bf16 %v1632_v20, %v1631_v54  ;;  %7510 = vrot.lane.b32.xlu0 %v7509_v58, %s8619_s18  ;;  %v8525_v53 = vld [vmem:[#allocation2 + $0x1d0] sm:$0xff]  ;;  %v8526_v20 = vld [vmem:[#allocation2 + $0x1c8] sm:$0xff] }
 0x142   : > { %v7393_v9 = vunpack.i.h.bf16 %v7391_v47  ;;  %v7392_v23 = vunpack.i.l.bf16 %v7391_v47  ;;  %v7514_v47 = vpack.i.bf16 %v2404_v31, %v2403_v52 }
 0x143   : > { %2001 = vmatprep.mubr.bf16.mxu0 %v1675_v30  ;;  %v1535_v7 = vsel %vm1512_vm2, %v1502_v3, %v7387_v15  ;;  %v1536_v42 = vsel %vm1512_vm2, %v1503_v8, %v7388_v1  ;;  %v417_v30 = vld [vmem:[#allocation2 + $0x1af] sm:$0xff] }
 0x144   : > { %v7396_v6 = vpop.permute.xlu1 %7395  ;;  %v1674_v0 = vpack.c.bf16 %v1536_v42, %v1535_v7  ;;  %v1570_v27 = vsel %vm252_vm0, %v543_v60, %v7393_v9  ;;  %v1569_v63 = vsel %vm252_vm0, %v542_v26, %v7392_v23  ;;  %v416_v7 = vld [vmem:[#allocation2 + $0x1a7] sm:$0xff] }
 0x145   : > { %v7401_v45 = vpop.permute.xlu0 %7400  ;;  %v7398_v25 = vunpack.i.h.bf16 %v7396_v6  ;;  %v7397_v22 = vunpack.i.l.bf16 %v7396_v6  ;;  %7515 = vrot.lane.b32.xlu0 %v7514_v47, %s8620_s10 }
 0x146   : > { %2002 = vmatmul.mubr.bf16.gmra.mxu0 %v1674_v0  ;;  %v7403_v18 = vunpack.i.h.bf16 %v7401_v45  ;;  %v7402_v50 = vunpack.i.l.bf16 %v7401_v45 }
 0x147   : > { %v1472_v56 = vsel %vm252_vm0, %v415_v59, %v7398_v25  ;;  %v1471_v10 = vsel %vm252_vm0, %v414_v24, %v7397_v22 }
 0x148   : > { %v7406_v12 = vpop.permute.xlu1 %7405  ;;  %v1601_v29 = vsel %vm1479_vm1, %v1569_v63, %v7402_v50  ;;  %v1602_v4 = vsel %vm1479_vm1, %v1570_v27, %v7403_v18 }
 0x149   : > { %v7411_v40 = vpop.permute.xlu0 %7410  ;;  %v7408_v55 = vunpack.i.h.bf16 %v7406_v12  ;;  %v7407_v44 = vunpack.i.l.bf16 %v7406_v12 }
 0x14a   : > { %v7413_v57 = vunpack.i.h.bf16 %v7411_v40  ;;  %v7412_v21 = vunpack.i.l.bf16 %v7411_v40 }
 0x14b   : > { %v1504_v34 = vsel %vm1479_vm1, %v1471_v10, %v7407_v44  ;;  %v1505_v36 = vsel %vm1479_vm1, %v1472_v56, %v7408_v55 }
 0x14c   : > { %v7416_v16 = vpop.permute.xlu1 %7415  ;;  %v1633_v37 = vsel %vm1512_vm2, %v1601_v29, %v7412_v21  ;;  %v1634_v51 = vsel %vm1512_vm2, %v1602_v4, %v7413_v57 }
 0x14d   : > { %v7418_v11 = vunpack.i.h.bf16 %v7416_v16  ;;  %v7417_v5 = vunpack.i.l.bf16 %v7416_v16  ;;  %v7421_v48 = vpop.permute.xlu0 %7420  ;;  %v1678_v33 = vpack.c.bf16 %v1634_v51, %v1633_v37 }
 0x14e   : > { %v7423_v13 = vunpack.i.h.bf16 %v7421_v48  ;;  %v7422_v46 = vunpack.i.l.bf16 %v7421_v48 }
 0x14f   : > { %2009 = vmatprep.mubr.bf16.mxu0 %v1678_v33  ;;  %v1537_v14 = vsel %vm1512_vm2, %v1504_v34, %v7417_v5  ;;  %v1538_v62 = vsel %vm1512_vm2, %v1505_v36, %v7418_v11  ;;  %v419_v5 = vld [vmem:[#allocation2 + $0x1cf] sm:$0xff]  ;;  %v418_v34 = vld [vmem:[#allocation2 + $0x1c7] sm:$0xff] }
 0x150   : > { %v7426_v19 = vpop.permute.xlu1 %7425  ;;  %v1677_v17 = vpack.c.bf16 %v1538_v62, %v1537_v14  ;;  %v1572_v54 = vsel %vm252_vm0, %v8525_v53, %v7423_v13  ;;  %v1571_v28 = vsel %vm252_vm0, %v8526_v20, %v7422_v46 }
 0x151   : > { %v7431_v41 = vpop.permute.xlu0 %7430  ;;  %v7428_v1 = vunpack.i.h.bf16 %v7426_v19  ;;  %v7427_v3 = vunpack.i.l.bf16 %v7426_v19 }
 0x152   : > { %2010 = vmatmul.mubr.bf16.gmra.mxu0 %v1677_v17  ;;  %v7433_v32 = vunpack.i.h.bf16 %v7431_v41  ;;  %v7432_v38 = vunpack.i.l.bf16 %v7431_v41 }
 0x153   : > { %v1474_v60 = vsel %vm252_vm0, %v417_v30, %v7428_v1  ;;  %v1473_v27 = vsel %vm252_vm0, %v416_v7, %v7427_v3 }
 0x154   : > { %v7436_v15 = vpop.permute.xlu1 %7435  ;;  %v1603_v0 = vsel %vm1479_vm1, %v1571_v28, %v7432_v38  ;;  %v1604_v26 = vsel %vm1479_vm1, %v1572_v54, %v7433_v32 }
 0x155   : > { %v7441_v8 = vpop.permute.xlu0 %7440  ;;  %v7438_v42 = vunpack.i.h.bf16 %v7436_v15  ;;  %v7437_v9 = vunpack.i.l.bf16 %v7436_v15 }
 0x156   : > { %v7443_v23 = vunpack.i.h.bf16 %v7441_v8  ;;  %v7442_v6 = vunpack.i.l.bf16 %v7441_v8 }
 0x157   : > { %v1506_v22 = vsel %vm1479_vm1, %v1473_v27, %v7437_v9  ;;  %v1507_v40 = vsel %vm1479_vm1, %v1474_v60, %v7438_v42 }
 0x158   : > { %v7446_v45 = vpop.permute.xlu1 %7445  ;;  %v1635_v18 = vsel %vm1512_vm2, %v1603_v0, %v7442_v6  ;;  %v1636_v50 = vsel %vm1512_vm2, %v1604_v26, %v7443_v23  ;;  %v421_v23 = vld [vmem:[#allocation2 + $0x1ef] sm:$0xff]  ;;  %v420_v26 = vld [vmem:[#allocation2 + $0x1e7] sm:$0xff] }
 0x159   : > { %v7448_v63 = vunpack.i.h.bf16 %v7446_v45  ;;  %v7447_v25 = vunpack.i.l.bf16 %v7446_v45  ;;  %v7451_v12 = vpop.permute.xlu0 %7450  ;;  %v1681_v59 = vpack.c.bf16 %v1636_v50, %v1635_v18 }
 0x15a   : > { %v7453_v44 = vunpack.i.h.bf16 %v7451_v12  ;;  %v7452_v57 = vunpack.i.l.bf16 %v7451_v12 }
 0x15b   : > { %2017 = vmatprep.mubr.bf16.mxu0 %v1681_v59  ;;  %v1539_v24 = vsel %vm1512_vm2, %v1506_v22, %v7447_v25  ;;  %v1540_v55 = vsel %vm1512_vm2, %v1507_v40, %v7448_v63  ;;  %v647_v59 = vld [vmem:[#allocation2 + $0x49] sm:$0xff]  ;;  %v648_v22 = vld [vmem:[#allocation2 + $0x51] sm:$0xff] }
 0x15c   : > { %v7456_v21 = vpop.permute.xlu1 %7455  ;;  %v1680_v29 = vpack.c.bf16 %v1540_v55, %v1539_v24  ;;  %v1574_v37 = vsel %vm252_vm0, %v9277_v39, %v7453_v44  ;;  %v1573_v51 = vsel %vm252_vm0, %v9275_v35, %v7452_v57 }
 0x15d   : > { %v7461_v4 = vpop.permute.xlu0 %7460  ;;  %v7458_v10 = vunpack.i.h.bf16 %v7456_v21  ;;  %v7457_v48 = vunpack.i.l.bf16 %v7456_v21 }
 0x15e   : > { %2018 = vmatmul.mubr.bf16.gmra.mxu0 %v1680_v29  ;;  %v7463_v56 = vunpack.i.h.bf16 %v7461_v4  ;;  %v7462_v16 = vunpack.i.l.bf16 %v7461_v4 }
 0x15f   : > { %v1476_v46 = vsel %vm252_vm0, %v419_v5, %v7458_v10  ;;  %v1475_v17 = vsel %vm252_vm0, %v418_v34, %v7457_v48  ;;  %v651_v10 = vld [vmem:[#allocation2 + $0x89] sm:$0xff]  ;;  %v654_v34 = vld [vmem:[#allocation2 + $0xb1] sm:$0xff] }
 0x160   : > { %v7466_v11 = vpop.permute.xlu1 %7465  ;;  %v1605_v2 = vsel %vm1479_vm1, %v1573_v51, %v7462_v16  ;;  %v1606_v13 = vsel %vm1479_vm1, %v1574_v37, %v7463_v56  ;;  %v1643_v56 = vpack.c.bf16 %v648_v22, %v647_v59  ;;  %v649_v37 = vld [vmem:[#allocation2 + $0x69] sm:$0xff]  ;;  %v650_v51 = vld [vmem:[#allocation2 + $0x71] sm:$0xff] }
 0x161   : > { %v7471_v33 = vpop.permute.xlu0 %7470  ;;  %v7468_v36 = vunpack.i.h.bf16 %v7466_v11  ;;  %v7467_v14 = vunpack.i.l.bf16 %v7466_v11  ;;  %v652_v11 = vld [vmem:[#allocation2 + $0x91] sm:$0xff]  ;;  %v1646_v5 = vpack.c.bf16 %v650_v51, %v649_v37 }
 0x162   : > { %v7473_v62 = vunpack.i.h.bf16 %v7471_v33  ;;  %v7472_v43 = vunpack.i.l.bf16 %v7471_v33  ;;  %v1649_v48 = vpack.c.bf16 %v652_v11, %v651_v10  ;;  %v653_v33 = vld [vmem:[#allocation2 + $0xa9] sm:$0xff] }
 0x163   : > { %v1508_v52 = vsel %vm1479_vm1, %v1475_v17, %v7467_v14  ;;  %v1509_v31 = vsel %vm1479_vm1, %v1476_v46, %v7468_v36  ;;  %v1652_v36 = vpack.c.bf16 %v654_v34, %v653_v33 }
 0x164   : > { %v7476_v39 = vpop.permute.xlu1 %7475  ;;  %v1637_v19 = vsel %vm1512_vm2, %v1605_v2, %v7472_v43  ;;  %v1638_v35 = vsel %vm1512_vm2, %v1606_v13, %v7473_v62 }
 0x165   : > { %v7478_v58 = vunpack.i.h.bf16 %v7476_v39  ;;  %v7477_v41 = vunpack.i.l.bf16 %v7476_v39  ;;  %v7481_v32 = vpop.permute.xlu0 %7480  ;;  %v1684_v38 = vpack.c.bf16 %v1638_v35, %v1637_v19 }
 0x166   : > { %v7483_v20 = vunpack.i.h.bf16 %v7481_v32  ;;  %v7482_v28 = vunpack.i.l.bf16 %v7481_v32 }
 0x167   : > { %2025 = vmatprep.mubr.bf16.mxu0 %v1684_v38  ;;  %v1541_v53 = vsel %vm1512_vm2, %v1508_v52, %v7477_v41  ;;  %v1542_v54 = vsel %vm1512_vm2, %v1509_v31, %v7478_v58 }
 0x168   : > { %v7486_v1 = vpop.permute.xlu1 %7485  ;;  %v1683_v15 = vpack.c.bf16 %v1542_v54, %v1541_v53  ;;  %v1576_v8 = vsel %vm252_vm0, %v9313_v49, %v7483_v20  ;;  %v1575_v7 = vsel %vm252_vm0, %v9311_v61, %v7482_v28  ;;  %v2203_v54 = vlaneseq }
 0x169   : > { %v7491_v47 = vpop.permute.xlu0 %7490  ;;  %v7488_v42 = vunpack.i.h.bf16 %v7486_v1  ;;  %v7487_v6 = vunpack.i.l.bf16 %v7486_v1  ;;  %v6888_v1 = vpop.f32.mrf.mxu1 }
 0x16a   : > { %2026 = vmatmul.mubr.bf16.gmra.mxu0 %v1683_v15  ;;  %v7493_v30 = vunpack.i.h.bf16 %v7491_v47  ;;  %v7492_v3 = vunpack.i.l.bf16 %v7491_v47  ;;  %v9561_v15 = vshrl.u32 %v2203_v54, 7 }
 0x16b   : > { %v1478_v25 = vsel %vm252_vm0, %v421_v23, %v7488_v42  ;;  %v1477_v40 = vsel %vm252_vm0, %v420_v26, %v7487_v6 }
 0x16c   : > { %v7496_v9 = vpop.permute.xlu1 %7495  ;;  %v1607_v27 = vsel %vm1479_vm1, %v1575_v7, %v7492_v3  ;;  %v1608_v63 = vsel %vm1479_vm1, %v1576_v8, %v7493_v30  ;;  %11821 = vst [vmem:[#allocation6_spill] sm:$0xff] %v9561_v15  ;;  %v2108_v30 = vpop.f32.mrf.mxu1  ;;  %v2205_v3 = vsub.s32 0, %v9561_v15  ;;  %v250_v7 = vld [vmem:[%s11726_s4] sm:$0x7] }
 0x16d   : > { %v7501_v0 = vpop.permute.xlu0 %7500  ;;  %v7498_v60 = vunpack.i.h.bf16 %v7496_v9  ;;  %v7497_v45 = vunpack.i.l.bf16 %v7496_v9  ;;  %v251_v9 = vld [vmem:[%s11727_s5] sm:$0x7] }
 0x16e   : > { %v7503_v18 = vunpack.i.h.bf16 %v7501_v0  ;;  %v7502_v50 = vunpack.i.l.bf16 %v7501_v0  ;;  %v6889_v23 = vpop.f32.mrf.mxu1  ;;  %v9572_v0 = vrot.slane %v250_v7, %v2205_v3 }
 0x16f   : > { %v1510_v57 = vsel %vm1479_vm1, %v1477_v40, %v7497_v45  ;;  %v1511_v21 = vsel %vm1479_vm1, %v1478_v25, %v7498_v60  ;;  %v9574_v45 = vrot.slane %v251_v9, %v2205_v3 }
 0x170   : > { %v7506_v49 = vpop.permute.xlu1 %7505  ;;  %v1639_v12 = vsel %vm1512_vm2, %v1607_v27, %v7502_v50  ;;  %v1640_v61 = vsel %vm1512_vm2, %v1608_v63, %v7503_v18  ;;  %v2111_v50 = vpop.f32.mrf.mxu1 }
 0x171   : > { %v7508_v24 = vunpack.i.h.bf16 %v7506_v49  ;;  %v7507_v55 = vunpack.i.l.bf16 %v7506_v49  ;;  %v1687_v44 = vpack.c.bf16 %v1640_v61, %v1639_v12 }
 0x173   : > { %2033 = vmatprep.mubr.bf16.mxu0 %v1687_v44  ;;  %v1543_v29 = vsel %vm1512_vm2, %v1510_v57, %v7507_v55  ;;  %v1544_v4 = vsel %vm1512_vm2, %v1511_v21, %v7508_v24  ;;  %v6892_v57 = vpop.f32.mrf.mxu1 }
 0x174   : > { %v1686_v16 = vpack.c.bf16 %v1544_v4, %v1543_v29 }
 0x175   : > { %v2124_v51 = vpop.f32.mrf.mxu1 }
 0x176   : > { %2034 = vmatmul.mubr.bf16.gmra.mxu0 %v1686_v16 }
 0x177   : > { %6878 = vmatprep.mubr.msk.bf16.mxu0 %vm252_vm0, %v1643_v56  ;;  %v6893_v34 = vpop.f32.mrf.mxu1 }
 0x179   : > { %v2127_v3 = vpop.f32.mrf.mxu1 }
 0x17e   : > { %6879 = vmatmul.mubr.msk.bf16.vlgmr.msra.gmra.mxu0 %vm252_vm0, %v1646_v5 }
 0x17f   : > { %6882 = vmatprep.mubr.msk.bf16.mxu0 %vm252_vm0, %v1649_v48 }
 0x186   : > { %6883 = vmatmul.mubr.msk.bf16.gmra.mxu0 %vm252_vm0, %v1652_v36 }
 0x196   : > { %v6500_v14 = vpop.f32.mrf.mxu0 }
 0x198   : > { %v6501_v62 = vpop.f32.mrf.mxu0 }
 0x199   : > { %v9539_v43 = vadd.f32 %v6501_v62, %v6500_v14 }
 0x19a   : > { %v9541_v2 = vpop.f32.mrf.mxu0 }
 0x19c   : > { %v9543_v13 = vpop.f32.mrf.mxu0 }
 0x19f   : > { %v6506_v46 = vpop.f32.mrf.mxu0 }
 0x1a1   : > { %v6507_v39 = vpop.f32.mrf.mxu0 }
 0x1a2   : > { %v9545_v19 = vadd.f32 %v6507_v39, %v6506_v46 }
 0x1a3   : > { %v9547_v35 = vpop.f32.mrf.mxu0 }
 0x1a5   : > { %v9549_v17 = vpop.f32.mrf.mxu0 }
 0x1aa   : > { %v6512_v58 = vpop.f32.mrf.mxu0 }
 0x1ac   : > { %v6513_v41 = vpop.f32.mrf.mxu0 }
 0x1ad   : > { %v9551_v32 = vadd.f32 %v6513_v41, %v6512_v58 }
 0x1ae   : > { %v9553_v38 = vpop.f32.mrf.mxu0 }
 0x1b0   : > { %v9555_v52 = vpop.f32.mrf.mxu0 }
 0x1b3   : > { %v6518_v31 = vpop.f32.mrf.mxu0 }
 0x1b5   : > { %v6519_v53 = vpop.f32.mrf.mxu0 }
 0x1b6   : > { %v9557_v20 = vadd.f32 %v6519_v53, %v6518_v31 }
 0x1b7   : > { %v9559_v28 = vpop.f32.mrf.mxu0 }
 0x1b9   : > { %v9563_v47 = vpop.f32.mrf.mxu0 }
 0x1be   : > { %v6524_v8 = vpop.f32.mrf.mxu0 }
 0x1c0   : > { %v6525_v42 = vpop.f32.mrf.mxu0 }
 0x1c1   : > { %v6526_v6 = vadd.f32 %v6525_v42, %v6524_v8 }
 0x1c2   : > { %v6527_v26 = vpop.f32.mrf.mxu0 }
 0x1c3   : > { %v2109_v60 = vadd.f32 %v6526_v6, %v2108_v30 }
 0x1c4   : > { %v6528_v18 = vpop.f32.mrf.mxu0 }
 0x1c5   : > { %v2215_v27 = vmul.f32 %v9572_v0, %v2109_v60  ;;  %v6529_v63 = vadd.f32 %v6528_v18, %v6527_v26 }
 0x1c7   : > { %v9578_v25 = vadd.f32 %v9574_v45, %v2215_v27  ;;  %v2112_v49 = vadd.f32 %v6529_v63, %v2111_v50  ;;  %v6530_v12 = vpop.f32.mrf.mxu0 }
 0x1c9   : > { %11822 = vst [vmem:[#allocation7_spill] sm:$0xff] %v9578_v25  ;;  %v11747_v61 = vmax.f32 %v9578_v25, 0.0  ;;  %v2216_v59 = vmul.f32 %v9572_v0, %v2112_v49  ;;  %v6531_v22 = vpop.f32.mrf.mxu0 }
 0x1ca   : > { %v6532_v40 = vadd.f32 %v6531_v22, %v6530_v12 }
 0x1cb   : > { %2315 = vst.msk [vmem:[#allocation2 + $0xa8] sm:$0xff] %vm252_vm0, %v11747_v61  ;;  %v9586_v24 = vadd.f32 %v9574_v45, %v2216_v59  ;;  %v6533_v55 = vpop.f32.mrf.mxu0 }
 0x1cc   : > { %v2117_v44 = vadd.f32 %v6888_v1, %v6532_v40  ;;  %v8487_v1 = vld [vmem:[%s11724_s2 + $0x88] sm:$0xff]  }
 0x1cd   : > { %11823 = vst [vmem:[#allocation8_spill] sm:$0xff] %v9586_v24  ;;  %v11746_v21 = vmax.f32 %v9586_v24, 0.0  ;;  %v6534_v29 = vpop.f32.mrf.mxu0  ;;  %6910 = vmatprep.subr.bf16.mxu0 %v8487_v1 }
 0x1ce   : > { %v2217_v4 = vmul.f32 %v9572_v0, %v2117_v44  ;;  %v6535_v56 = vadd.f32 %v6534_v29, %v6533_v55  ;;  %6911 = vmatpush3.bf16.msra.mxu0 %v8487_v1  ;;  %v6896_v29 = vpop.f32.mrf.mxu1 }
 0x1cf   : > { %2316 = vst.msk [vmem:[#allocation2 + $0xb0] sm:$0xff] %vm252_vm0, %v11746_v21 }
 0x1d0   : > { %v9594_v16 = vadd.f32 %v9574_v45, %v2217_v4  ;;  %v2120_v37 = vadd.f32 %v6889_v23, %v6535_v56  ;;  %v8488_v23 = vld [vmem:[%s11724_s2 + $0x80] sm:$0xff]  }
 0x1d1   : > { %6912 = vmatprep.subr.bf16.mxu0 %v8488_v23 }
 0x1d2   : > { %11824 = vst [vmem:[#allocation9_spill] sm:$0xff] %v9594_v16  ;;  %v11745_v10 = vmax.f32 %v9594_v16, 0.0  ;;  %v2218_v11 = vmul.f32 %v9572_v0, %v2120_v37  ;;  %v6536_v5 = vpop.f32.mrf.mxu0  ;;  %v2537_v14 = vld [vmem:[#allocation2 + $0xa7] sm:$0xff]  ;;  %6913 = vmatpush3.bf16.msra.mxu0 %v8488_v23 }
 0x1d3   : > { %v2381_v58 = vld [vmem:[#allocation2 + $0xa8] sm:$0xff] }
 0x1d4   : > { %2317 = vst.msk [vmem:[#allocation2 + $0xc8] sm:$0xff] %vm252_vm0, %v11745_v10  ;;  %v9602_v48 = vadd.f32 %v9574_v45, %v2218_v11  ;;  %v6537_v33 = vpop.f32.mrf.mxu0 }
 0x1d5   : > { %v6538_v36 = vadd.f32 %v6537_v33, %v6536_v5 }
 0x1d6   : > { %11825 = vst [vmem:[#allocation10_spill] sm:$0xff] %v9602_v48  ;;  %v11742_v62 = vmax.f32 %v9602_v48, 0.0  ;;  %v6539_v46 = vpop.f32.mrf.mxu0  ;;  %v2538_v39 = vld [vmem:[#allocation2 + $0xaf] sm:$0xff] }
 0x1d7   : > { %v2382_v41 = vld [vmem:[#allocation2 + $0xb0] sm:$0xff]  ;;  %v2125_v31 = vadd.f32 %v6538_v36, %v2124_v51  ;;  %v7524_v53 = vpack.i.bf16 %v2538_v39, %v2537_v14  ;;  %v2140_v14 = vpop.f32.mrf.mxu1 }
 0x1d8   : > { %v7519_v54 = vpack.i.bf16 %v2382_v41, %v2381_v58  ;;  %2318 = vst.msk [vmem:[#allocation2 + $0xd0] sm:$0xff] %vm252_vm0, %v11742_v62  ;;  %v6540_v30 = vpop.f32.mrf.mxu0  ;;  %v9611_v8 = vld [vmem:[#allocation2 + $0xa9] sm:$0xff]  ;;  %v9613_v7 = vld [vmem:[#allocation2 + $0xb1] sm:$0xff] }
 0x1d9   : > { %v2219_v42 = vmul.f32 %v9572_v0, %v2125_v31  ;;  %v6541_v9 = vadd.f32 %v6540_v30, %v6539_v46  ;;  %7525 = vrot.lane.b32.xlu0 %v7524_v53, %s8620_s10  ;;  %v7544_v18 = vpack.i.bf16 %v9613_v7, %v9611_v8  ;;  %v6897_v1 = vpop.f32.mrf.mxu1 }
 0x1da   : > { %7520 = vrot.lane.b32.xlu1 %v7519_v54, %s8619_s18 }
 0x1db   : > { %v9622_v6 = vadd.f32 %v9574_v45, %v2219_v42  ;;  %v2128_v26 = vadd.f32 %v6541_v9, %v2127_v3  ;;  %v6542_v60 = vpop.f32.mrf.mxu0  ;;  %v2539_v22 = vld [vmem:[#allocation2 + $0xc7] sm:$0xff] }
 0x1dd   : > { %11826 = vst [vmem:[#allocation11_spill] sm:$0xff] %v9622_v6  ;;  %v11741_v50 = vmax.f32 %v9622_v6, 0.0  ;;  %v2220_v27 = vmul.f32 %v9572_v0, %v2128_v26  ;;  %v6543_v63 = vpop.f32.mrf.mxu0  ;;  %7530 = vrot.lane.b32.xlu0 %v7519_v54, %s8621_s16 }
 0x1de   : > { %7545 = vrot.lane.b32.xlu1 %v7544_v18, %s8620_s10  ;;  %v6544_v49 = vadd.f32 %v6543_v63, %v6542_v60 }
 0x1df   : > { %2319 = vst.msk [vmem:[#allocation2 + $0xe8] sm:$0xff] %vm252_vm0, %v11741_v50  ;;  %v9634_v12 = vadd.f32 %v9574_v45, %v2220_v27  ;;  %v6545_v59 = vpop.f32.mrf.mxu0  ;;  %v2540_v40 = vld [vmem:[#allocation2 + $0xcf] sm:$0xff] }
 0x1e0   : > { %v2133_v55 = vadd.f32 %v6892_v57, %v6544_v49  ;;  %v9636_v44 = vpack.i.bf16 %v2540_v40, %v2539_v22  ;;  %v2572_v37 = vld [vmem:[#allocation2 + $0xd0] sm:$0xff]  ;;  %v2571_v57 = vld [vmem:[#allocation2 + $0xc8] sm:$0xff] }
 0x1e1   : > { %11827 = vst [vmem:[#allocation12_spill] sm:$0xff] %v9634_v12  ;;  %v11740_v4 = vmax.f32 %v9634_v12, 0.0  ;;  %v6546_v56 = vpop.f32.mrf.mxu0  ;;  %7535 = vrot.lane.b32.xlu0 %v7544_v18, %s8619_s18  ;;  %v7559_v36 = vpack.i.bf16 %v2572_v37, %v2571_v57  ;;  %v9650_v46 = vld [vmem:[#allocation2 + $0xc9] sm:$0xff]  ;;  %v9652_v39 = vld [vmem:[#allocation2 + $0xd1] sm:$0xff] }
 0x1e2   : > { %v2221_v51 = vmul.f32 %v9572_v0, %v2133_v55  ;;  %v6547_v11 = vadd.f32 %v6546_v56, %v6545_v59  ;;  %7555 = vrot.lane.b32.xlu1 %v9636_v44, %s8620_s10  ;;  %v2143_v59 = vpop.f32.mrf.mxu1 }
 0x1e3   : > { %2320 = vst.msk [vmem:[#allocation2 + $0xf0] sm:$0xff] %vm252_vm0, %v11740_v4 }
 0x1e4   : > { %v9647_v5 = vadd.f32 %v9574_v45, %v2221_v51  ;;  %v2136_v33 = vadd.f32 %v6893_v34, %v6547_v11 }
 0x1e5   : > { %7540 = vrot.lane.b32.xlu0 %v7524_v53, %s8621_s16  ;;  %v9665_v53 = vpack.i.bf16 %v9652_v39, %v9650_v46 }
 0x1e6   : > { %11828 = vst [vmem:[#allocation13_spill] sm:$0xff] %v9647_v5  ;;  %v11737_v58 = vmax.f32 %v9647_v5, 0.0  ;;  %v2222_v41 = vmul.f32 %v9572_v0, %v2136_v33  ;;  %v6548_v31 = vpop.f32.mrf.mxu0  ;;  %7560 = vrot.lane.b32.xlu1 %v7559_v36, %s8621_s16  ;;  %v2541_v3 = vld [vmem:[#allocation2 + $0xe7] sm:$0xff] }
 0x1e7   : > { %v2385_v26 = vld [vmem:[#allocation2 + $0xe8] sm:$0xff] }
 0x1e8   : > { %2321 = vst.msk [vmem:[#allocation2 + $0x108] sm:$0xff] %vm252_vm0, %v11737_v58  ;;  %v9661_v34 = vadd.f32 %v9574_v45, %v2222_v41  ;;  %v6549_v54 = vpop.f32.mrf.mxu0 }
 0x1e9   : > { %v6550_v30 = vadd.f32 %v6549_v54, %v6548_v31  ;;  %7550 = vrot.lane.b32.xlu0 %v7559_v36, %s8619_s18 }
 0x1ea   : > { %11829 = vst [vmem:[#allocation14_spill] sm:$0xff] %v9661_v34  ;;  %v11736_v42 = vmax.f32 %v9661_v34, 0.0  ;;  %v6551_v9 = vpop.f32.mrf.mxu0  ;;  %7565 = vrot.lane.b32.xlu1 %v9665_v53, %s8619_s18  ;;  %v2542_v23 = vld [vmem:[#allocation2 + $0xef] sm:$0xff] }
 0x1eb   : > { %v2386_v60 = vld [vmem:[#allocation2 + $0xf0] sm:$0xff]  ;;  %v2141_v18 = vadd.f32 %v6550_v30, %v2140_v14  ;;  %v9671_v27 = vpack.i.bf16 %v2542_v23, %v2541_v3  ;;  %v6900_v3 = vpop.f32.mrf.mxu1 }
 0x1ec   : > { %v9673_v63 = vpack.i.bf16 %v2386_v60, %v2385_v26  ;;  %2322 = vst.msk [vmem:[#allocation2 + $0x110] sm:$0xff] %vm252_vm0, %v11736_v42  ;;  %v6552_v49 = vpop.f32.mrf.mxu0 }
 0x1ed   : > { %v2223_v22 = vmul.f32 %v9572_v0, %v2141_v18  ;;  %v6553_v40 = vadd.f32 %v6552_v49, %v6551_v9  ;;  %7575 = vrot.lane.b32.xlu0 %v9671_v27, %s8620_s10  ;;  %v2156_v49 = vpop.f32.mrf.mxu1 }
 0x1ee   : > { %7570 = vrot.lane.b32.xlu1 %v9673_v63, %s8619_s18 }
 0x1ef   : > { %v9684_v55 = vadd.f32 %v9574_v45, %v2223_v22  ;;  %v2144_v56 = vadd.f32 %v6553_v40, %v2143_v59  ;;  %v6554_v37 = vpop.f32.mrf.mxu0  ;;  %v2387_v41 = vld [vmem:[#allocation2 + $0x108] sm:$0xff] }
 0x1f1   : > { %11830 = vst [vmem:[#allocation15_spill] sm:$0xff] %v9684_v55  ;;  %v11735_v51 = vmax.f32 %v9684_v55, 0.0  ;;  %v2224_v11 = vmul.f32 %v9572_v0, %v2144_v56  ;;  %v6555_v57 = vpop.f32.mrf.mxu0 }
 0x1f2   : > { %v6556_v33 = vadd.f32 %v6555_v57, %v6554_v37 }
 0x1f3   : > { %2323 = vst.msk [vmem:[#allocation2 + $0x128] sm:$0xff] %vm252_vm0, %v11735_v51  ;;  %v9692_v36 = vadd.f32 %v9574_v45, %v2224_v11  ;;  %v6557_v14 = vpop.f32.mrf.mxu0  ;;  %v2388_v31 = vld [vmem:[#allocation2 + $0x110] sm:$0xff]  ;;  %v6901_v11 = vpop.f32.mrf.mxu1 }
 0x1f4   : > { %v2149_v54 = vadd.f32 %v6896_v29, %v6556_v33  ;;  %v9694_v30 = vpack.i.bf16 %v2388_v31, %v2387_v41 }
 0x1f5   : > { %11831 = vst [vmem:[#allocation16_spill] sm:$0xff] %v9692_v36  ;;  %v11734_v9 = vmax.f32 %v9692_v36, 0.0  ;;  %v6558_v23 = vpop.f32.mrf.mxu0 }
 0x1f6   : > { %v2225_v26 = vmul.f32 %v9572_v0, %v2149_v54  ;;  %v6559_v60 = vadd.f32 %v6558_v23, %v6557_v14  ;;  %7580 = vrot.lane.b32.xlu0 %v9694_v30, %s8619_s18 }
 0x1f7   : > { %2324 = vst.msk [vmem:[#allocation2 + $0x130] sm:$0xff] %vm252_vm0, %v11734_v9 }
 0x1f8   : > { %v9704_v18 = vadd.f32 %v9574_v45, %v2225_v26  ;;  %v2152_v29 = vadd.f32 %v6897_v1, %v6559_v60  ;;  %v2159_v26 = vpop.f32.mrf.mxu1 }
 0x1fa   : > { %11832 = vst [vmem:[#allocation17_spill] sm:$0xff] %v9704_v18  ;;  %v11733_v59 = vmax.f32 %v9704_v18, 0.0  ;;  %v2226_v22 = vmul.f32 %v9572_v0, %v2152_v29  ;;  %v6560_v40 = vpop.f32.mrf.mxu0  ;;  %v2389_v1 = vld [vmem:[#allocation2 + $0x128] sm:$0xff] }
 0x1fc   : > { %2325 = vst.msk [vmem:[#allocation2 + $0x148] sm:$0xff] %vm252_vm0, %v11733_v59  ;;  %v9712_v56 = vadd.f32 %v9574_v45, %v2226_v22  ;;  %v6561_v37 = vpop.f32.mrf.mxu0 }
 0x1fd   : > { %v6562_v57 = vadd.f32 %v6561_v37, %v6560_v40 }
 0x1fe   : > { %11833 = vst [vmem:[#allocation18_spill] sm:$0xff] %v9712_v56  ;;  %v11732_v33 = vmax.f32 %v9712_v56, 0.0  ;;  %v6563_v14 = vpop.f32.mrf.mxu0  ;;  %v2390_v41 = vld [vmem:[#allocation2 + $0x130] sm:$0xff] }
 0x1ff   : > { %v2157_v31 = vadd.f32 %v6562_v57, %v2156_v49  ;;  %v9715_v54 = vpack.i.bf16 %v2390_v41, %v2389_v1 }
 0x200   : > { %2326 = vst.msk [vmem:[#allocation2 + $0x150] sm:$0xff] %vm252_vm0, %v11732_v33  ;;  %v6564_v23 = vpop.f32.mrf.mxu0 }
 0x201   : > { %v2227_v60 = vmul.f32 %v9572_v0, %v2157_v31  ;;  %v6565_v29 = vadd.f32 %v6564_v23, %v6563_v14  ;;  %7585 = vrot.lane.b32.xlu1 %v9715_v54, %s8619_s18 }
 0x203   : > { %v9724_v22 = vadd.f32 %v9574_v45, %v2227_v60  ;;  %v2160_v40 = vadd.f32 %v6565_v29, %v2159_v26  ;;  %v2391_v14 = vld [vmem:[#allocation2 + $0x148] sm:$0xff] }
 0x205   : > { %11834 = vst [vmem:[#allocation19_spill] sm:$0xff] %v9724_v22  ;;  %v11731_v49 = vmax.f32 %v9724_v22, 0.0  ;;  %v2228_v37 = vmul.f32 %v9572_v0, %v2160_v40 }
 0x206   : > { %v6566_v57 = vpop.f32.mrf.mxu0 }
 0x207   : > { %2327 = vst.msk [vmem:[#allocation2 + $0x168] sm:$0xff] %vm252_vm0, %v11731_v49  ;;  %v9732_v1 = vadd.f32 %v9574_v45, %v2228_v37  ;;  %v2392_v41 = vld [vmem:[#allocation2 + $0x150] sm:$0xff]  ;;  %v6904_v37 = vpop.f32.mrf.mxu1 }
 0x208   : > { %v6567_v31 = vpop.f32.mrf.mxu0  ;;  %v9734_v23 = vpack.i.bf16 %v2392_v41, %v2391_v14  ;;  %v10041_v22 = vld [vmem:[#allocation2 + $0x149] sm:$0xff]  ;;  %v10043_v56 = vld [vmem:[#allocation2 + $0x151] sm:$0xff] }
 0x209   : > { %11835 = vst [vmem:[#allocation20_spill] sm:$0xff] %v9732_v1  ;;  %v11739_v60 = vmax.f32 %v9732_v1, 0.0  ;;  %v6568_v26 = vadd.f32 %v6567_v31, %v6566_v57  ;;  %v2172_v9 = vpop.f32.mrf.mxu1  ;;  %v3613_v18 = vpack.c.bf16 %v10043_v56, %v10041_v22  ;;  %v7814_v25 = vpack.i.bf16 %v10043_v56, %v10041_v22 }
 0x20a   : > { %v6569_v29 = vpop.f32.mrf.mxu0  ;;  %7590 = vrot.lane.b32.xlu0 %v9734_v23, %s8619_s18 }
 0x20b   : > { %2328 = vst.msk [vmem:[#allocation2 + $0x170] sm:$0xff] %vm252_vm0, %v11739_v60  ;;  %v2165_v40 = vadd.f32 %v6900_v3, %v6568_v26  ;;  %v6905_v26 = vpop.f32.mrf.mxu1 }
 0x20c   : > { %v6570_v49 = vpop.f32.mrf.mxu0 }
 0x20d   : > { %v2229_v33 = vmul.f32 %v9572_v0, %v2165_v40  ;;  %v6571_v59 = vadd.f32 %v6570_v49, %v6569_v29 }
 0x20e   : > { %v2393_v42 = vld [vmem:[#allocation2 + $0x168] sm:$0xff] }
 0x20f   : > { %v9744_v14 = vadd.f32 %v9574_v45, %v2229_v33  ;;  %v2168_v41 = vadd.f32 %v6901_v11, %v6571_v59 }
 0x211   : > { %11836 = vst [vmem:[#allocation21_spill] sm:$0xff] %v9744_v14  ;;  %v11738_v57 = vmax.f32 %v9744_v14, 0.0  ;;  %v2230_v31 = vmul.f32 %v9572_v0, %v2168_v41  ;;  %v2610_v14 = vld [vmem:[#allocation2 + $0x131] sm:$0xff] }
 0x212   : > { %v6572_v51 = vpop.f32.mrf.mxu0  ;;  %v2394_v58 = vld [vmem:[#allocation2 + $0x170] sm:$0xff] }
 0x213   : > { %2329 = vst.msk [vmem:[#allocation2 + $0x188] sm:$0xff] %vm252_vm0, %v11738_v57  ;;  %v9752_v3 = vadd.f32 %v9574_v45, %v2230_v31  ;;  %v9754_v49 = vpack.i.bf16 %v2394_v58, %v2393_v42  ;;  %v2175_v57 = vpop.f32.mrf.mxu1 }
 0x214   : > { %v6573_v33 = vpop.f32.mrf.mxu0 }
 0x215   : > { %11837 = vst [vmem:[#allocation22_spill] sm:$0xff] %v9752_v3  ;;  %v11744_v59 = vmax.f32 %v9752_v3, 0.0  ;;  %v6574_v11 = vadd.f32 %v6573_v33, %v6572_v51  ;;  %7595 = vrot.lane.b32.xlu1 %v9754_v49, %s8619_s18  ;;  %v2609_v3 = vld [vmem:[#allocation2 + $0x129] sm:$0xff] }
 0x216   : > { %v6575_v29 = vpop.f32.mrf.mxu0 }
 0x217   : > { %2330 = vst.msk [vmem:[#allocation2 + $0x190] sm:$0xff] %vm252_vm0, %v11744_v59  ;;  %v2173_v40 = vadd.f32 %v6574_v11, %v2172_v9 }
 0x218   : > { %v6576_v41 = vpop.f32.mrf.mxu0 }
 0x219   : > { %v2231_v31 = vmul.f32 %v9572_v0, %v2173_v40  ;;  %v6577_v58 = vadd.f32 %v6576_v41, %v6575_v29 }
 0x21a   : > { %v2395_v50 = vld [vmem:[#allocation2 + $0x188] sm:$0xff] }
 0x21b   : > { %v9764_v42 = vadd.f32 %v9574_v45, %v2231_v31  ;;  %v2176_v60 = vadd.f32 %v6577_v58, %v2175_v57  ;;  %v6908_v58 = vpop.f32.mrf.mxu1  ;;  %v2363_v22 = vld [vmem:[#allocation2 + $0x187] sm:$0xff] }
 0x21d   : > { %11838 = vst [vmem:[#allocation23_spill] sm:$0xff] %v9764_v42  ;;  %v11743_v51 = vmax.f32 %v9764_v42, 0.0  ;;  %v2232_v33 = vmul.f32 %v9572_v0, %v2176_v60  ;;  %v2188_v59 = vpop.f32.mrf.mxu1 }
 0x21e   : > { %v6578_v4 = vpop.f32.mrf.mxu0  ;;  %v2396_v62 = vld [vmem:[#allocation2 + $0x190] sm:$0xff] }
 0x21f   : > { %2331 = vst.msk [vmem:[#allocation2 + $0x1a8] sm:$0xff] %vm252_vm0, %v11743_v51  ;;  %v9772_v9 = vadd.f32 %v9574_v45, %v2232_v33  ;;  %v9774_v11 = vpack.i.bf16 %v2396_v62, %v2395_v50 }
 0x220   : > { %v6579_v29 = vpop.f32.mrf.mxu0 }
 0x221   : > { %11839 = vst [vmem:[#allocation24_spill] sm:$0xff] %v9772_v9  ;;  %v11749_v40 = vmax.f32 %v9772_v9, 0.0  ;;  %v6580_v57 = vadd.f32 %v6579_v29, %v6578_v4  ;;  %7600 = vrot.lane.b32.xlu0 %v9774_v11, %s8619_s18 }
 0x222   : > { %v6581_v60 = vpop.f32.mrf.mxu0 }
 0x223   : > { %2332 = vst.msk [vmem:[#allocation2 + $0x1b0] sm:$0xff] %vm252_vm0, %v11749_v40  ;;  %v2181_v41 = vadd.f32 %v6904_v37, %v6580_v57 }
 0x224   : > { %v6582_v31 = vpop.f32.mrf.mxu0 }
 0x225   : > { %v2233_v33 = vmul.f32 %v9572_v0, %v2181_v41  ;;  %v6583_v51 = vadd.f32 %v6582_v31, %v6581_v60  ;;  %v6909_v41 = vpop.f32.mrf.mxu1 }
 0x226   : > { %v2397_v21 = vld [vmem:[#allocation2 + $0x1a8] sm:$0xff] }
 0x227   : > { %v9784_v62 = vadd.f32 %v9574_v45, %v2233_v33  ;;  %v2184_v50 = vadd.f32 %v6905_v26, %v6583_v51  ;;  %v8489_v33 = vld [vmem:[%s11724_s2 + $0x78] sm:$0xff]  }
 0x228   : > { %6614 = vmatprep.subr.bf16.mxu1 %v8489_v33 }
 0x229   : > { %11840 = vst [vmem:[#allocation25_spill] sm:$0xff] %v9784_v62  ;;  %v11748_v4 = vmax.f32 %v9784_v62, 0.0  ;;  %v2234_v29 = vmul.f32 %v9572_v0, %v2184_v50 }
 0x22a   : > { %v6584_v10 = vpop.f32.mrf.mxu0  ;;  %v2398_v61 = vld [vmem:[#allocation2 + $0x1b0] sm:$0xff] }
 0x22b   : > { %2333 = vst.msk [vmem:[#allocation2 + $0x1c8] sm:$0xff] %vm252_vm0, %v11748_v4  ;;  %v9792_v37 = vadd.f32 %v9574_v45, %v2234_v29  ;;  %v9794_v57 = vpack.i.bf16 %v2398_v61, %v2397_v21  ;;  %v2191_v21 = vpop.f32.mrf.mxu1 }
 0x22c   : > { %v6585_v60 = vpop.f32.mrf.mxu0 }
 0x22d   : > { %11841 = vst [vmem:[#allocation26_spill] sm:$0xff] %v9792_v37  ;;  %v11751_v26 = vmax.f32 %v9792_v37, 0.0  ;;  %v6586_v51 = vadd.f32 %v6585_v60, %v6584_v10  ;;  %7605 = vrot.lane.b32.xlu1 %v9794_v57, %s8619_s18  ;;  %v8490_v10 = vld [vmem:[%s11724_s2 + $0x38] sm:$0xff]  }
 0x22e   : > { %v6587_v31 = vpop.f32.mrf.mxu0  ;;  %6615 = vmatpush3.bf16.msra.mxu1 %v8490_v10 }
 0x22f   : > { %2334 = vst.msk [vmem:[#allocation2 + $0x1d0] sm:$0xff] %vm252_vm0, %v11751_v26  ;;  %v2189_v50 = vadd.f32 %v6586_v51, %v2188_v59 }
 0x230   : > { %v6588_v61 = vpop.f32.mrf.mxu0 }
 0x231   : > { %v2235_v29 = vmul.f32 %v9572_v0, %v2189_v50  ;;  %v6589_v4 = vadd.f32 %v6588_v61, %v6587_v31 }
 0x232   : > { %v2399_v51 = vld [vmem:[#allocation2 + $0x1c8] sm:$0xff] }
 0x233   : > { %v9810_v60 = vadd.f32 %v9574_v45, %v2235_v29  ;;  %v2192_v40 = vadd.f32 %v6589_v4, %v2191_v21  ;;  %v8491_v4 = vld [vmem:[%s11724_s2 + $0x70] sm:$0xff]  }
 0x234   : > { %6616 = vmatprep.subr.bf16.mxu1 %v8491_v4  ;;  %v8494_v4 = vld [vmem:[%s11724_s2 + $0x28] sm:$0xff]  }
 0x235   : > { %11842 = vst [vmem:[#allocation27_spill] sm:$0xff] %v9810_v60  ;;  %v11754_v37 = vmax.f32 %v9810_v60, 0.0  ;;  %v2236_v26 = vmul.f32 %v9572_v0, %v2192_v40 }
 0x236   : > { %v6590_v59 = vpop.f32.mrf.mxu0  ;;  %v2400_v62 = vld [vmem:[#allocation2 + $0x1d0] sm:$0xff] }
 0x237   : > { %2335 = vst.msk [vmem:[#allocation2 + $0x1e8] sm:$0xff] %vm252_vm0, %v11754_v37  ;;  %v9818_v31 = vadd.f32 %v9574_v45, %v2236_v26  ;;  %v7609_v33 = vpack.i.bf16 %v2400_v62, %v2399_v51  ;;  %v8492_v62 = vld [vmem:[%s11724_s2 + $0x30] sm:$0xff]   ;;  %v8493_v26 = vld [vmem:[%s11724_s2 + $0x68] sm:$0xff]  }
 0x238   : > { %v6591_v50 = vpop.f32.mrf.mxu0  ;;  %6617 = vmatpush3.bf16.msra.mxu1 %v8492_v62  ;;  %v10081_v36 = vld [vmem:[#allocation2 + $0x1d1] sm:$0xff] }
 0x239   : > { %11843 = vst [vmem:[#allocation28_spill] sm:$0xff] %v9818_v31  ;;  %v11753_v61 = vmax.f32 %v9818_v31, 0.0  ;;  %v6592_v21 = vadd.f32 %v6591_v50, %v6590_v59  ;;  %7610 = vrot.lane.b32.xlu0 %v7609_v33, %s8619_s18  ;;  %6618 = vmatprep.subr.bf16.mxu1 %v8493_v26 }
 0x23a   : > { %v6593_v40 = vpop.f32.mrf.mxu0 }
 0x23b   : > { %2336 = vst.msk [vmem:[#allocation2 + $0x1f0] sm:$0xff] %vm252_vm0, %v11753_v61  ;;  %v2197_v29 = vadd.f32 %v6908_v58, %v6592_v21  ;;  %v6511_v61 = vadd.f32 %v9549_v17, %v9547_v35 }
 0x23c   : > { %v6594_v10 = vpop.f32.mrf.mxu0  ;;  %6619 = vmatpush3.bf16.msra.mxu1 %v8494_v4 }
 0x23d   : > { %v2237_v59 = vmul.f32 %v9572_v0, %v2197_v29  ;;  %v6595_v51 = vadd.f32 %v6594_v10, %v6593_v40 }
 0x23e   : > { %v6880_v33 = vpop.f32.mrf.mxu0 }
 0x23f   : > { %v9839_v58 = vadd.f32 %v9574_v45, %v2237_v59  ;;  %v2200_v50 = vadd.f32 %v6909_v41, %v6595_v51  ;;  %v2085_v21 = vadd.f32 %v6880_v33, %v9545_v19  ;;  %v2401_v59 = vld [vmem:[#allocation2 + $0x1e8] sm:$0xff]  ;;  %v6505_v51 = vadd.f32 %v9543_v13, %v9541_v2 }
 0x240   : > { %v2076_v37 = vpop.f32.mrf.mxu0 }
 0x241   : > { %11844 = vst [vmem:[#allocation29_spill] sm:$0xff] %v9839_v58  ;;  %v11757_v29 = vmax.f32 %v9839_v58, 0.0  ;;  %v2238_v40 = vmul.f32 %v9572_v0, %v2200_v50  ;;  %v2209_v62 = vmul.f32 %v9572_v0, %v2085_v21  ;;  %v2077_v26 = vadd.f32 %v9539_v43, %v2076_v37  ;;  %v8495_v43 = vld [vmem:[%s11724_s2 + $0x60] sm:$0xff]  }
 0x242   : > { %v6881_v10 = vpop.f32.mrf.mxu0  ;;  %v2402_v31 = vld [vmem:[#allocation2 + $0x1f0] sm:$0xff]  ;;  %v8496_v37 = vld [vmem:[%s11724_s2 + $0x20] sm:$0xff]   ;;  %6620 = vmatprep.subr.bf16.mxu1 %v8495_v43 }
 0x243   : > { %2337 = vst.msk [vmem:[#allocation2 + $0x208] sm:$0xff] %vm252_vm0, %v11757_v29  ;;  %v9852_v19 = vadd.f32 %v9574_v45, %v2238_v40  ;;  %v9855_v35 = vadd.f32 %v9574_v45, %v2209_v62  ;;  %v2207_v17 = vmul.f32 %v9572_v0, %v2077_v26  ;;  %v2088_v41 = vadd.f32 %v6881_v10, %v6511_v61  ;;  %v10105_v55 = vld [vmem:[#allocation2 + $0x1e9] sm:$0xff]  ;;  %v10107_v34 = vld [vmem:[#allocation2 + $0x1f1] sm:$0xff] }
 0x244   : > { %v2079_v33 = vpop.f32.mrf.mxu0  ;;  %v7614_v4 = vpack.i.bf16 %v2402_v31, %v2401_v59  ;;  %6621 = vmatpush3.bf16.msra.mxu1 %v8496_v37 }
 0x245   : > { %11845 = vst [vmem:[#allocation30_spill] sm:$0xff] %v9852_v19  ;;  %11846 = vst [vmem:[#allocation31_spill] sm:$0xff] %v9855_v35  ;;  %v11756_v50 = vmax.f32 %v9852_v19, 0.0  ;;  %v11763_v21 = vmax.f32 %v9855_v35, 0.0  ;;  %v9869_v61 = vadd.f32 %v9574_v45, %v2207_v17  ;;  %v2210_v40 = vmul.f32 %v9572_v0, %v2088_v41 }
 0x246   : > { %v2080_v62 = vadd.f32 %v6505_v51, %v2079_v33  ;;  %7615 = vrot.lane.b32.xlu1 %v7614_v4, %s8619_s18  ;;  %v6884_v26 = vpop.f32.mrf.mxu0  ;;  %v6523_v41 = vadd.f32 %v9563_v47, %v9559_v28  ;;  %v8497_v4 = vld [vmem:[%s11724_s2 + $0x58] sm:$0xff]  }
 0x247   : > { %11847 = vst [vmem:[#allocation32_spill] sm:$0xff] %v9869_v61  ;;  %2338 = vst.msk [vmem:[#allocation2 + $0x210] sm:$0xff] %vm252_vm0, %v11756_v50  ;;  %v11764_v2 = vmax.f32 %v9869_v61, 0.0  ;;  %v9881_v13 = vadd.f32 %v9574_v45, %v2210_v40  ;;  %v2101_v31 = vadd.f32 %v6884_v26, %v9557_v20  ;;  %v6517_v40 = vadd.f32 %v9555_v52, %v9553_v38  ;;  %v8502_v50 = vld [vmem:[%s11724_s2 + $0x8] sm:$0xff]  }
 0x248   : > { %2309 = vst.msk [vmem:[#allocation2 + $0x48] sm:$0xff] %vm252_vm0, %v11763_v21  ;;  %v2208_v10 = vmul.f32 %v9572_v0, %v2080_v62  ;;  %v2092_v17 = vpop.f32.mrf.mxu0  ;;  %6622 = vmatprep.subr.bf16.mxu1 %v8497_v4 }
 0x249   : > { %11848 = vst [vmem:[#allocation33_spill] sm:$0xff] %v9881_v13  ;;  %2307 = vst.msk [vmem:[#allocation2 + $0x28] sm:$0xff] %vm252_vm0, %v11764_v2  ;;  %v11762_v59 = vmax.f32 %v9881_v13, 0.0  ;;  %v2213_v43 = vmul.f32 %v9572_v0, %v2101_v31  ;;  %v2093_v37 = vadd.f32 %v9551_v32, %v2092_v17  ;;  %v8498_v32 = vld [vmem:[%s11724_s2 + $0x18] sm:$0xff]  }
 0x24a   : > { %v9894_v51 = vadd.f32 %v9574_v45, %v2208_v10  ;;  %v6885_v20 = vpop.f32.mrf.mxu0  ;;  %6623 = vmatpush3.bf16.msra.mxu1 %v8498_v32 }
 0x24b   : > { %2310 = vst.msk [vmem:[#allocation2 + $0x50] sm:$0xff] %vm252_vm0, %v11762_v59  ;;  %v9900_v28 = vadd.f32 %v9574_v45, %v2213_v43  ;;  %v2211_v47 = vmul.f32 %v9572_v0, %v2093_v37  ;;  %v2104_v33 = vadd.f32 %v6885_v20, %v6523_v41  ;;  %v8499_v43 = vld [vmem:[%s11724_s2 + $0x50] sm:$0xff]  }
 0x24c   : > { %11849 = vst [vmem:[#allocation34_spill] sm:$0xff] %v9894_v51  ;;  %v11765_v62 = vmax.f32 %v9894_v51, 0.0  ;;  %v2095_v26 = vpop.f32.mrf.mxu0  ;;  %6624 = vmatprep.subr.bf16.mxu1 %v8499_v43  ;;  %v10131_v16 = vpop.permute.xlu1 %7520  ;;  %v2369_v51 = vld [vmem:[#allocation2 + $0x1e7] sm:$0xff] }
 0x24d   : > { %11850 = vst [vmem:[#allocation35_spill] sm:$0xff] %v9900_v28  ;;  %v11759_v31 = vmax.f32 %v9900_v28, 0.0  ;;  %v9914_v10 = vadd.f32 %v9574_v45, %v2211_v47  ;;  %v2214_v17 = vmul.f32 %v9572_v0, %v2104_v33  ;;  %v2096_v41 = vadd.f32 %v6517_v40, %v2095_v26  ;;  %v8500_v33 = vld [vmem:[%s11724_s2 + $0x10] sm:$0xff]  }
 0x24e   : > { %2308 = vst.msk [vmem:[#allocation2 + $0x30] sm:$0xff] %vm252_vm0, %v11765_v62  ;;  %6625 = vmatpush3.bf16.msra.mxu1 %v8500_v33  ;;  %v10111_v5 = vld [vmem:[#allocation2 + $0x209] sm:$0xff]  ;;  %v10113_v12 = vld [vmem:[#allocation2 + $0x211] sm:$0xff] }
 0x24f   : > { %11851 = vst [vmem:[#allocation36_spill] sm:$0xff] %v9914_v10  ;;  %2313 = vst.msk [vmem:[#allocation2 + $0x88] sm:$0xff] %vm252_vm0, %v11759_v31  ;;  %v11761_v38 = vmax.f32 %v9914_v10, 0.0  ;;  %v9925_v52 = vadd.f32 %v9574_v45, %v2214_v17  ;;  %v2212_v37 = vmul.f32 %v9572_v0, %v2096_v41  ;;  %v9935_v47 = vld [vmem:[#allocation2 + $0x48] sm:$0xff] }
 0x250   : > { %v9987_v2 = vld [vmem:[#allocation2 + $0x27] sm:$0xff]  ;;  %v2366_v10 = vld [vmem:[#allocation2 + $0x1af] sm:$0xff] }
 0x251   : > { %11852 = vst [vmem:[#allocation37_spill] sm:$0xff] %v9925_v52  ;;  %2311 = vst.msk [vmem:[#allocation2 + $0x68] sm:$0xff] %vm252_vm0, %v11761_v38  ;;  %v11758_v20 = vmax.f32 %v9925_v52, 0.0  ;;  %v9941_v4 = vadd.f32 %v9574_v45, %v2212_v37  ;;  %v9959_v37 = vld [vmem:[#allocation2 + $0x47] sm:$0xff] }
 0x252   : > { %v2595_v32 = vld [vmem:[#allocation2 + $0x49] sm:$0xff]  ;;  %v2596_v40 = vld [vmem:[#allocation2 + $0x51] sm:$0xff] }
 0x253   : > { %11853 = vst [vmem:[#allocation38_spill] sm:$0xff] %v9941_v4  ;;  %v9943_v26 = vld [vmem:[#allocation2 + $0x50] sm:$0xff]  ;;  %2314 = vst.msk [vmem:[#allocation2 + $0x90] sm:$0xff] %vm252_vm0, %v11758_v20  ;;  %v3589_v0 = vpack.c.bf16 %v2596_v40, %v2595_v32  ;;  %v11760_v41 = vmax.f32 %v9941_v4, 0.0  ;;  %v7634_v43 = vpack.i.bf16 %v2596_v40, %v2595_v32  ;;  %v8503_v32 = vld [vmem:[%s11724_s2 + $0x40] sm:$0xff]  }
 0x254   : > { %v7629_v17 = vpack.i.bf16 %v9943_v26, %v9935_v47  ;;  %v9953_v45 = vld [vmem:[#allocation2 + $0x4f] sm:$0xff] }
 0x255   : > { %6914 = vmatprep.mubr.msk.bf16.mxu0 %vm252_vm0, %v3589_v0  ;;  %2312 = vst.msk [vmem:[#allocation2 + $0x70] sm:$0xff] %vm252_vm0, %v11760_v41  ;;  %v7624_v33 = vpack.i.bf16 %v9953_v45, %v9959_v37  ;;  %v8501_v0 = vld [vmem:[%s11724_s2 + $0x48] sm:$0xff]   ;;  %v9974_v29 = vld [vmem:[#allocation2 + $0x30] sm:$0xff] }
 0x256   : > { %7630 = vrot.lane.b32.xlu1 %v7629_v17, %s8621_s16  ;;  %7620 = vrot.lane.b32.xlu0 %v7629_v17, %s8619_s18  ;;  %v9977_v41 = vld [vmem:[#allocation2 + $0x2f] sm:$0xff] }
 0x257   : > { %6626 = vmatprep.subr.bf16.mxu1 %v8501_v0  ;;  %v9980_v0 = vld [vmem:[#allocation2 + $0x28] sm:$0xff] }
 0x258   : > { %6627 = vmatpush3.bf16.msra.mxu1 %v8502_v50  ;;  %v8504_v50 = vld [vmem:[%s11724_s2] sm:$0xff]   ;;  %v7649_v21 = vpack.i.bf16 %v9974_v29, %v9980_v0  ;;  %v9997_v58 = vld [vmem:[#allocation2 + $0x88] sm:$0xff] }
 0x259   : > { %6628 = vmatprep.subr.bf16.mxu1 %v8503_v32  ;;  %v2499_v32 = vld [vmem:[#allocation2 + $0x29] sm:$0xff] }
 0x25a   : > { %7635 = vrot.lane.b32.xlu1 %v7634_v43, %s8619_s18  ;;  %7625 = vrot.lane.b32.xlu0 %v7624_v33, %s8620_s10  ;;  %v2599_v40 = vld [vmem:[#allocation2 + $0x89] sm:$0xff]  ;;  %v2600_v17 = vld [vmem:[#allocation2 + $0x91] sm:$0xff] }
 0x25b   : > { %v3595_v59 = vpack.c.bf16 %v2600_v17, %v2599_v40  ;;  %v9994_v62 = vld [vmem:[#allocation2 + $0x90] sm:$0xff]  ;;  %v10033_v9 = vld [vmem:[#allocation2 + $0x68] sm:$0xff] }
 0x25c   : > { %v2597_v20 = vld [vmem:[#allocation2 + $0x69] sm:$0xff]  ;;  %v2598_v31 = vld [vmem:[#allocation2 + $0x71] sm:$0xff]  ;;  %6629 = vmatpush3.bf16.msra.mxu1 %v8504_v50  ;;  %v3598_v50 = vpack.c.bf16 %v9613_v7, %v9611_v8 }
 0x25d   : > { %v3592_v38 = vpack.c.bf16 %v2598_v31, %v2597_v20  ;;  %v10019_v7 = vld [vmem:[#allocation2 + $0x67] sm:$0xff]  ;;  %v7714_v1 = vpack.i.bf16 %v2598_v31, %v2597_v20  ;;  %v10055_v31 = vld [vmem:[#allocation2 + $0x171] sm:$0xff] }
 0x25e   : > { %7640 = vrot.lane.b32.xlu1 %v7624_v33, %s8621_s16  ;;  %7645 = vrot.lane.b32.xlu0 %v7634_v43, %s8620_s10  ;;  %v7659_v33 = vpack.i.bf16 %v9977_v41, %v9987_v2  ;;  %v2500_v43 = vld [vmem:[#allocation2 + $0x31] sm:$0xff]  ;;  %v10057_v20 = vld [vmem:[#allocation2 + $0x189] sm:$0xff] }
 0x25f   : > { %6915 = vmatmul.mubr.msk.bf16.vlgmr.msra.gmra.mxu0 %vm252_vm0, %v3592_v38  ;;  %v7654_v19 = vpack.i.bf16 %v2500_v43, %v2499_v32  ;;  %v7669_v38 = vpack.i.bf16 %v9994_v62, %v9997_v58  ;;  %v10012_v32 = vld [vmem:[#allocation2 + $0x6f] sm:$0xff]  ;;  %v10015_v43 = vld [vmem:[#allocation2 + $0x87] sm:$0xff] }
 0x260   : > { %6918 = vmatprep.mubr.msk.bf16.mxu0 %vm252_vm0, %v3595_v59  ;;  %v7694_v59 = vpack.i.bf16 %v2600_v17, %v2599_v40  ;;  %v7704_v40 = vpack.i.bf16 %v10012_v32, %v10019_v7  ;;  %v10023_v17 = vld [vmem:[#allocation2 + $0x109] sm:$0xff] }
 0x262   : > { %7650 = vrot.lane.b32.xlu1 %v7649_v21, %s8619_s18  ;;  %7660 = vrot.lane.b32.xlu0 %v7659_v33, %s8621_s16  ;;  %v3601_v21 = vpack.c.bf16 %v9652_v39, %v9650_v46  ;;  %v10008_v33 = vld [vmem:[#allocation2 + $0x8f] sm:$0xff] }
 0x263   : > { %v7674_v8 = vpack.i.bf16 %v10008_v33, %v10015_v43  ;;  %v2605_v46 = vld [vmem:[#allocation2 + $0xe9] sm:$0xff]  ;;  %v2606_v39 = vld [vmem:[#allocation2 + $0xf1] sm:$0xff] }
 0x266   : > { %7655 = vrot.lane.b32.xlu1 %v7654_v19, %s8619_s18  ;;  %7670 = vrot.lane.b32.xlu0 %v7669_v38, %s8619_s18 }
 0x267   : > { %6919 = vmatmul.mubr.msk.bf16.gmra.mxu0 %vm252_vm0, %v3598_v50  ;;  %v10025_v50 = vld [vmem:[#allocation2 + $0x111] sm:$0xff] }
 0x268   : > { %6922 = vmatprep.mubr.msk.bf16.mxu0 %vm252_vm0, %v3601_v21  ;;  %v3604_v21 = vpack.c.bf16 %v2606_v39, %v2605_v46  ;;  %v3607_v60 = vpack.c.bf16 %v10025_v50, %v10023_v17  ;;  %v7764_v6 = vpack.i.bf16 %v10025_v50, %v10023_v17  ;;  %v10137_v17 = vld [vmem:[#allocation2 + $0x14f] sm:$0xff]  ;;  %v10140_v50 = vld [vmem:[#allocation2 + $0x147] sm:$0xff] }
 0x269   : > { %11858 = vst [vmem:[#allocation43_spill] sm:$0xff] %v10137_v17  ;;  %11859 = vst [vmem:[#allocation44_spill] sm:$0xff] %v10140_v50 }
 0x26a   : > { %7665 = vrot.lane.b32.xlu1 %v7654_v19, %s8620_s10  ;;  %7695 = vrot.lane.b32.xlu0 %v7694_v59, %s8620_s10  ;;  %v10028_v19 = vld [vmem:[#allocation2 + $0x70] sm:$0xff] }
 0x26b   : > { %v7709_v42 = vpack.i.bf16 %v10028_v19, %v10033_v9 }
 0x26e   : > { %7675 = vrot.lane.b32.xlu1 %v7674_v8, %s8620_s10  ;;  %7705 = vrot.lane.b32.xlu0 %v7704_v40, %s8620_s10 }
 0x26f   : > { %6923 = vmatmul.mubr.msk.bf16.gmra.mxu0 %vm252_vm0, %v3604_v21  ;;  %v3610_v21 = vpack.c.bf16 %v2610_v14, %v2609_v3 }
 0x270   : > { %6926 = vmatprep.mubr.msk.bf16.mxu0 %vm252_vm0, %v3607_v60  ;;  %v10053_v60 = vld [vmem:[#allocation2 + $0x169] sm:$0xff] }
 0x271   : > { %v7839_v28 = vpack.i.bf16 %v10055_v31, %v10053_v60 }
 0x272   : > { %7680 = vrot.lane.b32.xlu1 %v7669_v38, %s8621_s16  ;;  %7710 = vrot.lane.b32.xlu0 %v7709_v42, %s8621_s16  ;;  %v10059_v38 = vld [vmem:[#allocation2 + $0x191] sm:$0xff] }
 0x276   : > { %7685 = vrot.lane.b32.xlu1 %v7694_v59, %s8619_s18  ;;  %7715 = vrot.lane.b32.xlu0 %v7714_v1, %s8619_s18  ;;  %v3619_v59 = vpack.c.bf16 %v10059_v38, %v10057_v20 }
 0x277   : > { %6927 = vmatmul.mubr.msk.bf16.gmra.mxu0 %vm252_vm0, %v3610_v21  ;;  %v10079_v21 = vld [vmem:[#allocation2 + $0x1c9] sm:$0xff] }
 0x278   : > { %6930 = vmatprep.mubr.msk.bf16.mxu0 %vm252_vm0, %v3613_v18  ;;  %v3616_v18 = vpack.c.bf16 %v10055_v31, %v10053_v60  ;;  %v2365_v31 = vld [vmem:[#allocation2 + $0x1a7] sm:$0xff] }
 0x279   : > { %v7869_v13 = vpack.i.bf16 %v2366_v10, %v2365_v31  ;;  %v2367_v31 = vld [vmem:[#allocation2 + $0x1c7] sm:$0xff] }
 0x27a   : > { %7690 = vrot.lane.b32.xlu1 %v7674_v8, %s8621_s16  ;;  %7720 = vrot.lane.b32.xlu0 %v7704_v40, %s8621_s16  ;;  %v7734_v8 = vpack.i.bf16 %v2606_v39, %v2605_v46  ;;  %v10075_v40 = vld [vmem:[#allocation2 + $0x1b1] sm:$0xff]  ;;  %v10084_v46 = vld [vmem:[#allocation2 + $0x107] sm:$0xff]  ;;  %v3625_v39 = vpack.c.bf16 %v10081_v36, %v10079_v21 }
 0x27b   : > { %11855 = vst [vmem:[#allocation40_spill] sm:$0xff] %v10084_v46 }
 0x27e   : > { %7700 = vrot.lane.b32.xlu1 %v7709_v42, %s8619_s18  ;;  %7725 = vrot.lane.b32.xlu0 %v9673_v63, %s8621_s16  ;;  %v10073_v42 = vld [vmem:[#allocation2 + $0x1a9] sm:$0xff] }
 0x27f   : > { %6931 = vmatmul.mubr.msk.bf16.gmra.mxu0 %vm252_vm0, %v3616_v18  ;;  %v10077_v63 = vld [vmem:[#allocation2 + $0x10f] sm:$0xff] }
 0x280   : > { %6934 = vmatprep.mubr.msk.bf16.mxu0 %vm252_vm0, %v3619_v59  ;;  %11854 = vst [vmem:[#allocation39_spill] sm:$0xff] %v10077_v63  ;;  %v7744_v18 = vpack.i.bf16 %v10077_v63, %v10084_v46  ;;  %v10095_v59 = vld [vmem:[#allocation2 + $0x12f] sm:$0xff] }
 0x281   : > { %11856 = vst [vmem:[#allocation41_spill] sm:$0xff] %v10095_v59  ;;  %v2625_v46 = vld [vmem:[#allocation2 + $0x229] sm:$0xff] }
 0x282   : > { %7730 = vrot.lane.b32.xlu1 %v9636_v44, %s8621_s16  ;;  %7735 = vrot.lane.b32.xlu0 %v7734_v8, %s8619_s18  ;;  %v3622_v44 = vpack.c.bf16 %v10075_v40, %v10073_v42 }
 0x286   : > { %7740 = vrot.lane.b32.xlu1 %v7714_v1, %s8620_s10  ;;  %7750 = vrot.lane.b32.xlu0 %v9665_v53, %s8620_s10  ;;  %v10099_v1 = vpop.permute.xlu0 %7510  ;;  %v10103_v53 = vld [vmem:[#allocation2 + $0x127] sm:$0xff] }
 0x287   : > { %6935 = vmatmul.mubr.msk.bf16.gmra.mxu0 %vm252_vm0, %v3622_v44  ;;  %11857 = vst [vmem:[#allocation42_spill] sm:$0xff] %v10103_v53  ;;  %v7769_v44 = vpack.i.bf16 %v10095_v59, %v10103_v53 }
 0x288   : > { %6938 = vmatprep.mubr.msk.bf16.mxu0 %vm252_vm0, %v3625_v39  ;;  %v3631_v39 = vpack.c.bf16 %v10113_v12, %v10111_v5 }
 0x28a   : > { %7745 = vrot.lane.b32.xlu1 %v7744_v18, %s8620_s10  ;;  %7760 = vrot.lane.b32.xlu0 %v9671_v27, %s8621_s16  ;;  %v3628_v27 = vpack.c.bf16 %v10107_v34, %v10105_v55  ;;  %v10124_v48 = vpop.permute.xlu0 %7515 }
 0x28e   : > { %7755 = vrot.lane.b32.xlu1 %v9694_v30, %s8621_s16  ;;  %7770 = vrot.lane.b32.xlu0 %v7769_v44, %s8620_s10  ;;  %v7789_v30 = vpack.i.bf16 %v2610_v14, %v2609_v3  ;;  %v10134_v24 = vpop.permute.xlu0 %7525  ;;  %v10149_v3 = vld [vmem:[#allocation2 + $0x16f] sm:$0xff] }
 0x28f   : > { %6939 = vmatmul.mubr.msk.bf16.gmra.mxu0 %vm252_vm0, %v3628_v27  ;;  %v10143_v27 = vpop.permute.xlu1 %7545  ;;  %11860 = vst [vmem:[#allocation45_spill] sm:$0xff] %v10149_v3 }
 0x290   : > { %6942 = vmatprep.mubr.msk.bf16.mxu0 %vm252_vm0, %v3631_v39 }
 0x292   : > { %7765 = vrot.lane.b32.xlu1 %v7764_v6, %s8619_s18  ;;  %7780 = vrot.lane.b32.xlu0 %v9715_v54, %s8621_s16  ;;  %v7794_v54 = vpack.i.bf16 %v10137_v17, %v10140_v50  ;;  %v10147_v14 = vpop.permute.xlu0 %7530  ;;  %v2562_v50 = vld [vmem:[#allocation2 + $0x22f] sm:$0xff] }
 0x293   : > { %v10157_v39 = vpop.permute.xlu1 %7555 }
 0x296   : > { %7775 = vrot.lane.b32.xlu1 %v7734_v8, %s8620_s10  ;;  %7790 = vrot.lane.b32.xlu0 %v7789_v30, %s8619_s18  ;;  %v10153_v8 = vld [vmem:[#allocation2 + $0x167] sm:$0xff] }
 0x297   : > { %11861 = vst [vmem:[#allocation46_spill] sm:$0xff] %v10153_v8 }
 0x29a   : > { %7785 = vrot.lane.b32.xlu1 %v7744_v18, %s8621_s16  ;;  %7800 = vrot.lane.b32.xlu0 %v7764_v6, %s8620_s10  ;;  %v7819_v18 = vpack.i.bf16 %v10149_v3, %v10153_v8  ;;  %v10161_v6 = vpop.permute.xlu0 %7535  ;;  %v7518_v3 = vunpack.i.h.bf16 %v10124_v48 }
 0x29e   : > { %7795 = vrot.lane.b32.xlu1 %v7794_v54, %s8620_s10  ;;  %7810 = vrot.lane.b32.xlu0 %v7769_v44, %s8621_s16  ;;  %v10169_v44 = vpop.permute.xlu1 %7560  ;;  %v10171_v52 = vpop.permute.xlu0 %7540 }
 0x2a2   : > { %7805 = vrot.lane.b32.xlu1 %v9734_v23, %s8621_s16  ;;  %7820 = vrot.lane.b32.xlu0 %v7819_v18, %s8620_s10  ;;  %v2364_v23 = vld [vmem:[#allocation2 + $0x18f] sm:$0xff]  ;;  %v10177_v4 = vpop.permute.xlu1 %7565  ;;  %v10180_v56 = vpop.permute.xlu0 %7550 }
 0x2a6   : > { %7815 = vrot.lane.b32.xlu1 %v7814_v25, %s8619_s18  ;;  %7830 = vrot.lane.b32.xlu0 %v9754_v49, %s8621_s16  ;;  %v7844_v49 = vpack.i.bf16 %v2364_v23, %v2363_v22  ;;  %v10185_v60 = vpop.permute.xlu1 %7570 }
 0x2aa   : > { %7825 = vrot.lane.b32.xlu1 %v7789_v30, %s8620_s10  ;;  %7840 = vrot.lane.b32.xlu0 %v7839_v28, %s8619_s18  ;;  %v10187_v30 = vpop.permute.xlu0 %7575 }
 0x2ae   : > { %7835 = vrot.lane.b32.xlu1 %v7794_v54, %s8621_s16  ;;  %7850 = vrot.lane.b32.xlu0 %v7814_v25, %s8620_s10  ;;  %v10192_v54 = vpop.permute.xlu1 %7585  ;;  %v7864_v25 = vpack.i.bf16 %v10059_v38, %v10057_v20  ;;  %v10196_v23 = vpop.permute.xlu0 %7580  ;;  %v2368_v38 = vld [vmem:[#allocation2 + $0x1cf] sm:$0xff] }
 0x2af   : > { %11862 = vst [vmem:[#allocation47_spill] sm:$0xff] %v10192_v54  ;;  %11863 = vst [vmem:[#allocation48_spill] sm:$0xff] %v10196_v23  ;;  %v7894_v35 = vpack.i.bf16 %v2368_v38, %v2367_v31  ;;  %v2590_v31 = vld [vmem:[#allocation2 + $0x1f0] sm:$0xff] }
 0x2b2   : > { %7845 = vrot.lane.b32.xlu1 %v7844_v49, %s8620_s10  ;;  %7860 = vrot.lane.b32.xlu0 %v7819_v18, %s8621_s16  ;;  %v10201_v18 = vpop.permute.xlu1 %7595  ;;  %v10203_v10 = vpop.permute.xlu0 %7590 }
 0x2b3   : > { %11864 = vst [vmem:[#allocation49_spill] sm:$0xff] %v10201_v18  ;;  %11865 = vst [vmem:[#allocation50_spill] sm:$0xff] %v10203_v10  ;;  %v2561_v18 = vld [vmem:[#allocation2 + $0x227] sm:$0xff] }
 0x2b6   : > { %7855 = vrot.lane.b32.xlu1 %v9774_v11, %s8621_s16  ;;  %7870 = vrot.lane.b32.xlu0 %v7869_v13, %s8620_s10  ;;  %v7889_v11 = vpack.i.bf16 %v10075_v40, %v10073_v42  ;;  %v10209_v22 = vpop.permute.xlu1 %7605  ;;  %v10211_v20 = vpop.permute.xlu0 %7600  ;;  %v10219_v42 = vld [vmem:[#allocation2 + $0x1d0] sm:$0xff]  ;;  %v10223_v40 = vld [vmem:[#allocation2 + $0x1c8] sm:$0xff] }
 0x2b7   : > { %11866 = vst [vmem:[#allocation51_spill] sm:$0xff] %v10209_v22  ;;  %11867 = vst [vmem:[#allocation52_spill] sm:$0xff] %v10211_v20 }
 0x2b8   : > { %11870 = vst [vmem:[#allocation55_spill] sm:$0xff] %v10219_v42  ;;  %11871 = vst [vmem:[#allocation56_spill] sm:$0xff] %v10223_v40 }
 0x2ba   : > { %7865 = vrot.lane.b32.xlu1 %v7864_v25, %s8619_s18  ;;  %7880 = vrot.lane.b32.xlu0 %v9794_v57, %s8621_s16  ;;  %v10215_v57 = vpop.permute.xlu1 %7615  ;;  %v10217_v61 = vpop.permute.xlu0 %7610 }
 0x2bb   : > { %11868 = vst [vmem:[#allocation53_spill] sm:$0xff] %v10215_v57  ;;  %11869 = vst [vmem:[#allocation54_spill] sm:$0xff] %v10217_v61  ;;  %v2589_v61 = vld [vmem:[#allocation2 + $0x1e8] sm:$0xff] }
 0x2bc   : > { %v7929_v20 = vpack.i.bf16 %v2590_v31, %v2589_v61  ;;  %v2340_v61 = vld [vmem:[#allocation2 + $0xf] sm:$0xff] }
 0x2be   : > { %7875 = vrot.lane.b32.xlu1 %v7839_v28, %s8620_s10  ;;  %7890 = vrot.lane.b32.xlu0 %v7889_v11, %s8619_s18  ;;  %v2370_v28 = vld [vmem:[#allocation2 + $0x1ef] sm:$0xff] }
 0x2bf   : > { %v7919_v38 = vpack.i.bf16 %v2370_v28, %v2369_v51  ;;  %v7512_v51 = vunpack.i.l.bf16 %v10099_v1 }
 0x2c2   : > { %7885 = vrot.lane.b32.xlu1 %v7844_v49, %s8621_s16  ;;  %7900 = vrot.lane.b32.xlu0 %v7864_v25, %s8620_s10  ;;  %v7904_v49 = vpack.i.bf16 %v10219_v42, %v10223_v40  ;;  %v2339_v42 = vld [vmem:[#allocation2 + $0x7] sm:$0xff] }
 0x2c3   : > { %v3395_v31 = vsel %vm252_vm0, %v2339_v42, %v7512_v51 }
 0x2c6   : > { %7895 = vrot.lane.b32.xlu1 %v7894_v35, %s8620_s10  ;;  %7910 = vrot.lane.b32.xlu0 %v7869_v13, %s8621_s16  ;;  %v7914_v13 = vpack.i.bf16 %v10081_v36, %v10079_v21  ;;  %v7513_v36 = vunpack.i.h.bf16 %v10099_v1  ;;  %v7517_v21 = vunpack.i.l.bf16 %v10124_v48  ;;  %v2592_v1 = vld [vmem:[#allocation2 + $0x210] sm:$0xff]  ;;  %v2591_v48 = vld [vmem:[#allocation2 + $0x208] sm:$0xff] }
 0x2c8   : > { %v10225_v15 = vpop.permute.xlu1 %7630  ;;  %v10229_v25 = vpop.permute.xlu0 %7620  ;;  %v3427_v17 = vsel %vm1479_vm1, %v3395_v31, %v7517_v21  ;;  %v7969_v21 = vpack.i.bf16 %v2562_v50, %v2561_v18  ;;  %v2593_v18 = vld [vmem:[#allocation2 + $0x228] sm:$0xff] }
 0x2c9   : > { %v7633_v31 = vunpack.i.h.bf16 %v10225_v15 }
 0x2ca   : > { %7905 = vrot.lane.b32.xlu1 %v7904_v49, %s8621_s16  ;;  %7920 = vrot.lane.b32.xlu0 %v7919_v38, %s8620_s10  ;;  %v10246_v49 = vpack.i.bf16 %v10107_v34, %v10105_v55  ;;  %v2560_v34 = vld [vmem:[#allocation2 + $0x20f] sm:$0xff]  ;;  %v3396_v55 = vsel %vm252_vm0, %v2340_v61, %v7513_v36 }
 0x2cb   : > { %v3428_v51 = vsel %vm1479_vm1, %v3396_v55, %v7518_v3 }
 0x2cc   : > { %v10233_v57 = vpop.permute.xlu1 %7635  ;;  %v7626_v22 = vpop.permute.xlu0 %7625 }
 0x2cd   : > { %v7628_v63 = vunpack.i.h.bf16 %v7626_v22  ;;  %v7627_v23 = vunpack.i.l.bf16 %v7626_v22 }
 0x2ce   : > { %7915 = vrot.lane.b32.xlu1 %v7914_v13, %s8619_s18  ;;  %7930 = vrot.lane.b32.xlu0 %v7929_v20, %s8621_s16 }
 0x2d0   : > { %v10239_v40 = vpop.permute.xlu1 %7640  ;;  %v10242_v28 = vpop.permute.xlu0 %7645 }
 0x2d2   : > { %7925 = vrot.lane.b32.xlu1 %v7889_v11, %s8620_s10  ;;  %7940 = vrot.lane.b32.xlu0 %v10246_v49, %s8619_s18  ;;  %v2559_v11 = vld [vmem:[#allocation2 + $0x207] sm:$0xff] }
 0x2d3   : > { %v10261_v42 = vpack.i.bf16 %v2560_v34, %v2559_v11  ;;  %v7632_v34 = vunpack.i.l.bf16 %v10225_v15  ;;  %v2594_v11 = vld [vmem:[#allocation2 + $0x230] sm:$0xff] }
 0x2d4   : > { %v10253_v20 = vpop.permute.xlu1 %7650  ;;  %v7661_v8 = vpop.permute.xlu0 %7660 }
 0x2d5   : > { %v7663_v10 = vunpack.i.h.bf16 %v7661_v8  ;;  %v7662_v53 = vunpack.i.l.bf16 %v7661_v8 }
 0x2d6   : > { %7935 = vrot.lane.b32.xlu1 %v7894_v35, %s8621_s16  ;;  %7950 = vrot.lane.b32.xlu0 %v7914_v13, %s8620_s10  ;;  %v7954_v35 = vpack.i.bf16 %v2592_v1, %v2591_v48  ;;  %v2626_v13 = vld [vmem:[#allocation2 + $0x231] sm:$0xff] }
 0x2d7   : > { %v3634_v8 = vpack.c.bf16 %v2626_v13, %v2625_v46  ;;  %v3460_v55 = vsel %vm1512_vm2, %v3428_v51, %v7663_v10  ;;  %v3459_v22 = vsel %vm1512_vm2, %v3427_v17, %v7662_v53  ;;  %v7653_v53 = vunpack.i.h.bf16 %v10253_v20 }
 0x2d8   : > { %v7656_v59 = vpop.permute.xlu1 %7655  ;;  %v10264_v61 = vpop.permute.xlu0 %7670  ;;  %v7652_v17 = vunpack.i.l.bf16 %v10253_v20  ;;  %v7964_v51 = vpack.i.bf16 %v10113_v12, %v10111_v5  ;;  %v7527_v13 = vunpack.i.l.bf16 %v10134_v24  ;;  %v7533_v20 = vunpack.i.h.bf16 %v10147_v14 }
 0x2d9   : > { %v7658_v54 = vunpack.i.h.bf16 %v7656_v59  ;;  %v7657_v36 = vunpack.i.l.bf16 %v7656_v59  ;;  %6943 = vmatmul.mubr.msk.bf16.gmra.mxu0 %vm252_vm0, %v3634_v8  ;;  %v7638_v8 = vunpack.i.h.bf16 %v10233_v57 }
 0x2da   : > { %7945 = vrot.lane.b32.xlu1 %v10261_v42, %s8620_s10  ;;  %7960 = vrot.lane.b32.xlu0 %v7919_v38, %s8621_s16  ;;  %v3397_v12 = vsel %vm252_vm0, %v9987_v2, %v7652_v17  ;;  %v7642_v2 = vunpack.i.l.bf16 %v10239_v40 }
 0x2db   : > { %v3492_v3 = vsel %vm252_vm0, %v9974_v29, %v7658_v54  ;;  %v3491_v59 = vsel %vm252_vm0, %v9980_v0, %v7657_v36  ;;  %v7528_v36 = vunpack.i.h.bf16 %v10134_v24 }
 0x2dc   : > { %v7666_v1 = vpop.permute.xlu1 %7665  ;;  %v3523_v50 = vsel %vm1479_vm1, %v3491_v59, %v7627_v23  ;;  %v3524_v46 = vsel %vm1479_vm1, %v3492_v3, %v7628_v63  ;;  %v10280_v15 = vpop.permute.xlu0 %7695  ;;  %v3587_v23 = vpack.c.bf16 %v3460_v55, %v3459_v22  ;;  %v7979_v63 = vpack.i.bf16 %v2594_v11, %v2593_v18 }
 0x2dd   : > { %v3555_v29 = vsel %vm1512_vm2, %v3523_v50, %v7632_v34  ;;  %v3556_v0 = vsel %vm1512_vm2, %v3524_v46, %v7633_v31  ;;  %v7668_v10 = vunpack.i.h.bf16 %v7666_v1  ;;  %v7667_v38 = vunpack.i.l.bf16 %v7666_v1 }
 0x2de   : > { %7955 = vrot.lane.b32.xlu1 %v7954_v35, %s8621_s16  ;;  %v3588_v54 = vpack.c.bf16 %v3556_v0, %v3555_v29  ;;  %7970 = vrot.lane.b32.xlu0 %v7969_v21, %s8620_s10  ;;  %v7637_v21 = vunpack.i.l.bf16 %v10233_v57  ;;  %v3398_v31 = vsel %vm252_vm0, %v9977_v41, %v7653_v53  ;;  %v7623_v3 = vunpack.i.h.bf16 %v10229_v25 }
 0x2df   : > { %v7622_v59 = vunpack.i.l.bf16 %v10229_v25  ;;  %v3429_v22 = vsel %vm1479_vm1, %v3397_v12, %v7667_v38  ;;  %v3430_v57 = vsel %vm1479_vm1, %v3398_v31, %v7668_v10  ;;  %v7532_v1 = vunpack.i.l.bf16 %v10147_v14 }
 0x2e0   : > { %v10288_v48 = vpop.permute.xlu1 %7675  ;;  %3859 = vmatprep.mubr.bf16.mxu1 %v3588_v54  ;;  %v7706_v35 = vpop.permute.xlu0 %7705  ;;  %v7538_v41 = vunpack.i.h.bf16 %v10161_v6  ;;  %v7643_v50 = vunpack.i.h.bf16 %v10239_v40  ;;  %v3494_v18 = vsel %vm252_vm0, %v9943_v26, %v7638_v8  ;;  %v3493_v25 = vsel %vm252_vm0, %v9935_v47, %v7637_v21 }
 0x2e1   : > { %3860 = vmatmul.mubr.bf16.vlgmr.msra.gmra.mxu1 %v3587_v23  ;;  %v7708_v5 = vunpack.i.h.bf16 %v7706_v35  ;;  %v7707_v34 = vunpack.i.l.bf16 %v7706_v35  ;;  %v3461_v53 = vsel %vm1512_vm2, %v3429_v22, %v7642_v2  ;;  %v3399_v17 = vsel %vm252_vm0, %v9959_v37, %v7622_v59 }
 0x2e2   : > { %7965 = vrot.lane.b32.xlu1 %v7964_v51, %s8619_s18  ;;  %7980 = vrot.lane.b32.xlu0 %v7979_v63, %s8621_s16  ;;  %v3462_v40 = vsel %vm1512_vm2, %v3430_v57, %v7643_v50  ;;  %v3400_v26 = vsel %vm252_vm0, %v9953_v45, %v7623_v3  ;;  %v7647_v8 = vunpack.i.l.bf16 %v10242_v28  ;;  %v7678_v45 = vunpack.i.h.bf16 %v10288_v48 }
 0x2e3   : > { %v3525_v0 = vsel %vm1479_vm1, %v3493_v25, %v7707_v34  ;;  %v3526_v54 = vsel %vm1479_vm1, %v3494_v18, %v7708_v5  ;;  %v3590_v37 = vpack.c.bf16 %v3462_v40, %v3461_v53  ;;  %v7677_v12 = vunpack.i.l.bf16 %v10288_v48 }
 0x2e4   : > { %v7681_v55 = vpop.permute.xlu1 %7680  ;;  %v7711_v46 = vpop.permute.xlu0 %7710  ;;  %v3431_v25 = vsel %vm1479_vm1, %v3399_v17, %v7647_v8  ;;  %v7558_v40 = vunpack.i.h.bf16 %v10157_v39  ;;  %v7557_v17 = vunpack.i.l.bf16 %v10157_v39  ;;  %v7563_v14 = vunpack.i.h.bf16 %v10169_v44 }
 0x2e5   : > { %v7713_v11 = vunpack.i.h.bf16 %v7711_v46  ;;  %v7712_v29 = vunpack.i.l.bf16 %v7711_v46  ;;  %v7683_v3 = vunpack.i.h.bf16 %v7681_v55  ;;  %v7682_v59 = vunpack.i.l.bf16 %v7681_v55 }
 0x2e6   : > { %7975 = vrot.lane.b32.xlu1 %v10246_v49, %s8620_s10  ;;  %v7648_v49 = vunpack.i.h.bf16 %v10242_v28 }
 0x2e7   : > { %v3557_v23 = vsel %vm1512_vm2, %v3525_v0, %v7712_v29  ;;  %v3558_v63 = vsel %vm1512_vm2, %v3526_v54, %v7713_v11 }
 0x2e8   : > { %v7686_v47 = vpop.permute.xlu1 %7685  ;;  %v7716_v51 = vpop.permute.xlu0 %7715  ;;  %v3591_v35 = vpack.c.bf16 %v3558_v63, %v3557_v23  ;;  %v3432_v11 = vsel %vm1479_vm1, %v3400_v26, %v7648_v49  ;;  %v8528_v63 = vld [vmem:[#allocation2 + $0xa8] sm:$0xff] }
 0x2e9   : > { %v7688_v10 = vunpack.i.h.bf16 %v7686_v47  ;;  %v7687_v38 = vunpack.i.l.bf16 %v7686_v47  ;;  %v7718_v21 = vunpack.i.h.bf16 %v7716_v51  ;;  %v7717_v31 = vunpack.i.l.bf16 %v7716_v51  ;;  %v8527_v47 = vld [vmem:[#allocation2 + $0xb0] sm:$0xff] }
 0x2ea   : > { %7985 = vrot.lane.b32.xlu1 %v10261_v42, %s8621_s16  ;;  %3867 = vmatprep.mubr.bf16.mxu1 %v3591_v35  ;;  %v3500_v23 = vsel %vm252_vm0, %v8527_v47, %v7538_v41  ;;  %v7673_v41 = vunpack.i.h.bf16 %v10264_v61  ;;  %v7672_v35 = vunpack.i.l.bf16 %v10264_v61  ;;  %v7548_v47 = vunpack.i.h.bf16 %v10143_v27 }
 0x2eb   : > { %v3498_v5 = vsel %vm252_vm0, %v9994_v62, %v7688_v10  ;;  %v3497_v34 = vsel %vm252_vm0, %v9997_v58, %v7687_v38  ;;  %v3496_v28 = vsel %vm252_vm0, %v10028_v19, %v7718_v21  ;;  %v3495_v42 = vsel %vm252_vm0, %v10033_v9, %v7717_v31  ;;  %3868 = vmatmul.mubr.bf16.gmra.mxu1 %v3590_v37 }
 0x2ec   : > { %v7691_v22 = vpop.permute.xlu1 %7690  ;;  %v7721_v57 = vpop.permute.xlu0 %7720  ;;  %v3527_v48 = vsel %vm1479_vm1, %v3495_v42, %v7677_v12  ;;  %v3528_v50 = vsel %vm1479_vm1, %v3496_v28, %v7678_v45  ;;  %v3529_v62 = vsel %vm1479_vm1, %v3497_v34, %v7527_v13  ;;  %v3530_v58 = vsel %vm1479_vm1, %v3498_v5, %v7528_v36 }
 0x2ed   : > { %v7723_v55 = vunpack.i.h.bf16 %v7721_v57  ;;  %v7722_v2 = vunpack.i.l.bf16 %v7721_v57  ;;  %v3559_v19 = vsel %vm1512_vm2, %v3527_v48, %v7682_v59  ;;  %v3560_v46 = vsel %vm1512_vm2, %v3528_v50, %v7683_v3 }
 0x2ee   : > { %v7537_v9 = vunpack.i.l.bf16 %v10161_v6  ;;  %v3594_v18 = vpack.c.bf16 %v3560_v46, %v3559_v19  ;;  %v3561_v36 = vsel %vm1512_vm2, %v3529_v62, %v7532_v1  ;;  %v3562_v0 = vsel %vm1512_vm2, %v3530_v58, %v7533_v20 }
 0x2ef   : > { %v3463_v13 = vsel %vm1512_vm2, %v3431_v25, %v7722_v2  ;;  %v3464_v24 = vsel %vm1512_vm2, %v3432_v11, %v7723_v55  ;;  %v3597_v26 = vpack.c.bf16 %v3562_v0, %v3561_v36  ;;  %v7562_v20 = vunpack.i.l.bf16 %v10169_v44  ;;  %v8529_v11 = vld [vmem:[#allocation2 + $0xd0] sm:$0xff] }
 0x2f0   : > { %v7701_v29 = vpop.permute.xlu1 %7700  ;;  %v10358_v54 = vpop.permute.xlu0 %7725  ;;  %3875 = vmatprep.mubr.bf16.mxu1 %v3594_v18  ;;  %v3593_v53 = vpack.c.bf16 %v3464_v24, %v3463_v13  ;;  %v3499_v1 = vsel %vm252_vm0, %v8528_v63, %v7537_v9  ;;  %v3532_v6 = vsel %vm1479_vm1, %v3500_v23, %v7558_v40  ;;  %v7698_v31 = vunpack.i.h.bf16 %v10280_v15  ;;  %v8530_v13 = vld [vmem:[#allocation2 + $0xc8] sm:$0xff] }
 0x2f1   : > { %v7703_v39 = vunpack.i.h.bf16 %v7701_v29  ;;  %v7702_v38 = vunpack.i.l.bf16 %v7701_v29  ;;  %v3531_v51 = vsel %vm1479_vm1, %v3499_v1, %v7557_v17  ;;  %v3564_v44 = vsel %vm1512_vm2, %v3532_v6, %v7563_v14 }
 0x2f2   : > { %v3563_v21 = vsel %vm1512_vm2, %v3531_v51, %v7562_v20  ;;  %v7697_v37 = vunpack.i.l.bf16 %v10280_v15  ;;  %v7693_v34 = vunpack.i.h.bf16 %v7691_v22  ;;  %v7692_v3 = vunpack.i.l.bf16 %v7691_v22 }
 0x2f3   : > { %3876 = vmatmul.mubr.bf16.gmra.mxu1 %v3593_v53  ;;  %v3402_v59 = vsel %vm252_vm0, %v10012_v32, %v7703_v39  ;;  %v3401_v61 = vsel %vm252_vm0, %v10019_v7, %v7702_v38  ;;  %v7568_v57 = vunpack.i.h.bf16 %v10177_v4  ;;  %v7567_v15 = vunpack.i.l.bf16 %v10177_v4 }
 0x2f4   : > { %v10368_v49 = vpop.permute.xlu1 %7730  ;;  %v10370_v10 = vpop.permute.xlu0 %7735  ;;  %3883 = vmatprep.mubr.bf16.mxu1 %v3597_v26  ;;  %v3404_v32 = vsel %vm252_vm0, %v10008_v33, %v7673_v41  ;;  %v3403_v7 = vsel %vm252_vm0, %v10015_v43, %v7672_v35  ;;  %v3600_v55 = vpack.c.bf16 %v3564_v44, %v3563_v21  ;;  %v7578_v2 = vunpack.i.h.bf16 %v10187_v30  ;;  %v8531_v35 = vld [vmem:[#allocation2 + $0xa7] sm:$0xff] }
 0x2f5   : > { %v7577_v4 = vunpack.i.l.bf16 %v10187_v30  ;;  %v3435_v19 = vsel %vm1479_vm1, %v3403_v7, %v7697_v37  ;;  %v3436_v46 = vsel %vm1479_vm1, %v3404_v32, %v7698_v31  ;;  %v7543_v9 = vunpack.i.h.bf16 %v10171_v52  ;;  %v2480_v37 = vld [vmem:[#allocation2 + $0xf0] sm:$0xff] }
 0x2f6   : > { %v7542_v18 = vunpack.i.l.bf16 %v10171_v52  ;;  %v7728_v33 = vunpack.i.h.bf16 %v10358_v54  ;;  %v7727_v43 = vunpack.i.l.bf16 %v10358_v54  ;;  %v3502_v29 = vsel %vm252_vm0, %v8529_v11, %v7568_v57  ;;  %v2482_v32 = vld [vmem:[#allocation2 + $0x110] sm:$0xff] }
 0x2f7   : > { %v3501_v30 = vsel %vm252_vm0, %v8530_v13, %v7567_v15  ;;  %v3468_v0 = vsel %vm1512_vm2, %v3436_v46, %v7543_v9  ;;  %v3534_v53 = vsel %vm1479_vm1, %v3502_v29, %v7578_v2  ;;  %v7523_v54 = vunpack.i.h.bf16 %v10131_v16 }
 0x2f8   : > { %v7741_v8 = vpop.permute.xlu1 %7740  ;;  %v10380_v5 = vpop.permute.xlu0 %7750  ;;  %v3467_v36 = vsel %vm1512_vm2, %v3435_v19, %v7542_v18  ;;  %v3533_v52 = vsel %vm1479_vm1, %v3501_v30, %v7577_v4  ;;  %v7522_v40 = vunpack.i.l.bf16 %v10131_v16  ;;  %v3566_v26 = vsel %vm1512_vm2, %v3534_v53, %v7728_v33 }
 0x2f9   : > { %v7743_v45 = vunpack.i.h.bf16 %v7741_v8  ;;  %v7742_v12 = vunpack.i.l.bf16 %v7741_v8  ;;  %v3565_v17 = vsel %vm1512_vm2, %v3533_v52, %v7727_v43  ;;  %v7547_v23 = vunpack.i.l.bf16 %v10143_v27  ;;  %v8532_v8 = vld [vmem:[#allocation2 + $0xaf] sm:$0xff] }
 0x2fa   : > { %v3599_v1 = vpack.c.bf16 %v3468_v0, %v3467_v36  ;;  %v7733_v14 = vunpack.i.h.bf16 %v10368_v49  ;;  %v7732_v20 = vunpack.i.l.bf16 %v10368_v49  ;;  %v7738_v39 = vunpack.i.h.bf16 %v10370_v10  ;;  %v2479_v49 = vld [vmem:[#allocation2 + $0xe8] sm:$0xff] }
 0x2fb   : > { %v3433_v28 = vsel %vm1479_vm1, %v3401_v61, %v7742_v12  ;;  %v3434_v42 = vsel %vm1479_vm1, %v3402_v59, %v7743_v45  ;;  %v7737_v38 = vunpack.i.l.bf16 %v10370_v10  ;;  %v3603_v41 = vpack.c.bf16 %v3566_v26, %v3565_v17  ;;  %v8533_v36 = vld [vmem:[#allocation2 + $0xcf] sm:$0xff] }
 0x2fc   : > { %v10390_v48 = vpop.permute.xlu1 %7745  ;;  %v3465_v50 = vsel %vm1512_vm2, %v3433_v28, %v7692_v3  ;;  %v3466_v22 = vsel %vm1512_vm2, %v3434_v42, %v7693_v34  ;;  %v10398_v62 = vpop.permute.xlu0 %7760  ;;  %v3405_v27 = vsel %vm252_vm0, %v8531_v35, %v7522_v40  ;;  %v3406_v21 = vsel %vm252_vm0, %v8532_v8, %v7523_v54 }
 0x2fd   : > { %v3596_v58 = vpack.c.bf16 %v3466_v22, %v3465_v50  ;;  %v7748_v16 = vunpack.i.h.bf16 %v10390_v48  ;;  %v7747_v6 = vunpack.i.l.bf16 %v10390_v48  ;;  %v3437_v34 = vsel %vm1479_vm1, %v3405_v27, %v7547_v23  ;;  %v2481_v22 = vld [vmem:[#allocation2 + $0x108] sm:$0xff] }
 0x2fe   : > { %v3438_v3 = vsel %vm1479_vm1, %v3406_v21, %v7548_v47  ;;  %v3504_v59 = vsel %vm252_vm0, %v2480_v37, %v7738_v39  ;;  %v3503_v61 = vsel %vm252_vm0, %v2479_v49, %v7737_v38  ;;  %v3469_v42 = vsel %vm1512_vm2, %v3437_v34, %v7732_v20  ;;  %v8536_v49 = vld [vmem:[#allocation2 + $0xe7] sm:$0xff]  ;;  %v2484_v34 = vld [vmem:[#allocation2 + $0x130] sm:$0xff] }
 0x2ff   : > { %3884 = vmatmul.mubr.bf16.gmra.mxu1 %v3596_v58  ;;  %v3470_v57 = vsel %vm1512_vm2, %v3438_v3, %v7733_v14  ;;  %v3535_v15 = vsel %vm1479_vm1, %v3503_v61, %v7747_v6  ;;  %v3536_v48 = vsel %vm1479_vm1, %v3504_v59, %v7748_v16  ;;  %v7553_v50 = vunpack.i.h.bf16 %v10180_v56 }
 0x300   : > { %v7756_v25 = vpop.permute.xlu1 %7755  ;;  %3891 = vmatprep.mubr.bf16.mxu1 %v3600_v55  ;;  %v10410_v24 = vpop.permute.xlu0 %7770  ;;  %v7552_v55 = vunpack.i.l.bf16 %v10180_v56  ;;  %v3602_v46 = vpack.c.bf16 %v3470_v57, %v3469_v42  ;;  %v7753_v9 = vunpack.i.h.bf16 %v10380_v5  ;;  %v7752_v18 = vunpack.i.l.bf16 %v10380_v5  ;;  %v8534_v5 = vld [vmem:[#allocation2 + $0xc7] sm:$0xff] }
 0x301   : > { %v7758_v44 = vunpack.i.h.bf16 %v7756_v25  ;;  %v7757_v31 = vunpack.i.l.bf16 %v7756_v25  ;;  %v7773_v33 = vunpack.i.h.bf16 %v10410_v24  ;;  %v7772_v43 = vunpack.i.l.bf16 %v10410_v24 }
 0x302   : > { %v7763_v11 = vunpack.i.h.bf16 %v10398_v62  ;;  %v7762_v56 = vunpack.i.l.bf16 %v10398_v62  ;;  %v3408_v0 = vsel %vm252_vm0, %v8533_v36, %v7553_v50  ;;  %v3407_v52 = vsel %vm252_vm0, %v8534_v5, %v7552_v55 }
 0x303   : > { %v3567_v7 = vsel %vm1512_vm2, %v3535_v15, %v7757_v31  ;;  %v3568_v58 = vsel %vm1512_vm2, %v3536_v48, %v7758_v44  ;;  %v3439_v62 = vsel %vm1479_vm1, %v3407_v52, %v7752_v18  ;;  %v3440_v17 = vsel %vm1479_vm1, %v3408_v0, %v7753_v9  ;;  %v8535_v31 = vld [vmem:[#allocation2 + $0xef] sm:$0xff] }
 0x304   : > { %v7766_v63 = vpop.permute.xlu1 %7765  ;;  %v10426_v51 = vpop.permute.xlu0 %7780  ;;  %v3606_v29 = vpack.c.bf16 %v3568_v58, %v3567_v7  ;;  %v3471_v26 = vsel %vm1512_vm2, %v3439_v62, %v7762_v56  ;;  %v3472_v47 = vsel %vm1512_vm2, %v3440_v17, %v7763_v11  ;;  %v7572_v14 = vunpack.i.l.bf16 %v10185_v60  ;;  %v11872_v58 = vld [vmem:[#allocation48_spill] sm:$0xff] }
 0x305   : > { %v7768_v45 = vunpack.i.h.bf16 %v7766_v63  ;;  %v7767_v10 = vunpack.i.l.bf16 %v7766_v63  ;;  %v7783_v24 = vunpack.i.h.bf16 %v10426_v51  ;;  %v7782_v53 = vunpack.i.l.bf16 %v10426_v51  ;;  %v11874_v17 = vld [vmem:[#allocation40_spill] sm:$0xff] }
 0x306   : > { %v3409_v37 = vsel %vm252_vm0, %v8536_v49, %v7572_v14  ;;  %v7583_v55 = vunpack.i.h.bf16 %v11872_v58  ;;  %v7582_v9 = vunpack.i.l.bf16 %v11872_v58 }
 0x307   : > { %3892 = vmatmul.mubr.bf16.gmra.mxu1 %v3599_v1  ;;  %v3506_v2 = vsel %vm252_vm0, %v2482_v32, %v7768_v45  ;;  %v3505_v4 = vsel %vm252_vm0, %v2481_v22, %v7767_v10  ;;  %v7573_v1 = vunpack.i.h.bf16 %v10185_v60 }
 0x308   : > { %v10432_v12 = vpop.permute.xlu1 %7775  ;;  %3899 = vmatprep.mubr.bf16.mxu1 %v3603_v41  ;;  %v10438_v28 = vpop.permute.xlu0 %7790  ;;  %v3537_v13 = vsel %vm1479_vm1, %v3505_v4, %v7772_v43  ;;  %v3538_v30 = vsel %vm1479_vm1, %v3506_v2, %v7773_v33  ;;  %v3605_v41 = vpack.c.bf16 %v3472_v47, %v3471_v26  ;;  %v2485_v2 = vld [vmem:[#allocation2 + $0x148] sm:$0xff]  ;;  %v2486_v4 = vld [vmem:[#allocation2 + $0x150] sm:$0xff] }
 0x309   : > { %v3569_v23 = vsel %vm1512_vm2, %v3537_v13, %v7782_v53  ;;  %v3570_v63 = vsel %vm1512_vm2, %v3538_v30, %v7783_v24  ;;  %v7778_v20 = vunpack.i.h.bf16 %v10432_v12  ;;  %v7777_v39 = vunpack.i.l.bf16 %v10432_v12  ;;  %v2483_v12 = vld [vmem:[#allocation2 + $0x128] sm:$0xff] }
 0x30a   : > { %v7793_v51 = vunpack.i.h.bf16 %v10438_v28  ;;  %v7792_v16 = vunpack.i.l.bf16 %v10438_v28  ;;  %v3609_v35 = vpack.c.bf16 %v3570_v63, %v3569_v23  ;;  %v3410_v60 = vsel %vm252_vm0, %v8535_v31, %v7573_v1 }
 0x30b   : > { %v3441_v59 = vsel %vm1479_vm1, %v3409_v37, %v7777_v39  ;;  %v3442_v61 = vsel %vm1479_vm1, %v3410_v60, %v7778_v20 }
 0x30c   : > { %v10450_v19 = vpop.permute.xlu1 %7785  ;;  %v10456_v25 = vpop.permute.xlu0 %7800  ;;  %v3508_v28 = vsel %vm252_vm0, %v2484_v34, %v7793_v51  ;;  %v3507_v42 = vsel %vm252_vm0, %v2483_v12, %v7792_v16  ;;  %v11875_v51 = vld [vmem:[#allocation47_spill] sm:$0xff]  ;;  %v11876_v12 = vld [vmem:[#allocation41_spill] sm:$0xff] }
 0x30d   : > { %v7788_v27 = vunpack.i.h.bf16 %v10450_v19  ;;  %v7787_v8 = vunpack.i.l.bf16 %v10450_v19  ;;  %v7803_v18 = vunpack.i.h.bf16 %v10456_v25  ;;  %v7802_v56 = vunpack.i.l.bf16 %v10456_v25 }
 0x30e   : > { %v3411_v25 = vsel %vm252_vm0, %v11874_v17, %v7582_v9  ;;  %v7588_v16 = vunpack.i.h.bf16 %v11875_v51  ;;  %v11878_v9 = vld [vmem:[#allocation50_spill] sm:$0xff] }
 0x30f   : > { %3900 = vmatmul.mubr.bf16.gmra.mxu1 %v3602_v46  ;;  %v3473_v50 = vsel %vm1512_vm2, %v3441_v59, %v7787_v8  ;;  %v3474_v22 = vsel %vm1512_vm2, %v3442_v61, %v7788_v27  ;;  %v2487_v61 = vld [vmem:[#allocation2 + $0x168] sm:$0xff] }
 0x310   : > { %v7796_v54 = vpop.permute.xlu1 %7795  ;;  %3907 = vmatprep.mubr.bf16.mxu1 %v3606_v29  ;;  %v10466_v40 = vpop.permute.xlu0 %7810  ;;  %v3608_v36 = vpack.c.bf16 %v3474_v22, %v3473_v50  ;;  %v3414_v34 = vsel %vm252_vm0, %v11876_v12, %v7588_v16 }
 0x311   : > { %v7798_v21 = vunpack.i.h.bf16 %v7796_v54  ;;  %v7797_v44 = vunpack.i.l.bf16 %v7796_v54  ;;  %v7813_v0 = vunpack.i.h.bf16 %v10466_v40  ;;  %v7812_v5 = vunpack.i.l.bf16 %v10466_v40  ;;  %v11873_v54 = vld [vmem:[#allocation39_spill] sm:$0xff] }
 0x312   : > { %v3412_v62 = vsel %vm252_vm0, %v11873_v54, %v7583_v55  ;;  %v3443_v40 = vsel %vm1479_vm1, %v3411_v25, %v7802_v56  ;;  %v2490_v54 = vld [vmem:[#allocation2 + $0x190] sm:$0xff] }
 0x313   : > { %v3539_v32 = vsel %vm1479_vm1, %v3507_v42, %v7797_v44  ;;  %v3540_v7 = vsel %vm1479_vm1, %v3508_v28, %v7798_v21  ;;  %v3444_v1 = vsel %vm1479_vm1, %v3412_v62, %v7803_v18  ;;  %v3475_v14 = vsel %vm1512_vm2, %v3443_v40, %v7812_v5  ;;  %v2488_v28 = vld [vmem:[#allocation2 + $0x170] sm:$0xff] }
 0x314   : > { %v7806_v38 = vpop.permute.xlu1 %7805  ;;  %v7821_v6 = vpop.permute.xlu0 %7820  ;;  %v3476_v20 = vsel %vm1512_vm2, %v3444_v1, %v7813_v0  ;;  %v7593_v18 = vunpack.i.h.bf16 %v11878_v9 }
 0x315   : > { %v7808_v45 = vunpack.i.h.bf16 %v7806_v38  ;;  %v7807_v10 = vunpack.i.l.bf16 %v7806_v38  ;;  %v7823_v29 = vunpack.i.h.bf16 %v7821_v6  ;;  %v7822_v13 = vunpack.i.l.bf16 %v7821_v6 }
 0x316   : > { %v7587_v6 = vunpack.i.l.bf16 %v11875_v51  ;;  %v3611_v31 = vpack.c.bf16 %v3476_v20, %v3475_v14 }
 0x317   : > { %3908 = vmatmul.mubr.bf16.gmra.mxu1 %v3605_v41  ;;  %v3571_v19 = vsel %vm1512_vm2, %v3539_v32, %v7807_v10  ;;  %v3572_v46 = vsel %vm1512_vm2, %v3540_v7, %v7808_v45 }
 0x318   : > { %v7816_v3 = vpop.permute.xlu1 %7815  ;;  %3915 = vmatprep.mubr.bf16.mxu1 %v3609_v35  ;;  %v7831_v48 = vpop.permute.xlu0 %7830  ;;  %v3612_v52 = vpack.c.bf16 %v3572_v46, %v3571_v19 }
 0x319   : > { %v7818_v57 = vunpack.i.h.bf16 %v7816_v3  ;;  %v7817_v15 = vunpack.i.l.bf16 %v7816_v3  ;;  %v7833_v26 = vunpack.i.h.bf16 %v7831_v48  ;;  %v7832_v47 = vunpack.i.l.bf16 %v7831_v48  ;;  %v11877_v3 = vld [vmem:[#allocation42_spill] sm:$0xff] }
 0x31a   : > { %v3413_v59 = vsel %vm252_vm0, %v11877_v3, %v7587_v6 }
 0x31b   : > { %v3510_v33 = vsel %vm252_vm0, %v2486_v4, %v7818_v57  ;;  %v3509_v43 = vsel %vm252_vm0, %v2485_v2, %v7817_v15 }
 0x31c   : > { %v7826_v11 = vpop.permute.xlu1 %7825  ;;  %v7841_v30 = vpop.permute.xlu0 %7840  ;;  %v3541_v24 = vsel %vm1479_vm1, %v3509_v43, %v7822_v13  ;;  %v3542_v53 = vsel %vm1479_vm1, %v3510_v33, %v7823_v29  ;;  %v7592_v33 = vunpack.i.l.bf16 %v11878_v9  ;;  %v4508_v9 = vld [vmem:[#allocation2 + $0x22f] sm:$0xff] }
 0x31d   : > { %v3573_v39 = vsel %vm1512_vm2, %v3541_v24, %v7832_v47  ;;  %v3574_v38 = vsel %vm1512_vm2, %v3542_v53, %v7833_v26  ;;  %v7828_v41 = vunpack.i.h.bf16 %v7826_v11  ;;  %v7827_v35 = vunpack.i.l.bf16 %v7826_v11  ;;  %v2489_v53 = vld [vmem:[#allocation2 + $0x188] sm:$0xff] }
 0x31e   : > { %v7843_v8 = vunpack.i.h.bf16 %v7841_v30  ;;  %v7842_v21 = vunpack.i.l.bf16 %v7841_v30  ;;  %v3615_v60 = vpack.c.bf16 %v3574_v38, %v3573_v39  ;;  %v11879_v26 = vld [vmem:[#allocation43_spill] sm:$0xff] }
 0x31f   : > { %3916 = vmatmul.mubr.bf16.gmra.mxu1 %v3608_v36  ;;  %v3445_v57 = vsel %vm1479_vm1, %v3413_v59, %v7827_v35  ;;  %v3446_v15 = vsel %vm1479_vm1, %v3414_v34, %v7828_v41  ;;  %v3416_v47 = vsel %vm252_vm0, %v11879_v26, %v7593_v18  ;;  %v11881_v35 = vld [vmem:[#allocation49_spill] sm:$0xff] }
 0x320   : > { %v7836_v23 = vpop.permute.xlu1 %7835  ;;  %3923 = vmatprep.mubr.bf16.mxu1 %v3612_v52  ;;  %v10508_v63 = vpop.permute.xlu0 %7850  ;;  %v3512_v48 = vsel %vm252_vm0, %v2488_v28, %v7843_v8  ;;  %v3511_v50 = vsel %vm252_vm0, %v2487_v61, %v7842_v21  ;;  %v11882_v28 = vld [vmem:[#allocation46_spill] sm:$0xff] }
 0x321   : > { %v7838_v49 = vunpack.i.h.bf16 %v7836_v23  ;;  %v7837_v37 = vunpack.i.l.bf16 %v7836_v23  ;;  %v7853_v43 = vunpack.i.h.bf16 %v10508_v63  ;;  %v7852_v11 = vunpack.i.l.bf16 %v10508_v63  ;;  %v11880_v23 = vld [vmem:[#allocation44_spill] sm:$0xff] }
 0x322   : > { %v3415_v63 = vsel %vm252_vm0, %v11880_v23, %v7592_v33 }
 0x323   : > { %v3477_v58 = vsel %vm1512_vm2, %v3445_v57, %v7837_v37  ;;  %v3478_v55 = vsel %vm1512_vm2, %v3446_v15, %v7838_v49  ;;  %v3447_v51 = vsel %vm1479_vm1, %v3415_v63, %v7852_v11  ;;  %v3448_v16 = vsel %vm1479_vm1, %v3416_v47, %v7853_v43  ;;  %v4317_v49 = vld [vmem:[#allocation2 + $0x8] sm:$0xff]  ;;  %v4318_v37 = vld [vmem:[#allocation2 + $0x10] sm:$0xff]  ;;  %v11883_v57 = vld [vmem:[#allocation45_spill] sm:$0xff] }
 0x324   : > { %v7846_v27 = vpop.permute.xlu1 %7845  ;;  %v7861_v44 = vpop.permute.xlu0 %7860  ;;  %v3614_v0 = vpack.c.bf16 %v3478_v55, %v3477_v58  ;;  %v7989_v3 = vpack.i.bf16 %v4318_v37, %v4317_v49  ;;  %v4350_v58 = vld [vmem:[#allocation2 + $0x11] sm:$0xff]  ;;  %v4507_v55 = vld [vmem:[#allocation2 + $0x227] sm:$0xff] }
 0x325   : > { %v7848_v45 = vunpack.i.h.bf16 %v7846_v27  ;;  %v7847_v10 = vunpack.i.l.bf16 %v7846_v27  ;;  %v7863_v29 = vunpack.i.h.bf16 %v7861_v44  ;;  %v7862_v5 = vunpack.i.l.bf16 %v7861_v44  ;;  %v11885_v49 = vld [vmem:[#allocation55_spill] sm:$0xff] }
 0x326   : > { %v7597_v27 = vunpack.i.l.bf16 %v11881_v35  ;;  %v7598_v44 = vunpack.i.h.bf16 %v11881_v35  ;;  %7990 = vrot.lane.b32.xlu1 %v7989_v3, %s8619_s18  ;;  %v7999_v11 = vpack.i.bf16 %v4508_v9, %v4507_v55  ;;  %v11887_v3 = vld [vmem:[#allocation51_spill] sm:$0xff] }
 0x327   : > { %3924 = vmatmul.mubr.bf16.gmra.mxu1 %v3611_v31  ;;  %v3543_v2 = vsel %vm1479_vm1, %v3511_v50, %v7847_v10  ;;  %v3544_v4 = vsel %vm1479_vm1, %v3512_v48, %v7848_v45  ;;  %v3479_v6 = vsel %vm1512_vm2, %v3447_v51, %v7862_v5  ;;  %v3480_v41 = vsel %vm1512_vm2, %v3448_v16, %v7863_v29  ;;  %v8505_v55 = vld [vmem:[%s11725_s3 + $0x88] sm:$0xff]  }
 0x328   : > { %v7856_v42 = vpop.permute.xlu1 %7855  ;;  %3931 = vmatprep.mubr.bf16.mxu1 %v3615_v60  ;;  %v7871_v7 = vpop.permute.xlu0 %7870  ;;  %v3617_v34 = vpack.c.bf16 %v3480_v41, %v3479_v6  ;;  %v3418_v15 = vsel %vm252_vm0, %v11883_v57, %v7598_v44  ;;  %8000 = vrot.lane.b32.xlu0 %v7999_v11, %s8620_s10  ;;  %v7607_v57 = vunpack.i.l.bf16 %v11887_v3 }
 0x329   : > { %v7858_v22 = vunpack.i.h.bf16 %v7856_v42  ;;  %v7857_v32 = vunpack.i.l.bf16 %v7856_v42  ;;  %v7873_v52 = vunpack.i.h.bf16 %v7871_v7  ;;  %v7872_v24 = vunpack.i.l.bf16 %v7871_v7  ;;  %v4349_v7 = vld [vmem:[#allocation2 + $0x9] sm:$0xff]  ;;  %6946 = vmatprep.subr.bf16.mxu0 %v8505_v55 }
 0x32a   : > { %v3417_v42 = vsel %vm252_vm0, %v11882_v28, %v7597_v27  ;;  %6947 = vmatpush3.bf16.msra.mxu0 %v8505_v55 }
 0x32b   : > { %v3575_v19 = vsel %vm1512_vm2, %v3543_v2, %v7857_v32  ;;  %v3576_v46 = vsel %vm1512_vm2, %v3544_v4, %v7858_v22 }
 0x32c   : > { %v7866_v56 = vpop.permute.xlu1 %7865  ;;  %v7881_v36 = vpop.permute.xlu0 %7880  ;;  %v3618_v62 = vpack.c.bf16 %v3576_v46, %v3575_v19  ;;  %v7994_v46 = vpack.i.bf16 %v4350_v58, %v4349_v7 }
 0x32d   : > { %v7868_v13 = vunpack.i.h.bf16 %v7866_v56  ;;  %v7867_v30 = vunpack.i.l.bf16 %v7866_v56  ;;  %v7883_v20 = vunpack.i.h.bf16 %v7881_v36  ;;  %v7882_v39 = vunpack.i.l.bf16 %v7881_v36  ;;  %v11884_v56 = vld [vmem:[#allocation52_spill] sm:$0xff] }
 0x32e   : > { %v7603_v29 = vunpack.i.h.bf16 %v11884_v56  ;;  %7995 = vrot.lane.b32.xlu1 %v7994_v46, %s8620_s10  ;;  %v7602_v36 = vunpack.i.l.bf16 %v11884_v56  ;;  %v8540_v46 = vld [vmem:[#allocation2 + $0x1a7] sm:$0xff] }
 0x32f   : > { %v3514_v17 = vsel %vm252_vm0, %v2490_v54, %v7868_v13  ;;  %v3513_v25 = vsel %vm252_vm0, %v2489_v53, %v7867_v30  ;;  %3932 = vmatmul.mubr.bf16.gmra.mxu1 %v3614_v0  ;;  %v2491_v13 = vld [vmem:[#allocation2 + $0x1a8] sm:$0xff]  ;;  %v2492_v30 = vld [vmem:[#allocation2 + $0x1b0] sm:$0xff]  ;;  %v3421_v9 = vsel %vm252_vm0, %v8540_v46, %v7607_v57 }
 0x330   : > { %v7876_v40 = vpop.permute.xlu1 %7875  ;;  %3939 = vmatprep.mubr.bf16.mxu1 %v3618_v62  ;;  %v3545_v1 = vsel %vm1479_vm1, %v3513_v25, %v7872_v24  ;;  %v3546_v14 = vsel %vm1479_vm1, %v3514_v17, %v7873_v52  ;;  %v7891_v38 = vpop.permute.xlu0 %7890 }
 0x331   : > { %v3577_v8 = vsel %vm1512_vm2, %v3545_v1, %v7882_v39  ;;  %v3578_v21 = vsel %vm1512_vm2, %v3546_v14, %v7883_v20  ;;  %v7877_v31 = vunpack.i.l.bf16 %v7876_v40  ;;  %v7878_v45 = vunpack.i.h.bf16 %v7876_v40  ;;  %v8537_v14 = vld [vmem:[#allocation2 + $0x18f] sm:$0xff]  ;;  %v8538_v39 = vld [vmem:[#allocation2 + $0x187] sm:$0xff] }
 0x332   : > { %v3621_v61 = vpack.c.bf16 %v3578_v21, %v3577_v8  ;;  %v7893_v48 = vunpack.i.h.bf16 %v7891_v38  ;;  %v7892_v50 = vunpack.i.l.bf16 %v7891_v38  ;;  %v3420_v20 = vsel %vm252_vm0, %v8537_v14, %v7603_v29  ;;  %v11888_v29 = vld [vmem:[#allocation54_spill] sm:$0xff] }
 0x333   : > { %v3449_v32 = vsel %vm1479_vm1, %v3417_v42, %v7877_v31  ;;  %v3450_v4 = vsel %vm1479_vm1, %v3418_v15, %v7878_v45  ;;  %v3419_v38 = vsel %vm252_vm0, %v8538_v39, %v7602_v36  ;;  %v11886_v45 = vld [vmem:[#allocation56_spill] sm:$0xff]  ;;  %v8542_v14 = vld [vmem:[#allocation2 + $0x1c7] sm:$0xff] }
 0x334   : > { %v7886_v60 = vpop.permute.xlu1 %7885  ;;  %v7901_v12 = vpop.permute.xlu0 %7900  ;;  %v3516_v0 = vsel %vm252_vm0, %v2492_v30, %v7893_v48  ;;  %v3515_v5 = vsel %vm252_vm0, %v2491_v13, %v7892_v50  ;;  %v7613_v13 = vunpack.i.h.bf16 %v11888_v29  ;;  %v8543_v39 = vld [vmem:[#allocation2 + $0x1f0] sm:$0xff] }
 0x335   : > { %v7887_v10 = vunpack.i.l.bf16 %v7886_v60  ;;  %v7888_v59 = vunpack.i.h.bf16 %v7886_v60  ;;  %v7903_v52 = vunpack.i.h.bf16 %v7901_v12  ;;  %v7902_v53 = vunpack.i.l.bf16 %v7901_v12 }
 0x337   : > { %3940 = vmatmul.mubr.bf16.gmra.mxu1 %v3617_v34  ;;  %v3481_v19 = vsel %vm1512_vm2, %v3449_v32, %v7887_v10  ;;  %v3482_v43 = vsel %vm1512_vm2, %v3450_v4, %v7888_v59  ;;  %v3451_v27 = vsel %vm1479_vm1, %v3419_v38, %v7902_v53  ;;  %v3452_v8 = vsel %vm1479_vm1, %v3420_v20, %v7903_v52  ;;  %v8539_v4 = vld [vmem:[#allocation2 + $0x1af] sm:$0xff] }
 0x338   : > { %v7896_v22 = vpop.permute.xlu1 %7895  ;;  %3947 = vmatprep.mubr.bf16.mxu1 %v3621_v61  ;;  %v7911_v2 = vpop.permute.xlu0 %7910  ;;  %v3620_v25 = vpack.c.bf16 %v3482_v43, %v3481_v19  ;;  %v7608_v59 = vunpack.i.h.bf16 %v11887_v3 }
 0x339   : > { %v7898_v18 = vunpack.i.h.bf16 %v7896_v22  ;;  %v7897_v33 = vunpack.i.l.bf16 %v7896_v22  ;;  %v7913_v26 = vunpack.i.h.bf16 %v7911_v2  ;;  %v7912_v47 = vunpack.i.l.bf16 %v7911_v2 }
 0x33a   : > { %v3422_v19 = vsel %vm252_vm0, %v8539_v4, %v7608_v59 }
 0x33b   : > { %v3547_v23 = vsel %vm1479_vm1, %v3515_v5, %v7897_v33  ;;  %v3548_v63 = vsel %vm1479_vm1, %v3516_v0, %v7898_v18  ;;  %v3483_v31 = vsel %vm1512_vm2, %v3451_v27, %v7912_v47  ;;  %v3484_v60 = vsel %vm1512_vm2, %v3452_v8, %v7913_v26  ;;  %v8506_v0 = vld [vmem:[%s11725_s3 + $0x80] sm:$0xff]  }
 0x33c   : > { %v7906_v24 = vpop.permute.xlu1 %7905  ;;  %v7921_v17 = vpop.permute.xlu0 %7920  ;;  %v3623_v48 = vpack.c.bf16 %v3484_v60, %v3483_v31  ;;  %v7612_v5 = vunpack.i.l.bf16 %v11888_v29  ;;  %6948 = vmatprep.subr.bf16.mxu0 %v8506_v0 }
 0x33d   : > { %v7908_v54 = vunpack.i.h.bf16 %v7906_v24  ;;  %v7907_v62 = vunpack.i.l.bf16 %v7906_v24  ;;  %v7923_v21 = vunpack.i.h.bf16 %v7921_v17  ;;  %v7922_v44 = vunpack.i.l.bf16 %v7921_v17  ;;  %6949 = vmatpush3.bf16.msra.mxu0 %v8506_v0 }
 0x33e   : > { %v3423_v20 = vsel %vm252_vm0, %v8542_v14, %v7612_v5 }
 0x33f   : > { %3948 = vmatmul.mubr.bf16.gmra.mxu1 %v3620_v25  ;;  %v3579_v40 = vsel %vm1512_vm2, %v3547_v23, %v7907_v62  ;;  %v3580_v1 = vsel %vm1512_vm2, %v3548_v63, %v7908_v54 }
 0x340   : > { %v7916_v51 = vpop.permute.xlu1 %7915  ;;  %v3624_v16 = vpack.c.bf16 %v3580_v1, %v3579_v40  ;;  %v7931_v35 = vpop.permute.xlu0 %7930  ;;  %v8541_v40 = vld [vmem:[#allocation2 + $0x1cf] sm:$0xff] }
 0x341   : > { %v7918_v6 = vunpack.i.h.bf16 %v7916_v51  ;;  %v7917_v41 = vunpack.i.l.bf16 %v7916_v51  ;;  %v7933_v12 = vunpack.i.h.bf16 %v7931_v35  ;;  %v7932_v34 = vunpack.i.l.bf16 %v7931_v35  ;;  %v8544_v51 = vld [vmem:[#allocation2 + $0x1e8] sm:$0xff] }
 0x342   : > { %3955 = vmatprep.mubr.bf16.mxu1 %v3624_v16  ;;  %v3424_v1 = vsel %vm252_vm0, %v8541_v40, %v7613_v13  ;;  %v8548_v13 = vld [vmem:[#allocation2 + $0x1e7] sm:$0xff] }
 0x343   : > { %v3518_v37 = vsel %vm252_vm0, %v11885_v49, %v7918_v6  ;;  %v3517_v10 = vsel %vm252_vm0, %v11886_v45, %v7917_v41  ;;  %v8511_v40 = vld [vmem:[%s11725_s3 + $0x68] sm:$0xff]  }
 0x344   : > { %v7926_v61 = vpop.permute.xlu1 %7925  ;;  %v3549_v28 = vsel %vm1479_vm1, %v3517_v10, %v7922_v44  ;;  %v3550_v42 = vsel %vm1479_vm1, %v3518_v37, %v7923_v21  ;;  %v7941_v15 = vpop.permute.xlu0 %7940 }
 0x345   : > { %v3581_v50 = vsel %vm1512_vm2, %v3549_v28, %v7932_v34  ;;  %v3582_v22 = vsel %vm1512_vm2, %v3550_v42, %v7933_v12  ;;  %v7928_v32 = vunpack.i.h.bf16 %v7926_v61  ;;  %v7927_v7 = vunpack.i.l.bf16 %v7926_v61 }
 0x346   : > { %v3627_v58 = vpack.c.bf16 %v3582_v22, %v3581_v50  ;;  %v7943_v52 = vunpack.i.h.bf16 %v7941_v15  ;;  %v7942_v24 = vunpack.i.l.bf16 %v7941_v15  ;;  %v8546_v22 = vld [vmem:[#allocation2 + $0x208] sm:$0xff] }
 0x347   : > { %3956 = vmatmul.mubr.bf16.gmra.mxu1 %v3623_v48  ;;  %v3453_v11 = vsel %vm1479_vm1, %v3421_v9, %v7927_v7  ;;  %v3454_v56 = vsel %vm1479_vm1, %v3422_v19, %v7928_v32  ;;  %v8545_v48 = vld [vmem:[#allocation2 + $0x210] sm:$0xff] }
 0x348   : > { %v7936_v2 = vpop.permute.xlu1 %7935  ;;  %3963 = vmatprep.mubr.bf16.mxu1 %v3627_v58  ;;  %v7951_v43 = vpop.permute.xlu0 %7950  ;;  %v3520_v38 = vsel %vm252_vm0, %v8543_v39, %v7943_v52  ;;  %v3519_v16 = vsel %vm252_vm0, %v8544_v51, %v7942_v24 }
 0x349   : > { %v7938_v18 = vunpack.i.h.bf16 %v7936_v2  ;;  %v7937_v33 = vunpack.i.l.bf16 %v7936_v2  ;;  %v7953_v62 = vunpack.i.h.bf16 %v7951_v43  ;;  %v7952_v17 = vunpack.i.l.bf16 %v7951_v43  ;;  %v11889_v2 = vld [vmem:[#allocation53_spill] sm:$0xff] }
 0x34a   : > { %v7618_v4 = vunpack.i.h.bf16 %v11889_v2  ;;  %v7617_v19 = vunpack.i.l.bf16 %v11889_v2 }
 0x34b   : > { %v3485_v30 = vsel %vm1512_vm2, %v3453_v11, %v7937_v33  ;;  %v3486_v36 = vsel %vm1512_vm2, %v3454_v56, %v7938_v18  ;;  %v3455_v8 = vsel %vm1479_vm1, %v3423_v20, %v7952_v17  ;;  %v3456_v21 = vsel %vm1479_vm1, %v3424_v1, %v7953_v62  ;;  %v8547_v56 = vld [vmem:[#allocation2 + $0x1ef] sm:$0xff]  ;;  %v8507_v62 = vld [vmem:[%s11725_s3 + $0x78] sm:$0xff]  }
 0x34c   : > { %v7946_v53 = vpop.permute.xlu1 %7945  ;;  %v3626_v54 = vpack.c.bf16 %v3486_v36, %v3485_v30  ;;  %v7961_v25 = vpop.permute.xlu0 %7960  ;;  %v3426_v29 = vsel %vm252_vm0, %v8547_v56, %v7618_v4  ;;  %v3425_v30 = vsel %vm252_vm0, %v8548_v13, %v7617_v19  ;;  %v8508_v17 = vld [vmem:[%s11725_s3 + $0x38] sm:$0xff]   ;;  %6744 = vmatprep.subr.bf16.mxu1 %v8507_v62 }
 0x34d   : > { %v7948_v26 = vunpack.i.h.bf16 %v7946_v53  ;;  %v7947_v47 = vunpack.i.l.bf16 %v7946_v53  ;;  %v7963_v23 = vunpack.i.h.bf16 %v7961_v25  ;;  %v7962_v63 = vunpack.i.l.bf16 %v7961_v25  ;;  %6745 = vmatpush3.bf16.msra.mxu1 %v8508_v17  ;;  %v8509_v25 = vld [vmem:[%s11725_s3 + $0x70] sm:$0xff]  }
 0x34e   : > { %6746 = vmatprep.subr.bf16.mxu1 %v8509_v25 }
 0x34f   : > { %3964 = vmatmul.mubr.bf16.gmra.mxu1 %v3626_v54  ;;  %v3551_v44 = vsel %vm1479_vm1, %v3519_v16, %v7947_v47  ;;  %v3552_v31 = vsel %vm1479_vm1, %v3520_v38, %v7948_v26  ;;  %v3487_v60 = vsel %vm1512_vm2, %v3455_v8, %v7962_v63  ;;  %v3488_v49 = vsel %vm1512_vm2, %v3456_v21, %v7963_v23  ;;  %v8510_v26 = vld [vmem:[%s11725_s3 + $0x30] sm:$0xff]   ;;  %v6916_v47 = vpop.f32.mrf.mxu0  ;;  %v11890_v23 = vld [vmem:[#allocation6_spill] sm:$0xff] }
 0x350   : > { %v7956_v6 = vpop.permute.xlu1 %7955  ;;  %v7971_v27 = vpop.permute.xlu0 %7970  ;;  %v3629_v42 = vpack.c.bf16 %v3488_v49, %v3487_v60  ;;  %v4151_v63 = vsub.s32 1, %v11890_v23  ;;  %v8549_v38 = vld [vmem:[%s11726_s4] sm:$0x7]  ;;  %v8512_v16 = vld [vmem:[%s11725_s3 + $0x28] sm:$0xff]  }
 0x351   : > { %v7958_v41 = vunpack.i.h.bf16 %v7956_v6  ;;  %v7957_v35 = vunpack.i.l.bf16 %v7956_v6  ;;  %v7973_v10 = vunpack.i.h.bf16 %v7971_v27  ;;  %v7972_v12 = vunpack.i.l.bf16 %v7971_v27  ;;  %6747 = vmatpush3.bf16.msra.mxu1 %v8510_v26  ;;  %v4022_v1 = vpop.f32.mrf.mxu0  ;;  %v8550_v27 = vld [vmem:[%s11727_s5] sm:$0x7]  ;;  %v8518_v26 = vld [vmem:[%s11725_s3 + $0x10] sm:$0xff]  }
 0x352   : > { %6748 = vmatprep.subr.bf16.mxu1 %v8511_v40  ;;  %v10646_v51 = vrot.slane %v8549_v38, %v4151_v63  ;;  %v10654_v8 = vrot.slane %v8550_v27, %v4151_v63  ;;  %v8519_v63 = vld [vmem:[%s11725_s3 + $0x48] sm:$0xff]   ;;  %v8521_v27 = vld [vmem:[%s11725_s3 + $0x40] sm:$0xff]  }
 0x353   : > { %v3583_v37 = vsel %vm1512_vm2, %v3551_v44, %v7957_v35  ;;  %v3584_v45 = vsel %vm1512_vm2, %v3552_v31, %v7958_v41  ;;  %v6917_v6 = vpop.f32.mrf.mxu0 }
 0x354   : > { %v7966_v34 = vpop.permute.xlu1 %7965  ;;  %v3630_v3 = vpack.c.bf16 %v3584_v45, %v3583_v37  ;;  %v7981_v28 = vpop.permute.xlu0 %7980 }
 0x355   : > { %v7968_v59 = vunpack.i.h.bf16 %v7966_v34  ;;  %v7967_v61 = vunpack.i.l.bf16 %v7966_v34  ;;  %v7983_v57 = vunpack.i.h.bf16 %v7981_v28  ;;  %v7982_v15 = vunpack.i.l.bf16 %v7981_v28  ;;  %6749 = vmatpush3.bf16.msra.mxu1 %v8512_v16  ;;  %v4025_v60 = vpop.f32.mrf.mxu0 }
 0x356   : > { %3971 = vmatprep.mubr.bf16.mxu1 %v3630_v3 }
 0x357   : > { %v3522_v50 = vsel %vm252_vm0, %v8545_v48, %v7968_v59  ;;  %v3521_v32 = vsel %vm252_vm0, %v8546_v22, %v7967_v61  ;;  %3972 = vmatmul.mubr.bf16.gmra.mxu1 %v3629_v42  ;;  %v10661_v61 = vpop.f32.mrf.mxu0  ;;  %v8514_v48 = vld [vmem:[%s11725_s3 + $0x20] sm:$0xff]  }
 0x358   : > { %v7976_v7 = vpop.permute.xlu1 %7975  ;;  %v3553_v58 = vsel %vm1479_vm1, %v3521_v32, %v7972_v12  ;;  %v3554_v55 = vsel %vm1479_vm1, %v3522_v50, %v7973_v10 }
 0x359   : > { %v3585_v46 = vsel %vm1512_vm2, %v3553_v58, %v7982_v15  ;;  %v3586_v9 = vsel %vm1512_vm2, %v3554_v55, %v7983_v57  ;;  %v7978_v18 = vunpack.i.h.bf16 %v7976_v7  ;;  %v7977_v33 = vunpack.i.l.bf16 %v7976_v7  ;;  %v8513_v57 = vld [vmem:[%s11725_s3 + $0x60] sm:$0xff]   ;;  %v4038_v7 = vpop.f32.mrf.mxu0  ;;  %v8515_v55 = vld [vmem:[%s11725_s3 + $0x58] sm:$0xff]  }
 0x35a   : > { %v3633_v43 = vpack.c.bf16 %v3586_v9, %v3585_v46  ;;  %6750 = vmatprep.subr.bf16.mxu1 %v8513_v57  ;;  %v8516_v46 = vld [vmem:[%s11725_s3 + $0x18] sm:$0xff]  }
 0x35b   : > { %v3457_v5 = vsel %vm1479_vm1, %v3425_v30, %v7977_v33  ;;  %v3458_v52 = vsel %vm1479_vm1, %v3426_v29, %v7978_v18  ;;  %6751 = vmatpush3.bf16.msra.mxu1 %v8514_v48  ;;  %v8517_v29 = vld [vmem:[%s11725_s3 + $0x50] sm:$0xff]  }
 0x35c   : > { %v7986_v11 = vpop.permute.xlu1 %7985  ;;  %3979 = vmatprep.mubr.bf16.mxu1 %v3633_v43  ;;  %6752 = vmatprep.subr.bf16.mxu1 %v8515_v55  ;;  %v10679_v43 = vpop.f32.mrf.mxu0 }
 0x35d   : > { %v7988_v36 = vunpack.i.h.bf16 %v7986_v11  ;;  %v7987_v0 = vunpack.i.l.bf16 %v7986_v11 }
 0x35f   : > { %v3489_v24 = vsel %vm1512_vm2, %v3457_v5, %v7987_v0  ;;  %v3490_v53 = vsel %vm1512_vm2, %v3458_v52, %v7988_v36  ;;  %6753 = vmatpush3.bf16.msra.mxu1 %v8516_v46 }
 0x360   : > { %v3632_v54 = vpack.c.bf16 %v3490_v53, %v3489_v24  ;;  %6754 = vmatprep.subr.bf16.mxu1 %v8517_v29 }
 0x362   : > { %3980 = vmatmul.mubr.bf16.gmra.mxu1 %v3632_v54 }
 0x363   : > { %6755 = vmatpush3.bf16.msra.mxu1 %v8518_v26 }
 0x364   : > { %6756 = vmatprep.subr.bf16.mxu1 %v8519_v63 }
 0x3a1   : > { %v6630_v14 = vpop.f32.mrf.mxu1 }
 0x3a3   : > { %v6631_v20 = vpop.f32.mrf.mxu1 }
 0x3a4   : > { %v6632_v39 = vadd.f32 %v6631_v20, %v6630_v14  ;;  %v8520_v20 = vld [vmem:[%s11725_s3 + $0x8] sm:$0xff]  }
 0x3a5   : > { %v6633_v41 = vpop.f32.mrf.mxu1  ;;  %6757 = vmatpush3.bf16.msra.mxu1 %v8520_v20 }
 0x3a6   : > { %v4023_v35 = vadd.f32 %v6632_v39, %v4022_v1  ;;  %6758 = vmatprep.subr.bf16.mxu1 %v8521_v27 }
 0x3a7   : > { %v6634_v21 = vpop.f32.mrf.mxu1 }
 0x3a8   : > { %v4153_v44 = vmul.f32 %v10646_v51, %v4023_v35  ;;  %v6635_v31 = vadd.f32 %v6634_v21, %v6633_v41  ;;  %v8522_v21 = vld [vmem:[%s11725_s3] sm:$0xff]  }
 0x3a9   : > { %6759 = vmatpush3.bf16.msra.mxu1 %v8522_v21 }
 0x3aa   : > { %v4189_v49 = vadd.f32 %v10654_v8, %v4153_v44  ;;  %v4026_v37 = vadd.f32 %v6635_v31, %v4025_v60 }
 0x3ab   : > { %v6636_v12 = vpop.f32.mrf.mxu1 }
 0x3ac   : > { %v4221_v45 = vmax.f32 %v4189_v49, 0.0  ;;  %v4154_v10 = vmul.f32 %v10646_v51, %v4026_v37 }
 0x3ad   : > { %v6637_v3 = vpop.f32.mrf.mxu1 }
 0x3ae   : > { %4253 = vst.msk [vmem:[#allocation2 + $0x28] sm:$0xff] %vm252_vm0, %v4221_v45  ;;  %v4190_v34 = vadd.f32 %v10654_v8, %v4154_v10  ;;  %v6638_v59 = vadd.f32 %v6637_v3, %v6636_v12 }
 0x3af   : > { %v6639_v42 = vpop.f32.mrf.mxu1 }
 0x3b0   : > { %v4222_v28 = vmax.f32 %v4190_v34, 0.0  ;;  %v4031_v15 = vadd.f32 %v6916_v47, %v6638_v59  ;;  %v4041_v47 = vpop.f32.mrf.mxu0 }
 0x3b1   : > { %v6640_v50 = vpop.f32.mrf.mxu1 }
 0x3b2   : > { %4254 = vst.msk [vmem:[#allocation2 + $0x30] sm:$0xff] %vm252_vm0, %v4222_v28  ;;  %v4155_v22 = vmul.f32 %v10646_v51, %v4031_v15  ;;  %v6641_v32 = vadd.f32 %v6640_v50, %v6639_v42  ;;  %v10710_v31 = vpop.f32.mrf.mxu0 }
 0x3b3   : > { %v6642_v58 = vpop.f32.mrf.mxu1 }
 0x3b4   : > { %v4191_v2 = vadd.f32 %v10654_v8, %v4155_v22  ;;  %v4034_v4 = vadd.f32 %v6917_v6, %v6641_v32  ;;  %v4054_v48 = vpop.f32.mrf.mxu0 }
 0x3b5   : > { %v6643_v19 = vpop.f32.mrf.mxu1  ;;  %v4381_v56 = vld [vmem:[#allocation2 + $0x27] sm:$0xff] }
 0x3b6   : > { %v4223_v9 = vmax.f32 %v4191_v2, 0.0  ;;  %v4156_v18 = vmul.f32 %v10646_v51, %v4034_v4  ;;  %v6644_v33 = vadd.f32 %v6643_v19, %v6642_v58  ;;  %v4319_v14 = vld [vmem:[#allocation2 + $0x28] sm:$0xff]  ;;  %v6925_v19 = vpop.f32.mrf.mxu0 }
 0x3b7   : > { %v6645_v11 = vpop.f32.mrf.mxu1 }
 0x3b8   : > { %4255 = vst.msk [vmem:[#allocation2 + $0x48] sm:$0xff] %vm252_vm0, %v4223_v9  ;;  %v4192_v13 = vadd.f32 %v10654_v8, %v4156_v18  ;;  %v4039_v30 = vadd.f32 %v6644_v33, %v4038_v7 }
 0x3b9   : > { %v4445_v36 = vld [vmem:[#allocation2 + $0x29] sm:$0xff]  ;;  %v4446_v0 = vld [vmem:[#allocation2 + $0x31] sm:$0xff]  ;;  %v6646_v52 = vpop.f32.mrf.mxu1 }
 0x3ba   : > { %v4382_v5 = vld [vmem:[#allocation2 + $0x2f] sm:$0xff]  ;;  %v8004_v24 = vpack.i.bf16 %v4446_v0, %v4445_v36  ;;  %v4224_v54 = vmax.f32 %v4192_v13, 0.0  ;;  %v4157_v62 = vmul.f32 %v10646_v51, %v4039_v30  ;;  %v6647_v17 = vadd.f32 %v6646_v52, %v6645_v11 }
 0x3bb   : > { %v8009_v53 = vpack.i.bf16 %v4382_v5, %v4381_v56  ;;  %v4320_v25 = vld [vmem:[#allocation2 + $0x30] sm:$0xff]  ;;  %v4057_v5 = vpop.f32.mrf.mxu0 }
 0x3bc   : > { %8005 = vrot.lane.b32.xlu0 %v8004_v24, %s8619_s18  ;;  %4256 = vst.msk [vmem:[#allocation2 + $0x50] sm:$0xff] %vm252_vm0, %v4224_v54  ;;  %v4193_v40 = vadd.f32 %v10654_v8, %v4157_v62  ;;  %v4042_v1 = vadd.f32 %v6647_v17, %v4041_v47  ;;  %v8014_v39 = vpack.i.bf16 %v4320_v25, %v4319_v14 }
 0x3bd   : > { %8010 = vrot.lane.b32.xlu1 %v8009_v53, %s8621_s16 }
 0x3be   : > { %v4225_v38 = vmax.f32 %v4193_v40, 0.0  ;;  %v4158_v16 = vmul.f32 %v10646_v51, %v4042_v1  ;;  %v10733_v40 = vpop.f32.mrf.mxu0 }
 0x3bf   : > { %v6648_v6 = vpop.f32.mrf.mxu1  ;;  %v4477_v37 = vld [vmem:[#allocation2 + $0x47] sm:$0xff] }
 0x3c0   : > { %4257 = vst.msk [vmem:[#allocation2 + $0x68] sm:$0xff] %vm252_vm0, %v4225_v38  ;;  %v4194_v41 = vadd.f32 %v10654_v8, %v4158_v16  ;;  %v4509_v32 = vld [vmem:[#allocation2 + $0x48] sm:$0xff]  ;;  %v4070_v27 = vpop.f32.mrf.mxu0 }
 0x3c1   : > { %8015 = vrot.lane.b32.xlu1 %v8014_v39, %s8619_s18  ;;  %v6649_v35 = vpop.f32.mrf.mxu1 }
 0x3c2   : > { %v6650_v44 = vadd.f32 %v6649_v35, %v6648_v6  ;;  %v4226_v60 = vmax.f32 %v4194_v41, 0.0 }
 0x3c3   : > { %v6651_v49 = vpop.f32.mrf.mxu1  ;;  %v4541_v10 = vld [vmem:[#allocation2 + $0x49] sm:$0xff]  ;;  %v4542_v12 = vld [vmem:[#allocation2 + $0x51] sm:$0xff] }
 0x3c4   : > { %v4047_v45 = vadd.f32 %v10661_v61, %v6650_v44  ;;  %v4478_v34 = vld [vmem:[#allocation2 + $0x4f] sm:$0xff]  ;;  %4258 = vst.msk [vmem:[#allocation2 + $0x70] sm:$0xff] %vm252_vm0, %v4226_v60  ;;  %v5535_v59 = vpack.c.bf16 %v4542_v12, %v4541_v10  ;;  %v8034_v56 = vpack.i.bf16 %v4542_v12, %v4541_v10 }
 0x3c5   : > { %8020 = vrot.lane.b32.xlu1 %v8004_v24, %s8620_s10  ;;  %v6652_v3 = vpop.f32.mrf.mxu1  ;;  %v8024_v28 = vpack.i.bf16 %v4478_v34, %v4477_v37  ;;  %v4510_v15 = vld [vmem:[#allocation2 + $0x50] sm:$0xff] }
 0x3c6   : > { %v4159_v42 = vmul.f32 %v10646_v51, %v4047_v45  ;;  %v6653_v57 = vadd.f32 %v6652_v3, %v6651_v49  ;;  %6950 = vmatprep.mubr.msk.bf16.mxu0 %vm252_vm0, %v5535_v59  ;;  %v8029_v58 = vpack.i.bf16 %v4510_v15, %v4509_v32 }
 0x3c7   : > { %8025 = vrot.lane.b32.xlu0 %v8024_v28, %s8620_s10  ;;  %v6654_v61 = vpop.f32.mrf.mxu1  ;;  %v4479_v54 = vld [vmem:[#allocation2 + $0x67] sm:$0xff] }
 0x3c8   : > { %v4195_v50 = vadd.f32 %v10654_v8, %v4159_v42  ;;  %v4050_v22 = vadd.f32 %v10679_v43, %v6653_v57  ;;  %v4511_v39 = vld [vmem:[#allocation2 + $0x68] sm:$0xff] }
 0x3c9   : > { %8040 = vrot.lane.b32.xlu1 %v8024_v28, %s8621_s16  ;;  %v6655_v7 = vpop.f32.mrf.mxu1  ;;  %v6929_v28 = vpop.f32.mrf.mxu0 }
 0x3ca   : > { %v4227_v55 = vmax.f32 %v4195_v50, 0.0  ;;  %v4160_v2 = vmul.f32 %v10646_v51, %v4050_v22  ;;  %v6656_v4 = vadd.f32 %v6655_v7, %v6654_v61 }
 0x3cb   : > { %8030 = vrot.lane.b32.xlu0 %v8029_v58, %s8621_s16  ;;  %v6657_v46 = vpop.f32.mrf.mxu1  ;;  %v4543_v33 = vld [vmem:[#allocation2 + $0x69] sm:$0xff]  ;;  %v4544_v43 = vld [vmem:[#allocation2 + $0x71] sm:$0xff] }
 0x3cc   : > { %4259 = vst.msk [vmem:[#allocation2 + $0x88] sm:$0xff] %vm252_vm0, %v4227_v55  ;;  %v4196_v9 = vadd.f32 %v10654_v8, %v4160_v2  ;;  %v4055_v18 = vadd.f32 %v6656_v4, %v4054_v48  ;;  %v5538_v29 = vpack.c.bf16 %v4544_v43, %v4543_v33  ;;  %v4480_v0 = vld [vmem:[#allocation2 + $0x6f] sm:$0xff]  ;;  %v8064_v10 = vpack.i.bf16 %v4544_v43, %v4543_v33  ;;  %v4073_v55 = vpop.f32.mrf.mxu0 }
 0x3cd   : > { %8045 = vrot.lane.b32.xlu1 %v8029_v58, %s8619_s18  ;;  %v6658_v11 = vpop.f32.mrf.mxu1  ;;  %v8054_v17 = vpack.i.bf16 %v4480_v0, %v4479_v54  ;;  %v4512_v63 = vld [vmem:[#allocation2 + $0x70] sm:$0xff] }
 0x3ce   : > { %v4228_v13 = vmax.f32 %v4196_v9, 0.0  ;;  %v4161_v30 = vmul.f32 %v10646_v51, %v4055_v18  ;;  %v6659_v36 = vadd.f32 %v6658_v11, %v6657_v46  ;;  %6951 = vmatmul.mubr.msk.bf16.vlgmr.msra.gmra.mxu0 %vm252_vm0, %v5538_v29  ;;  %v8059_v16 = vpack.i.bf16 %v4512_v63, %v4511_v39 }
 0x3cf   : > { %8035 = vrot.lane.b32.xlu0 %v8034_v56, %s8619_s18  ;;  %v6660_v52 = vpop.f32.mrf.mxu1 }
 0x3d0   : > { %4260 = vst.msk [vmem:[#allocation2 + $0x90] sm:$0xff] %vm252_vm0, %v4228_v13  ;;  %v4197_v24 = vadd.f32 %v10654_v8, %v4161_v30  ;;  %v4058_v53 = vadd.f32 %v6659_v36, %v4057_v5  ;;  %v10764_v30 = vpop.f32.mrf.mxu0 }
 0x3d1   : > { %8050 = vrot.lane.b32.xlu1 %v8034_v56, %s8620_s10  ;;  %v6661_v62 = vpop.f32.mrf.mxu1 }
 0x3d2   : > { %v4229_v25 = vmax.f32 %v4197_v24, 0.0  ;;  %v4162_v26 = vmul.f32 %v10646_v51, %v4058_v53  ;;  %v6662_v47 = vadd.f32 %v6661_v62, %v6660_v52 }
 0x3d3   : > { %8055 = vrot.lane.b32.xlu0 %v8054_v17, %s8620_s10  ;;  %v6663_v1 = vpop.f32.mrf.mxu1  ;;  %v4481_v48 = vld [vmem:[#allocation2 + $0x87] sm:$0xff] }
 0x3d4   : > { %4261 = vst.msk [vmem:[#allocation2 + $0xa8] sm:$0xff] %vm252_vm0, %v4229_v25  ;;  %v4198_v14 = vadd.f32 %v10654_v8, %v4162_v26  ;;  %v4063_v20 = vadd.f32 %v10710_v31, %v6662_v47  ;;  %v4513_v33 = vld [vmem:[#allocation2 + $0x88] sm:$0xff]  ;;  %v4086_v25 = vpop.f32.mrf.mxu0 }
 0x3d5   : > { %8070 = vrot.lane.b32.xlu1 %v8054_v17, %s8621_s16  ;;  %v6664_v38 = vpop.f32.mrf.mxu1 }
 0x3d6   : > { %v4230_v6 = vmax.f32 %v4198_v14, 0.0  ;;  %v4163_v41 = vmul.f32 %v10646_v51, %v4063_v20  ;;  %v6665_v35 = vadd.f32 %v6664_v38, %v6663_v1 }
 0x3d7   : > { %8060 = vrot.lane.b32.xlu0 %v8059_v16, %s8621_s16  ;;  %v6666_v21 = vpop.f32.mrf.mxu1  ;;  %v4545_v44 = vld [vmem:[#allocation2 + $0x89] sm:$0xff]  ;;  %v4546_v60 = vld [vmem:[#allocation2 + $0x91] sm:$0xff] }
 0x3d8   : > { %4262 = vst.msk [vmem:[#allocation2 + $0xb0] sm:$0xff] %vm252_vm0, %v4230_v6  ;;  %v4199_v49 = vadd.f32 %v10654_v8, %v4163_v41  ;;  %v4066_v31 = vadd.f32 %v6925_v19, %v6665_v35  ;;  %v5541_v37 = vpack.c.bf16 %v4546_v60, %v4545_v44  ;;  %v4482_v59 = vld [vmem:[#allocation2 + $0x8f] sm:$0xff]  ;;  %v8094_v24 = vpack.i.bf16 %v4546_v60, %v4545_v44 }
 0x3d9   : > { %8075 = vrot.lane.b32.xlu1 %v8059_v16, %s8619_s18  ;;  %v6667_v45 = vpop.f32.mrf.mxu1  ;;  %v8084_v50 = vpack.i.bf16 %v4482_v59, %v4481_v48  ;;  %v4514_v58 = vld [vmem:[#allocation2 + $0x90] sm:$0xff] }
 0x3da   : > { %v4231_v12 = vmax.f32 %v4199_v49, 0.0  ;;  %v4164_v34 = vmul.f32 %v10646_v51, %v4066_v31  ;;  %v6668_v3 = vadd.f32 %v6667_v45, %v6666_v21  ;;  %6954 = vmatprep.mubr.msk.bf16.mxu0 %vm252_vm0, %v5541_v37  ;;  %v8089_v11 = vpack.i.bf16 %v4514_v58, %v4513_v33 }
 0x3db   : > { %8065 = vrot.lane.b32.xlu0 %v8064_v10, %s8619_s18  ;;  %v6669_v42 = vpop.f32.mrf.mxu1  ;;  %v4483_v20 = vld [vmem:[#allocation2 + $0xa7] sm:$0xff] }
 0x3dc   : > { %4263 = vst.msk [vmem:[#allocation2 + $0xc8] sm:$0xff] %vm252_vm0, %v4231_v12  ;;  %v4200_v57 = vadd.f32 %v10654_v8, %v4164_v34  ;;  %v4071_v15 = vadd.f32 %v6668_v3, %v4070_v27  ;;  %v6933_v27 = vpop.f32.mrf.mxu0  ;;  %v4515_v49 = vld [vmem:[#allocation2 + $0xa8] sm:$0xff] }
 0x3dd   : > { %8080 = vrot.lane.b32.xlu1 %v8064_v10, %s8620_s10  ;;  %v6670_v61 = vpop.f32.mrf.mxu1 }
 0x3de   : > { %v4232_v22 = vmax.f32 %v4200_v57, 0.0  ;;  %v4165_v32 = vmul.f32 %v10646_v51, %v4071_v15  ;;  %v6671_v7 = vadd.f32 %v6670_v61, %v6669_v42  ;;  %v4089_v34 = vpop.f32.mrf.mxu0 }
 0x3df   : > { %8085 = vrot.lane.b32.xlu0 %v8084_v50, %s8620_s10  ;;  %v6672_v2 = vpop.f32.mrf.mxu1  ;;  %v10753_v4 = vld [vmem:[#allocation2 + $0xa9] sm:$0xff]  ;;  %v10755_v19 = vld [vmem:[#allocation2 + $0xb1] sm:$0xff] }
 0x3e0   : > { %4264 = vst.msk [vmem:[#allocation2 + $0xd0] sm:$0xff] %vm252_vm0, %v4232_v22  ;;  %v4201_v46 = vadd.f32 %v10654_v8, %v4165_v32  ;;  %v4074_v9 = vadd.f32 %v6671_v7, %v4073_v55  ;;  %v5544_v18 = vpack.c.bf16 %v10755_v19, %v10753_v4  ;;  %v4484_v17 = vld [vmem:[#allocation2 + $0xaf] sm:$0xff]  ;;  %v8124_v61 = vpack.i.bf16 %v10755_v19, %v10753_v4  ;;  %v10803_v58 = vpop.f32.mrf.mxu0 }
 0x3e1   : > { %8100 = vrot.lane.b32.xlu1 %v8084_v50, %s8621_s16  ;;  %v6673_v43 = vpop.f32.mrf.mxu1  ;;  %v8114_v38 = vpack.i.bf16 %v4484_v17, %v4483_v20  ;;  %v4516_v35 = vld [vmem:[#allocation2 + $0xb0] sm:$0xff] }
 0x3e2   : > { %v4233_v56 = vmax.f32 %v4201_v46, 0.0  ;;  %v4166_v29 = vmul.f32 %v10646_v51, %v4074_v9  ;;  %v6674_v13 = vadd.f32 %v6673_v43, %v6672_v2  ;;  %6955 = vmatmul.mubr.msk.bf16.gmra.mxu0 %vm252_vm0, %v5544_v18  ;;  %v8119_v37 = vpack.i.bf16 %v4516_v35, %v4515_v49 }
 0x3e3   : > { %8090 = vrot.lane.b32.xlu0 %v8089_v11, %s8621_s16  ;;  %v6675_v36 = vpop.f32.mrf.mxu1  ;;  %v4485_v4 = vld [vmem:[#allocation2 + $0xc7] sm:$0xff] }
 0x3e4   : > { %4265 = vst.msk [vmem:[#allocation2 + $0xe8] sm:$0xff] %vm252_vm0, %v4233_v56  ;;  %v4202_v0 = vadd.f32 %v10654_v8, %v4166_v29  ;;  %v4079_v5 = vadd.f32 %v10733_v40, %v6674_v13  ;;  %v4102_v56 = vpop.f32.mrf.mxu0 }
 0x3e5   : > { %8105 = vrot.lane.b32.xlu1 %v8089_v11, %s8619_s18  ;;  %v6676_v52 = vpop.f32.mrf.mxu1 }
 0x3e6   : > { %v4234_v53 = vmax.f32 %v4202_v0, 0.0  ;;  %v4167_v54 = vmul.f32 %v10646_v51, %v4079_v5  ;;  %v6677_v62 = vadd.f32 %v6676_v52, %v6675_v36  ;;  %v4517_v52 = vld [vmem:[#allocation2 + $0xc8] sm:$0xff] }
 0x3e7   : > { %8095 = vrot.lane.b32.xlu0 %v8094_v24, %s8619_s18  ;;  %v6678_v26 = vpop.f32.mrf.mxu1  ;;  %v10773_v47 = vld [vmem:[#allocation2 + $0xc9] sm:$0xff]  ;;  %v10775_v63 = vld [vmem:[#allocation2 + $0xd1] sm:$0xff] }
 0x3e8   : > { %4266 = vst.msk [vmem:[#allocation2 + $0xf0] sm:$0xff] %vm252_vm0, %v4234_v53  ;;  %v4203_v40 = vadd.f32 %v10654_v8, %v4167_v54  ;;  %v4082_v1 = vadd.f32 %v6929_v28, %v6677_v62  ;;  %v5547_v14 = vpack.c.bf16 %v10775_v63, %v10773_v47  ;;  %v4486_v7 = vld [vmem:[#allocation2 + $0xcf] sm:$0xff]  ;;  %v8154_v20 = vpack.i.bf16 %v10775_v63, %v10773_v47 }
 0x3e9   : > { %8110 = vrot.lane.b32.xlu1 %v8094_v24, %s8620_s10  ;;  %v6679_v39 = vpop.f32.mrf.mxu1  ;;  %v8144_v9 = vpack.i.bf16 %v4486_v7, %v4485_v4  ;;  %v4518_v11 = vld [vmem:[#allocation2 + $0xd0] sm:$0xff] }
 0x3ea   : > { %v4235_v16 = vmax.f32 %v4203_v40, 0.0  ;;  %v4168_v6 = vmul.f32 %v10646_v51, %v4082_v1  ;;  %v6680_v41 = vadd.f32 %v6679_v39, %v6678_v26  ;;  %6958 = vmatprep.mubr.msk.bf16.mxu0 %vm252_vm0, %v5547_v14  ;;  %v8149_v53 = vpack.i.bf16 %v4518_v11, %v4517_v52 }
 0x3eb   : > { %8115 = vrot.lane.b32.xlu0 %v8114_v38, %s8620_s10  ;;  %v6681_v21 = vpop.f32.mrf.mxu1  ;;  %v4487_v63 = vld [vmem:[#allocation2 + $0xe7] sm:$0xff] }
 0x3ec   : > { %4267 = vst.msk [vmem:[#allocation2 + $0x108] sm:$0xff] %vm252_vm0, %v4235_v16  ;;  %v4204_v44 = vadd.f32 %v10654_v8, %v4168_v6  ;;  %v4087_v60 = vadd.f32 %v6680_v41, %v4086_v25  ;;  %v6937_v25 = vpop.f32.mrf.mxu0 }
 0x3ed   : > { %8130 = vrot.lane.b32.xlu1 %v8114_v38, %s8621_s16  ;;  %v6682_v31 = vpop.f32.mrf.mxu1 }
 0x3ee   : > { %v4236_v45 = vmax.f32 %v4204_v44, 0.0  ;;  %v4169_v10 = vmul.f32 %v10646_v51, %v4087_v60  ;;  %v6683_v12 = vadd.f32 %v6682_v31, %v6681_v21  ;;  %v4105_v41 = vpop.f32.mrf.mxu0 }
 0x3ef   : > { %8120 = vrot.lane.b32.xlu0 %v8119_v37, %s8621_s16  ;;  %v6684_v3 = vpop.f32.mrf.mxu1  ;;  %v10790_v59 = vld [vmem:[#allocation2 + $0xe9] sm:$0xff]  ;;  %v10792_v28 = vld [vmem:[#allocation2 + $0xf1] sm:$0xff] }
 0x3f0   : > { %4268 = vst.msk [vmem:[#allocation2 + $0x110] sm:$0xff] %vm252_vm0, %v4236_v45  ;;  %v4205_v42 = vadd.f32 %v10654_v8, %v4169_v10  ;;  %v4090_v57 = vadd.f32 %v6683_v12, %v4089_v34  ;;  %v5550_v15 = vpack.c.bf16 %v10792_v28, %v10790_v59  ;;  %v4488_v6 = vld [vmem:[#allocation2 + $0xef] sm:$0xff]  ;;  %v10842_v34 = vpop.f32.mrf.mxu0 }
 0x3f1   : > { %8135 = vrot.lane.b32.xlu1 %v8119_v37, %s8619_s18  ;;  %v6685_v48 = vpop.f32.mrf.mxu1  ;;  %v8174_v31 = vpack.i.bf16 %v4488_v6, %v4487_v63  ;;  %v4520_v12 = vld [vmem:[#allocation2 + $0xf0] sm:$0xff] }
 0x3f2   : > { %v4237_v50 = vmax.f32 %v4205_v42, 0.0  ;;  %v4170_v22 = vmul.f32 %v10646_v51, %v4090_v57  ;;  %v6686_v32 = vadd.f32 %v6685_v48, %v6684_v3  ;;  %6959 = vmatmul.mubr.msk.bf16.gmra.mxu0 %vm252_vm0, %v5550_v15  ;;  %v4519_v15 = vld [vmem:[#allocation2 + $0xe8] sm:$0xff]  ;;  %v4118_v7 = vpop.f32.mrf.mxu0 }
 0x3f3   : > { %8125 = vrot.lane.b32.xlu0 %v8124_v61, %s8619_s18  ;;  %v6687_v55 = vpop.f32.mrf.mxu1  ;;  %v4489_v52 = vld [vmem:[#allocation2 + $0x107] sm:$0xff] }
 0x3f4   : > { %4269 = vst.msk [vmem:[#allocation2 + $0x128] sm:$0xff] %vm252_vm0, %v4237_v50  ;;  %v4206_v2 = vadd.f32 %v10654_v8, %v4170_v22  ;;  %v4095_v46 = vadd.f32 %v10764_v30, %v6686_v32 }
 0x3f5   : > { %8140 = vrot.lane.b32.xlu1 %v8124_v61, %s8620_s10  ;;  %v6688_v19 = vpop.f32.mrf.mxu1  ;;  %v8179_v61 = vpack.i.bf16 %v4520_v12, %v4519_v15 }
 0x3f6   : > { %v4238_v18 = vmax.f32 %v4206_v2, 0.0  ;;  %v4171_v33 = vmul.f32 %v10646_v51, %v4095_v46  ;;  %v6689_v43 = vadd.f32 %v6688_v19, %v6687_v55 }
 0x3f7   : > { %8145 = vrot.lane.b32.xlu0 %v8144_v9, %s8620_s10  ;;  %v6690_v29 = vpop.f32.mrf.mxu1  ;;  %v10812_v13 = vld [vmem:[#allocation2 + $0x109] sm:$0xff]  ;;  %v10814_v36 = vld [vmem:[#allocation2 + $0x111] sm:$0xff] }
 0x3f8   : > { %4270 = vst.msk [vmem:[#allocation2 + $0x130] sm:$0xff] %vm252_vm0, %v4238_v18  ;;  %v4207_v30 = vadd.f32 %v10654_v8, %v4171_v33  ;;  %v4098_v0 = vadd.f32 %v6933_v27, %v6689_v43  ;;  %v5553_v5 = vpack.c.bf16 %v10814_v36, %v10812_v13  ;;  %v8184_v18 = vpack.i.bf16 %v10792_v28, %v10790_v59 }
 0x3f9   : > { %8160 = vrot.lane.b32.xlu1 %v8144_v9, %s8621_s16  ;;  %v6691_v24 = vpop.f32.mrf.mxu1 }
 0x3fa   : > { %v4239_v54 = vmax.f32 %v4207_v30, 0.0  ;;  %v4172_v62 = vmul.f32 %v10646_v51, %v4098_v0  ;;  %v6692_v17 = vadd.f32 %v6691_v24, %v6690_v29  ;;  %6962 = vmatprep.mubr.msk.bf16.mxu0 %vm252_vm0, %v5553_v5  ;;  %v6941_v29 = vpop.f32.mrf.mxu0 }
 0x3fb   : > { %8150 = vrot.lane.b32.xlu0 %v8149_v53, %s8621_s16  ;;  %v6693_v26 = vpop.f32.mrf.mxu1 }
 0x3fc   : > { %4271 = vst.msk [vmem:[#allocation2 + $0x148] sm:$0xff] %vm252_vm0, %v4239_v54  ;;  %v4208_v40 = vadd.f32 %v10654_v8, %v4172_v62  ;;  %v4103_v1 = vadd.f32 %v6692_v17, %v4102_v56  ;;  %v4490_v56 = vld [vmem:[#allocation2 + $0x10f] sm:$0xff]  ;;  %v4121_v17 = vpop.f32.mrf.mxu0 }
 0x3fd   : > { %8165 = vrot.lane.b32.xlu1 %v8149_v53, %s8619_s18  ;;  %v6694_v14 = vpop.f32.mrf.mxu1  ;;  %v8204_v28 = vpack.i.bf16 %v4490_v56, %v4489_v52  ;;  %v4522_v62 = vld [vmem:[#allocation2 + $0x110] sm:$0xff] }
 0x3fe   : > { %v4240_v39 = vmax.f32 %v4208_v40, 0.0  ;;  %v4173_v38 = vmul.f32 %v10646_v51, %v4103_v1  ;;  %v6695_v16 = vadd.f32 %v6694_v14, %v6693_v26  ;;  %v10879_v6 = vpop.f32.mrf.mxu0 }
 0x3ff   : > { %8155 = vrot.lane.b32.xlu0 %v8154_v20, %s8619_s18  ;;  %v6696_v35 = vpop.f32.mrf.mxu1  ;;  %v10831_v27 = vld [vmem:[#allocation2 + $0x129] sm:$0xff]  ;;  %v10833_v21 = vld [vmem:[#allocation2 + $0x131] sm:$0xff] }
 0x400   : > { %4272 = vst.msk [vmem:[#allocation2 + $0x150] sm:$0xff] %vm252_vm0, %v4240_v39  ;;  %v4209_v44 = vadd.f32 %v10654_v8, %v4173_v38  ;;  %v4106_v60 = vadd.f32 %v6695_v16, %v4105_v41  ;;  %v5556_v47 = vpack.c.bf16 %v10833_v21, %v10831_v27  ;;  %v4521_v39 = vld [vmem:[#allocation2 + $0x108] sm:$0xff] }
 0x401   : > { %8170 = vrot.lane.b32.xlu1 %v8154_v20, %s8620_s10  ;;  %v6697_v49 = vpop.f32.mrf.mxu1  ;;  %v8209_v16 = vpack.i.bf16 %v4522_v62, %v4521_v39 }
 0x402   : > { %v4241_v37 = vmax.f32 %v4209_v44, 0.0  ;;  %v4174_v45 = vmul.f32 %v10646_v51, %v4106_v60  ;;  %v6698_v10 = vadd.f32 %v6697_v49, %v6696_v35  ;;  %6963 = vmatmul.mubr.msk.bf16.gmra.mxu0 %vm252_vm0, %v5556_v47 }
 0x403   : > { %8175 = vrot.lane.b32.xlu0 %v8174_v31, %s8620_s10  ;;  %v6699_v3 = vpop.f32.mrf.mxu1 }
 0x404   : > { %4273 = vst.msk [vmem:[#allocation2 + $0x168] sm:$0xff] %vm252_vm0, %v4241_v37  ;;  %v4210_v42 = vadd.f32 %v10654_v8, %v4174_v45  ;;  %v4111_v57 = vadd.f32 %v10803_v58, %v6698_v10  ;;  %v4134_v37 = vpop.f32.mrf.mxu0 }
 0x405   : > { %8190 = vrot.lane.b32.xlu1 %v8174_v31, %s8621_s16  ;;  %v6700_v48 = vpop.f32.mrf.mxu1  ;;  %v8214_v31 = vpack.i.bf16 %v10814_v36, %v10812_v13  ;;  %v4491_v36 = vld [vmem:[#allocation2 + $0x127] sm:$0xff] }
 0x406   : > { %v4242_v50 = vmax.f32 %v4210_v42, 0.0  ;;  %v4175_v22 = vmul.f32 %v10646_v51, %v4111_v57  ;;  %v6701_v32 = vadd.f32 %v6700_v48, %v6699_v3  ;;  %v4492_v3 = vld [vmem:[#allocation2 + $0x12f] sm:$0xff] }
 0x407   : > { %8180 = vrot.lane.b32.xlu0 %v8179_v61, %s8621_s16  ;;  %v6702_v55 = vpop.f32.mrf.mxu1  ;;  %v10851_v2 = vld [vmem:[#allocation2 + $0x149] sm:$0xff]  ;;  %v10853_v46 = vld [vmem:[#allocation2 + $0x151] sm:$0xff] }
 0x408   : > { %4274 = vst.msk [vmem:[#allocation2 + $0x170] sm:$0xff] %vm252_vm0, %v4242_v50  ;;  %v4211_v58 = vadd.f32 %v10654_v8, %v4175_v22  ;;  %v4114_v4 = vadd.f32 %v6937_v25, %v6701_v32  ;;  %v5559_v19 = vpack.c.bf16 %v10853_v46, %v10851_v2  ;;  %v8234_v50 = vpack.i.bf16 %v4492_v3, %v4491_v36  ;;  %v6945_v22 = vpop.f32.mrf.mxu0  ;;  %v10952_v36 = vpop.permute.xlu0 %8000 }
 0x409   : > { %8195 = vrot.lane.b32.xlu1 %v8179_v61, %s8619_s18  ;;  %v6703_v9 = vpop.f32.mrf.mxu1 }
 0x40a   : > { %v4243_v33 = vmax.f32 %v4211_v58, 0.0  ;;  %v4176_v43 = vmul.f32 %v10646_v51, %v4114_v4  ;;  %v6704_v11 = vadd.f32 %v6703_v9, %v6702_v55  ;;  %6966 = vmatprep.mubr.msk.bf16.mxu0 %vm252_vm0, %v5559_v19  ;;  %v4524_v58 = vld [vmem:[#allocation2 + $0x130] sm:$0xff] }
 0x40b   : > { %8185 = vrot.lane.b32.xlu0 %v8184_v18, %s8619_s18  ;;  %v6705_v30 = vpop.f32.mrf.mxu1 }
 0x40c   : > { %4275 = vst.msk [vmem:[#allocation2 + $0x188] sm:$0xff] %vm252_vm0, %v4243_v33  ;;  %v4212_v0 = vadd.f32 %v10654_v8, %v4176_v43  ;;  %v4119_v5 = vadd.f32 %v6704_v11, %v4118_v7  ;;  %v4137_v11 = vpop.f32.mrf.mxu0 }
 0x40d   : > { %8200 = vrot.lane.b32.xlu1 %v8184_v18, %s8620_s10  ;;  %v6706_v59 = vpop.f32.mrf.mxu1  ;;  %v4523_v18 = vld [vmem:[#allocation2 + $0x128] sm:$0xff] }
 0x40e   : > { %v4244_v24 = vmax.f32 %v4212_v0, 0.0  ;;  %v4177_v53 = vmul.f32 %v10646_v51, %v4119_v5  ;;  %v6707_v54 = vadd.f32 %v6706_v59, %v6705_v30  ;;  %v8239_v43 = vpack.i.bf16 %v4524_v58, %v4523_v18  ;;  %v4286_v18 = vld [vmem:[#allocation2 + $0xf] sm:$0xff] }
 0x40f   : > { %8205 = vrot.lane.b32.xlu0 %v8204_v28, %s8620_s10  ;;  %v6708_v25 = vpop.f32.mrf.mxu1  ;;  %v10870_v26 = vld [vmem:[#allocation2 + $0x169] sm:$0xff]  ;;  %v10872_v40 = vld [vmem:[#allocation2 + $0x171] sm:$0xff] }
 0x410   : > { %4276 = vst.msk [vmem:[#allocation2 + $0x190] sm:$0xff] %vm252_vm0, %v4244_v24  ;;  %v4213_v1 = vadd.f32 %v10654_v8, %v4177_v53  ;;  %v4122_v14 = vadd.f32 %v6707_v54, %v4121_v17  ;;  %v5562_v20 = vpack.c.bf16 %v10872_v40, %v10870_v26  ;;  %v8244_v24 = vpack.i.bf16 %v10833_v21, %v10831_v27  ;;  %v10922_v17 = vpop.permute.xlu1 %7990 }
 0x411   : > { %8220 = vrot.lane.b32.xlu1 %v8204_v28, %s8621_s16  ;;  %v6709_v38 = vpop.f32.mrf.mxu1  ;;  %v7992_v58 = vunpack.i.l.bf16 %v10922_v17 }
 0x412   : > { %v4245_v41 = vmax.f32 %v4213_v1, 0.0  ;;  %v4178_v35 = vmul.f32 %v10646_v51, %v4122_v14  ;;  %v6710_v44 = vadd.f32 %v6709_v38, %v6708_v25  ;;  %6967 = vmatmul.mubr.msk.bf16.gmra.mxu0 %vm252_vm0, %v5562_v20  ;;  %v4494_v25 = vld [vmem:[#allocation2 + $0x14f] sm:$0xff]  ;;  %v4493_v20 = vld [vmem:[#allocation2 + $0x147] sm:$0xff] }
 0x413   : > { %8210 = vrot.lane.b32.xlu0 %v8209_v16, %s8621_s16  ;;  %v6711_v60 = vpop.f32.mrf.mxu1  ;;  %v8264_v21 = vpack.i.bf16 %v4494_v25, %v4493_v20 }
 0x414   : > { %4277 = vst.msk [vmem:[#allocation2 + $0x1a8] sm:$0xff] %vm252_vm0, %v4245_v41  ;;  %v4214_v47 = vadd.f32 %v10654_v8, %v4178_v35  ;;  %v4127_v63 = vadd.f32 %v10842_v34, %v6710_v44 }
 0x415   : > { %8225 = vrot.lane.b32.xlu1 %v8209_v16, %s8619_s18  ;;  %v6712_v49 = vpop.f32.mrf.mxu1  ;;  %v4526_v16 = vld [vmem:[#allocation2 + $0x150] sm:$0xff] }
 0x416   : > { %v4246_v45 = vmax.f32 %v4214_v47, 0.0  ;;  %v4179_v10 = vmul.f32 %v10646_v51, %v4127_v63  ;;  %v6713_v12 = vadd.f32 %v6712_v49, %v6711_v60  ;;  %v10936_v47 = vpop.permute.xlu1 %7995  ;;  %v4525_v49 = vld [vmem:[#allocation2 + $0x148] sm:$0xff] }
 0x417   : > { %8215 = vrot.lane.b32.xlu0 %v8214_v31, %s8619_s18  ;;  %v6714_v42 = vpop.f32.mrf.mxu1  ;;  %v10892_v57 = vld [vmem:[#allocation2 + $0x189] sm:$0xff]  ;;  %v10894_v15 = vld [vmem:[#allocation2 + $0x191] sm:$0xff] }
 0x418   : > { %4278 = vst.msk [vmem:[#allocation2 + $0x1b0] sm:$0xff] %vm252_vm0, %v4246_v45  ;;  %v4215_v34 = vadd.f32 %v10654_v8, %v4179_v10  ;;  %v4130_v48 = vadd.f32 %v6941_v29, %v6713_v12  ;;  %v5565_v13 = vpack.c.bf16 %v10894_v15, %v10892_v57 }
 0x419   : > { %8230 = vrot.lane.b32.xlu1 %v8214_v31, %s8620_s10  ;;  %v6715_v61 = vpop.f32.mrf.mxu1 }
 0x41a   : > { %v4247_v32 = vmax.f32 %v4215_v34, 0.0  ;;  %v4180_v7 = vmul.f32 %v10646_v51, %v4130_v48  ;;  %v6716_v55 = vadd.f32 %v6715_v61, %v6714_v42  ;;  %6970 = vmatprep.mubr.msk.bf16.mxu0 %vm252_vm0, %v5565_v13  ;;  %v8274_v42 = vpack.i.bf16 %v10853_v46, %v10851_v2  ;;  %v4496_v48 = vld [vmem:[#allocation2 + $0x16f] sm:$0xff]  ;;  %v4495_v2 = vld [vmem:[#allocation2 + $0x167] sm:$0xff] }
 0x41b   : > { %8235 = vrot.lane.b32.xlu0 %v8234_v50, %s8620_s10  ;;  %v6717_v4 = vpop.f32.mrf.mxu1 }
 0x41c   : > { %4279 = vst.msk [vmem:[#allocation2 + $0x1c8] sm:$0xff] %vm252_vm0, %v4247_v32  ;;  %v4216_v19 = vadd.f32 %v10654_v8, %v4180_v7  ;;  %v4135_v9 = vadd.f32 %v6716_v55, %v4134_v37  ;;  %v8269_v37 = vpack.i.bf16 %v4526_v16, %v4525_v49  ;;  %v4527_v7 = vld [vmem:[#allocation2 + $0x168] sm:$0xff]  ;;  %v7993_v55 = vunpack.i.h.bf16 %v10922_v17 }
 0x41d   : > { %8250 = vrot.lane.b32.xlu1 %v8234_v50, %s8621_s16  ;;  %v6718_v33 = vpop.f32.mrf.mxu1  ;;  %v4498_v17 = vld [vmem:[#allocation2 + $0x18f] sm:$0xff] }
 0x41e   : > { %v4248_v56 = vmax.f32 %v4216_v19, 0.0  ;;  %v4181_v29 = vmul.f32 %v10646_v51, %v4135_v9  ;;  %v6719_v30 = vadd.f32 %v6718_v33, %v6717_v4  ;;  %v4285_v9 = vld [vmem:[#allocation2 + $0x7] sm:$0xff] }
 0x41f   : > { %8240 = vrot.lane.b32.xlu0 %v8239_v43, %s8621_s16  ;;  %v10909_v0 = vld [vmem:[#allocation2 + $0x1a9] sm:$0xff]  ;;  %v10911_v5 = vld [vmem:[#allocation2 + $0x1b1] sm:$0xff] }
 0x420   : > { %4280 = vst.msk [vmem:[#allocation2 + $0x1d0] sm:$0xff] %vm252_vm0, %v4248_v56  ;;  %v4217_v52 = vadd.f32 %v10654_v8, %v4181_v29  ;;  %v4138_v59 = vadd.f32 %v6719_v30, %v4137_v11  ;;  %v5568_v28 = vpack.c.bf16 %v10911_v5, %v10909_v0  ;;  %v7997_v11 = vunpack.i.l.bf16 %v10936_v47 }
 0x421   : > { %8255 = vrot.lane.b32.xlu1 %v8239_v43, %s8619_s18  ;;  %v7998_v43 = vunpack.i.h.bf16 %v10936_v47  ;;  %v5342_v56 = vsel %vm252_vm0, %v4286_v18, %v7993_v55  ;;  %v5341_v29 = vsel %vm252_vm0, %v4285_v9, %v7992_v58  ;;  %v8334_v58 = vpack.i.bf16 %v10894_v15, %v10892_v57  ;;  %v4500_v18 = vld [vmem:[#allocation2 + $0x1af] sm:$0xff]  ;;  %v11031_v57 = vld [vmem:[#allocation2 + $0x1a7] sm:$0xff] }
 0x422   : > { %v4249_v53 = vmax.f32 %v4217_v52, 0.0  ;;  %v4182_v54 = vmul.f32 %v10646_v51, %v4138_v59  ;;  %v6720_v62 = vpop.f32.mrf.mxu1  ;;  %6971 = vmatmul.mubr.msk.bf16.gmra.mxu0 %vm252_vm0, %v5568_v28  ;;  %v8304_v52 = vpack.i.bf16 %v10872_v40, %v10870_v26  ;;  %v5373_v40 = vsel %vm1479_vm1, %v5341_v29, %v7997_v11  ;;  %v4288_v11 = vld [vmem:[#allocation2 + $0x2f] sm:$0xff] }
 0x423   : > { %8245 = vrot.lane.b32.xlu0 %v8244_v24, %s8619_s18  ;;  %v5374_v20 = vsel %vm1479_vm1, %v5342_v56, %v7998_v43  ;;  %v4287_v43 = vld [vmem:[#allocation2 + $0x27] sm:$0xff] }
 0x424   : > { %4281 = vst.msk [vmem:[#allocation2 + $0x1e8] sm:$0xff] %vm252_vm0, %v4249_v53  ;;  %v4218_v1 = vadd.f32 %v10654_v8, %v4182_v54  ;;  %v6721_v14 = vpop.f32.mrf.mxu1 }
 0x425   : > { %8260 = vrot.lane.b32.xlu1 %v8244_v24, %s8620_s10  ;;  %v6722_v27 = vadd.f32 %v6721_v14, %v6720_v62 }
 0x426   : > { %v4250_v39 = vmax.f32 %v4218_v1, 0.0  ;;  %v6723_v38 = vpop.f32.mrf.mxu1 }
 0x427   : > { %v4143_v41 = vadd.f32 %v10879_v6, %v6722_v27  ;;  %8265 = vrot.lane.b32.xlu0 %v8264_v21, %s8620_s10  ;;  %v10930_v35 = vld [vmem:[#allocation2 + $0x1c9] sm:$0xff]  ;;  %v10932_v44 = vld [vmem:[#allocation2 + $0x1d1] sm:$0xff] }
 0x428   : > { %4282 = vst.msk [vmem:[#allocation2 + $0x1f0] sm:$0xff] %vm252_vm0, %v4250_v39  ;;  %v6724_v60 = vpop.f32.mrf.mxu1  ;;  %v5571_v63 = vpack.c.bf16 %v10932_v44, %v10930_v35  ;;  %v4497_v27 = vld [vmem:[#allocation2 + $0x187] sm:$0xff] }
 0x429   : > { %8280 = vrot.lane.b32.xlu1 %v8264_v21, %s8621_s16  ;;  %v4183_v31 = vmul.f32 %v10646_v51, %v4143_v41  ;;  %v6725_v6 = vadd.f32 %v6724_v60, %v6723_v38  ;;  %v4414_v21 = vld [vmem:[#allocation2 + $0x30] sm:$0xff]  ;;  %v4413_v39 = vld [vmem:[#allocation2 + $0x28] sm:$0xff]  ;;  %v8324_v16 = vpack.i.bf16 %v4498_v17, %v4497_v27 }
 0x42a   : > { %6974 = vmatprep.mubr.msk.bf16.mxu0 %vm252_vm0, %v5571_v63 }
 0x42b   : > { %v4219_v45 = vadd.f32 %v10654_v8, %v4183_v31  ;;  %v4146_v10 = vadd.f32 %v6945_v22, %v6725_v6  ;;  %8270 = vrot.lane.b32.xlu0 %v8269_v37, %s8621_s16  ;;  %v8294_v22 = vpack.i.bf16 %v4496_v48, %v4495_v2  ;;  %v10999_v31 = vld [vmem:[#allocation2 + $0x190] sm:$0xff] }
 0x42d   : > { %8285 = vrot.lane.b32.xlu1 %v8269_v37, %s8619_s18  ;;  %v4251_v12 = vmax.f32 %v4219_v45, 0.0  ;;  %v4184_v3 = vmul.f32 %v10646_v51, %v4146_v10 }
 0x42e   : > { %v8006_v4 = vpop.permute.xlu0 %8005 }
 0x42f   : > { %v10948_v34 = vpop.permute.xlu1 %8010  ;;  %4283 = vst.msk [vmem:[#allocation2 + $0x208] sm:$0xff] %vm252_vm0, %v4251_v12  ;;  %v4220_v13 = vadd.f32 %v10654_v8, %v4184_v3  ;;  %8275 = vrot.lane.b32.xlu0 %v8274_v42, %s8619_s18  ;;  %v10955_v61 = vld [vmem:[#allocation2 + $0x1e9] sm:$0xff]  ;;  %v10957_v50 = vld [vmem:[#allocation2 + $0x1f1] sm:$0xff]  ;;  %v8008_v59 = vunpack.i.h.bf16 %v8006_v4  ;;  %v8007_v28 = vunpack.i.l.bf16 %v8006_v4 }
 0x430   : > { %v5574_v51 = vpack.c.bf16 %v10957_v50, %v10955_v61  ;;  %v4528_v8 = vld [vmem:[#allocation2 + $0x170] sm:$0xff]  ;;  %v8013_v24 = vunpack.i.h.bf16 %v10948_v34  ;;  %v8012_v25 = vunpack.i.l.bf16 %v10948_v34 }
 0x431   : > { %8290 = vrot.lane.b32.xlu1 %v8274_v42, %s8620_s10  ;;  %v4252_v46 = vmax.f32 %v4220_v13, 0.0  ;;  %v8299_v19 = vpack.i.bf16 %v4528_v8, %v4527_v7  ;;  %v5438_v41 = vsel %vm252_vm0, %v4414_v21, %v8008_v59  ;;  %v5437_v60 = vsel %vm252_vm0, %v4413_v39, %v8007_v28  ;;  %v11009_v42 = vld [vmem:[#allocation2 + $0x188] sm:$0xff]  ;;  %v4416_v28 = vld [vmem:[#allocation2 + $0x50] sm:$0xff] }
 0x432   : > { %6975 = vmatmul.mubr.msk.bf16.gmra.mxu0 %vm252_vm0, %v5574_v51  ;;  %v5406_v6 = vsel %vm1512_vm2, %v5374_v20, %v8013_v24  ;;  %v5405_v37 = vsel %vm1512_vm2, %v5373_v40, %v8012_v25  ;;  %v8329_v13 = vpack.i.bf16 %v10999_v31, %v11009_v42  ;;  %v4415_v24 = vld [vmem:[#allocation2 + $0x48] sm:$0xff]  ;;  %v11040_v20 = vld [vmem:[#allocation2 + $0x1b0] sm:$0xff] }
 0x433   : > { %v10962_v32 = vpop.permute.xlu1 %8015  ;;  %4284 = vst.msk [vmem:[#allocation2 + $0x210] sm:$0xff] %vm252_vm0, %v4252_v46  ;;  %8295 = vrot.lane.b32.xlu0 %v8294_v22, %s8620_s10  ;;  %v5533_v51 = vpack.c.bf16 %v5406_v6, %v5405_v37 }
 0x434   : > { %v8018_v46 = vunpack.i.h.bf16 %v10962_v32 }
 0x435   : > { %8310 = vrot.lane.b32.xlu1 %v8294_v22, %s8621_s16  ;;  %v8017_v22 = vunpack.i.l.bf16 %v10962_v32 }
 0x437   : > { %v10970_v33 = vpop.permute.xlu1 %8020  ;;  %8300 = vrot.lane.b32.xlu0 %v8299_v19, %s8621_s16 }
 0x438   : > { %v8023_v8 = vunpack.i.h.bf16 %v10970_v33  ;;  %v8022_v7 = vunpack.i.l.bf16 %v10970_v33  ;;  %v5343_v33 = vsel %vm252_vm0, %v4287_v43, %v8017_v22 }
 0x439   : > { %8315 = vrot.lane.b32.xlu1 %v8299_v19, %s8619_s18  ;;  %v8026_v30 = vpop.permute.xlu0 %8025 }
 0x43a   : > { %v10983_v54 = vld [vmem:[#allocation2 + $0x209] sm:$0xff]  ;;  %v10985_v62 = vld [vmem:[#allocation2 + $0x211] sm:$0xff]  ;;  %v8028_v1 = vunpack.i.h.bf16 %v8026_v30  ;;  %v8027_v14 = vunpack.i.l.bf16 %v8026_v30  ;;  %v5375_v15 = vsel %vm1479_vm1, %v5343_v33, %v8022_v7 }
 0x43b   : > { %v10981_v53 = vpop.permute.xlu1 %8040  ;;  %8305 = vrot.lane.b32.xlu0 %v8304_v52, %s8619_s18  ;;  %v5577_v26 = vpack.c.bf16 %v10985_v62, %v10983_v54  ;;  %v4289_v7 = vld [vmem:[#allocation2 + $0x47] sm:$0xff] }
 0x43c   : > { %v5470_v45 = vsel %vm1479_vm1, %v5438_v41, %v8028_v1  ;;  %v5469_v10 = vsel %vm1479_vm1, %v5437_v60, %v8027_v14  ;;  %v8043_v32 = vunpack.i.h.bf16 %v10981_v53  ;;  %v8042_v56 = vunpack.i.l.bf16 %v10981_v53  ;;  %v11050_v60 = vld [vmem:[#allocation2 + $0x1a8] sm:$0xff] }
 0x43d   : > { %8320 = vrot.lane.b32.xlu1 %v8304_v52, %s8620_s10  ;;  %v8031_v38 = vpop.permute.xlu0 %8030  ;;  %6978 = vmatprep.mubr.msk.bf16.mxu0 %vm252_vm0, %v5577_v26  ;;  %v5344_v52 = vsel %vm252_vm0, %v4288_v11, %v8018_v46  ;;  %v8354_v53 = vpack.i.bf16 %v4500_v18, %v11031_v57  ;;  %v8359_v6 = vpack.i.bf16 %v11040_v20, %v11050_v60  ;;  %v4418_v11 = vld [vmem:[#allocation2 + $0x70] sm:$0xff] }
 0x43e   : > { %v8033_v47 = vunpack.i.h.bf16 %v8031_v38  ;;  %v8032_v63 = vunpack.i.l.bf16 %v8031_v38  ;;  %v5376_v59 = vsel %vm1479_vm1, %v5344_v52, %v8023_v8  ;;  %v5407_v39 = vsel %vm1512_vm2, %v5375_v15, %v8042_v56  ;;  %v11066_v8 = vld [vmem:[#allocation2 + $0x1cf] sm:$0xff] }
 0x43f   : > { %v10997_v49 = vpop.permute.xlu1 %8045  ;;  %8325 = vrot.lane.b32.xlu0 %v8324_v16, %s8620_s10  ;;  %v5408_v38 = vsel %vm1512_vm2, %v5376_v59, %v8043_v32  ;;  %v4417_v32 = vld [vmem:[#allocation2 + $0x68] sm:$0xff]  ;;  %v11084_v59 = vld [vmem:[#allocation2 + $0x1d0] sm:$0xff] }
 0x440   : > { %v5501_v12 = vsel %vm1512_vm2, %v5469_v10, %v8032_v63  ;;  %v5502_v3 = vsel %vm1512_vm2, %v5470_v45, %v8033_v47  ;;  %v5536_v45 = vpack.c.bf16 %v5408_v38, %v5407_v39  ;;  %v8048_v10 = vunpack.i.h.bf16 %v10997_v49 }
 0x441   : > { %8340 = vrot.lane.b32.xlu1 %v8324_v16, %s8621_s16  ;;  %v8036_v34 = vpop.permute.xlu0 %8035  ;;  %v5534_v48 = vpack.c.bf16 %v5502_v3, %v5501_v12  ;;  %v8047_v12 = vunpack.i.l.bf16 %v10997_v49 }
 0x442   : > { %v8038_v4 = vunpack.i.h.bf16 %v8036_v34  ;;  %v8037_v19 = vunpack.i.l.bf16 %v8036_v34 }
 0x443   : > { %v11013_v2 = vpop.permute.xlu1 %8050  ;;  %5805 = vmatprep.mubr.bf16.mxu1 %v5534_v48  ;;  %8330 = vrot.lane.b32.xlu0 %v8329_v13, %s8621_s16 }
 0x444   : > { %5806 = vmatmul.mubr.bf16.vlgmr.msra.gmra.mxu1 %v5533_v51  ;;  %v5440_v25 = vsel %vm252_vm0, %v4416_v28, %v8038_v4  ;;  %v5439_v1 = vsel %vm252_vm0, %v4415_v24, %v8037_v19  ;;  %v8053_v3 = vunpack.i.h.bf16 %v11013_v2  ;;  %v8052_v34 = vunpack.i.l.bf16 %v11013_v2 }
 0x445   : > { %8345 = vrot.lane.b32.xlu1 %v8329_v13, %s8619_s18  ;;  %v8056_v55 = vpop.permute.xlu0 %8055  ;;  %v8364_v13 = vpack.i.bf16 %v10911_v5, %v10909_v0  ;;  %v5345_v2 = vsel %vm252_vm0, %v4289_v7, %v8047_v12  ;;  %v11074_v5 = vld [vmem:[#allocation2 + $0x1c7] sm:$0xff] }
 0x446   : > { %v8058_v29 = vunpack.i.h.bf16 %v8056_v55  ;;  %v8057_v30 = vunpack.i.l.bf16 %v8056_v55  ;;  %v4290_v55 = vld [vmem:[#allocation2 + $0x4f] sm:$0xff]  ;;  %v5377_v18 = vsel %vm1479_vm1, %v5345_v2, %v8052_v34 }
 0x447   : > { %v11023_v9 = vpop.permute.xlu1 %8070  ;;  %8335 = vrot.lane.b32.xlu0 %v8334_v58, %s8619_s18  ;;  %v5346_v0 = vsel %vm252_vm0, %v4290_v55, %v8048_v10  ;;  %v11110_v34 = vld [vmem:[#allocation2 + $0x1ef] sm:$0xff] }
 0x448   : > { %v5472_v27 = vsel %vm1479_vm1, %v5440_v25, %v8058_v29  ;;  %v5471_v21 = vsel %vm1479_vm1, %v5439_v1, %v8057_v30  ;;  %v8073_v49 = vunpack.i.h.bf16 %v11023_v9  ;;  %v5378_v43 = vsel %vm1479_vm1, %v5346_v0, %v8053_v3  ;;  %v11092_v25 = vld [vmem:[#allocation2 + $0x1c8] sm:$0xff] }
 0x449   : > { %8350 = vrot.lane.b32.xlu1 %v8334_v58, %s8620_s10  ;;  %v8061_v17 = vpop.permute.xlu0 %8060  ;;  %v8072_v58 = vunpack.i.l.bf16 %v11023_v9  ;;  %v8384_v9 = vpack.i.bf16 %v11066_v8, %v11074_v5 }
 0x44a   : > { %v8063_v14 = vunpack.i.h.bf16 %v8061_v17  ;;  %v8062_v26 = vunpack.i.l.bf16 %v8061_v17 }
 0x44b   : > { %v11038_v40 = vpop.permute.xlu1 %8075  ;;  %8355 = vrot.lane.b32.xlu0 %v8354_v53, %s8620_s10  ;;  %v5409_v17 = vsel %vm1512_vm2, %v5377_v18, %v8072_v58  ;;  %v4419_v58 = vld [vmem:[#allocation2 + $0x88] sm:$0xff] }
 0x44c   : > { %v5503_v16 = vsel %vm1512_vm2, %v5471_v21, %v8062_v26  ;;  %v5504_v41 = vsel %vm1512_vm2, %v5472_v27, %v8063_v14  ;;  %v8389_v27 = vpack.i.bf16 %v11084_v59, %v11092_v25 }
 0x44d   : > { %8370 = vrot.lane.b32.xlu1 %v8354_v53, %s8621_s16  ;;  %v8066_v47 = vpop.permute.xlu0 %8065  ;;  %v5537_v63 = vpack.c.bf16 %v5504_v41, %v5503_v16  ;;  %v5410_v53 = vsel %vm1512_vm2, %v5378_v43, %v8073_v49  ;;  %v8078_v16 = vunpack.i.h.bf16 %v11038_v40  ;;  %v8077_v41 = vunpack.i.l.bf16 %v11038_v40 }
 0x44e   : > { %v8068_v51 = vunpack.i.h.bf16 %v8066_v47  ;;  %v8067_v46 = vunpack.i.l.bf16 %v8066_v47  ;;  %v5539_v38 = vpack.c.bf16 %v5410_v53, %v5409_v17 }
 0x44f   : > { %v11054_v37 = vpop.permute.xlu1 %8080  ;;  %5813 = vmatprep.mubr.bf16.mxu1 %v5537_v63  ;;  %8360 = vrot.lane.b32.xlu0 %v8359_v6, %s8621_s16 }
 0x450   : > { %5814 = vmatmul.mubr.bf16.gmra.mxu1 %v5536_v45  ;;  %v5442_v29 = vsel %vm252_vm0, %v4418_v11, %v8068_v51  ;;  %v5441_v30 = vsel %vm252_vm0, %v4417_v32, %v8067_v46  ;;  %v8083_v47 = vunpack.i.h.bf16 %v11054_v37  ;;  %v8082_v63 = vunpack.i.l.bf16 %v11054_v37  ;;  %v11128_v32 = vld [vmem:[#allocation2 + $0x1f0] sm:$0xff] }
 0x451   : > { %8375 = vrot.lane.b32.xlu1 %v8359_v6, %s8619_s18  ;;  %v8086_v48 = vpop.permute.xlu0 %8085  ;;  %v8394_v45 = vpack.i.bf16 %v10932_v44, %v10930_v35  ;;  %v11118_v44 = vld [vmem:[#allocation2 + $0x1e7] sm:$0xff] }
 0x452   : > { %v8088_v4 = vunpack.i.h.bf16 %v8086_v48  ;;  %v8087_v19 = vunpack.i.l.bf16 %v8086_v48  ;;  %v4291_v48 = vld [vmem:[#allocation2 + $0x67] sm:$0xff] }
 0x453   : > { %v11064_v22 = vpop.permute.xlu1 %8100  ;;  %8365 = vrot.lane.b32.xlu0 %v8364_v13, %s8619_s18  ;;  %v5347_v37 = vsel %vm252_vm0, %v4291_v48, %v8077_v41  ;;  %v8424_v41 = vpack.i.bf16 %v10957_v50, %v10955_v61  ;;  %v4505_v50 = vld [vmem:[#allocation2 + $0x207] sm:$0xff] }
 0x454   : > { %v5473_v28 = vsel %vm1479_vm1, %v5441_v30, %v8087_v19  ;;  %v5474_v24 = vsel %vm1479_vm1, %v5442_v29, %v8088_v4  ;;  %v8103_v40 = vunpack.i.h.bf16 %v11064_v22  ;;  %v8102_v51 = vunpack.i.l.bf16 %v11064_v22  ;;  %v4420_v4 = vld [vmem:[#allocation2 + $0x90] sm:$0xff] }
 0x455   : > { %8380 = vrot.lane.b32.xlu1 %v8364_v13, %s8620_s10  ;;  %v8091_v56 = vpop.permute.xlu0 %8090  ;;  %v4292_v13 = vld [vmem:[#allocation2 + $0x6f] sm:$0xff]  ;;  %v5379_v55 = vsel %vm1479_vm1, %v5347_v37, %v8082_v63  ;;  %v8414_v22 = vpack.i.bf16 %v11110_v34, %v11118_v44 }
 0x456   : > { %v8093_v33 = vunpack.i.h.bf16 %v8091_v56  ;;  %v8092_v52 = vunpack.i.l.bf16 %v8091_v56  ;;  %v5348_v35 = vsel %vm252_vm0, %v4292_v13, %v8078_v16  ;;  %v5411_v29 = vsel %vm1512_vm2, %v5379_v55, %v8102_v51  ;;  %v4572_v51 = vld [vmem:[#allocation2 + $0x231] sm:$0xff]  ;;  %v4421_v55 = vld [vmem:[#allocation2 + $0xa8] sm:$0xff] }
 0x457   : > { %v11082_v15 = vpop.permute.xlu1 %8105  ;;  %8385 = vrot.lane.b32.xlu0 %v8384_v9, %s8620_s10  ;;  %v5380_v49 = vsel %vm1479_vm1, %v5348_v35, %v8083_v47  ;;  %v4293_v47 = vld [vmem:[#allocation2 + $0x87] sm:$0xff] }
 0x458   : > { %v5505_v1 = vsel %vm1512_vm2, %v5473_v28, %v8092_v52  ;;  %v5506_v14 = vsel %vm1512_vm2, %v5474_v24, %v8093_v33  ;;  %v5412_v30 = vsel %vm1512_vm2, %v5380_v49, %v8103_v40  ;;  %v11136_v33 = vld [vmem:[#allocation2 + $0x1e8] sm:$0xff] }
 0x459   : > { %8400 = vrot.lane.b32.xlu1 %v8384_v9, %s8621_s16  ;;  %v8096_v26 = vpop.permute.xlu0 %8095  ;;  %v5540_v21 = vpack.c.bf16 %v5506_v14, %v5505_v1  ;;  %v8419_v17 = vpack.i.bf16 %v11128_v32, %v11136_v33  ;;  %v5542_v14 = vpack.c.bf16 %v5412_v30, %v5411_v29  ;;  %v11175_v30 = vld [vmem:[#allocation2 + $0x208] sm:$0xff] }
 0x45a   : > { %v8098_v10 = vunpack.i.h.bf16 %v8096_v26  ;;  %v8097_v12 = vunpack.i.l.bf16 %v8096_v26  ;;  %v8108_v26 = vunpack.i.h.bf16 %v11082_v15 }
 0x45b   : > { %v11098_v39 = vpop.permute.xlu1 %8110  ;;  %8390 = vrot.lane.b32.xlu0 %v8389_v27, %s8621_s16  ;;  %5821 = vmatprep.mubr.bf16.mxu1 %v5540_v21 }
 0x45c   : > { %5822 = vmatmul.mubr.bf16.gmra.mxu1 %v5539_v38  ;;  %v5444_v2 = vsel %vm252_vm0, %v4420_v4, %v8098_v10  ;;  %v5443_v0 = vsel %vm252_vm0, %v4419_v58, %v8097_v12  ;;  %v8113_v21 = vunpack.i.h.bf16 %v11098_v39  ;;  %v8112_v38 = vunpack.i.l.bf16 %v11098_v39  ;;  %v4506_v10 = vld [vmem:[#allocation2 + $0x20f] sm:$0xff] }
 0x45d   : > { %8405 = vrot.lane.b32.xlu1 %v8389_v27, %s8619_s18  ;;  %v8116_v6 = vpop.permute.xlu0 %8115  ;;  %v8107_v27 = vunpack.i.l.bf16 %v11082_v15  ;;  %v4294_v12 = vld [vmem:[#allocation2 + $0x8f] sm:$0xff]  ;;  %v8444_v58 = vpack.i.bf16 %v4506_v10, %v4505_v50 }
 0x45e   : > { %v8118_v46 = vunpack.i.h.bf16 %v8116_v6  ;;  %v8117_v7 = vunpack.i.l.bf16 %v8116_v6  ;;  %v4571_v39 = vld [vmem:[#allocation2 + $0x229] sm:$0xff] }
 0x45f   : > { %v11108_v3 = vpop.permute.xlu1 %8130  ;;  %8395 = vrot.lane.b32.xlu0 %v8394_v45, %s8619_s18  ;;  %v5349_v61 = vsel %vm252_vm0, %v4293_v47, %v8107_v27  ;;  %v4539_v27 = vld [vmem:[#allocation2 + $0x228] sm:$0xff] }
 0x460   : > { %v5475_v56 = vsel %vm1479_vm1, %v5443_v0, %v8117_v7  ;;  %v5476_v9 = vsel %vm1479_vm1, %v5444_v2, %v8118_v46  ;;  %v8133_v15 = vunpack.i.h.bf16 %v11108_v3  ;;  %v8132_v48 = vunpack.i.l.bf16 %v11108_v3  ;;  %v4422_v3 = vld [vmem:[#allocation2 + $0xb0] sm:$0xff]  ;;  %v4423_v50 = vld [vmem:[#allocation2 + $0xc8] sm:$0xff] }
 0x461   : > { %8410 = vrot.lane.b32.xlu1 %v8394_v45, %s8620_s10  ;;  %v8121_v19 = vpop.permute.xlu0 %8120  ;;  %v5350_v46 = vsel %vm252_vm0, %v4294_v12, %v8108_v26  ;;  %v5580_v7 = vpack.c.bf16 %v4572_v51, %v4571_v39  ;;  %v5381_v37 = vsel %vm1479_vm1, %v5349_v61, %v8112_v38 }
 0x462   : > { %v8123_v18 = vunpack.i.h.bf16 %v8121_v19  ;;  %v8122_v43 = vunpack.i.l.bf16 %v8121_v19  ;;  %v5382_v35 = vsel %vm1479_vm1, %v5350_v46, %v8113_v21  ;;  %v4540_v21 = vld [vmem:[#allocation2 + $0x230] sm:$0xff] }
 0x463   : > { %v11126_v11 = vpop.permute.xlu1 %8135  ;;  %8415 = vrot.lane.b32.xlu0 %v8414_v22, %s8620_s10  ;;  %6979 = vmatmul.mubr.msk.bf16.gmra.mxu0 %vm252_vm0, %v5580_v7  ;;  %v5414_v29 = vsel %vm1512_vm2, %v5382_v35, %v8133_v15  ;;  %v4424_v7 = vld [vmem:[#allocation2 + $0xd0] sm:$0xff] }
 0x464   : > { %v5507_v52 = vsel %vm1512_vm2, %v5475_v56, %v8122_v43  ;;  %v5508_v28 = vsel %vm1512_vm2, %v5476_v9, %v8123_v18  ;;  %v11166_v18 = vld [vmem:[#allocation2 + $0x210] sm:$0xff]  ;;  %v5413_v9 = vsel %vm1512_vm2, %v5381_v37, %v8132_v48  ;;  %v8138_v38 = vunpack.i.h.bf16 %v11126_v11 }
 0x465   : > { %8430 = vrot.lane.b32.xlu1 %v8414_v22, %s8621_s16  ;;  %v8126_v24 = vpop.permute.xlu0 %8125  ;;  %v5543_v53 = vpack.c.bf16 %v5508_v28, %v5507_v52  ;;  %v5545_v26 = vpack.c.bf16 %v5414_v29, %v5413_v9  ;;  %v8459_v48 = vpack.i.bf16 %v4540_v21, %v4539_v27 }
 0x466   : > { %v8128_v63 = vunpack.i.h.bf16 %v8126_v24  ;;  %v8127_v6 = vunpack.i.l.bf16 %v8126_v24 }
 0x467   : > { %v11142_v1 = vpop.permute.xlu1 %8140  ;;  %8420 = vrot.lane.b32.xlu0 %v8419_v17, %s8621_s16  ;;  %5829 = vmatprep.mubr.bf16.mxu1 %v5543_v53 }
 0x468   : > { %5830 = vmatmul.mubr.bf16.gmra.mxu1 %v5542_v14  ;;  %v5446_v4 = vsel %vm252_vm0, %v4422_v3, %v8128_v63  ;;  %v5445_v19 = vsel %vm252_vm0, %v4421_v55, %v8127_v6  ;;  %v8142_v47 = vunpack.i.l.bf16 %v11142_v1  ;;  %v8454_v6 = vpack.i.bf16 %v10985_v62, %v10983_v54 }
 0x469   : > { %8435 = vrot.lane.b32.xlu1 %v8419_v17, %s8619_s18  ;;  %v8146_v16 = vpop.permute.xlu0 %8145  ;;  %v8449_v17 = vpack.i.bf16 %v11166_v18, %v11175_v30 }
 0x46a   : > { %v8148_v13 = vunpack.i.h.bf16 %v8146_v16  ;;  %v8147_v40 = vunpack.i.l.bf16 %v8146_v16  ;;  %v8137_v16 = vunpack.i.l.bf16 %v11126_v11 }
 0x46b   : > { %v11152_v45 = vpop.permute.xlu1 %8160  ;;  %8425 = vrot.lane.b32.xlu0 %v8424_v41, %s8619_s18 }
 0x46c   : > { %v5477_v43 = vsel %vm1479_vm1, %v5445_v19, %v8147_v40  ;;  %v5478_v56 = vsel %vm1479_vm1, %v5446_v4, %v8148_v13  ;;  %v4295_v13 = vld [vmem:[#allocation2 + $0xa7] sm:$0xff]  ;;  %v4296_v40 = vld [vmem:[#allocation2 + $0xaf] sm:$0xff]  ;;  %v8163_v39 = vunpack.i.h.bf16 %v11152_v45  ;;  %v8162_v11 = vunpack.i.l.bf16 %v11152_v45 }
 0x46d   : > { %8440 = vrot.lane.b32.xlu1 %v8424_v41, %s8620_s10  ;;  %v8151_v49 = vpop.permute.xlu0 %8150  ;;  %v8143_v41 = vunpack.i.h.bf16 %v11142_v1  ;;  %v5352_v1 = vsel %vm252_vm0, %v4296_v40, %v8138_v38  ;;  %v5351_v61 = vsel %vm252_vm0, %v4295_v13, %v8137_v16  ;;  %v4297_v16 = vld [vmem:[#allocation2 + $0xc7] sm:$0xff]  ;;  %v4426_v40 = vld [vmem:[#allocation2 + $0xf0] sm:$0xff] }
 0x46e   : > { %v8153_v22 = vunpack.i.h.bf16 %v8151_v49  ;;  %v8152_v2 = vunpack.i.l.bf16 %v8151_v49  ;;  %v5383_v54 = vsel %vm1479_vm1, %v5351_v61, %v8142_v47  ;;  %v4425_v13 = vld [vmem:[#allocation2 + $0xe8] sm:$0xff] }
 0x46f   : > { %v11164_v0 = vpop.permute.xlu1 %8165  ;;  %8445 = vrot.lane.b32.xlu0 %v8444_v58, %s8620_s10  ;;  %v5384_v62 = vsel %vm1479_vm1, %v5352_v1, %v8143_v41  ;;  %v5415_v19 = vsel %vm1512_vm2, %v5383_v54, %v8162_v11  ;;  %v4298_v41 = vld [vmem:[#allocation2 + $0xcf] sm:$0xff] }
 0x470   : > { %v5509_v52 = vsel %vm1512_vm2, %v5477_v43, %v8152_v2  ;;  %v5510_v28 = vsel %vm1512_vm2, %v5478_v56, %v8153_v22  ;;  %v5416_v22 = vsel %vm1512_vm2, %v5384_v62, %v8163_v39 }
 0x471   : > { %8465 = vrot.lane.b32.xlu1 %v8444_v58, %s8621_s16  ;;  %v8156_v24 = vpop.permute.xlu0 %8155  ;;  %v5546_v53 = vpack.c.bf16 %v5510_v28, %v5509_v52  ;;  %v5548_v52 = vpack.c.bf16 %v5416_v22, %v5415_v19  ;;  %v8168_v28 = vunpack.i.h.bf16 %v11164_v0 }
 0x472   : > { %v8158_v10 = vunpack.i.h.bf16 %v8156_v24  ;;  %v8157_v12 = vunpack.i.l.bf16 %v8156_v24  ;;  %v8167_v24 = vunpack.i.l.bf16 %v11164_v0 }
 0x473   : > { %v11181_v14 = vpop.permute.xlu1 %8170  ;;  %8450 = vrot.lane.b32.xlu0 %v8449_v17, %s8621_s16  ;;  %5837 = vmatprep.mubr.bf16.mxu1 %v5546_v53 }
 0x474   : > { %5838 = vmatmul.mubr.bf16.gmra.mxu1 %v5545_v26  ;;  %v5448_v35 = vsel %vm252_vm0, %v4424_v7, %v8158_v10  ;;  %v5447_v55 = vsel %vm252_vm0, %v4423_v50, %v8157_v12  ;;  %v8173_v17 = vunpack.i.h.bf16 %v11181_v14  ;;  %v8172_v53 = vunpack.i.l.bf16 %v11181_v14 }
 0x475   : > { %v8176_v63 = vpop.permute.xlu0 %8175  ;;  %v5354_v12 = vsel %vm252_vm0, %v4298_v41, %v8168_v28  ;;  %v5353_v0 = vsel %vm252_vm0, %v4297_v16, %v8167_v24  ;;  %v4300_v28 = vld [vmem:[#allocation2 + $0xef] sm:$0xff] }
 0x476   : > { %v8178_v51 = vunpack.i.h.bf16 %v8176_v63  ;;  %v8177_v46 = vunpack.i.l.bf16 %v8176_v63  ;;  %v5386_v14 = vsel %vm1479_vm1, %v5354_v12, %v8173_v17  ;;  %v4427_v41 = vld [vmem:[#allocation2 + $0x108] sm:$0xff] }
 0x477   : > { %v11190_v15 = vpop.permute.xlu1 %8190  ;;  %8455 = vrot.lane.b32.xlu0 %v8454_v6, %s8619_s18 }
 0x478   : > { %v5479_v58 = vsel %vm1479_vm1, %v5447_v55, %v8177_v46  ;;  %v5480_v4 = vsel %vm1479_vm1, %v5448_v35, %v8178_v51  ;;  %v8193_v47 = vunpack.i.h.bf16 %v11190_v15  ;;  %v8192_v63 = vunpack.i.l.bf16 %v11190_v15 }
 0x479   : > { %v8181_v37 = vpop.permute.xlu0 %8180 }
 0x47a   : > { %v8183_v45 = vunpack.i.h.bf16 %v8181_v37  ;;  %v8182_v3 = vunpack.i.l.bf16 %v8181_v37  ;;  %v5418_v54 = vsel %vm1512_vm2, %v5386_v14, %v8193_v47 }
 0x47b   : > { %v11201_v49 = vpop.permute.xlu1 %8195  ;;  %8460 = vrot.lane.b32.xlu0 %v8459_v48, %s8621_s16  ;;  %v5385_v48 = vsel %vm1479_vm1, %v5353_v0, %v8172_v53 }
 0x47c   : > { %v5511_v2 = vsel %vm1512_vm2, %v5479_v58, %v8182_v3  ;;  %v5512_v43 = vsel %vm1512_vm2, %v5480_v4, %v8183_v45  ;;  %v5417_v61 = vsel %vm1512_vm2, %v5385_v48, %v8192_v63  ;;  %v8198_v58 = vunpack.i.h.bf16 %v11201_v49 }
 0x47d   : > { %v8186_v56 = vpop.permute.xlu0 %8185  ;;  %v5549_v9 = vpack.c.bf16 %v5512_v43, %v5511_v2  ;;  %v5551_v45 = vpack.c.bf16 %v5418_v54, %v5417_v61  ;;  %v8197_v4 = vunpack.i.l.bf16 %v11201_v49 }
 0x47e   : > { %v8188_v27 = vunpack.i.h.bf16 %v8186_v56  ;;  %v8187_v21 = vunpack.i.l.bf16 %v8186_v56 }
 0x47f   : > { %v8201_v29 = vpop.permute.xlu1 %8200  ;;  %5845 = vmatprep.mubr.bf16.mxu1 %v5549_v9 }
 0x480   : > { %5846 = vmatmul.mubr.bf16.gmra.mxu1 %v5548_v52  ;;  %v5450_v11 = vsel %vm252_vm0, %v4426_v40, %v8188_v27  ;;  %v5449_v51 = vsel %vm252_vm0, %v4425_v13, %v8187_v21  ;;  %v8203_v19 = vunpack.i.h.bf16 %v8201_v29  ;;  %v8202_v22 = vunpack.i.l.bf16 %v8201_v29  ;;  %v4299_v52 = vld [vmem:[#allocation2 + $0xe7] sm:$0xff]  ;;  %v4428_v29 = vld [vmem:[#allocation2 + $0x110] sm:$0xff] }
 0x481   : > { %v8206_v26 = vpop.permute.xlu0 %8205  ;;  %v5356_v27 = vsel %vm252_vm0, %v4300_v28, %v8198_v58  ;;  %v5355_v21 = vsel %vm252_vm0, %v4299_v52, %v8197_v4  ;;  %v4302_v58 = vld [vmem:[#allocation2 + $0x10f] sm:$0xff] }
 0x482   : > { %v8208_v6 = vunpack.i.h.bf16 %v8206_v26  ;;  %v8207_v10 = vunpack.i.l.bf16 %v8206_v26  ;;  %v5387_v16 = vsel %vm1479_vm1, %v5355_v21, %v8202_v22  ;;  %v5388_v49 = vsel %vm1479_vm1, %v5356_v27, %v8203_v19  ;;  %v4429_v28 = vld [vmem:[#allocation2 + $0x128] sm:$0xff] }
 0x483   : > { %v8221_v38 = vpop.permute.xlu1 %8220 }
 0x484   : > { %v5481_v62 = vsel %vm1479_vm1, %v5449_v51, %v8207_v10  ;;  %v5482_v50 = vsel %vm1479_vm1, %v5450_v11, %v8208_v6  ;;  %v8223_v24 = vunpack.i.h.bf16 %v8221_v38  ;;  %v8222_v17 = vunpack.i.l.bf16 %v8221_v38 }
 0x485   : > { %v8211_v39 = vpop.permute.xlu0 %8210 }
 0x486   : > { %v8213_v46 = vunpack.i.h.bf16 %v8211_v39  ;;  %v8212_v1 = vunpack.i.l.bf16 %v8211_v39  ;;  %v5419_v0 = vsel %vm1512_vm2, %v5387_v16, %v8222_v17  ;;  %v5420_v48 = vsel %vm1512_vm2, %v5388_v49, %v8223_v24 }
 0x487   : > { %v11222_v15 = vpop.permute.xlu1 %8225 }
 0x488   : > { %v5513_v7 = vsel %vm1512_vm2, %v5481_v62, %v8212_v1  ;;  %v5514_v37 = vsel %vm1512_vm2, %v5482_v50, %v8213_v46  ;;  %v5554_v46 = vpack.c.bf16 %v5420_v48, %v5419_v0  ;;  %v8228_v61 = vunpack.i.h.bf16 %v11222_v15 }
 0x489   : > { %v8216_v35 = vpop.permute.xlu0 %8215  ;;  %v5552_v55 = vpack.c.bf16 %v5514_v37, %v5513_v7  ;;  %v8227_v54 = vunpack.i.l.bf16 %v11222_v15 }
 0x48a   : > { %v8218_v43 = vunpack.i.h.bf16 %v8216_v35  ;;  %v8217_v56 = vunpack.i.l.bf16 %v8216_v35 }
 0x48b   : > { %v8231_v3 = vpop.permute.xlu1 %8230  ;;  %5853 = vmatprep.mubr.bf16.mxu1 %v5552_v55 }
 0x48c   : > { %5854 = vmatmul.mubr.bf16.gmra.mxu1 %v5551_v45  ;;  %v5452_v63 = vsel %vm252_vm0, %v4428_v29, %v8218_v43  ;;  %v5451_v6 = vsel %vm252_vm0, %v4427_v41, %v8217_v56  ;;  %v8233_v62 = vunpack.i.h.bf16 %v8231_v3  ;;  %v8232_v50 = vunpack.i.l.bf16 %v8231_v3  ;;  %v4301_v45 = vld [vmem:[#allocation2 + $0x107] sm:$0xff]  ;;  %v4430_v3 = vld [vmem:[#allocation2 + $0x130] sm:$0xff] }
 0x48d   : > { %v8236_v2 = vpop.permute.xlu0 %8235  ;;  %v5358_v43 = vsel %vm252_vm0, %v4302_v58, %v8228_v61  ;;  %v5357_v56 = vsel %vm252_vm0, %v4301_v45, %v8227_v54  ;;  %v4304_v61 = vld [vmem:[#allocation2 + $0x12f] sm:$0xff] }
 0x48e   : > { %v8238_v53 = vunpack.i.h.bf16 %v8236_v2  ;;  %v8237_v26 = vunpack.i.l.bf16 %v8236_v2  ;;  %v5389_v52 = vsel %vm1479_vm1, %v5357_v56, %v8232_v50  ;;  %v5390_v15 = vsel %vm1479_vm1, %v5358_v43, %v8233_v62  ;;  %v4431_v58 = vld [vmem:[#allocation2 + $0x148] sm:$0xff] }
 0x48f   : > { %v8251_v9 = vpop.permute.xlu1 %8250 }
 0x490   : > { %v5483_v14 = vsel %vm1479_vm1, %v5451_v6, %v8237_v26  ;;  %v5484_v13 = vsel %vm1479_vm1, %v5452_v63, %v8238_v53  ;;  %v8253_v4 = vunpack.i.h.bf16 %v8251_v9  ;;  %v8252_v19 = vunpack.i.l.bf16 %v8251_v9 }
 0x491   : > { %v8241_v47 = vpop.permute.xlu0 %8240 }
 0x492   : > { %v8243_v10 = vunpack.i.h.bf16 %v8241_v47  ;;  %v8242_v12 = vunpack.i.l.bf16 %v8241_v47  ;;  %v5421_v21 = vsel %vm1512_vm2, %v5389_v52, %v8252_v19  ;;  %v5422_v16 = vsel %vm1512_vm2, %v5390_v15, %v8253_v4 }
 0x493   : > { %v11238_v38 = vpop.permute.xlu1 %8255 }
 0x494   : > { %v5515_v40 = vsel %vm1512_vm2, %v5483_v14, %v8242_v12  ;;  %v5516_v39 = vsel %vm1512_vm2, %v5484_v13, %v8243_v10  ;;  %v5557_v10 = vpack.c.bf16 %v5422_v16, %v5421_v21  ;;  %v8258_v0 = vunpack.i.h.bf16 %v11238_v38 }
 0x495   : > { %v8246_v11 = vpop.permute.xlu0 %8245  ;;  %v5555_v51 = vpack.c.bf16 %v5516_v39, %v5515_v40  ;;  %v8257_v48 = vunpack.i.l.bf16 %v11238_v38 }
 0x496   : > { %v8248_v37 = vunpack.i.h.bf16 %v8246_v11  ;;  %v8247_v35 = vunpack.i.l.bf16 %v8246_v11 }
 0x497   : > { %v8261_v1 = vpop.permute.xlu1 %8260  ;;  %5861 = vmatprep.mubr.bf16.mxu1 %v5555_v51 }
 0x498   : > { %5862 = vmatmul.mubr.bf16.gmra.mxu1 %v5554_v46  ;;  %v5454_v17 = vsel %vm252_vm0, %v4430_v3, %v8248_v37  ;;  %v5453_v53 = vsel %vm252_vm0, %v4429_v28, %v8247_v35  ;;  %v8263_v14 = vunpack.i.h.bf16 %v8261_v1  ;;  %v8262_v13 = vunpack.i.l.bf16 %v8261_v1  ;;  %v4303_v46 = vld [vmem:[#allocation2 + $0x127] sm:$0xff]  ;;  %v4432_v1 = vld [vmem:[#allocation2 + $0x150] sm:$0xff] }
 0x499   : > { %v8266_v7 = vpop.permute.xlu0 %8265  ;;  %v5360_v37 = vsel %vm252_vm0, %v4304_v61, %v8258_v0  ;;  %v5359_v35 = vsel %vm252_vm0, %v4303_v46, %v8257_v48  ;;  %v4306_v0 = vld [vmem:[#allocation2 + $0x14f] sm:$0xff] }
 0x49a   : > { %v8268_v22 = vunpack.i.h.bf16 %v8266_v7  ;;  %v8267_v2 = vunpack.i.l.bf16 %v8266_v7  ;;  %v5391_v45 = vsel %vm1479_vm1, %v5359_v35, %v8262_v13  ;;  %v5392_v38 = vsel %vm1479_vm1, %v5360_v37, %v8263_v14  ;;  %v4433_v61 = vld [vmem:[#allocation2 + $0x168] sm:$0xff] }
 0x49b   : > { %v8281_v55 = vpop.permute.xlu1 %8280 }
 0x49c   : > { %v5485_v49 = vsel %vm1479_vm1, %v5453_v53, %v8267_v2  ;;  %v5486_v41 = vsel %vm1479_vm1, %v5454_v17, %v8268_v22  ;;  %v8283_v54 = vunpack.i.h.bf16 %v8281_v55  ;;  %v8282_v62 = vunpack.i.l.bf16 %v8281_v55 }
 0x49d   : > { %v8271_v24 = vpop.permute.xlu0 %8270 }
 0x49e   : > { %v8273_v26 = vunpack.i.h.bf16 %v8271_v24  ;;  %v8272_v27 = vunpack.i.l.bf16 %v8271_v24  ;;  %v5423_v56 = vsel %vm1512_vm2, %v5391_v45, %v8282_v62  ;;  %v5424_v52 = vsel %vm1512_vm2, %v5392_v38, %v8283_v54 }
 0x49f   : > { %v11254_v9 = vpop.permute.xlu1 %8285 }
 0x4a0   : > { %v5517_v29 = vsel %vm1512_vm2, %v5485_v49, %v8272_v27  ;;  %v5518_v47 = vsel %vm1512_vm2, %v5486_v41, %v8273_v26  ;;  %v5560_v26 = vpack.c.bf16 %v5424_v52, %v5423_v56  ;;  %v8288_v21 = vunpack.i.h.bf16 %v11254_v9 }
 0x4a1   : > { %v8276_v63 = vpop.permute.xlu0 %8275  ;;  %v5558_v6 = vpack.c.bf16 %v5518_v47, %v5517_v29  ;;  %v8287_v16 = vunpack.i.l.bf16 %v11254_v9 }
 0x4a2   : > { %v8278_v39 = vunpack.i.h.bf16 %v8276_v63  ;;  %v8277_v11 = vunpack.i.l.bf16 %v8276_v63 }
 0x4a3   : > { %v8291_v12 = vpop.permute.xlu1 %8290  ;;  %5869 = vmatprep.mubr.bf16.mxu1 %v5558_v6 }
 0x4a4   : > { %5870 = vmatmul.mubr.bf16.gmra.mxu1 %v5557_v10  ;;  %v5456_v19 = vsel %vm252_vm0, %v4432_v1, %v8278_v39  ;;  %v5455_v22 = vsel %vm252_vm0, %v4431_v58, %v8277_v11  ;;  %v8293_v49 = vunpack.i.h.bf16 %v8291_v12  ;;  %v8292_v41 = vunpack.i.l.bf16 %v8291_v12  ;;  %v4305_v10 = vld [vmem:[#allocation2 + $0x147] sm:$0xff]  ;;  %v4434_v12 = vld [vmem:[#allocation2 + $0x170] sm:$0xff] }
 0x4a5   : > { %v8296_v40 = vpop.permute.xlu0 %8295  ;;  %v5362_v39 = vsel %vm252_vm0, %v4306_v0, %v8288_v21  ;;  %v5361_v11 = vsel %vm252_vm0, %v4305_v10, %v8287_v16  ;;  %v4308_v21 = vld [vmem:[#allocation2 + $0x16f] sm:$0xff] }
 0x4a6   : > { %v8298_v50 = vunpack.i.h.bf16 %v8296_v40  ;;  %v8297_v7 = vunpack.i.l.bf16 %v8296_v40  ;;  %v5393_v46 = vsel %vm1479_vm1, %v5361_v11, %v8292_v41  ;;  %v5394_v9 = vsel %vm1479_vm1, %v5362_v39, %v8293_v49 }
 0x4a7   : > { %v8311_v51 = vpop.permute.xlu1 %8310 }
 0x4a8   : > { %v5487_v15 = vsel %vm1479_vm1, %v5455_v22, %v8297_v7  ;;  %v5488_v28 = vsel %vm1479_vm1, %v5456_v19, %v8298_v50  ;;  %v8313_v48 = vunpack.i.h.bf16 %v8311_v51  ;;  %v8312_v14 = vunpack.i.l.bf16 %v8311_v51 }
 0x4a9   : > { %v8301_v4 = vpop.permute.xlu0 %8300 }
 0x4aa   : > { %v8303_v2 = vunpack.i.h.bf16 %v8301_v4  ;;  %v8302_v43 = vunpack.i.l.bf16 %v8301_v4  ;;  %v5425_v35 = vsel %vm1512_vm2, %v5393_v46, %v8312_v14  ;;  %v5426_v45 = vsel %vm1512_vm2, %v5394_v9, %v8313_v48 }
 0x4ab   : > { %v11270_v55 = vpop.permute.xlu1 %8315 }
 0x4ac   : > { %v5519_v3 = vsel %vm1512_vm2, %v5487_v15, %v8302_v43  ;;  %v5520_v24 = vsel %vm1512_vm2, %v5488_v28, %v8303_v2  ;;  %v5563_v2 = vpack.c.bf16 %v5426_v45, %v5425_v35  ;;  %v8318_v56 = vunpack.i.h.bf16 %v11270_v55 }
 0x4ad   : > { %v8306_v17 = vpop.permute.xlu0 %8305  ;;  %v5561_v53 = vpack.c.bf16 %v5520_v24, %v5519_v3  ;;  %v8317_v52 = vunpack.i.l.bf16 %v11270_v55 }
 0x4ae   : > { %v8308_v47 = vunpack.i.h.bf16 %v8306_v17  ;;  %v8307_v63 = vunpack.i.l.bf16 %v8306_v17 }
 0x4af   : > { %v8321_v27 = vpop.permute.xlu1 %8320  ;;  %5877 = vmatprep.mubr.bf16.mxu1 %v5561_v53 }
 0x4b0   : > { %5878 = vmatmul.mubr.bf16.gmra.mxu1 %v5560_v26  ;;  %v5458_v62 = vsel %vm252_vm0, %v4434_v12, %v8308_v47  ;;  %v5457_v50 = vsel %vm252_vm0, %v4433_v61, %v8307_v63  ;;  %v8323_v15 = vunpack.i.h.bf16 %v8321_v27  ;;  %v8322_v28 = vunpack.i.l.bf16 %v8321_v27  ;;  %v4307_v26 = vld [vmem:[#allocation2 + $0x167] sm:$0xff] }
 0x4b1   : > { %v8326_v29 = vpop.permute.xlu0 %8325  ;;  %v5364_v47 = vsel %vm252_vm0, %v4308_v21, %v8318_v56  ;;  %v5363_v63 = vsel %vm252_vm0, %v4307_v26, %v8317_v52  ;;  %v8552_v52 = vld [vmem:[#allocation2 + $0x187] sm:$0xff] }
 0x4b2   : > { %v8328_v13 = vunpack.i.h.bf16 %v8326_v29  ;;  %v8327_v40 = vunpack.i.l.bf16 %v8326_v29  ;;  %v5395_v10 = vsel %vm1479_vm1, %v5363_v63, %v8322_v28  ;;  %v5396_v55 = vsel %vm1479_vm1, %v5364_v47, %v8323_v15 }
 0x4b3   : > { %v8341_v6 = vpop.permute.xlu1 %8340 }
 0x4b4   : > { %v5489_v38 = vsel %vm1479_vm1, %v5457_v50, %v8327_v40  ;;  %v5490_v58 = vsel %vm1479_vm1, %v5458_v62, %v8328_v13  ;;  %v8343_v16 = vunpack.i.h.bf16 %v8341_v6  ;;  %v8342_v49 = vunpack.i.l.bf16 %v8341_v6 }
 0x4b5   : > { %v8331_v54 = vpop.permute.xlu0 %8330 }
 0x4b6   : > { %v8333_v7 = vunpack.i.h.bf16 %v8331_v54  ;;  %v8332_v37 = vunpack.i.l.bf16 %v8331_v54  ;;  %v5427_v40 = vsel %vm1512_vm2, %v5395_v10, %v8342_v49  ;;  %v5428_v39 = vsel %vm1512_vm2, %v5396_v55, %v8343_v16 }
 0x4b7   : > { %v11286_v51 = vpop.permute.xlu1 %8345  ;;  %v5566_v54 = vpack.c.bf16 %v5428_v39, %v5427_v40 }
 0x4b8   : > { %v5521_v1 = vsel %vm1512_vm2, %v5489_v38, %v8332_v37  ;;  %v5522_v4 = vsel %vm1512_vm2, %v5490_v58, %v8333_v7  ;;  %v8348_v62 = vunpack.i.h.bf16 %v11286_v51  ;;  %v8347_v50 = vunpack.i.l.bf16 %v11286_v51 }
 0x4b9   : > { %v8336_v19 = vpop.permute.xlu0 %8335  ;;  %v5564_v22 = vpack.c.bf16 %v5522_v4, %v5521_v1 }
 0x4ba   : > { %v8338_v24 = vunpack.i.h.bf16 %v8336_v19  ;;  %v8337_v17 = vunpack.i.l.bf16 %v8336_v19  ;;  %v5365_v15 = vsel %vm252_vm0, %v8552_v52, %v8347_v50 }
 0x4bb   : > { %v8351_v43 = vpop.permute.xlu1 %8350  ;;  %5885 = vmatprep.mubr.bf16.mxu1 %v5564_v22 }
 0x4bc   : > { %5886 = vmatmul.mubr.bf16.gmra.mxu1 %v5563_v2  ;;  %v5460_v27 = vsel %vm252_vm0, %v10999_v31, %v8338_v24  ;;  %v5459_v48 = vsel %vm252_vm0, %v11009_v42, %v8337_v17  ;;  %v8353_v7 = vunpack.i.h.bf16 %v8351_v43  ;;  %v8352_v37 = vunpack.i.l.bf16 %v8351_v43  ;;  %v8551_v2 = vld [vmem:[#allocation2 + $0x18f] sm:$0xff] }
 0x4bd   : > { %v8356_v3 = vpop.permute.xlu0 %8355  ;;  %v5366_v56 = vsel %vm252_vm0, %v8551_v2, %v8348_v62 }
 0x4be   : > { %v8358_v41 = vunpack.i.h.bf16 %v8356_v3  ;;  %v8357_v29 = vunpack.i.l.bf16 %v8356_v3  ;;  %v5397_v28 = vsel %vm1479_vm1, %v5365_v15, %v8352_v37  ;;  %v5398_v51 = vsel %vm1479_vm1, %v5366_v56, %v8353_v7 }
 0x4bf   : > { %v8371_v53 = vpop.permute.xlu1 %8370 }
 0x4c0   : > { %v5491_v11 = vsel %vm1479_vm1, %v5459_v48, %v8357_v29  ;;  %v5492_v46 = vsel %vm1479_vm1, %v5460_v27, %v8358_v41  ;;  %v8373_v1 = vunpack.i.h.bf16 %v8371_v53  ;;  %v8372_v4 = vunpack.i.l.bf16 %v8371_v53 }
 0x4c1   : > { %v8361_v0 = vpop.permute.xlu0 %8360 }
 0x4c2   : > { %v8363_v14 = vunpack.i.h.bf16 %v8361_v0  ;;  %v8362_v13 = vunpack.i.l.bf16 %v8361_v0  ;;  %v5429_v21 = vsel %vm1512_vm2, %v5397_v28, %v8372_v4  ;;  %v5430_v16 = vsel %vm1512_vm2, %v5398_v51, %v8373_v1 }
 0x4c3   : > { %v11304_v6 = vpop.permute.xlu1 %8375  ;;  %v5569_v10 = vpack.c.bf16 %v5430_v16, %v5429_v21 }
 0x4c4   : > { %v5523_v9 = vsel %vm1512_vm2, %v5491_v11, %v8362_v13  ;;  %v5524_v61 = vsel %vm1512_vm2, %v5492_v46, %v8363_v14  ;;  %v8377_v0 = vunpack.i.l.bf16 %v11304_v6 }
 0x4c5   : > { %v8366_v31 = vpop.permute.xlu0 %8365  ;;  %v5567_v12 = vpack.c.bf16 %v5524_v61, %v5523_v9 }
 0x4c6   : > { %v8368_v45 = vunpack.i.h.bf16 %v8366_v31  ;;  %v8367_v38 = vunpack.i.l.bf16 %v8366_v31  ;;  %v8553_v31 = vld [vmem:[#allocation2 + $0x1af] sm:$0xff] }
 0x4c7   : > { %v8381_v42 = vpop.permute.xlu1 %8380  ;;  %5893 = vmatprep.mubr.bf16.mxu1 %v5567_v12 }
 0x4c8   : > { %5894 = vmatmul.mubr.bf16.gmra.mxu1 %v5566_v54  ;;  %v5462_v43 = vsel %vm252_vm0, %v11040_v20, %v8368_v45  ;;  %v5461_v24 = vsel %vm252_vm0, %v11050_v60, %v8367_v38  ;;  %v8378_v60 = vunpack.i.h.bf16 %v11304_v6  ;;  %v8383_v27 = vunpack.i.h.bf16 %v8381_v42 }
 0x4c9   : > { %v8386_v35 = vpop.permute.xlu0 %8385  ;;  %v8382_v48 = vunpack.i.l.bf16 %v8381_v42  ;;  %v5367_v54 = vsel %vm252_vm0, %v11031_v57, %v8377_v0 }
 0x4ca   : > { %v8388_v19 = vunpack.i.h.bf16 %v8386_v35  ;;  %v8387_v22 = vunpack.i.l.bf16 %v8386_v35  ;;  %v5368_v12 = vsel %vm252_vm0, %v8553_v31, %v8378_v60 }
 0x4cb   : > { %v8401_v58 = vpop.permute.xlu1 %8400  ;;  %v5399_v62 = vsel %vm1479_vm1, %v5367_v54, %v8382_v48  ;;  %v5400_v6 = vsel %vm1479_vm1, %v5368_v12, %v8383_v27 }
 0x4cc   : > { %v5493_v49 = vsel %vm1479_vm1, %v5461_v24, %v8387_v22  ;;  %v5494_v41 = vsel %vm1479_vm1, %v5462_v43, %v8388_v19  ;;  %v8403_v11 = vunpack.i.h.bf16 %v8401_v58  ;;  %v8402_v46 = vunpack.i.l.bf16 %v8401_v58 }
 0x4cd   : > { %v8391_v3 = vpop.permute.xlu0 %8390 }
 0x4ce   : > { %v8393_v17 = vunpack.i.h.bf16 %v8391_v3  ;;  %v8392_v53 = vunpack.i.l.bf16 %v8391_v3  ;;  %v5431_v45 = vsel %vm1512_vm2, %v5399_v62, %v8402_v46  ;;  %v5432_v38 = vsel %vm1512_vm2, %v5400_v6, %v8403_v11 }
 0x4cf   : > { %v8406_v26 = vpop.permute.xlu1 %8405  ;;  %v5572_v2 = vpack.c.bf16 %v5432_v38, %v5431_v45  ;;  %v8003_v62 = vunpack.i.h.bf16 %v10952_v36  ;;  %v8002_v6 = vunpack.i.l.bf16 %v10952_v36 }
 0x4d0   : > { %v5525_v29 = vsel %vm1512_vm2, %v5493_v49, %v8392_v53  ;;  %v5526_v47 = vsel %vm1512_vm2, %v5494_v41, %v8393_v17  ;;  %v8408_v56 = vunpack.i.h.bf16 %v8406_v26 }
 0x4d1   : > { %v8396_v63 = vpop.permute.xlu0 %8395  ;;  %v5570_v20 = vpack.c.bf16 %v5526_v47, %v5525_v29 }
 0x4d2   : > { %v8398_v13 = vunpack.i.h.bf16 %v8396_v63  ;;  %v8397_v40 = vunpack.i.l.bf16 %v8396_v63  ;;  %v5370_v53 = vsel %vm252_vm0, %v11066_v8, %v8408_v56 }
 0x4d3   : > { %v8411_v55 = vpop.permute.xlu1 %8410  ;;  %5901 = vmatprep.mubr.bf16.mxu1 %v5570_v20 }
 0x4d4   : > { %5902 = vmatmul.mubr.bf16.gmra.mxu1 %v5569_v10  ;;  %v5464_v42 = vsel %vm252_vm0, %v11084_v59, %v8398_v13  ;;  %v5463_v7 = vsel %vm252_vm0, %v11092_v25, %v8397_v40  ;;  %v8407_v25 = vunpack.i.l.bf16 %v8406_v26  ;;  %v8413_v52 = vunpack.i.h.bf16 %v8411_v55 }
 0x4d5   : > { %v8416_v14 = vpop.permute.xlu0 %8415  ;;  %v8412_v15 = vunpack.i.l.bf16 %v8411_v55 }
 0x4d6   : > { %v8418_v9 = vunpack.i.h.bf16 %v8416_v14  ;;  %v8417_v61 = vunpack.i.l.bf16 %v8416_v14  ;;  %v5369_v21 = vsel %vm252_vm0, %v11074_v5, %v8407_v25  ;;  %v5402_v41 = vsel %vm1479_vm1, %v5370_v53, %v8413_v52 }
 0x4d7   : > { %v8431_v39 = vpop.permute.xlu1 %8430  ;;  %v5401_v26 = vsel %vm1479_vm1, %v5369_v21, %v8412_v15 }
 0x4d8   : > { %v5495_v58 = vsel %vm1479_vm1, %v5463_v7, %v8417_v61  ;;  %v5496_v57 = vsel %vm1479_vm1, %v5464_v42, %v8418_v9  ;;  %v8433_v28 = vunpack.i.h.bf16 %v8431_v39  ;;  %v8432_v51 = vunpack.i.l.bf16 %v8431_v39 }
 0x4d9   : > { %v8421_v50 = vpop.permute.xlu0 %8420 }
 0x4da   : > { %v8423_v37 = vunpack.i.h.bf16 %v8421_v50  ;;  %v8422_v35 = vunpack.i.l.bf16 %v8421_v50  ;;  %v5433_v29 = vsel %vm1512_vm2, %v5401_v26, %v8432_v51  ;;  %v5434_v47 = vsel %vm1512_vm2, %v5402_v41, %v8433_v28 }
 0x4db   : > { %v8436_v1 = vpop.permute.xlu1 %8435  ;;  %v5575_v14 = vpack.c.bf16 %v5434_v47, %v5433_v29 }
 0x4dc   : > { %v5527_v4 = vsel %vm1512_vm2, %v5495_v58, %v8422_v35  ;;  %v5528_v19 = vsel %vm1512_vm2, %v5496_v57, %v8423_v37  ;;  %v8438_v13 = vunpack.i.h.bf16 %v8436_v1  ;;  %v8437_v40 = vunpack.i.l.bf16 %v8436_v1 }
 0x4dd   : > { %v8426_v22 = vpop.permute.xlu0 %8425  ;;  %v5573_v59 = vpack.c.bf16 %v5528_v19, %v5527_v4 }
 0x4de   : > { %v8428_v43 = vunpack.i.h.bf16 %v8426_v22  ;;  %v8427_v24 = vunpack.i.l.bf16 %v8426_v22  ;;  %v5372_v50 = vsel %vm252_vm0, %v11110_v34, %v8438_v13  ;;  %v5371_v42 = vsel %vm252_vm0, %v11118_v44, %v8437_v40 }
 0x4df   : > { %5909 = vmatprep.mubr.bf16.mxu1 %v5573_v59  ;;  %v8441_v17 = vpop.permute.xlu1 %8440 }
 0x4e0   : > { %5910 = vmatmul.mubr.bf16.gmra.mxu1 %v5572_v2  ;;  %v5466_v20 = vsel %vm252_vm0, %v11128_v32, %v8428_v43  ;;  %v5465_v8 = vsel %vm252_vm0, %v11136_v33, %v8427_v24  ;;  %v8443_v32 = vunpack.i.h.bf16 %v8441_v17  ;;  %v8442_v46 = vunpack.i.l.bf16 %v8441_v17 }
 0x4e1   : > { %v8446_v3 = vpop.permute.xlu0 %8445 }
 0x4e2   : > { %v8448_v16 = vunpack.i.h.bf16 %v8446_v3  ;;  %v8447_v49 = vunpack.i.l.bf16 %v8446_v3  ;;  %v5403_v37 = vsel %vm1479_vm1, %v5371_v42, %v8442_v46  ;;  %v5404_v35 = vsel %vm1479_vm1, %v5372_v50, %v8443_v32 }
 0x4e3   : > { %v8466_v0 = vpop.permute.xlu1 %8465 }
 0x4e4   : > { %v5497_v5 = vsel %vm1479_vm1, %v5465_v8, %v8447_v49  ;;  %v5498_v60 = vsel %vm1479_vm1, %v5466_v20, %v8448_v16  ;;  %v8468_v61 = vunpack.i.h.bf16 %v8466_v0  ;;  %v8467_v31 = vunpack.i.l.bf16 %v8466_v0 }
 0x4e5   : > { %v8451_v63 = vpop.permute.xlu0 %8450 }
 0x4e6   : > { %v8453_v10 = vunpack.i.h.bf16 %v8451_v63  ;;  %v8452_v55 = vunpack.i.l.bf16 %v8451_v63  ;;  %v5436_v38 = vsel %vm1512_vm2, %v5404_v35, %v8468_v61  ;;  %v6952_v63 = vpop.f32.mrf.mxu0 }
 0x4e8   : > { %v5529_v27 = vsel %vm1512_vm2, %v5497_v5, %v8452_v55  ;;  %v5530_v48 = vsel %vm1512_vm2, %v5498_v60, %v8453_v10  ;;  %v5968_v8 = vpop.f32.mrf.mxu0 }
 0x4e9   : > { %v8456_v39 = vpop.permute.xlu0 %8455  ;;  %v5576_v11 = vpack.c.bf16 %v5530_v48, %v5529_v27 }
 0x4ea   : > { %v8458_v9 = vunpack.i.h.bf16 %v8456_v39  ;;  %v8457_v33 = vunpack.i.l.bf16 %v8456_v39  ;;  %v6953_v55 = vpop.f32.mrf.mxu0 }
 0x4eb   : > { %5917 = vmatprep.mubr.bf16.mxu1 %v5576_v11 }
 0x4ec   : > { %v5468_v12 = vsel %vm252_vm0, %v11166_v18, %v8458_v9  ;;  %v5467_v54 = vsel %vm252_vm0, %v11175_v30, %v8457_v33  ;;  %5918 = vmatmul.mubr.bf16.gmra.mxu1 %v5575_v14  ;;  %v5435_v30 = vsel %vm1512_vm2, %v5403_v37, %v8467_v31  ;;  %v5971_v0 = vpop.f32.mrf.mxu0 }
 0x4ed   : > { %v8461_v7 = vpop.permute.xlu0 %8460  ;;  %v5499_v58 = vsel %vm1479_vm1, %v5467_v54, %v8002_v6  ;;  %v5500_v36 = vsel %vm1479_vm1, %v5468_v12, %v8003_v62  ;;  %v5578_v1 = vpack.c.bf16 %v5436_v38, %v5435_v30 }
 0x4ee   : > { %v8463_v18 = vunpack.i.h.bf16 %v8461_v7  ;;  %v8462_v45 = vunpack.i.l.bf16 %v8461_v7  ;;  %v6956_v27 = vpop.f32.mrf.mxu0 }
 0x4f0   : > { %v5531_v34 = vsel %vm1512_vm2, %v5499_v58, %v8462_v45  ;;  %v5532_v57 = vsel %vm1512_vm2, %v5500_v36, %v8463_v18  ;;  %v5984_v14 = vpop.f32.mrf.mxu0  ;;  %v6097_v18 = vsub.s32 2, %v11890_v23 }
 0x4f1   : > { %v5579_v44 = vpack.c.bf16 %v5532_v57, %v5531_v34  ;;  %v8554_v57 = vld [vmem:[%s11726_s4] sm:$0x7] }
 0x4f2   : > { %v6957_v39 = vpop.f32.mrf.mxu0 }
 0x4f3   : > { %5925 = vmatprep.mubr.bf16.mxu1 %v5579_v44  ;;  %v11441_v44 = vrot.slane %v8554_v57, %v6097_v18 }
 0x4f4   : > { %5926 = vmatmul.mubr.bf16.gmra.mxu1 %v5578_v1  ;;  %v5987_v32 = vpop.f32.mrf.mxu0 }
 0x4f6   : > { %v11413_v9 = vpop.f32.mrf.mxu0 }
 0x4f8   : > { %v6000_v61 = vpop.f32.mrf.mxu0 }
 0x4fa   : > { %v11421_v54 = vpop.f32.mrf.mxu0 }
 0x4fc   : > { %v6003_v6 = vpop.f32.mrf.mxu0 }
 0x4fe   : > { %v11425_v50 = vpop.f32.mrf.mxu0 }
 0x500   : > { %v11431_v35 = vpop.f32.mrf.mxu0 }
 0x502   : > { %v11436_v36 = vpop.f32.mrf.mxu0 }
 0x504   : > { %v6760_v4 = vpop.f32.mrf.mxu1 }
 0x506   : > { %v6761_v19 = vpop.f32.mrf.mxu1 }
 0x507   : > { %v6762_v22 = vadd.f32 %v6761_v19, %v6760_v4 }
 0x508   : > { %v6763_v59 = vpop.f32.mrf.mxu1 }
 0x509   : > { %v5969_v34 = vadd.f32 %v6762_v22, %v5968_v8  ;;  %v8555_v22 = vld [vmem:[%s11727_s5] sm:$0x7] }
 0x50a   : > { %v6764_v2 = vpop.f32.mrf.mxu1 }
 0x50b   : > { %v6765_v37 = vadd.f32 %v6764_v2, %v6763_v59 }
 0x50d   : > { %v5972_v58 = vadd.f32 %v6765_v37, %v5971_v0 }
 0x50f   : > { %v6100_v23 = vmul.f32 %v11441_v44, %v5972_v58 }
 0x510   : > { %v6766_v56 = vpop.f32.mrf.mxu1 }
 0x512   : > { %v6767_v25 = vpop.f32.mrf.mxu1 }
 0x513   : > { %v6768_v45 = vadd.f32 %v6767_v25, %v6766_v56  ;;  %v11446_v56 = vpop.f32.mrf.mxu0  ;;  %v6099_v25 = vmul.f32 %v11441_v44, %v5969_v34 }
 0x514   : > { %v6769_v52 = vpop.f32.mrf.mxu1 }
 0x515   : > { %v5977_v1 = vadd.f32 %v6952_v63, %v6768_v45  ;;  %v11457_v8 = vpop.f32.mrf.mxu0 }
 0x516   : > { %v6770_v15 = vpop.f32.mrf.mxu1 }
 0x517   : > { %v6771_v38 = vadd.f32 %v6770_v15, %v6769_v52  ;;  %v11452_v52 = vrot.slane %v8555_v22, %v6097_v18  ;;  %v6101_v15 = vmul.f32 %v11441_v44, %v5977_v1  ;;  %v11472_v58 = vpop.f32.mrf.mxu0 }
 0x519   : > { %v5980_v59 = vadd.f32 %v6953_v55, %v6771_v38  ;;  %v6136_v55 = vadd.f32 %v11452_v52, %v6100_v23  ;;  %v6135_v18 = vadd.f32 %v11452_v52, %v6099_v25  ;;  %v6137_v45 = vadd.f32 %v11452_v52, %v6101_v15 }
 0x51c   : > { %v6772_v28 = vpop.f32.mrf.mxu1 }
 0x51e   : > { %v6773_v51 = vpop.f32.mrf.mxu1 }
 0x51f   : > { %v6774_v4 = vadd.f32 %v6773_v51, %v6772_v28 }
 0x520   : > { %v6775_v3 = vpop.f32.mrf.mxu1 }
 0x521   : > { %v5985_v63 = vadd.f32 %v6774_v4, %v5984_v14 }
 0x522   : > { %v6776_v43 = vpop.f32.mrf.mxu1 }
 0x523   : > { %v6777_v2 = vadd.f32 %v6776_v43, %v6775_v3  ;;  %v6102_v3 = vmul.f32 %v11441_v44, %v5980_v59  ;;  %v6103_v14 = vmul.f32 %v11441_v44, %v5985_v63  ;;  %v11893_v59 = vld [vmem:[#allocation32_spill] sm:$0xff] }
 0x524   : > { %v11894_v23 = vmax.f32 %v11893_v59, 0.0  ;;  %v11901_v59 = vld [vmem:[#allocation38_spill] sm:$0xff] }
 0x525   : > { %v5988_v0 = vadd.f32 %v6777_v2, %v5987_v32  ;;  %v6138_v34 = vadd.f32 %v11452_v52, %v6102_v3 }
 0x526   : > { %v6167_v2 = vadd.f32 %v6135_v18, %v11894_v23  ;;  %v11902_v23 = vmax.f32 %v11901_v59, 0.0 }
 0x527   : > { %v6104_v1 = vmul.f32 %v11441_v44, %v5988_v0 }
 0x528   : > { %v6778_v24 = vpop.f32.mrf.mxu1 }
 0x52a   : > { %v6779_v17 = vpop.f32.mrf.mxu1 }
 0x52b   : > { %v6780_v51 = vadd.f32 %v6779_v17, %v6778_v24 }
 0x52c   : > { %v11379_v53 = vpop.f32.mrf.mxu1 }
 0x52d   : > { %v5993_v24 = vadd.f32 %v6956_v27, %v6780_v51  ;;  %v11895_v27 = vld [vmem:[#allocation31_spill] sm:$0xff]  ;;  %v11897_v51 = vld [vmem:[#allocation33_spill] sm:$0xff] }
 0x52e   : > { %v11381_v21 = vpop.f32.mrf.mxu1  ;;  %v11896_v25 = vmax.f32 %v11895_v27, 0.0 }
 0x52f   : > { %v6783_v37 = vadd.f32 %v11381_v21, %v11379_v53  ;;  %v11891_v53 = vld [vmem:[#allocation34_spill] sm:$0xff]  ;;  %v6105_v15 = vmul.f32 %v11441_v44, %v5993_v24 }
 0x530   : > { %v11892_v21 = vmax.f32 %v11891_v53, 0.0  ;;  %v6169_v22 = vadd.f32 %v6137_v45, %v11896_v25 }
 0x531   : > { %v5996_v4 = vadd.f32 %v6957_v39, %v6783_v37  ;;  %v11898_v39 = vmax.f32 %v11897_v51, 0.0  ;;  %v6140_v37 = vadd.f32 %v11452_v52, %v6104_v1 }
 0x532   : > { %v6168_v57 = vadd.f32 %v6136_v55, %v11892_v21  ;;  %v6201_v24 = vmax.f32 %v6169_v22, 0.0 }
 0x533   : > { %v6170_v3 = vadd.f32 %v6138_v34, %v11898_v39  ;;  %v6106_v18 = vmul.f32 %v11441_v44, %v5996_v4 }
 0x534   : > { %v11383_v16 = vpop.f32.mrf.mxu1  ;;  %v6200_v0 = vmax.f32 %v6168_v57, 0.0 }
 0x535   : > { %v6202_v57 = vmax.f32 %v6170_v3, 0.0  ;;  %v6142_v27 = vadd.f32 %v11452_v52, %v6106_v18 }
 0x536   : > { %v11385_v49 = vpop.f32.mrf.mxu1  ;;  %v6232_v4 = vsel %vm252_vm0, %v6200_v0, 0.0 }
 0x537   : > { %v6786_v17 = vadd.f32 %v11385_v49, %v11383_v16  ;;  %v6139_v16 = vadd.f32 %v11452_v52, %v6103_v14  ;;  %v6199_v14 = vmax.f32 %v6167_v2, 0.0  ;;  %v6172_v2 = vadd.f32 %v6140_v37, %v11902_v23 }
 0x538   : > { %v11387_v26 = vpop.f32.mrf.mxu1  ;;  %v6236_v3 = vsel %vm252_vm0, %v6202_v57, 0.0 }
 0x539   : > { %v6001_v63 = vadd.f32 %v6786_v17, %v6000_v61  ;;  %v11899_v61 = vld [vmem:[#allocation36_spill] sm:$0xff]  ;;  %v6204_v37 = vmax.f32 %v6172_v2, 0.0 }
 0x53a   : > { %v11389_v41 = vpop.f32.mrf.mxu1  ;;  %v11900_v17 = vmax.f32 %v11899_v61, 0.0 }
 0x53b   : > { %v6789_v32 = vadd.f32 %v11389_v41, %v11387_v26  ;;  %v11490_v41 = vpop.f32.mrf.mxu0  ;;  %v6107_v34 = vmul.f32 %v11441_v44, %v6001_v63 }
 0x53c   : > { %v6171_v53 = vadd.f32 %v6139_v16, %v11900_v17  ;;  %v11903_v16 = vld [vmem:[#allocation35_spill] sm:$0xff] }
 0x53d   : > { %v6004_v55 = vadd.f32 %v6789_v32, %v6003_v6  ;;  %v6035_v21 = vpop.f32.mrf.mxu0 }
 0x53e   : > { %v6203_v22 = vmax.f32 %v6171_v53, 0.0 }
 0x53f   : > { %v11517_v25 = vpop.f32.mrf.mxu0 }
 0x540   : > { %v11391_v29 = vpop.f32.mrf.mxu1 }
 0x542   : > { %v11393_v47 = vpop.f32.mrf.mxu1 }
 0x543   : > { %v6792_v26 = vadd.f32 %v11393_v47, %v11391_v29  ;;  %v6141_v47 = vadd.f32 %v11452_v52, %v6105_v15  ;;  %v11904_v15 = vmax.f32 %v11903_v16, 0.0  ;;  %v11911_v16 = vld [vmem:[#allocation9_spill] sm:$0xff] }
 0x544   : > { %v11395_v20 = vpop.f32.mrf.mxu1 }
 0x545   : > { %v6009_v6 = vadd.f32 %v11413_v9, %v6792_v26  ;;  %v6173_v63 = vadd.f32 %v6141_v47, %v11904_v15  ;;  %v6143_v26 = vadd.f32 %v11452_v52, %v6107_v34  ;;  %v11907_v34 = vld [vmem:[#allocation7_spill] sm:$0xff]  ;;  %v11912_v15 = vmax.f32 %v11911_v16, 0.0  ;;  %v11921_v16 = vld [vmem:[#allocation14_spill] sm:$0xff] }
 0x546   : > { %v11397_v10 = vpop.f32.mrf.mxu1 }
 0x547   : > { %v6795_v45 = vadd.f32 %v11397_v10, %v11395_v20  ;;  %v6108_v20 = vmul.f32 %v11441_v44, %v6004_v55  ;;  %v6109_v51 = vmul.f32 %v11441_v44, %v6009_v6  ;;  %v6205_v47 = vmax.f32 %v6173_v63, 0.0 }
 0x548   : > { %v11908_v6 = vmax.f32 %v11907_v34, 0.0 }
 0x549   : > { %v6012_v9 = vadd.f32 %v11421_v54, %v6795_v45  ;;  %v6144_v55 = vadd.f32 %v11452_v52, %v6108_v20  ;;  %v6145_v57 = vadd.f32 %v11452_v52, %v6109_v51  ;;  %v11909_v20 = vld [vmem:[#allocation8_spill] sm:$0xff] }
 0x54b   : > { %v6110_v45 = vmul.f32 %v11441_v44, %v6012_v9  ;;  %v6177_v63 = vadd.f32 %v6145_v57, %v11912_v15  ;;  %v11922_v15 = vmax.f32 %v11921_v16, 0.0 }
 0x54c   : > { %v11399_v5 = vpop.f32.mrf.mxu1 }
 0x54d   : > { %v6146_v23 = vadd.f32 %v11452_v52, %v6110_v45 }
 0x54e   : > { %v11401_v60 = vpop.f32.mrf.mxu1 }
 0x54f   : > { %v6798_v32 = vadd.f32 %v11401_v60, %v11399_v5  ;;  %v6231_v5 = vsel %vm252_vm0, %v6199_v14, 0.0  ;;  %v6234_v60 = vsel %vm252_vm0, %v6201_v24, 0.0  ;;  %v11538_v24 = vpop.f32.mrf.mxu0 }
 0x550   : > { %v11403_v48 = vpop.f32.mrf.mxu1  ;;  %v6233_v39 = vadd.f32 %v6232_v4, %v6231_v5 }
 0x551   : > { %v6017_v54 = vadd.f32 %v6798_v32, %v11431_v35  ;;  %v6238_v35 = vsel %vm252_vm0, %v6203_v22, 0.0  ;;  %v6175_v32 = vadd.f32 %v6143_v26, %v11908_v6 }
 0x552   : > { %v11405_v13 = vpop.f32.mrf.mxu1  ;;  %v6235_v61 = vadd.f32 %v6234_v60, %v6233_v39 }
 0x553   : > { %v6801_v10 = vadd.f32 %v11405_v13, %v11403_v48 }
 0x555   : > { %v6020_v0 = vadd.f32 %v6801_v10, %v11446_v56  ;;  %v11910_v10 = vmax.f32 %v11909_v20, 0.0 }
 0x557   : > { %v6176_v4 = vadd.f32 %v6144_v55, %v11910_v10  ;;  %v6112_v59 = vmul.f32 %v11441_v44, %v6020_v0  ;;  %v11913_v55 = vld [vmem:[#allocation10_spill] sm:$0xff] }
 0x558   : > { %v11407_v40 = vpop.f32.mrf.mxu1  ;;  %v11914_v0 = vmax.f32 %v11913_v55, 0.0 }
 0x559   : > { %v6208_v51 = vmax.f32 %v6176_v4, 0.0 }
 0x55a   : > { %v11409_v11 = vpop.f32.mrf.mxu1 }
 0x55b   : > { %v6804_v48 = vadd.f32 %v11409_v11, %v11407_v40  ;;  %v11905_v40 = vld [vmem:[#allocation37_spill] sm:$0xff] }
 0x55c   : > { %v11411_v46 = vpop.f32.mrf.mxu1  ;;  %v11906_v11 = vmax.f32 %v11905_v40, 0.0 }
 0x55d   : > { %v6025_v17 = vadd.f32 %v11425_v50, %v6804_v48 }
 0x55e   : > { %v11415_v33 = vpop.f32.mrf.mxu1  ;;  %v6174_v18 = vadd.f32 %v6142_v27, %v11906_v11  ;;  %v11558_v27 = vpop.f32.mrf.mxu0 }
 0x55f   : > { %v6807_v14 = vadd.f32 %v11415_v33, %v11411_v46  ;;  %v6111_v46 = vmul.f32 %v11441_v44, %v6017_v54  ;;  %v6237_v33 = vadd.f32 %v6236_v3, %v6235_v61  ;;  %v6113_v5 = vmul.f32 %v11441_v44, %v6025_v17  ;;  %v11915_v17 = vld [vmem:[#allocation11_spill] sm:$0xff] }
 0x560   : > { %v6148_v54 = vadd.f32 %v11452_v52, %v6112_v59  ;;  %v6051_v40 = vpop.f32.mrf.mxu0 }
 0x561   : > { %v6028_v2 = vadd.f32 %v11436_v36, %v6807_v14  ;;  %v6239_v9 = vadd.f32 %v6238_v35, %v6237_v33  ;;  %v6147_v26 = vadd.f32 %v11452_v52, %v6111_v46  ;;  %v6209_v35 = vmax.f32 %v6177_v63, 0.0 }
 0x562   : > { %v11583_v6 = vpop.f32.mrf.mxu0 }
 0x564   : > { %v11417_v31 = vpop.f32.mrf.mxu1 }
 0x566   : > { %v11419_v12 = vpop.f32.mrf.mxu1 }
 0x567   : > { %v6810_v53 = vadd.f32 %v11419_v12, %v11417_v31  ;;  %v6240_v31 = vsel %vm252_vm0, %v6204_v37, 0.0  ;;  %v6206_v12 = vmax.f32 %v6174_v18, 0.0  ;;  %v6149_v18 = vadd.f32 %v11452_v52, %v6113_v5 }
 0x568   : > { %v11423_v62 = vpop.f32.mrf.mxu1  ;;  %v6241_v36 = vadd.f32 %v6240_v31, %v6239_v9 }
 0x569   : > { %v6033_v60 = vadd.f32 %v6810_v53, %v11472_v58  ;;  %v6244_v58 = vsel %vm252_vm0, %v6206_v12, 0.0  ;;  %v11916_v53 = vmax.f32 %v11915_v17, 0.0 }
 0x56a   : > { %v11427_v42 = vpop.f32.mrf.mxu1 }
 0x56b   : > { %v6813_v50 = vadd.f32 %v11427_v42, %v11423_v62  ;;  %v6242_v62 = vsel %vm252_vm0, %v6205_v47, 0.0  ;;  %v6207_v42 = vmax.f32 %v6175_v32, 0.0  ;;  %v6115_v45 = vmul.f32 %v11441_v44, %v6033_v60  ;;  %v11917_v32 = vld [vmem:[#allocation12_spill] sm:$0xff]  ;;  %v6064_v60 = vpop.f32.mrf.mxu0 }
 0x56c   : > { %v6243_v11 = vadd.f32 %v6242_v62, %v6241_v36  ;;  %v6179_v47 = vadd.f32 %v6147_v26, %v11916_v53  ;;  %v11918_v57 = vmax.f32 %v11917_v32, 0.0 }
 0x56d   : > { %v6036_v39 = vadd.f32 %v6813_v50, %v6035_v21  ;;  %v6246_v61 = vsel %vm252_vm0, %v6207_v42, 0.0  ;;  %v6151_v31 = vadd.f32 %v11452_v52, %v6115_v45 }
 0x56e   : > { %v6180_v46 = vadd.f32 %v6148_v54, %v11918_v57  ;;  %v6211_v9 = vmax.f32 %v6179_v47, 0.0  ;;  %v11923_v54 = vld [vmem:[#allocation15_spill] sm:$0xff] }
 0x570   : > { %v11429_v7 = vpop.f32.mrf.mxu1  ;;  %v6254_v55 = vsel %vm252_vm0, %v6211_v9, 0.0 }
 0x572   : > { %v11434_v30 = vpop.f32.mrf.mxu1 }
 0x573   : > { %v6816_v22 = vadd.f32 %v11434_v30, %v11429_v7  ;;  %v6178_v7 = vadd.f32 %v6146_v23, %v11914_v0  ;;  %v6114_v30 = vmul.f32 %v11441_v44, %v6028_v2  ;;  %v6250_v2 = vsel %vm252_vm0, %v6209_v35, 0.0 }
 0x574   : > { %v11443_v19 = vpop.f32.mrf.mxu1 }
 0x575   : > { %v6041_v14 = vadd.f32 %v11457_v8, %v6816_v22  ;;  %v6116_v8 = vmul.f32 %v11441_v44, %v6036_v39  ;;  %v6210_v33 = vmax.f32 %v6178_v7, 0.0  ;;  %v6150_v20 = vadd.f32 %v11452_v52, %v6114_v30  ;;  %v6977_v7 = vpop.f32.mrf.mxu0 }
 0x576   : > { %v11455_v28 = vpop.f32.mrf.mxu1  ;;  %v11924_v39 = vmax.f32 %v11923_v54, 0.0 }
 0x577   : > { %v6819_v37 = vadd.f32 %v11455_v28, %v11443_v19  ;;  %v6245_v19 = vadd.f32 %v6244_v58, %v6243_v11  ;;  %v6248_v28 = vsel %vm252_vm0, %v6208_v51, 0.0  ;;  %v6117_v12 = vmul.f32 %v11441_v44, %v6041_v14 }
 0x578   : > { %v6252_v42 = vsel %vm252_vm0, %v6210_v33, 0.0  ;;  %v6182_v63 = vadd.f32 %v6150_v20, %v11922_v15 }
 0x579   : > { %v6044_v10 = vadd.f32 %v11490_v41, %v6819_v37  ;;  %v6247_v59 = vadd.f32 %v6246_v61, %v6245_v19 }
 0x57a   : > { %v6214_v61 = vmax.f32 %v6182_v63, 0.0 }
 0x57b   : > { %v6249_v22 = vadd.f32 %v6248_v28, %v6247_v59  ;;  %v6118_v26 = vmul.f32 %v11441_v44, %v6044_v10 }
 0x57c   : > { %v11460_v43 = vpop.f32.mrf.mxu1  ;;  %v6260_v59 = vsel %vm252_vm0, %v6214_v61, 0.0 }
 0x57d   : > { %v6251_v51 = vadd.f32 %v6250_v2, %v6249_v22  ;;  %v6154_v35 = vadd.f32 %v11452_v52, %v6118_v26 }
 0x57e   : > { %v11468_v38 = vpop.f32.mrf.mxu1 }
 0x57f   : > { %v6822_v34 = vadd.f32 %v11468_v38, %v11460_v43  ;;  %v11919_v43 = vld [vmem:[#allocation13_spill] sm:$0xff]  ;;  %v6253_v30 = vadd.f32 %v6252_v42, %v6251_v51  ;;  %v11933_v51 = vld [vmem:[#allocation20_spill] sm:$0xff] }
 0x580   : > { %v11485_v49 = vpop.f32.mrf.mxu1  ;;  %v11920_v38 = vmax.f32 %v11919_v43, 0.0  ;;  %v11929_v43 = vld [vmem:[#allocation18_spill] sm:$0xff] }
 0x581   : > { %v6049_v5 = vadd.f32 %v6822_v34, %v11538_v24  ;;  %v6255_v47 = vadd.f32 %v6254_v55, %v6253_v30 }
 0x582   : > { %v11500_v29 = vpop.f32.mrf.mxu1  ;;  %v6181_v50 = vadd.f32 %v6149_v18, %v11920_v38  ;;  %v11930_v38 = vmax.f32 %v11929_v43, 0.0 }
 0x583   : > { %v6825_v4 = vadd.f32 %v11500_v29, %v11485_v49  ;;  %v6212_v49 = vmax.f32 %v6180_v46, 0.0  ;;  %v6152_v29 = vadd.f32 %v11452_v52, %v6116_v8  ;;  %v6067_v8 = vpop.f32.mrf.mxu0 }
 0x584   : > { %v6213_v24 = vmax.f32 %v6181_v50, 0.0  ;;  %v6186_v50 = vadd.f32 %v6154_v35, %v11930_v38 }
 0x585   : > { %v6052_v36 = vadd.f32 %v6825_v4, %v6051_v40  ;;  %v6256_v37 = vsel %vm252_vm0, %v6212_v49, 0.0  ;;  %v11925_v40 = vld [vmem:[#allocation16_spill] sm:$0xff]  ;;  %v6980_v26 = vpop.f32.mrf.mxu0 }
 0x586   : > { %v11926_v11 = vmax.f32 %v11925_v40, 0.0  ;;  %v6257_v33 = vadd.f32 %v6256_v37, %v6255_v47  ;;  %v11937_v40 = vld [vmem:[#allocation22_spill] sm:$0xff] }
 0x587   : > { %v6120_v17 = vmul.f32 %v11441_v44, %v6052_v36  ;;  %v6218_v36 = vmax.f32 %v6186_v50, 0.0  ;;  %v11943_v50 = vld [vmem:[#allocation25_spill] sm:$0xff] }
 0x588   : > { %v11510_v1 = vpop.f32.mrf.mxu1  ;;  %v6184_v18 = vadd.f32 %v6152_v29, %v11926_v11  ;;  %v11938_v11 = vmax.f32 %v11937_v40, 0.0 }
 0x589   : > { %v6268_v61 = vsel %vm252_vm0, %v6218_v36, 0.0 }
 0x58a   : > { %v11523_v13 = vpop.f32.mrf.mxu1  ;;  %v6216_v20 = vmax.f32 %v6184_v18, 0.0 }
 0x58b   : > { %v6828_v41 = vadd.f32 %v11523_v13, %v11510_v1  ;;  %v6183_v1 = vadd.f32 %v6151_v31, %v11924_v39  ;;  %v6153_v13 = vadd.f32 %v11452_v52, %v6117_v12  ;;  %v6156_v31 = vadd.f32 %v11452_v52, %v6120_v17 }
 0x58c   : > { %v11544_v56 = vpop.f32.mrf.mxu1  ;;  %v6264_v15 = vsel %vm252_vm0, %v6216_v20, 0.0  ;;  %v11941_v20 = vld [vmem:[#allocation24_spill] sm:$0xff] }
 0x58e   : > { %v6830_v48 = vpop.f32.mrf.mxu1 }
 0x58f   : > { %v6831_v62 = vadd.f32 %v6830_v48, %v11544_v56  ;;  %v6119_v56 = vmul.f32 %v11441_v44, %v6049_v5  ;;  %v6057_v48 = vadd.f32 %v11517_v25, %v6828_v41  ;;  %v6258_v25 = vsel %vm252_vm0, %v6213_v24, 0.0 }
 0x590   : > { %v11934_v24 = vmax.f32 %v11933_v51, 0.0 }
 0x591   : > { %v6060_v45 = vadd.f32 %v11558_v27, %v6831_v62  ;;  %v6155_v32 = vadd.f32 %v11452_v52, %v6119_v56  ;;  %v6121_v57 = vmul.f32 %v11441_v44, %v6057_v48  ;;  %v11935_v56 = vld [vmem:[#allocation21_spill] sm:$0xff] }
 0x592   : > { %v6188_v54 = vadd.f32 %v6156_v31, %v11934_v24  ;;  %v11936_v48 = vmax.f32 %v11935_v56, 0.0  ;;  %v11944_v31 = vmax.f32 %v11943_v50, 0.0 }
 0x593   : > { %v6122_v10 = vmul.f32 %v11441_v44, %v6060_v45  ;;  %v6157_v29 = vadd.f32 %v11452_v52, %v6121_v57 }
 0x594   : > { %v6832_v3 = vpop.f32.mrf.mxu1 }
 0x595   : > { %v6158_v63 = vadd.f32 %v11452_v52, %v6122_v10  ;;  %v11942_v10 = vmax.f32 %v11941_v20, 0.0 }
 0x596   : > { %v6833_v21 = vpop.f32.mrf.mxu1 }
 0x597   : > { %v6834_v0 = vadd.f32 %v6833_v21, %v6832_v3  ;;  %v6215_v3 = vmax.f32 %v6183_v1, 0.0  ;;  %v11927_v21 = vld [vmem:[#allocation17_spill] sm:$0xff]  ;;  %v6190_v18 = vadd.f32 %v6158_v63, %v11938_v11 }
 0x598   : > { %v6835_v23 = vpop.f32.mrf.mxu1  ;;  %v11928_v34 = vmax.f32 %v11927_v21, 0.0 }
 0x599   : > { %v6065_v27 = vadd.f32 %v6834_v0, %v6064_v60  ;;  %v6262_v2 = vsel %vm252_vm0, %v6215_v3, 0.0  ;;  %v11931_v60 = vld [vmem:[#allocation19_spill] sm:$0xff]  ;;  %v6189_v0 = vadd.f32 %v6157_v29, %v11936_v48 }
 0x59a   : > { %v6836_v58 = vpop.f32.mrf.mxu1  ;;  %v6185_v19 = vadd.f32 %v6153_v13, %v11928_v34  ;;  %v11932_v22 = vmax.f32 %v11931_v60, 0.0  ;;  %v11939_v34 = vld [vmem:[#allocation23_spill] sm:$0xff] }
 0x59b   : > { %v6837_v53 = vadd.f32 %v6836_v58, %v6835_v23  ;;  %v6259_v23 = vadd.f32 %v6258_v25, %v6257_v33  ;;  %v6123_v62 = vmul.f32 %v11441_v44, %v6065_v27  ;;  %v6221_v21 = vmax.f32 %v6189_v0, 0.0 }
 0x59c   : > { %v6217_v9 = vmax.f32 %v6185_v19, 0.0  ;;  %v6187_v49 = vadd.f32 %v6155_v32, %v11932_v22  ;;  %v11940_v19 = vmax.f32 %v11939_v34, 0.0  ;;  %v6222_v27 = vmax.f32 %v6190_v18, 0.0 }
 0x59d   : > { %v6068_v12 = vadd.f32 %v6837_v53, %v6067_v8  ;;  %v6261_v16 = vadd.f32 %v6260_v59, %v6259_v23  ;;  %v6159_v30 = vadd.f32 %v11452_v52, %v6123_v62 }
 0x59e   : > { %v6266_v58 = vsel %vm252_vm0, %v6217_v9, 0.0  ;;  %v6219_v55 = vmax.f32 %v6187_v49, 0.0  ;;  %v6276_v22 = vsel %vm252_vm0, %v6222_v27, 0.0 }
 0x59f   : > { %v6263_v1 = vadd.f32 %v6262_v2, %v6261_v16  ;;  %v6274_v2 = vsel %vm252_vm0, %v6221_v21, 0.0 }
 0x5a0   : > { %v6838_v14 = vpop.f32.mrf.mxu1  ;;  %v6270_v3 = vsel %vm252_vm0, %v6219_v55, 0.0 }
 0x5a1   : > { %v6265_v37 = vadd.f32 %v6264_v15, %v6263_v1 }
 0x5a2   : > { %v6839_v28 = vpop.f32.mrf.mxu1 }
 0x5a3   : > { %v6840_v46 = vadd.f32 %v6839_v28, %v6838_v14  ;;  %v6080_v14 = vpop.f32.mrf.mxu0  ;;  %v6267_v53 = vadd.f32 %v6266_v58, %v6265_v37  ;;  %v6191_v28 = vadd.f32 %v6159_v30, %v11940_v19 }
 0x5a4   : > { %v6841_v4 = vpop.f32.mrf.mxu1 }
 0x5a5   : > { %v6073_v5 = vadd.f32 %v11583_v6, %v6840_v46  ;;  %v6124_v6 = vmul.f32 %v11441_v44, %v6068_v12  ;;  %v6269_v57 = vadd.f32 %v6268_v61, %v6267_v53  ;;  %v6981_v8 = vpop.f32.mrf.mxu0  ;;  %v6223_v9 = vmax.f32 %v6191_v28, 0.0  ;;  %v11949_v61 = vld [vmem:[#allocation28_spill] sm:$0xff]  ;;  %v11951_v28 = vld [vmem:[#allocation29_spill] sm:$0xff] }
 0x5a6   : > { %v6842_v41 = vpop.f32.mrf.mxu1 }
 0x5a7   : > { %v6843_v42 = vadd.f32 %v6842_v41, %v6841_v4  ;;  %v6125_v13 = vmul.f32 %v11441_v44, %v6073_v5  ;;  %v6160_v35 = vadd.f32 %v11452_v52, %v6124_v6  ;;  %v6271_v38 = vadd.f32 %v6270_v3, %v6269_v57  ;;  %v6083_v49 = vpop.f32.mrf.mxu0 }
 0x5a8   : > { %v6278_v6 = vsel %vm252_vm0, %v6223_v9, 0.0 }
 0x5a9   : > { %v6076_v39 = vadd.f32 %v6977_v7, %v6843_v42  ;;  %v6220_v7 = vmax.f32 %v6188_v54, 0.0  ;;  %v6161_v47 = vadd.f32 %v11452_v52, %v6125_v13  ;;  %v6192_v4 = vadd.f32 %v6160_v35, %v11942_v10  ;;  %v11945_v42 = vld [vmem:[#allocation26_spill] sm:$0xff] }
 0x5aa   : > { %v11946_v16 = vmax.f32 %v11945_v42, 0.0 }
 0x5ab   : > { %v6126_v17 = vmul.f32 %v11441_v44, %v6076_v39  ;;  %v6272_v33 = vsel %vm252_vm0, %v6220_v7, 0.0  ;;  %v6193_v12 = vadd.f32 %v6161_v47, %v11944_v31  ;;  %v6224_v62 = vmax.f32 %v6192_v4, 0.0  ;;  %v11947_v39 = vld [vmem:[#allocation27_spill] sm:$0xff] }
 0x5ac   : > { %v6844_v45 = vpop.f32.mrf.mxu1  ;;  %v6273_v60 = vadd.f32 %v6272_v33, %v6271_v38  ;;  %v11948_v1 = vmax.f32 %v11947_v39, 0.0  ;;  %v11950_v7 = vmax.f32 %v11949_v61, 0.0 }
 0x5ad   : > { %v6162_v59 = vadd.f32 %v11452_v52, %v6126_v17  ;;  %v6225_v24 = vmax.f32 %v6193_v12, 0.0  ;;  %v6280_v0 = vsel %vm252_vm0, %v6224_v62, 0.0 }
 0x5ae   : > { %v6845_v25 = vpop.f32.mrf.mxu1  ;;  %v6275_v51 = vadd.f32 %v6274_v2, %v6273_v60 }
 0x5af   : > { %v6846_v32 = vadd.f32 %v6845_v25, %v6844_v45  ;;  %v6194_v15 = vadd.f32 %v6162_v59, %v11946_v16  ;;  %v6282_v18 = vsel %vm252_vm0, %v6225_v24, 0.0 }
 0x5b0   : > { %v6847_v46 = vpop.f32.mrf.mxu1  ;;  %v6277_v56 = vadd.f32 %v6276_v22, %v6275_v51 }
 0x5b1   : > { %v6081_v43 = vadd.f32 %v6846_v32, %v6080_v14  ;;  %v6226_v30 = vmax.f32 %v6194_v15, 0.0  ;;  %v11952_v32 = vmax.f32 %v11951_v28, 0.0 }
 0x5b2   : > { %v6848_v23 = vpop.f32.mrf.mxu1  ;;  %v6279_v11 = vadd.f32 %v6278_v6, %v6277_v56 }
 0x5b3   : > { %v6127_v5 = vmul.f32 %v11441_v44, %v6081_v43  ;;  %v6849_v41 = vadd.f32 %v6848_v23, %v6847_v46  ;;  %v6284_v25 = vsel %vm252_vm0, %v6226_v30, 0.0 }
 0x5b4   : > { %v6850_v29 = vpop.f32.mrf.mxu1  ;;  %v6281_v47 = vadd.f32 %v6280_v0, %v6279_v11 }
 0x5b5   : > { %v6163_v63 = vadd.f32 %v11452_v52, %v6127_v5  ;;  %v6084_v36 = vadd.f32 %v6849_v41, %v6083_v49 }
 0x5b6   : > { %v6851_v54 = vpop.f32.mrf.mxu1  ;;  %v6283_v19 = vadd.f32 %v6282_v18, %v6281_v47 }
 0x5b7   : > { %v6195_v13 = vadd.f32 %v6163_v63, %v11948_v1  ;;  %v6128_v58 = vmul.f32 %v11441_v44, %v6084_v36  ;;  %v6852_v55 = vadd.f32 %v6851_v54, %v6850_v29 }
 0x5b8   : > { %v6853_v48 = vpop.f32.mrf.mxu1  ;;  %v6285_v46 = vadd.f32 %v6284_v25, %v6283_v19 }
 0x5b9   : > { %v6164_v37 = vadd.f32 %v11452_v52, %v6128_v58  ;;  %v6089_v40 = vadd.f32 %v6980_v26, %v6852_v55  ;;  %v6227_v14 = vmax.f32 %v6195_v13, 0.0 }
 0x5ba   : > { %v6854_v45 = vpop.f32.mrf.mxu1 }
 0x5bb   : > { %v6196_v35 = vadd.f32 %v6164_v37, %v11950_v7  ;;  %v6129_v17 = vmul.f32 %v11441_v44, %v6089_v40  ;;  %v6855_v53 = vadd.f32 %v6854_v45, %v6853_v48  ;;  %v6286_v26 = vsel %vm252_vm0, %v6227_v14, 0.0 }
 0x5bc   : > { %v6287_v4 = vadd.f32 %v6286_v26, %v6285_v46 }
 0x5bd   : > { %v6228_v3 = vmax.f32 %v6196_v35, 0.0  ;;  %v6165_v21 = vadd.f32 %v11452_v52, %v6129_v17  ;;  %v6092_v34 = vadd.f32 %v6981_v8, %v6855_v53  ;;  %v11953_v8 = vld [vmem:[#allocation30_spill] sm:$0xff] }
 0x5be   : > { %v11954_v43 = vmax.f32 %v11953_v8, 0.0 }
 0x5bf   : > { %v6197_v57 = vadd.f32 %v6165_v21, %v11952_v32  ;;  %v6130_v27 = vmul.f32 %v11441_v44, %v6092_v34  ;;  %v6288_v33 = vsel %vm252_vm0, %v6228_v3, 0.0 }
 0x5c0   : > { %v6289_v50 = vadd.f32 %v6288_v33, %v6287_v4 }
 0x5c1   : > { %v6229_v20 = vmax.f32 %v6197_v57, 0.0  ;;  %v6166_v10 = vadd.f32 %v11452_v52, %v6130_v27 }
 0x5c3   : > { %v6290_v59 = vsel %vm252_vm0, %v6229_v20, 0.0  ;;  %v6198_v38 = vadd.f32 %v6166_v10, %v11954_v43 }
 0x5c4   : > { %v6291_v12 = vadd.f32 %v6290_v59, %v6289_v50 }
 0x5c5   : > { %v6230_v31 = vmax.f32 %v6198_v38, 0.0 }
 0x5c7   : > { %v6292_v23 = vsel %vm252_vm0, %v6230_v31, 0.0 }
 0x5c8   : > { %v6293_v2 = vadd.f32 %v6292_v23, %v6291_v12 }
 0x5ca   : > { %v6294_v44 = vrot.slane %v6293_v2, 4 }
 0x5cc   : > { %v6295_v9 = vadd.f32 %v6294_v44, %v6293_v2 }
 0x5ce   : > { %v6296_v5 = vrot.slane %v6295_v9, 2 }
 0x5d0   : > { %v6297_v41 = vadd.f32 %v6296_v5, %v6295_v9 }
 0x5d2   : > { %v6298_v60 = vrot.slane %v6297_v41, 1 }
 0x5d4   : > { %v6299_v52 = vadd.f32 %v6298_v60, %v6297_v41 }
 0x5d6   : > { %v6301_v22 = vmul.f32 0.00390625, %v6299_v52 }
 0x5d8   : > { %6303 = vst.msk [vmem:[%s243_s13] sm:$0x1] %vm6302_vm3, %v6301_v22 }
 0x5d9   : > { %8569 = shalt.err (!%p8566_p3)
}
 0x5da   : > { %s8570_s18 = scalar_lea.hbm %s6315_s20, 16  ;;  %s8574_s15 = scalar_lea.hbm %s11728_s6, 32 }
 0x5db   : > { %p8571_p4 = scmp.ne.s32.totalorder %s6315_s20, %s8570_s18  ;;  %p8575_p9 = scmp.lt.s32.totalorder %s6315_s20, %s11728_s6 }
 0x5dc   : > { %p8576_p10 = scmp.lt.s32.totalorder %s8574_s15, %s8570_s18 }
 0x5dd   : > { %p8572_p7 = pnand %p8571_p4, %p8696_p5 }
 0x5de   : > { %p8577_p11 = por %p8576_p10, %p8575_p9 }
 0x5df   : > { %p8573_p8 = pneg %p8572_p7 }
 0x5e1   : > { %p8578_p12 = pnand %p8577_p11, %p8573_p8 }
 0x5e3   : > { %8581 = shalt.err (!%p8578_p12)
}
 0x5e4   : > { %6986 = dma.vmem_to_hbm [thread:$0]  (%p8696_p5), %s6318_s14, 16, %s6315_s20, %s6305_s26  }
 0x5e5 PF: > { %p6992_p13 = scmp.ge.s32.totalorder %s8616_s24, 2  ;;  %s6329_s13 = sand.u32 1, %s8604_s21  }
 0x5e6   : > { %s6330_s17 = scalar_lea.sflag [#allocation4], %s6329_s13 }
 0x5e7   : > { %p6989_p0 = pnand %p6992_p13, %p8700_p6 }
 0x5e9   : > { %p6990_p1 = pneg %p6989_p0 }
 0x5eb   : > { %8599 = dma.done.wait (%p6990_p1), %s6330_s17, 16  }
 0x5ec   : > { %8601 = vsyncadd (%p6990_p1), %s6330_s17, 4294967280  ;;  %p16_p2 = scmp.ge.s32.totalorder %s8683_s27, 4   ;;  %s11955_s21 = smov %s8608_s22 }
 0x5ed   : > { %s11956_s22 = smov %s8612_s23  ;;  %s11957_s23 = smov %s8694_s30 }
 0x5ee   : > { %s11958_s24 = smov %s8683_s27  ;;  %18 = sbr.rel (!%p16_p2) target bundleno = 3 (0x3), region = 81 }
 0x5f3   :  { %6334 = vsyncpa [#allocation4], 1 }
 0x5f4   :  { %6336 = vsyncpa [#allocation4 + $0x1], 1 }

</bundles_post_ra>
